<compile_context>
chip_gen: v6e
topology: v6e:2x2x1
jax: 0.10.0
libtpu: 0.0.40
codegen_flags: <defaults>
</compile_context>

<pallas_src>
import functools

import jax
import jax.numpy as jnp
from jax.experimental import pallas as pl
from jax.experimental.pallas import tpu as pltpu


def _fused_sr_kernel(xcol_ref, w1_ref, b1_ref, w2_ref, b2_ref, w3_ref, b3_ref,
                     o_ref, f1_ref, f2_ref, p_ref, *, H, W, WP):
    """One batch image per grid step; all intermediate activations stay in VMEM.

    xcol_ref : (H*WP, 25*Cin) bf16  conv1 im2col slab (pad columns w>=W are zero)
    w1_ref   : (25*Cin, 64)   bf16  K-stacked conv1 weights (tap-major, cin-minor)
    w2_ref   : (576, 64)      bf16  K-stacked conv2 weights
    w3_ref   : (576, C3)      bf16  K-stacked conv3 weights
    b*_ref   : (1, Cout)      f32
    o_ref    : (H*WP, C3)     f32   conv3 output slab (pad cols garbage; wrapper slices)
    f1_ref/f2_ref : ((H+3)*WP, 64) bf16  zero-halo activation frames
    p_ref    : (H*WP, 576)    bf16  reusable 9-tap patch slab for conv2/conv3
    """
    HW = H * WP
    C1 = 64
    base = WP + 1        # flat frame index of image pixel (0, 0)

    # Validity mask in slab coordinates: slab row q -> (h, w) = (q // WP, q % WP);
    # only w < W is a real output column.  Garbage columns must be zeroed before they
    # land in the next frame's zero halo.
    col = jax.lax.broadcasted_iota(jnp.int32, (HW, 1), 0) % WP
    valid = col < W

    # Frames must be exactly zero in the halo region.
    f1_ref[...] = jnp.zeros_like(f1_ref)
    f2_ref[...] = jnp.zeros_like(f2_ref)

    def load_tap(frame_ref, k):
        off = (k // 3) * WP + (k % 3)             # contiguous flat-row tap offset
        return frame_ref[off:off + HW, :]          # (HW, 64), no reshape/relayout

    def build_patch_slab(frame_ref):
        # Write taps in concatenated pairs so every lane store offset is 128-aligned.
        for k in range(0, 8, 2):
            pair = jnp.concatenate([load_tap(frame_ref, k),
                                    load_tap(frame_ref, k + 1)], axis=-1)   # (HW, 128)
            p_ref[:, k * C1:(k + 2) * C1] = pair
        p_ref[:, 8 * C1:9 * C1] = load_tap(frame_ref, 8)   # offset 512: aligned

    # ---------------- conv1: 5x5, Cin -> 64, ReLU (one K=75 matmul) ----------------
    y = jnp.dot(xcol_ref[...], w1_ref[...], preferred_element_type=jnp.float32)
    y = jnp.maximum(y + b1_ref[...], 0.0)
    y = jnp.where(valid, y, 0.0)
    f1_ref[base:base + HW, :] = y.astype(f1_ref.dtype)

    # ---------------- conv2: 3x3, 64 -> 64, ReLU (one K=576 matmul) ----------------
    build_patch_slab(f1_ref)
    y = jnp.dot(p_ref[...], w2_ref[...], preferred_element_type=jnp.float32)
    y = jnp.maximum(y + b2_ref[...], 0.0)
    y = jnp.where(valid, y, 0.0)
    f2_ref[base:base + HW, :] = y.astype(f2_ref.dtype)

    # ---------------- conv3: 3x3, 64 -> C3, no ReLU (one K=576 matmul, one store) ----
    build_patch_slab(f2_ref)
    y = jnp.dot(p_ref[...], w3_ref[...], preferred_element_type=jnp.float32)
    o_ref[...] = (y + b3_ref[...]).astype(o_ref.dtype)


def _vmem_limit_bytes():
    cap = 64 * 1024 * 1024
    try:
        cap = int(pltpu.get_tpu_info().vmem_capacity_bytes)
    except Exception:
        pass
    # ~48 MiB on v7x (64 MiB physical), ~96 MiB on v5e/v6e (128 MiB physical).
    return int(min(cap * 3 // 4, 100 * 1024 * 1024))


def _fused_forward_nhwc(x_nhwc, params):
    """Fused conv1/conv2/conv3. Returns (N, H, W, C3) f32 (pre pixel-shuffle)."""
    N, H, W, Cin = x_nhwc.shape
    C1 = params["w1"].shape[-1]          # 64
    C2 = params["w2"].shape[-1]          # 64
    C3 = params["w3"].shape[-1]          # num_channels * r^2 (12)
    assert C1 == 64 and C2 == 64
    WP = W + 2                           # slab/frame padded width (the scheme requires W+2)
    HW = H * WP
    FRAME = (H + 3) * WP                 # +1 extra zero row so tap slices never run off
    K1 = 25 * Cin
    K2 = 9 * C1

    # ---- host/XLA-side prep (tiny tensors) ----
    # conv1 im2col slab, tap-major / channel-minor; zero-padded from W to WP columns so
    # slab rows line up with the conv2/conv3 frame coordinates inside the kernel.
    xb = x_nhwc.astype(jnp.bfloat16)
    xp = jnp.pad(xb, ((0, 0), (2, 2), (2, 2), (0, 0)))                   # (N, H+4, W+4, Cin)
    cols = [xp[:, ky:ky + H, kx:kx + W, :] for ky in range(5) for kx in range(5)]
    xcol = jnp.concatenate(cols, axis=-1)                                # (N, H, W, 25*Cin)
    xcol = jnp.pad(xcol, ((0, 0), (0, 0), (0, WP - W), (0, 0)))          # (N, H, WP, 25*Cin)
    xcol = xcol.reshape(N, HW, K1)

    # K-stacked weights (tap-major, cin-minor) -- matches the slab column ordering.
    w1 = params["w1"].astype(jnp.bfloat16).reshape(K1, C1)
    w2 = params["w2"].astype(jnp.bfloat16).reshape(K2, C2)
    w3 = params["w3"].astype(jnp.bfloat16).reshape(K2, C3)
    b1 = params["b1"].astype(jnp.float32).reshape(1, C1)
    b2 = params["b2"].astype(jnp.float32).reshape(1, C2)
    b3 = params["b3"].astype(jnp.float32).reshape(1, C3)

    kernel = functools.partial(_fused_sr_kernel, H=H, W=W, WP=WP)

    out = pl.pallas_call(
        kernel,
        out_shape=jax.ShapeDtypeStruct((N, HW, C3), jnp.float32),
        grid_spec=pltpu.PrefetchScalarGridSpec(
            num_scalar_prefetch=0,
            grid=(N,),
            in_specs=[
                pl.BlockSpec((None, HW, K1), lambda n: (n, 0, 0)),   # conv1 im2col slab
                pl.BlockSpec((K1, C1), lambda n: (0, 0)),            # w1 stacked
                pl.BlockSpec((1, C1), lambda n: (0, 0)),             # b1
                pl.BlockSpec((K2, C2), lambda n: (0, 0)),            # w2 stacked
                pl.BlockSpec((1, C2), lambda n: (0, 0)),             # b2
                pl.BlockSpec((K2, C3), lambda n: (0, 0)),            # w3 stacked
                pl.BlockSpec((1, C3), lambda n: (0, 0)),             # b3
            ],
            out_specs=pl.BlockSpec((None, HW, C3), lambda n: (n, 0, 0)),
            scratch_shapes=[
                pltpu.VMEM((FRAME, C1), jnp.bfloat16),    # a1 frame (zero halo)
                pltpu.VMEM((FRAME, C2), jnp.bfloat16),    # a2 frame (zero halo)
                pltpu.VMEM((HW, K2), jnp.bfloat16),       # shared 9-tap patch slab
            ],
        ),
        compiler_params=pltpu.CompilerParams(
            dimension_semantics=("parallel",),            # batch across cores (v7x 2 TCs)
            vmem_limit_bytes=_vmem_limit_bytes(),
        ),
    )(xcol, w1, b1, w2, b2, w3, b3)

    # Drop the pad columns (cheap XLA slice).  NOTE: the raw pallas output contains
    # garbage in those pad columns; only this sliced result is valid.
    y = out.reshape(N, H, WP, C3)[:, :, :W, :]
    return y


@functools.partial(jax.jit, static_argnums=(2,))
def super_resolution_forward(x_nchw, params, upscale_factor=2):
    # NCHW -> NHWC
    x = jnp.transpose(x_nchw, (0, 2, 3, 1))
    y = _fused_forward_nhwc(x, params)                 # (N, H, W, C*r*r) f32

    # PixelShuffle (PyTorch channel order c*r*r + i*r + j), kept as cheap XLA glue.
    r = upscale_factor
    N, H, W, Crr = y.shape
    C = Crr // (r * r)
    y = y.reshape(N, H, W, C, r, r)
    y = jnp.transpose(y, (0, 1, 4, 2, 5, 3)).reshape(N, H * r, W * r, C)
    # NHWC -> NCHW (PyTorch output convention)
    return jnp.transpose(y, (0, 3, 1, 2))


def init_params(key, num_channels=3, upscale_factor=2):
    ks = jax.random.split(key, 6)
    def conv_w(k, kh, kw, cin, cout):
        scale = 1.0 / jnp.sqrt(kh * kw * cin)
        return jax.random.uniform(k, (kh, kw, cin, cout), jnp.float32, -scale, scale)
    def conv_b(k, fan_in, cout):
        scale = 1.0 / jnp.sqrt(fan_in)
        return jax.random.uniform(k, (cout,), jnp.float32, -scale, scale)
    c_out3 = num_channels * upscale_factor ** 2
    return {
        "w1": conv_w(ks[0], 5, 5, num_channels, 64), "b1": conv_b(ks[1], 5 * 5 * num_channels, 64),
        "w2": conv_w(ks[2], 3, 3, 64, 64),           "b2": conv_b(ks[3], 3 * 3 * 64, 64),
        "w3": conv_w(ks[4], 3, 3, 64, c_out3),       "b3": conv_b(ks[5], 3 * 3 * 64, c_out3),
    }


def _reference_forward(x_nchw, params, upscale_factor=2):
    """Pure-JAX f32 reference (lax.conv) for correctness checking."""
    def conv(x, w, b, pad):
        w_oihw = jnp.transpose(w, (3, 2, 0, 1))
        y = jax.lax.conv_general_dilated(
            x, w_oihw, window_strides=(1, 1), padding=[(pad, pad), (pad, pad)],
            dimension_numbers=("NCHW", "OIHW", "NCHW"))
        return y + b[None, :, None, None]
    x = jnp.maximum(conv(x_nchw, params["w1"], params["b1"], 2), 0.0)
    x = jnp.maximum(conv(x, params["w2"], params["b2"], 1), 0.0)
    x = conv(x, params["w3"], params["b3"], 1)
    N, Crr, H, W = x.shape
    r = upscale_factor
    C = Crr // (r * r)
    x = x.reshape(N, C, r, r, H, W)
    return jnp.transpose(x, (0, 1, 4, 2, 5, 3)).reshape(N, C, H * r, W * r)


if __name__ == "__main__":
    key = jax.random.PRNGKey(0)
    k_params, k_x = jax.random.split(key)

    num_channels, upscale = 3, 2
    params = init_params(k_params, num_channels=num_channels, upscale_factor=upscale)

    # Small NCHW input, PyTorch convention.
    x = jax.random.normal(k_x, (2, num_channels, 16, 16), dtype=jnp.float32)

    out = jax.block_until_ready(super_resolution_forward(x, params, upscale))
    assert out.shape == (2, num_channels, 16 * upscale, 16 * upscale), out.shape

    ref = _reference_forward(x, params, upscale)
    max_err = float(jnp.max(jnp.abs(out - ref)))
    # bf16 MXU operands with f32 accumulation -> small numerical difference vs f32 reference.
    assert jnp.allclose(out, ref, atol=3e-2, rtol=3e-2), max_err

    print("KERNEL_OK")
</pallas_src>

<mosaic_0001>
module attributes {stable_mosaic.version = 11 : i64} {
  func.func @_fused_sr_kernel(%arg0: i32, %arg1: memref<1x288x75xbf16, #tpu.memory_space<vmem>>, %arg2: memref<75x64xbf16, #tpu.memory_space<vmem>>, %arg3: memref<1x64xf32, #tpu.memory_space<vmem>>, %arg4: memref<576x64xbf16, #tpu.memory_space<vmem>>, %arg5: memref<1x64xf32, #tpu.memory_space<vmem>>, %arg6: memref<576x12xbf16, #tpu.memory_space<vmem>>, %arg7: memref<1x12xf32, #tpu.memory_space<vmem>>, %arg8: memref<1x288x12xf32, #tpu.memory_space<vmem>>, %arg9: memref<342x64xbf16, #tpu.memory_space<vmem>>, %arg10: memref<342x64xbf16, #tpu.memory_space<vmem>>, %arg11: memref<288x576xbf16, #tpu.memory_space<vmem>>) attributes {dimension_semantics = [#tpu.dimension_semantics<parallel>], iteration_bounds = array<i64: 2>, scalar_prefetch = 0 : i64, scratch_operands = 3 : i64, tpu.core_type = #tpu.core_type<tc>, window_params = [{transform_indices = @transform_0, window_bounds = array<i64: 1, 288, 75>}, {pipeline_mode = #tpu.pipeline_mode<synchronous>, transform_indices = @transform_1, window_bounds = array<i64: 75, 64>}, {pipeline_mode = #tpu.pipeline_mode<synchronous>, transform_indices = @transform_2, window_bounds = array<i64: 1, 64>}, {pipeline_mode = #tpu.pipeline_mode<synchronous>, transform_indices = @transform_3, window_bounds = array<i64: 576, 64>}, {pipeline_mode = #tpu.pipeline_mode<synchronous>, transform_indices = @transform_4, window_bounds = array<i64: 1, 64>}, {pipeline_mode = #tpu.pipeline_mode<synchronous>, transform_indices = @transform_5, window_bounds = array<i64: 576, 12>}, {pipeline_mode = #tpu.pipeline_mode<synchronous>, transform_indices = @transform_6, window_bounds = array<i64: 1, 12>}, {transform_indices = @transform_7, window_bounds = array<i64: 1, 288, 12>}]} {
    %0 = tpu.iota {dimensions = array<i32: 0>} : vector<288x1xi32>
    %c18_i32 = arith.constant 18 : i32
    %c0_i32 = arith.constant 0 : i32
    %1 = arith.cmpi eq, %c18_i32, %c0_i32 : i32
    %c1_i32 = arith.constant 1 : i32
    %2 = arith.select %1, %c1_i32, %c18_i32 : i32
    %3 = vector.broadcast %2 : i32 to vector<288x1xi32>
    %4 = arith.remsi %0, %3 : vector<288x1xi32>
    %c0_i32_0 = arith.constant 0 : i32
    %5 = vector.broadcast %c0_i32_0 : i32 to vector<288x1xi32>
    %6 = arith.cmpi ne, %4, %5 : vector<288x1xi32>
    %c0_i32_1 = arith.constant 0 : i32
    %7 = vector.broadcast %c0_i32_1 : i32 to vector<288x1xi32>
    %8 = arith.cmpi slt, %4, %7 : vector<288x1xi32>
    %c0_i32_2 = arith.constant 0 : i32
    %9 = arith.cmpi slt, %2, %c0_i32_2 : i32
    %10 = vector.broadcast %9 : i1 to vector<288x1xi1>
    %11 = vector.broadcast %10 : vector<288x1xi1> to vector<288x1xi1>
    %12 = arith.xori %8, %11 : vector<288x1xi1>
    %13 = arith.andi %12, %6 : vector<288x1xi1>
    %14 = vector.broadcast %2 : i32 to vector<288x1xi32>
    %15 = arith.addi %4, %14 : vector<288x1xi32>
    %16 = arith.select %13, %15, %4 : vector<288x1xi1>, vector<288x1xi32>
    %c16_i32 = arith.constant 16 : i32
    %17 = vector.broadcast %c16_i32 : i32 to vector<288x1xi32>
    %18 = arith.cmpi slt, %16, %17 : vector<288x1xi32>
    %cst = arith.constant 0.000000e+00 : bf16
    %19 = vector.broadcast %cst : bf16 to vector<342x64xbf16>
    %c0 = arith.constant 0 : index
    %c0_3 = arith.constant 0 : index
    %20 = vector.load %arg9[%c0, %c0_3] : memref<342x64xbf16, #tpu.memory_space<vmem>>, vector<342x64xbf16>
    tpu.vector_store %arg9[%c0, %c0_3], %19 {strides = array<i32>} : memref<342x64xbf16, #tpu.memory_space<vmem>>, vector<342x64xbf16>,
    %cst_4 = arith.constant 0.000000e+00 : bf16
    %21 = vector.broadcast %cst_4 : bf16 to vector<342x64xbf16>
    %c0_5 = arith.constant 0 : index
    %c0_6 = arith.constant 0 : index
    %22 = vector.load %arg10[%c0_5, %c0_6] : memref<342x64xbf16, #tpu.memory_space<vmem>>, vector<342x64xbf16>
    tpu.vector_store %arg10[%c0_5, %c0_6], %21 {strides = array<i32>} : memref<342x64xbf16, #tpu.memory_space<vmem>>, vector<342x64xbf16>,
    %c0_7 = arith.constant 0 : index
    %c0_8 = arith.constant 0 : index
    %c0_9 = arith.constant 0 : index
    %23 = vector.load %arg1[%c0_7, %c0_8, %c0_9] : memref<1x288x75xbf16, #tpu.memory_space<vmem>>, vector<1x288x75xbf16>
    %24 = vector.shape_cast %23 : vector<1x288x75xbf16> to vector<288x75xbf16>
    %c0_10 = arith.constant 0 : index
    %c0_11 = arith.constant 0 : index
    %25 = vector.load %arg2[%c0_10, %c0_11] : memref<75x64xbf16, #tpu.memory_space<vmem>>, vector<75x64xbf16>
    %cst_12 = arith.constant dense<0.000000e+00> : vector<288x64xf32>
    %26 = tpu.matmul %24, %25, %cst_12 {dimension_numbers = #tpu.dot_dimension_numbers<[1], [0], [0], [1], [0, 0, 1, 1], [], []>} : vector<288x75xbf16>, vector<75x64xbf16>, vector<288x64xf32> -> vector<288x64xf32>
    %c0_13 = arith.constant 0 : index
    %c0_14 = arith.constant 0 : index
    %27 = vector.load %arg3[%c0_13, %c0_14] : memref<1x64xf32, #tpu.memory_space<vmem>>, vector<1x64xf32>
    %28 = vector.broadcast %27 : vector<1x64xf32> to vector<288x64xf32>
    %29 = arith.addf %26, %28 : vector<288x64xf32>
    %cst_15 = arith.constant 0.000000e+00 : f32
    %30 = vector.broadcast %cst_15 : f32 to vector<288x64xf32>
    %31 = arith.maximumf %29, %30 : vector<288x64xf32>
    %cst_16 = arith.constant 0.000000e+00 : f32
    %32 = vector.shape_cast %18 : vector<288x1xi1> to vector<288x1xi1>
    %33 = vector.broadcast %32 : vector<288x1xi1> to vector<288x64xi1>
    %34 = vector.broadcast %cst_16 : f32 to vector<288x64xf32>
    %35 = arith.select %33, %31, %34 : vector<288x64xi1>, vector<288x64xf32>
    %36 = arith.truncf %35 : vector<288x64xf32> to vector<288x64xbf16>
    %c19 = arith.constant 19 : index
    %c0_17 = arith.constant 0 : index
    %37 = vector.load %arg9[%c19, %c0_17] : memref<342x64xbf16, #tpu.memory_space<vmem>>, vector<288x64xbf16>
    tpu.vector_store %arg9[%c19, %c0_17], %36 {strides = array<i32>} : memref<342x64xbf16, #tpu.memory_space<vmem>>, vector<288x64xbf16>,
    %c0_18 = arith.constant 0 : index
    %c0_19 = arith.constant 0 : index
    %38 = vector.load %arg9[%c0_18, %c0_19] : memref<342x64xbf16, #tpu.memory_space<vmem>>, vector<288x64xbf16>
    %c1 = arith.constant 1 : index
    %c0_20 = arith.constant 0 : index
    %39 = vector.load %arg9[%c1, %c0_20] : memref<342x64xbf16, #tpu.memory_space<vmem>>, vector<288x64xbf16>
    %40 = tpu.concatenate %38, %39 in 1 : vector<288x64xbf16>, vector<288x64xbf16> -> vector<288x128xbf16>
    %c0_21 = arith.constant 0 : index
    %c0_22 = arith.constant 0 : index
    %41 = vector.load %arg11[%c0_21, %c0_22] : memref<288x576xbf16, #tpu.memory_space<vmem>>, vector<288x128xbf16>
    tpu.vector_store %arg11[%c0_21, %c0_22], %40 {strides = array<i32>} : memref<288x576xbf16, #tpu.memory_space<vmem>>, vector<288x128xbf16>,
    %c2 = arith.constant 2 : index
    %c0_23 = arith.constant 0 : index
    %42 = vector.load %arg9[%c2, %c0_23] : memref<342x64xbf16, #tpu.memory_space<vmem>>, vector<288x64xbf16>
    %c18 = arith.constant 18 : index
    %c0_24 = arith.constant 0 : index
    %43 = vector.load %arg9[%c18, %c0_24] : memref<342x64xbf16, #tpu.memory_space<vmem>>, vector<288x64xbf16>
    %44 = tpu.concatenate %42, %43 in 1 : vector<288x64xbf16>, vector<288x64xbf16> -> vector<288x128xbf16>
    %c0_25 = arith.constant 0 : index
    %c128 = arith.constant 128 : index
    %45 = vector.load %arg11[%c0_25, %c128] : memref<288x576xbf16, #tpu.memory_space<vmem>>, vector<288x128xbf16>
    tpu.vector_store %arg11[%c0_25, %c128], %44 {strides = array<i32>} : memref<288x576xbf16, #tpu.memory_space<vmem>>, vector<288x128xbf16>,
    %c19_26 = arith.constant 19 : index
    %c0_27 = arith.constant 0 : index
    %46 = vector.load %arg9[%c19_26, %c0_27] : memref<342x64xbf16, #tpu.memory_space<vmem>>, vector<288x64xbf16>
    %c20 = arith.constant 20 : index
    %c0_28 = arith.constant 0 : index
    %47 = vector.load %arg9[%c20, %c0_28] : memref<342x64xbf16, #tpu.memory_space<vmem>>, vector<288x64xbf16>
    %48 = tpu.concatenate %46, %47 in 1 : vector<288x64xbf16>, vector<288x64xbf16> -> vector<288x128xbf16>
    %c0_29 = arith.constant 0 : index
    %c256 = arith.constant 256 : index
    %49 = vector.load %arg11[%c0_29, %c256] : memref<288x576xbf16, #tpu.memory_space<vmem>>, vector<288x128xbf16>
    tpu.vector_store %arg11[%c0_29, %c256], %48 {strides = array<i32>} : memref<288x576xbf16, #tpu.memory_space<vmem>>, vector<288x128xbf16>,
    %c36 = arith.constant 36 : index
    %c0_30 = arith.constant 0 : index
    %50 = vector.load %arg9[%c36, %c0_30] : memref<342x64xbf16, #tpu.memory_space<vmem>>, vector<288x64xbf16>
    %c37 = arith.constant 37 : index
    %c0_31 = arith.constant 0 : index
    %51 = vector.load %arg9[%c37, %c0_31] : memref<342x64xbf16, #tpu.memory_space<vmem>>, vector<288x64xbf16>
    %52 = tpu.concatenate %50, %51 in 1 : vector<288x64xbf16>, vector<288x64xbf16> -> vector<288x128xbf16>
    %c0_32 = arith.constant 0 : index
    %c384 = arith.constant 384 : index
    %53 = vector.load %arg11[%c0_32, %c384] : memref<288x576xbf16, #tpu.memory_space<vmem>>, vector<288x128xbf16>
    tpu.vector_store %arg11[%c0_32, %c384], %52 {strides = array<i32>} : memref<288x576xbf16, #tpu.memory_space<vmem>>, vector<288x128xbf16>,
    %c38 = arith.constant 38 : index
    %c0_33 = arith.constant 0 : index
    %54 = vector.load %arg9[%c38, %c0_33] : memref<342x64xbf16, #tpu.memory_space<vmem>>, vector<288x64xbf16>
    %c0_34 = arith.constant 0 : index
    %c512 = arith.constant 512 : index
    %55 = vector.load %arg11[%c0_34, %c512] : memref<288x576xbf16, #tpu.memory_space<vmem>>, vector<288x64xbf16>
    tpu.vector_store %arg11[%c0_34, %c512], %54 {strides = array<i32>} : memref<288x576xbf16, #tpu.memory_space<vmem>>, vector<288x64xbf16>,
    %c0_35 = arith.constant 0 : index
    %c0_36 = arith.constant 0 : index
    %56 = vector.load %arg11[%c0_35, %c0_36] : memref<288x576xbf16, #tpu.memory_space<vmem>>, vector<288x576xbf16>
    %c0_37 = arith.constant 0 : index
    %c0_38 = arith.constant 0 : index
    %57 = vector.load %arg4[%c0_37, %c0_38] : memref<576x64xbf16, #tpu.memory_space<vmem>>, vector<576x64xbf16>
    %cst_39 = arith.constant dense<0.000000e+00> : vector<288x64xf32>
    %58 = tpu.matmul %56, %57, %cst_39 {dimension_numbers = #tpu.dot_dimension_numbers<[1], [0], [0], [1], [0, 0, 1, 1], [], []>} : vector<288x576xbf16>, vector<576x64xbf16>, vector<288x64xf32> -> vector<288x64xf32>
    %c0_40 = arith.constant 0 : index
    %c0_41 = arith.constant 0 : index
    %59 = vector.load %arg5[%c0_40, %c0_41] : memref<1x64xf32, #tpu.memory_space<vmem>>, vector<1x64xf32>
    %60 = vector.broadcast %59 : vector<1x64xf32> to vector<288x64xf32>
    %61 = arith.addf %58, %60 : vector<288x64xf32>
    %cst_42 = arith.constant 0.000000e+00 : f32
    %62 = vector.broadcast %cst_42 : f32 to vector<288x64xf32>
    %63 = arith.maximumf %61, %62 : vector<288x64xf32>
    %cst_43 = arith.constant 0.000000e+00 : f32
    %64 = vector.shape_cast %18 : vector<288x1xi1> to vector<288x1xi1>
    %65 = vector.broadcast %64 : vector<288x1xi1> to vector<288x64xi1>
    %66 = vector.broadcast %cst_43 : f32 to vector<288x64xf32>
    %67 = arith.select %65, %63, %66 : vector<288x64xi1>, vector<288x64xf32>
    %68 = arith.truncf %67 : vector<288x64xf32> to vector<288x64xbf16>
    %c19_44 = arith.constant 19 : index
    %c0_45 = arith.constant 0 : index
    %69 = vector.load %arg10[%c19_44, %c0_45] : memref<342x64xbf16, #tpu.memory_space<vmem>>, vector<288x64xbf16>
    tpu.vector_store %arg10[%c19_44, %c0_45], %68 {strides = array<i32>} : memref<342x64xbf16, #tpu.memory_space<vmem>>, vector<288x64xbf16>,
    %c0_46 = arith.constant 0 : index
    %c0_47 = arith.constant 0 : index
    %70 = vector.load %arg10[%c0_46, %c0_47] : memref<342x64xbf16, #tpu.memory_space<vmem>>, vector<288x64xbf16>
    %c1_48 = arith.constant 1 : index
    %c0_49 = arith.constant 0 : index
    %71 = vector.load %arg10[%c1_48, %c0_49] : memref<342x64xbf16, #tpu.memory_space<vmem>>, vector<288x64xbf16>
    %72 = tpu.concatenate %70, %71 in 1 : vector<288x64xbf16>, vector<288x64xbf16> -> vector<288x128xbf16>
    %c0_50 = arith.constant 0 : index
    %c0_51 = arith.constant 0 : index
    %73 = vector.load %arg11[%c0_50, %c0_51] : memref<288x576xbf16, #tpu.memory_space<vmem>>, vector<288x128xbf16>
    tpu.vector_store %arg11[%c0_50, %c0_51], %72 {strides = array<i32>} : memref<288x576xbf16, #tpu.memory_space<vmem>>, vector<288x128xbf16>,
    %c2_52 = arith.constant 2 : index
    %c0_53 = arith.constant 0 : index
    %74 = vector.load %arg10[%c2_52, %c0_53] : memref<342x64xbf16, #tpu.memory_space<vmem>>, vector<288x64xbf16>
    %c18_54 = arith.constant 18 : index
    %c0_55 = arith.constant 0 : index
    %75 = vector.load %arg10[%c18_54, %c0_55] : memref<342x64xbf16, #tpu.memory_space<vmem>>, vector<288x64xbf16>
    %76 = tpu.concatenate %74, %75 in 1 : vector<288x64xbf16>, vector<288x64xbf16> -> vector<288x128xbf16>
    %c0_56 = arith.constant 0 : index
    %c128_57 = arith.constant 128 : index
    %77 = vector.load %arg11[%c0_56, %c128_57] : memref<288x576xbf16, #tpu.memory_space<vmem>>, vector<288x128xbf16>
    tpu.vector_store %arg11[%c0_56, %c128_57], %76 {strides = array<i32>} : memref<288x576xbf16, #tpu.memory_space<vmem>>, vector<288x128xbf16>,
    %c19_58 = arith.constant 19 : index
    %c0_59 = arith.constant 0 : index
    %78 = vector.load %arg10[%c19_58, %c0_59] : memref<342x64xbf16, #tpu.memory_space<vmem>>, vector<288x64xbf16>
    %c20_60 = arith.constant 20 : index
    %c0_61 = arith.constant 0 : index
    %79 = vector.load %arg10[%c20_60, %c0_61] : memref<342x64xbf16, #tpu.memory_space<vmem>>, vector<288x64xbf16>
    %80 = tpu.concatenate %78, %79 in 1 : vector<288x64xbf16>, vector<288x64xbf16> -> vector<288x128xbf16>
    %c0_62 = arith.constant 0 : index
    %c256_63 = arith.constant 256 : index
    %81 = vector.load %arg11[%c0_62, %c256_63] : memref<288x576xbf16, #tpu.memory_space<vmem>>, vector<288x128xbf16>
    tpu.vector_store %arg11[%c0_62, %c256_63], %80 {strides = array<i32>} : memref<288x576xbf16, #tpu.memory_space<vmem>>, vector<288x128xbf16>,
    %c36_64 = arith.constant 36 : index
    %c0_65 = arith.constant 0 : index
    %82 = vector.load %arg10[%c36_64, %c0_65] : memref<342x64xbf16, #tpu.memory_space<vmem>>, vector<288x64xbf16>
    %c37_66 = arith.constant 37 : index
    %c0_67 = arith.constant 0 : index
    %83 = vector.load %arg10[%c37_66, %c0_67] : memref<342x64xbf16, #tpu.memory_space<vmem>>, vector<288x64xbf16>
    %84 = tpu.concatenate %82, %83 in 1 : vector<288x64xbf16>, vector<288x64xbf16> -> vector<288x128xbf16>
    %c0_68 = arith.constant 0 : index
    %c384_69 = arith.constant 384 : index
    %85 = vector.load %arg11[%c0_68, %c384_69] : memref<288x576xbf16, #tpu.memory_space<vmem>>, vector<288x128xbf16>
    tpu.vector_store %arg11[%c0_68, %c384_69], %84 {strides = array<i32>} : memref<288x576xbf16, #tpu.memory_space<vmem>>, vector<288x128xbf16>,
    %c38_70 = arith.constant 38 : index
    %c0_71 = arith.constant 0 : index
    %86 = vector.load %arg10[%c38_70, %c0_71] : memref<342x64xbf16, #tpu.memory_space<vmem>>, vector<288x64xbf16>
    %c0_72 = arith.constant 0 : index
    %c512_73 = arith.constant 512 : index
    %87 = vector.load %arg11[%c0_72, %c512_73] : memref<288x576xbf16, #tpu.memory_space<vmem>>, vector<288x64xbf16>
    tpu.vector_store %arg11[%c0_72, %c512_73], %86 {strides = array<i32>} : memref<288x576xbf16, #tpu.memory_space<vmem>>, vector<288x64xbf16>,
    %c0_74 = arith.constant 0 : index
    %c0_75 = arith.constant 0 : index
    %88 = vector.load %arg11[%c0_74, %c0_75] : memref<288x576xbf16, #tpu.memory_space<vmem>>, vector<288x576xbf16>
    %c0_76 = arith.constant 0 : index
    %c0_77 = arith.constant 0 : index
    %89 = vector.load %arg6[%c0_76, %c0_77] : memref<576x12xbf16, #tpu.memory_space<vmem>>, vector<576x12xbf16>
    %cst_78 = arith.constant dense<0.000000e+00> : vector<288x12xf32>
    %90 = tpu.matmul %88, %89, %cst_78 {dimension_numbers = #tpu.dot_dimension_numbers<[1], [0], [0], [1], [0, 0, 1, 1], [], []>} : vector<288x576xbf16>, vector<576x12xbf16>, vector<288x12xf32> -> vector<288x12xf32>
    %c0_79 = arith.constant 0 : index
    %c0_80 = arith.constant 0 : index
    %91 = vector.load %arg7[%c0_79, %c0_80] : memref<1x12xf32, #tpu.memory_space<vmem>>, vector<1x12xf32>
    %92 = vector.broadcast %91 : vector<1x12xf32> to vector<288x12xf32>
    %93 = arith.addf %90, %92 : vector<288x12xf32>
    %c0_81 = arith.constant 0 : index
    %c0_82 = arith.constant 0 : index
    %c0_83 = arith.constant 0 : index
    %94 = vector.load %arg8[%c0_81, %c0_82, %c0_83] : memref<1x288x12xf32, #tpu.memory_space<vmem>>, vector<1x288x12xf32>
    %95 = vector.shape_cast %94 : vector<1x288x12xf32> to vector<288x12xf32>
    %96 = vector.shape_cast %93 : vector<288x12xf32> to vector<1x288x12xf32>
    tpu.vector_store %arg8[%c0_81, %c0_82, %c0_83], %96 {strides = array<i32>} : memref<1x288x12xf32, #tpu.memory_space<vmem>>, vector<1x288x12xf32>,
    return
  }
  func.func @transform_0(%arg0: i32) -> (i32, i32, i32) {
    %c0_i32 = arith.constant 0 : i32
    %c0_i32_0 = arith.constant 0 : i32
    %c0_i32_1 = arith.constant 0 : i32
    return %arg0, %c0_i32, %c0_i32_0 : i32, i32, i32
  }
  func.func @transform_1(%arg0: i32) -> (i32, i32) {
    %c0_i32 = arith.constant 0 : i32
    %c0_i32_0 = arith.constant 0 : i32
    %c0_i32_1 = arith.constant 0 : i32
    return %c0_i32, %c0_i32_0 : i32, i32
  }
  func.func @transform_2(%arg0: i32) -> (i32, i32) {
    %c0_i32 = arith.constant 0 : i32
    %c0_i32_0 = arith.constant 0 : i32
    %c0_i32_1 = arith.constant 0 : i32
    return %c0_i32, %c0_i32_0 : i32, i32
  }
  func.func @transform_3(%arg0: i32) -> (i32, i32) {
    %c0_i32 = arith.constant 0 : i32
    %c0_i32_0 = arith.constant 0 : i32
    %c0_i32_1 = arith.constant 0 : i32
    return %c0_i32, %c0_i32_0 : i32, i32
  }
  func.func @transform_4(%arg0: i32) -> (i32, i32) {
    %c0_i32 = arith.constant 0 : i32
    %c0_i32_0 = arith.constant 0 : i32
    %c0_i32_1 = arith.constant 0 : i32
    return %c0_i32, %c0_i32_0 : i32, i32
  }
  func.func @transform_5(%arg0: i32) -> (i32, i32) {
    %c0_i32 = arith.constant 0 : i32
    %c0_i32_0 = arith.constant 0 : i32
    %c0_i32_1 = arith.constant 0 : i32
    return %c0_i32, %c0_i32_0 : i32, i32
  }
  func.func @transform_6(%arg0: i32) -> (i32, i32) {
    %c0_i32 = arith.constant 0 : i32
    %c0_i32_0 = arith.constant 0 : i32
    %c0_i32_1 = arith.constant 0 : i32
    return %c0_i32, %c0_i32_0 : i32, i32
  }
  func.func @transform_7(%arg0: i32) -> (i32, i32, i32) {
    %c0_i32 = arith.constant 0 : i32
    %c0_i32_0 = arith.constant 0 : i32
    %c0_i32_1 = arith.constant 0 : i32
    return %arg0, %c0_i32, %c0_i32_0 : i32, i32, i32
  }
}

</mosaic_0001>

<bundles_post_ra>
// kernel: super_resolution_forward.1
= control target key start
LH: loop header
LB: loop body
LE: loop exit
PB: predicated region body
PF: predicated region fallthrough
CT: control target
= control target key end

     0   :  { %s13284_s24 = smov 0   ;;  %s18509_s0 = inlined_call_operand.vmem [shape: bf16[2,288,75], index: 0, kind: input, shape index: {}]   ;;  %s18510_s1 = inlined_call_operand.vmem [shape: bf16[75,64], index: 1, kind: input, shape index: {}]   ;;  %s18511_s2 = inlined_call_operand.vmem [shape: f32[1,64], index: 2, kind: input, shape index: {}]   ;;  %s18512_s3 = inlined_call_operand.vmem [shape: bf16[576,64], index: 3, kind: input, shape index: {}]   ;;  %s18513_s4 = inlined_call_operand.vmem [shape: f32[1,64], index: 4, kind: input, shape index: {}]   ;;  %s18514_s5 = inlined_call_operand.vmem [shape: bf16[576,12], index: 5, kind: input, shape index: {}]   ;;  %s18515_s6 = inlined_call_operand.vmem [shape: f32[1,12], index: 6, kind: input, shape index: {}]   ;;  %s18516_s7 = inlined_call_operand.vmem [shape: f32[2,288,12], index: 7, kind: output, shape index: {}]  }
   0x1 LB: > { %s11348_s25 = sadd.s32 4294967295, %s13239_s24   ;;  %p11352_p0 = scmp.ge.s32.totalorder %s13239_s24, 1  ;;  %s13239_s24 = sphi %s13284_s24, %s17_s24  }
   0x2   : > { %p237_p1 = scmp.lt.s32.totalorder %s13239_s24, 3 }
   0x4   : > { %p238_p2 = pnand %p11352_p0, %p237_p1 }
   0x6   : > { %241 = sbr.rel (%p238_p2) target bundleno = 1504 (0x5e0), region = 48 }
   0xb   : > { %vm1244_vm0 = vcmask 1044480   ;;  %v12591_v0 = vld [vmem:[%s18510_s1 + $0x20] sm:$0x3f]   ;;  %vm1245_vm1 = vcmask 1045504   ;;  %v13241_v1 = vmov 65535   ;;  %v12592_v5 = vld [vmem:[%s18510_s1 + $0x18] sm:$0xff]   ;;  %v280_v28 = vlaneseq }
   0xc   : > { %v1246_v2 = vsel %vm1244_vm0, 4294967295, %v13241_v1  ;;  %p269_p3 = scmp.lt.s32.totalorder %s11348_s25, 1  ;;  %v12593_v6 = vld [vmem:[%s18510_s1 + $0x10] sm:$0xff]   ;;  %vm1189_vm2 = vcmask 613376   ;;  %v12594_v8 = vld [vmem:[%s18510_s1 + $0x8] sm:$0xff]   ;;  %v12595_v9 = vld [vmem:[%s18510_s1] sm:$0xff]  }
   0xd   : > { %v1247_v3 = vsel %vm1245_vm1, %v1246_v2, 0  ;;  %vm18517_vm3 = vcmask 519168   ;;  %v18518_v27 = vmov 0   ;;  %v13517_v29 = vshrl.u32 %v280_v28, 7 }
   0xe   : > { %v1249_v4 = vand.u32 %v12591_v0, %v1247_v3  ;;  %s19716_s25 = smov (!%p269_p3, %s11348_s25), 1  ;;  %932 = vst.msk [vmem:[#allocation2 + $0x8] sm:$0xf] %vm18517_vm3, %v18518_v27  ;;  %930 = vst.msk [vmem:[#allocation2] sm:$0xf] %vm18517_vm3, %v18518_v27 }
   0xf   : > { %s12506_s9 = smul.u32 144, %s19716_s25  ;;  %931 = vst.msk [vmem:[#allocation2 + $0x4] sm:$0xf] %vm18517_vm3, %v18518_v27  ;;  %933 = vst.msk [vmem:[#allocation2 + $0xc] sm:$0xf] %vm18517_vm3, %v18518_v27  ;;  %v283_v30 = vadd.s32 16, %v13517_v29 }
  0x10   : > { %12362 = vmatprep.subr.bf16.mxu0 %v1249_v4  ;;  %12496 = vmatprep.subr.bf16.mxu1 %v1249_v4  ;;  %934 = vst.msk [vmem:[#allocation2 + $0x10] sm:$0xf] %vm18517_vm3, %v18518_v27  ;;  %935 = vst.msk [vmem:[#allocation2 + $0x14] sm:$0xf] %vm18517_vm3, %v18518_v27  ;;  %v284_v33 = vadd.s32 24, %v13517_v29  ;;  %v282_v38 = vadd.s32 8, %v13517_v29 }
  0x11   : > { %12363 = vmatpush3.bf16.msra.mxu0 %v1249_v4  ;;  %12501 = vmatpush3.bf16.msra.mxu1 %v1249_v4  ;;  %s13307_s12 = scalar_lea.vmem %s18509_s0, %s12506_s9  ;;  %936 = vst.msk [vmem:[#allocation2 + $0x18] sm:$0xf] %vm18517_vm3, %v18518_v27  ;;  %937 = vst.msk [vmem:[#allocation2 + $0x1c] sm:$0xf] %vm18517_vm3, %v18518_v27  ;;  %v13520_v31 = vmul.u32.u64.low 3817748708, %v283_v30  ;;  %v13521_v32 = vmul.u32.u64.high 3817748708, %v283_v30, %v13520_v31 }
  0x12   : > { %12364 = vmatprep.subr.bf16.mxu0 %v12592_v5  ;;  %12497 = vmatprep.subr.bf16.mxu1 %v12592_v5  ;;  %v12596_v7 = vld [vmem:[%s13307_s12] sm:$0xff]   ;;  %v12597_v10 = vld [vmem:[%s13307_s12 + $0x8] sm:$0xff]   ;;  %v12598_v11 = vld [vmem:[%s13307_s12 + $0x10] sm:$0xff]   ;;  %938 = vst.msk [vmem:[#allocation2 + $0x20] sm:$0xf] %vm18517_vm3, %v18518_v27  ;;  %v285_v39 = vadd.s32 32, %v13517_v29 }
  0x13   : > { %12372 = vmatprep.mubr.msk.bf16.mxu0 %vm1189_vm2, %v12596_v7  ;;  %v12612_v12 = vld [vmem:[%s13307_s12 + $0x80] sm:$0xff]   ;;  %v12613_v13 = vld [vmem:[%s13307_s12 + $0x88] sm:$0xff]   ;;  %v12599_v14 = vld [vmem:[%s13307_s12 + $0x18] sm:$0xff]   ;;  %939 = vst.msk [vmem:[#allocation2 + $0x24] sm:$0xf] %vm18517_vm3, %v18518_v27  ;;  %v345_v40 = vshrl.u32 %v13521_v32, 4 }
  0x14   : > { %12404 = vmatprep.mubr.msk.bf16.mxu1 %vm1189_vm2, %v12612_v12  ;;  %v12600_v15 = vld [vmem:[%s13307_s12 + $0x20] sm:$0xff]   ;;  %v12601_v16 = vld [vmem:[%s13307_s12 + $0x28] sm:$0xff]   ;;  %v12602_v17 = vld [vmem:[%s13307_s12 + $0x30] sm:$0xff]   ;;  %940 = vst.msk [vmem:[#allocation2 + $0x28] sm:$0xf] %vm18517_vm3, %v18518_v27  ;;  %v287_v43 = vadd.s32 48, %v13517_v29 }
  0x15   : > { %12365 = vmatpush3.bf16.msra.mxu0 %v12592_v5  ;;  %12502 = vmatpush3.bf16.msra.mxu1 %v12592_v5  ;;  %v12603_v18 = vld [vmem:[%s13307_s12 + $0x38] sm:$0xff]   ;;  %v12604_v19 = vld [vmem:[%s13307_s12 + $0x40] sm:$0xff]   ;;  %v12605_v20 = vld [vmem:[%s13307_s12 + $0x48] sm:$0xff]   ;;  %941 = vst.msk [vmem:[#allocation2 + $0x2c] sm:$0xf] %vm18517_vm3, %v18518_v27  ;;  %v288_v44 = vadd.s32 56, %v13517_v29 }
  0x16   : > { %12366 = vmatprep.subr.bf16.mxu0 %v12593_v6  ;;  %12498 = vmatprep.subr.bf16.mxu1 %v12593_v6  ;;  %v12606_v21 = vld [vmem:[%s13307_s12 + $0x50] sm:$0xff]   ;;  %v12607_v22 = vld [vmem:[%s13307_s12 + $0x58] sm:$0xff]   ;;  %v12608_v23 = vld [vmem:[%s13307_s12 + $0x60] sm:$0xff]   ;;  %942 = vst.msk [vmem:[#allocation2 + $0x30] sm:$0xf] %vm18517_vm3, %v18518_v27  ;;  %v286_v45 = vadd.s32 40, %v13517_v29 }
  0x17   : > { %v12609_v24 = vld [vmem:[%s13307_s12 + $0x68] sm:$0xff]   ;;  %v12610_v25 = vld [vmem:[%s13307_s12 + $0x70] sm:$0xff]   ;;  %v12611_v26 = vld [vmem:[%s13307_s12 + $0x78] sm:$0xff]   ;;  %943 = vst.msk [vmem:[#allocation2 + $0x34] sm:$0xf] %vm18517_vm3, %v18518_v27  ;;  %v346_v49 = vmul.u32 18, %v345_v40 }
  0x18   : > { %944 = vst.msk [vmem:[#allocation2 + $0x38] sm:$0xf] %vm18517_vm3, %v18518_v27  ;;  %945 = vst.msk [vmem:[#allocation2 + $0x3c] sm:$0xf] %vm18517_vm3, %v18518_v27  ;;  %v13525_v34 = vmul.u32.u64.low 3817748708, %v13517_v29  ;;  %v13526_v35 = vmul.u32.u64.high 3817748708, %v13517_v29, %v13525_v34 }
  0x19   : > { %12367 = vmatpush3.bf16.msra.mxu0 %v12593_v6  ;;  %12503 = vmatpush3.bf16.msra.mxu1 %v12593_v6  ;;  %946 = vst.msk [vmem:[#allocation2 + $0x40] sm:$0xf] %vm18517_vm3, %v18518_v27  ;;  %947 = vst.msk [vmem:[#allocation2 + $0x44] sm:$0xf] %vm18517_vm3, %v18518_v27  ;;  %v13528_v36 = vmul.u32.u64.low 3817748708, %v284_v33  ;;  %v13529_v37 = vmul.u32.u64.high 3817748708, %v284_v33, %v13528_v36  ;;  %v13555_v59 = vsub.s32 %v283_v30, %v346_v49 }
  0x1a   : > { %12368 = vmatprep.subr.bf16.mxu0 %v12594_v8  ;;  %12499 = vmatprep.subr.bf16.mxu1 %v12594_v8  ;;  %948 = vst.msk [vmem:[#allocation2 + $0x48] sm:$0xf] %vm18517_vm3, %v18518_v27  ;;  %949 = vst.msk [vmem:[#allocation2 + $0x4c] sm:$0xf] %vm18517_vm3, %v18518_v27  ;;  %v13534_v41 = vmul.u32.u64.low 3817748708, %v282_v38  ;;  %v13535_v42 = vmul.u32.u64.high 3817748708, %v282_v38, %v13534_v41 }
  0x1b   : > { %950 = vst.msk [vmem:[#allocation2 + $0x50] sm:$0xf] %vm18517_vm3, %v18518_v27  ;;  %951 = vst.msk [vmem:[#allocation2 + $0x54] sm:$0xf] %vm18517_vm3, %v18518_v27  ;;  %v323_v46 = vshrl.u32 %v13526_v35, 4  ;;  %v356_v50 = vshrl.u32 %v13529_v37, 4 }
  0x1c   : > { %952 = vst.msk [vmem:[#allocation2 + $0x58] sm:$0xf] %vm18517_vm3, %v18518_v27  ;;  %953 = vst.msk [vmem:[#allocation2 + $0x5c] sm:$0xf] %vm18517_vm3, %v18518_v27  ;;  %v13541_v47 = vmul.u32.u64.low 3817748708, %v285_v39  ;;  %v13542_v48 = vmul.u32.u64.high 3817748708, %v285_v39, %v13541_v47 }
  0x1d   : > { %12369 = vmatpush3.bf16.msra.mxu0 %v12594_v8  ;;  %12504 = vmatpush3.bf16.msra.mxu1 %v12594_v8  ;;  %954 = vst.msk [vmem:[#allocation2 + $0x60] sm:$0xf] %vm18517_vm3, %v18518_v27  ;;  %955 = vst.msk [vmem:[#allocation2 + $0x64] sm:$0xf] %vm18517_vm3, %v18518_v27  ;;  %v13545_v51 = vmul.u32.u64.low 3817748708, %v287_v43  ;;  %v13546_v52 = vmul.u32.u64.high 3817748708, %v287_v43, %v13545_v51 }
  0x1e   : > { %12370 = vmatprep.subr.bf16.mxu0 %v12595_v9  ;;  %12500 = vmatprep.subr.bf16.mxu1 %v12595_v9  ;;  %956 = vst.msk [vmem:[#allocation2 + $0x68] sm:$0xf] %vm18517_vm3, %v18518_v27  ;;  %957 = vst.msk [vmem:[#allocation2 + $0x6c] sm:$0xf] %vm18517_vm3, %v18518_v27  ;;  %v13548_v53 = vmul.u32.u64.low 3817748708, %v288_v44  ;;  %v13549_v54 = vmul.u32.u64.high 3817748708, %v288_v44, %v13548_v53 }
  0x1f   : > { %958 = vst.msk [vmem:[#allocation2 + $0x70] sm:$0xf] %vm18517_vm3, %v18518_v27  ;;  %959 = vst.msk [vmem:[#allocation2 + $0x74] sm:$0xf] %vm18517_vm3, %v18518_v27  ;;  %v13551_v55 = vmul.u32.u64.low 3817748708, %v286_v45  ;;  %v13552_v56 = vmul.u32.u64.high 3817748708, %v286_v45, %v13551_v55 }
  0x20   : > { %960 = vst.msk [vmem:[#allocation2 + $0x78] sm:$0xf] %vm18517_vm3, %v18518_v27  ;;  %961 = vst.msk [vmem:[#allocation2 + $0x7c] sm:$0xf] %vm18517_vm3, %v18518_v27  ;;  %v324_v57 = vmul.u32 18, %v323_v46  ;;  %v334_v58 = vshrl.u32 %v13535_v42, 4 }
  0x21   : > { %12371 = vmatpush3.bf16.msra.mxu0 %v12595_v9  ;;  %12505 = vmatpush3.bf16.msra.mxu1 %v12595_v9  ;;  %962 = vst.msk [vmem:[#allocation2 + $0x80] sm:$0xf] %vm18517_vm3, %v18518_v27  ;;  %963 = vst.msk [vmem:[#allocation2 + $0x84] sm:$0xf] %vm18517_vm3, %v18518_v27  ;;  %v357_v60 = vmul.u32 18, %v356_v50  ;;  %v367_v62 = vshrl.u32 %v13542_v48, 4 }
  0x22   : > { %964 = vst.msk [vmem:[#allocation2 + $0x88] sm:$0xf] %vm18517_vm3, %v18518_v27  ;;  %965 = vst.msk [vmem:[#allocation2 + $0x8c] sm:$0xf] %vm18517_vm3, %v18518_v27  ;;  %5858 = vmatprep.subr.bf16.mxu1 %v18518_v27  ;;  %6035 = vmatprep.subr.bf16.mxu0 %v18518_v27  ;;  %v13558_v61 = vsub.s32 %v13517_v29, %v324_v57  ;;  %v335_v63 = vmul.u32 18, %v334_v58  ;;  %v13562_v0 = vadd.s32 80, %v13517_v29 }
  0x23   : > { %966 = vst.msk [vmem:[#allocation2 + $0x90] sm:$0xf] %vm18517_vm3, %v18518_v27  ;;  %967 = vst.msk [vmem:[#allocation2 + $0x94] sm:$0xf] %vm18517_vm3, %v18518_v27  ;;  %vm715_vm4 = vcmp.ne.s32.totalorder %v13555_v59, 0  ;;  %v13565_v1 = vsub.s32 %v284_v33, %v357_v60  ;;  %v389_v2 = vshrl.u32 %v13546_v52, 4 }
  0x24   : > { %12373 = vmatmul.mubr.msk.bf16.vlgmr.msra.gmra.mxu0 %vm1189_vm2, %v12597_v10  ;;  %12405 = vmatmul.mubr.msk.bf16.vlgmr.msra.gmra.mxu1 %vm1189_vm2, %v12613_v13  ;;  %968 = vst.msk [vmem:[#allocation2 + $0x98] sm:$0xf] %vm18517_vm3, %v18518_v27  ;;  %969 = vst.msk [vmem:[#allocation2 + $0x9c] sm:$0xf] %vm18517_vm3, %v18518_v27  ;;  %v400_v3 = vshrl.u32 %v13549_v54, 4  ;;  %vm751_vm5 = vcmp.lt.s32.totalorder %v13555_v59, 0  ;;  %v13585_v10 = vsub.s32 %v282_v38, %v335_v63 }
  0x25   : > { %12376 = vmatprep.mubr.msk.bf16.mxu0 %vm1189_vm2, %v12598_v11  ;;  %970 = vst.msk [vmem:[#allocation2 + $0xa0] sm:$0xf] %vm18517_vm3, %v18518_v27  ;;  %974 = vst.msk [vmem:[#allocation3] sm:$0xf] %vm18517_vm3, %v18518_v27  ;;  %v13571_v4 = vadd.s32 18, %v13555_v59  ;;  %v378_v5 = vshrl.u32 %v13552_v56, 4 }
  0x26   : > { %975 = vst.msk [vmem:[#allocation3 + $0x4] sm:$0xf] %vm18517_vm3, %v18518_v27  ;;  %976 = vst.msk [vmem:[#allocation3 + $0x8] sm:$0xf] %vm18517_vm3, %v18518_v27  ;;  %v13575_v6 = vadd.s32 64, %v13517_v29  ;;  %vm713_vm6 = vcmp.ne.s32.totalorder %v13558_v61, 0 }
  0x27   : > { %977 = vst.msk [vmem:[#allocation3 + $0xc] sm:$0xf] %vm18517_vm3, %v18518_v27  ;;  %978 = vst.msk [vmem:[#allocation3 + $0x10] sm:$0xf] %vm18517_vm3, %v18518_v27  ;;  %vm749_vm7 = vcmp.lt.s32.totalorder %v13558_v61, 0  ;;  %v368_v7 = vmul.u32 18, %v367_v62 }
  0x28   : > { %979 = vst.msk [vmem:[#allocation3 + $0x14] sm:$0xf] %vm18517_vm3, %v18518_v27  ;;  %980 = vst.msk [vmem:[#allocation3 + $0x18] sm:$0xf] %vm18517_vm3, %v18518_v27  ;;  %v13580_v8 = vadd.s32 72, %v13517_v29  ;;  %v13583_v9 = vadd.s32 18, %v13558_v61 }
  0x29   : > { %981 = vst.msk [vmem:[#allocation3 + $0x1c] sm:$0xf] %vm18517_vm3, %v18518_v27  ;;  %982 = vst.msk [vmem:[#allocation3 + $0x20] sm:$0xf] %vm18517_vm3, %v18518_v27  ;;  %v13588_v11 = vmul.u32.u64.low 3817748708, %v13562_v0  ;;  %v13589_v12 = vmul.u32.u64.high 3817748708, %v13562_v0, %v13588_v11 }
  0x2a   : > { %983 = vst.msk [vmem:[#allocation3 + $0x24] sm:$0xf] %vm18517_vm3, %v18518_v27  ;;  %984 = vst.msk [vmem:[#allocation3 + $0x28] sm:$0xf] %vm18517_vm3, %v18518_v27  ;;  %vm716_vm8 = vcmp.ne.s32.totalorder %v13565_v1, 0  ;;  %v390_v13 = vmul.u32 18, %v389_v2 }
  0x2b   : > { %985 = vst.msk [vmem:[#allocation3 + $0x2c] sm:$0xf] %vm18517_vm3, %v18518_v27  ;;  %986 = vst.msk [vmem:[#allocation3 + $0x30] sm:$0xf] %vm18517_vm3, %v18518_v27  ;;  %vm752_vm9 = vcmp.lt.s32.totalorder %v13565_v1, 0  ;;  %vm714_vm10 = vcmp.ne.s32.totalorder %v13585_v10, 0 }
  0x2c   : > { %12377 = vmatmul.mubr.msk.bf16.gmra.mxu0 %vm1189_vm2, %v12599_v14  ;;  %987 = vst.msk [vmem:[#allocation3 + $0x34] sm:$0xf] %vm18517_vm3, %v18518_v27  ;;  %988 = vst.msk [vmem:[#allocation3 + $0x38] sm:$0xf] %vm18517_vm3, %v18518_v27  ;;  %v401_v14 = vmul.u32 18, %v400_v3  ;;  %vm750_vm11 = vcmp.lt.s32.totalorder %v13585_v10, 0 }
  0x2d   : > { %12380 = vmatprep.mubr.msk.bf16.mxu0 %vm1189_vm2, %v12600_v15  ;;  %989 = vst.msk [vmem:[#allocation3 + $0x3c] sm:$0xf] %vm18517_vm3, %v18518_v27  ;;  %990 = vst.msk [vmem:[#allocation3 + $0x40] sm:$0xf] %vm18517_vm3, %v18518_v27  ;;  %v13593_v15 = vadd.s32 88, %v13517_v29  ;;  %v13624_v30 = vadd.s32 120, %v13517_v29 }
  0x2e   : > { %991 = vst.msk [vmem:[#allocation3 + $0x44] sm:$0xf] %vm18517_vm3, %v18518_v27  ;;  %992 = vst.msk [vmem:[#allocation3 + $0x48] sm:$0xf] %vm18517_vm3, %v18518_v27  ;;  %v13626_v31 = vsub.s32 %v288_v44, %v401_v14  ;;  %v13643_v36 = vadd.s32 18, %v13585_v10  ;;  %v13648_v37 = vadd.s32 104, %v13517_v29 }
  0x2f   : > { %993 = vst.msk [vmem:[#allocation3 + $0x4c] sm:$0xf] %vm18517_vm3, %v18518_v27  ;;  %994 = vst.msk [vmem:[#allocation3 + $0x50] sm:$0xf] %vm18517_vm3, %v18518_v27  ;;  %v433_v40 = vshrl.u32 %v13589_v12, 4  ;;  %v18721_v46 = vmov 0 }
  0x30   : > { %995 = vst.msk [vmem:[#allocation3 + $0x54] sm:$0xf] %vm18517_vm3, %v18518_v27  ;;  %996 = vst.msk [vmem:[#allocation3 + $0x58] sm:$0xf] %vm18517_vm3, %v18518_v27  ;;  %v18723_v48 = vmov 0  ;;  %v18725_v52 = vmov 0 }
  0x31   : > { %997 = vst.msk [vmem:[#allocation3 + $0x5c] sm:$0xf] %vm18517_vm3, %v18518_v27  ;;  %998 = vst.msk [vmem:[#allocation3 + $0x60] sm:$0xf] %vm18517_vm3, %v18518_v27  ;;  %v13703_v50 = vmul.u32.u64.low 3817748708, %v13648_v37  ;;  %v13704_v51 = vmul.u32.u64.high 3817748708, %v13648_v37, %v13703_v50 }
  0x32   : > { %999 = vst.msk [vmem:[#allocation3 + $0x64] sm:$0xf] %vm18517_vm3, %v18518_v27  ;;  %1000 = vst.msk [vmem:[#allocation3 + $0x68] sm:$0xf] %vm18517_vm3, %v18518_v27  ;;  %v13714_v54 = vadd.s32 18, %v13626_v31  ;;  %v434_v55 = vmul.u32 18, %v433_v40 }
  0x33   : > { %1001 = vst.msk [vmem:[#allocation3 + $0x6c] sm:$0xf] %vm18517_vm3, %v18518_v27  ;;  %1002 = vst.msk [vmem:[#allocation3 + $0x70] sm:$0xf] %vm18517_vm3, %v18518_v27  ;;  %v18728_v58 = vmov 0  ;;  %v18731_v2 = vmov 0 }
  0x34   : > { %12381 = vmatmul.mubr.msk.bf16.gmra.mxu0 %vm1189_vm2, %v12601_v16  ;;  %1003 = vst.msk [vmem:[#allocation3 + $0x74] sm:$0xf] %vm18517_vm3, %v18518_v27  ;;  %1004 = vst.msk [vmem:[#allocation3 + $0x78] sm:$0xf] %vm18517_vm3, %v18518_v27  ;;  %v379_v16 = vmul.u32 18, %v378_v5  ;;  %v13761_v14 = vadd.s32 144, %v13517_v29 }
  0x35   : > { %12384 = vmatprep.mubr.msk.bf16.mxu0 %vm1189_vm2, %v12602_v17  ;;  %1005 = vst.msk [vmem:[#allocation3 + $0x7c] sm:$0xf] %vm18517_vm3, %v18518_v27  ;;  %1006 = vst.msk [vmem:[#allocation3 + $0x80] sm:$0xf] %vm18517_vm3, %v18518_v27  ;;  %v18769_v63 = vmov 0  ;;  %v18774_v56 = vmov 0 }
  0x36   : > { %1007 = vst.msk [vmem:[#allocation3 + $0x84] sm:$0xf] %vm18517_vm3, %v18518_v27  ;;  %1008 = vst.msk [vmem:[#allocation3 + $0x88] sm:$0xf] %vm18517_vm3, %v18518_v27  ;;  %v13628_v32 = vsub.s32 %v286_v45, %v379_v16  ;;  %v13677_v44 = vmul.u32.u64.low 3817748708, %v13624_v30  ;;  %v13678_v45 = vmul.u32.u64.high 3817748708, %v13624_v30, %v13677_v44 }
  0x37   : > { %1009 = vst.msk [vmem:[#allocation3 + $0x8c] sm:$0xf] %vm18517_vm3, %v18518_v27  ;;  %1010 = vst.msk [vmem:[#allocation3 + $0x90] sm:$0xf] %vm18517_vm3, %v18518_v27  ;;  %v466_v44 = vshrl.u32 %v13704_v51, 4  ;;  %s13243_s12 = smov 64  }
  0x38   : > { %1011 = vst.msk [vmem:[#allocation3 + $0x94] sm:$0xf] %vm18517_vm3, %v18518_v27  ;;  %1012 = vst.msk [vmem:[#allocation3 + $0x98] sm:$0xf] %vm18517_vm3, %v18518_v27  ;;  %v13733_v60 = vadd.s32 18, %v13628_v32  ;;  %s12507_s9 = smul.u32 288, %s19716_s25 }
  0x39   : > { %1013 = vst.msk [vmem:[#allocation3 + $0x9c] sm:$0xf] %vm18517_vm3, %v18518_v27  ;;  %1014 = vst.msk [vmem:[#allocation3 + $0xa0] sm:$0xf] %vm18517_vm3, %v18518_v27  ;;  %v18754_v27 = vmov 0 }
  0x3a   : > { %18713 = vst [vmem:[#allocation5_spill] sm:$0xff] %v13626_v31  ;;  %18714 = vst [vmem:[#allocation6_spill] sm:$0xff] %v13628_v32  ;;  %s18330_s13 = scalar_lea.vmem %s18516_s7, %s12507_s9 }
  0x3b   : > { %vm13638_vm12 = vmand %vm751_vm5, %vm715_vm4  ;;  %vm720_vm5 = vcmp.ne.s32.totalorder %v13626_v31, 0  ;;  %18727 = vst [vmem:[#allocation7_spill] sm:$0xff] %v13714_v54 }
  0x3c   : > { %12385 = vmatmul.mubr.msk.bf16.gmra.mxu0 %vm1189_vm2, %v12603_v18  ;;  %v13596_v17 = vmul.u32.u64.low 3817748708, %v13575_v6  ;;  %v13597_v18 = vmul.u32.u64.high 3817748708, %v13575_v6, %v13596_v17  ;;  %vm13654_vm15 = vmand %vm749_vm7, %vm713_vm6  ;;  %vm756_vm6 = vcmp.lt.s32.totalorder %v13626_v31, 0  ;;  %vm718_vm7 = vcmp.ne.s32.totalorder %v13628_v32, 0  ;;  %18730 = vst [vmem:[#allocation8_spill] sm:$0xff] %v13733_v60 }
  0x3d   : > { %12388 = vmatprep.mubr.msk.bf16.mxu0 %vm1189_vm2, %v12604_v19  ;;  %v13600_v19 = vadd.s32 96, %v13517_v29  ;;  %vm13670_vm0 = vmand %vm752_vm9, %vm716_vm8  ;;  %vm754_vm9 = vcmp.lt.s32.totalorder %v13628_v32, 0  ;;  %v18766_v17 = vmov 0  ;;  %v13940_v32 = vadd.s32 184, %v13517_v29 }
  0x3e   : > { %vm13684_vm4 = vmand %vm750_vm11, %vm714_vm10  ;;  %v411_v47 = vshrl.u32 %v13597_v18, 4  ;;  %v13772_v18 = vsub.s32 %v13562_v0, %v434_v55 }
  0x3f   : > { %v13631_v33 = vmul.u32.u64.low 3817748708, %v13600_v19  ;;  %v13632_v34 = vmul.u32.u64.high 3817748708, %v13600_v19, %v13631_v33  ;;  %v18722_v46 = vsel %vm13684_vm4, 4294967295, %v18721_v46  ;;  %vm13728_vm11 = vmand %vm756_vm6, %vm720_vm5 }
  0x40   : > { %v18729_v58 = vsel %vm13728_vm11, 4294967295, %v18728_v58  ;;  %v412_v3 = vmul.u32 18, %v411_v47  ;;  %18734 = vst [vmem:[#allocation10_spill] sm:$0xff] %v13772_v18  ;;  %v13781_v33 = vadd.s32 152, %v13517_v29  ;;  %v13811_v51 = vadd.s32 18, %v13772_v18 }
  0x41   : > { %v455_v5 = vshrl.u32 %v13632_v34, 4 }
  0x42   : > { %v13784_v34 = vsub.s32 %v13575_v6, %v412_v3  ;;  %18738 = vst [vmem:[#allocation14_spill] sm:$0xff] %v13811_v51 }
  0x43   : > { %v456_v40 = vmul.u32 18, %v455_v5 }
  0x44   : > { %12389 = vmatmul.mubr.msk.bf16.gmra.mxu0 %vm1189_vm2, %v12605_v20  ;;  %v13603_v20 = vsub.s32 %v285_v39, %v368_v7  ;;  %v13750_v7 = vadd.s32 128, %v13517_v29  ;;  %18735 = vst [vmem:[#allocation11_spill] sm:$0xff] %v13784_v34  ;;  %vm757_vm5 = vcmp.lt.s32.totalorder %v13784_v34, 0  ;;  %v13819_v5 = vadd.s32 18, %v13784_v34 }
  0x45   : > { %12392 = vmatprep.mubr.msk.bf16.mxu0 %vm1189_vm2, %v12606_v21  ;;  %v13816_v3 = vsub.s32 %v13600_v19, %v456_v40 }
  0x46   : > { %vm717_vm13 = vcmp.ne.s32.totalorder %v13603_v20, 0  ;;  %vm753_vm14 = vcmp.lt.s32.totalorder %v13603_v20, 0  ;;  %v13659_v39 = vadd.s32 18, %v13603_v20  ;;  %18740 = vst [vmem:[#allocation16_spill] sm:$0xff] %v13819_v5 }
  0x47   : > { %vm13696_vm8 = vmand %vm753_vm14, %vm717_vm13  ;;  %vm723_vm14 = vcmp.ne.s32.totalorder %v13772_v18, 0  ;;  %18739 = vst [vmem:[#allocation15_spill] sm:$0xff] %v13816_v3 }
  0x48   : > { %v18724_v48 = vsel %vm13696_vm8, 4294967295, %v18723_v48  ;;  %vm13744_vm13 = vmand %vm754_vm9, %vm718_vm7  ;;  %vm18764_vm8 = vcmp.ne.s32.totalorder %v13816_v3, 0 }
  0x49   : > { %v18732_v2 = vsel %vm13744_vm13, 4294967295, %v18731_v2 }
  0x4a   : > { %18733 = vst [vmem:[#allocation9_spill] sm:$0xff] %v18732_v2 }
  0x4c   : > { %12393 = vmatmul.mubr.msk.bf16.gmra.mxu0 %vm1189_vm2, %v12607_v22  ;;  %v13606_v21 = vmul.u32.u64.low 3817748708, %v13580_v8  ;;  %v13607_v22 = vmul.u32.u64.high 3817748708, %v13580_v8, %v13606_v21 }
  0x4d   : > { %12396 = vmatprep.mubr.msk.bf16.mxu0 %vm1189_vm2, %v12608_v23  ;;  %v13610_v23 = vadd.s32 18, %v13565_v1 }
  0x4e   : > { %v422_v49 = vshrl.u32 %v13607_v22, 4 }
  0x54   : > { %12397 = vmatmul.mubr.msk.bf16.gmra.mxu0 %vm1189_vm2, %v12609_v24  ;;  %v13615_v24 = vadd.s32 112, %v13517_v29 }
  0x55   : > { %12400 = vmatprep.mubr.msk.bf16.mxu0 %vm1189_vm2, %v12610_v25  ;;  %v13617_v25 = vsub.s32 %v287_v43, %v390_v13  ;;  %v423_v13 = vmul.u32 18, %v422_v49  ;;  %v13795_v47 = vmul.u32.u64.low 3817748708, %v13761_v14  ;;  %v13796_v49 = vmul.u32.u64.high 3817748708, %v13761_v14, %v13795_v47 }
  0x56   : > { %v13663_v41 = vmul.u32.u64.low 3817748708, %v13615_v24  ;;  %v13664_v42 = vmul.u32.u64.high 3817748708, %v13615_v24, %v13663_v41  ;;  %v13853_v47 = vadd.s32 176, %v13517_v29 }
  0x57   : > { %vm719_vm1 = vcmp.ne.s32.totalorder %v13617_v25, 0  ;;  %v13711_v53 = vadd.s32 18, %v13617_v25  ;;  %v13787_v0 = vmul.u32.u64.low 3817748708, %v13750_v7  ;;  %v13788_v41 = vmul.u32.u64.high 3817748708, %v13750_v7, %v13787_v0 }
  0x58   : > { %v477_v21 = vshrl.u32 %v13664_v42, 4  ;;  %v13791_v42 = vsub.s32 %v13580_v8, %v423_v13  ;;  %v13823_v13 = vadd.s32 160, %v13517_v29  ;;  %v12617_v0 = vld [vmem:[#allocation2] sm:$0xff]  }
  0x59   : > { %v13910_v16 = vmul.u32.u64.low 3817748708, %v13853_v47  ;;  %v13911_v11 = vmul.u32.u64.high 3817748708, %v13853_v47, %v13910_v16  ;;  %v2257_v51 = vshrl.u32 %v12617_v0, 16 }
  0x5a   : > { %18736 = vst [vmem:[#allocation12_spill] sm:$0xff] %v13791_v42  ;;  %v478_v6 = vmul.u32 18, %v477_v21  ;;  %v13836_v19 = vadd.s32 18, %v13791_v42 }
  0x5c   : > { %12401 = vmatmul.mubr.msk.bf16.gmra.mxu0 %vm1189_vm2, %v12611_v26  ;;  %v13620_v26 = vmul.u32.u64.low 3817748708, %v13593_v15  ;;  %v13621_v28 = vmul.u32.u64.high 3817748708, %v13593_v15, %v13620_v26  ;;  %vm755_vm2 = vcmp.lt.s32.totalorder %v13617_v25, 0  ;;  %v13827_v21 = vsub.s32 %v13615_v24, %v478_v6  ;;  %18742 = vst [vmem:[#allocation18_spill] sm:$0xff] %v13836_v19 }
  0x5d   : > { %vm13706_vm10 = vmand %vm755_vm2, %vm719_vm1  ;;  %vm759_vm1 = vcmp.lt.s32.totalorder %v13772_v18, 0  ;;  %vm721_vm2 = vcmp.ne.s32.totalorder %v13784_v34, 0  ;;  %v18744_v24 = vmov 0 }
  0x5e   : > { %v18726_v52 = vsel %vm13706_vm10, 4294967295, %v18725_v52  ;;  %v444_v62 = vshrl.u32 %v13621_v28, 4  ;;  %v488_v28 = vshrl.u32 %v13678_v45, 4  ;;  %v13801_v45 = vadd.s32 136, %v13517_v29  ;;  %18741 = vst [vmem:[#allocation17_spill] sm:$0xff] %v13827_v21  ;;  %vm13845_vm7 = vmand %vm759_vm1, %vm723_vm14 }
  0x5f   : > { %v18745_v24 = vsel %vm13845_vm7, 4294967295, %v18744_v24  ;;  %vm13859_vm3 = vmand %vm757_vm5, %vm721_vm2  ;;  %vm18752_vm14 = vcmp.ne.s32.totalorder %v13791_v42, 0  ;;  %vm18753_vm1 = vcmp.lt.s32.totalorder %v13791_v42, 0  ;;  %vm727_vm5 = vcmp.ne.s32.totalorder %v13827_v21, 0 }
  0x60   : > { %v445_v26 = vmul.u32 18, %v444_v62  ;;  %v489_v55 = vmul.u32 18, %v488_v28  ;;  %18746 = vst [vmem:[#allocation20_spill] sm:$0xff] %v18745_v24  ;;  %vm13878_vm2 = vmand %vm18753_vm1, %vm18752_vm14  ;;  %vm763_vm9 = vcmp.lt.s32.totalorder %v13827_v21, 0  ;;  %v13899_v22 = vadd.s32 18, %v13827_v21 }
  0x61   : > { %v13807_v8 = vmul.u32.u64.low 3817748708, %v13781_v33  ;;  %v13808_v62 = vmul.u32.u64.high 3817748708, %v13781_v33, %v13807_v8  ;;  %v18755_v27 = vsel %vm13878_vm2, 4294967295, %v18754_v27  ;;  %vm18765_vm10 = vcmp.lt.s32.totalorder %v13816_v3, 0 }
  0x62   : > { %v13804_v50 = vsub.s32 %v13593_v15, %v445_v26  ;;  %v467_v15 = vmul.u32 18, %v466_v44  ;;  %v13830_v26 = vmul.u32.u64.low 3817748708, %v13801_v45  ;;  %v13831_v28 = vmul.u32.u64.high 3817748708, %v13801_v45, %v13830_v26  ;;  %18756 = vst [vmem:[#allocation24_spill] sm:$0xff] %v18755_v27  ;;  %18763 = vst [vmem:[#allocation27_spill] sm:$0xff] %v13899_v22 }
  0x63   : > { %v13839_v40 = vsub.s32 %v13624_v30, %v489_v55  ;;  %v499_v44 = vshrl.u32 %v13788_v41, 4  ;;  %v18747_v30 = vmov 0  ;;  %v521_v55 = vshrl.u32 %v13796_v49, 4  ;;  %vm13905_vm4 = vmand %vm18765_vm10, %vm18764_vm8 }
  0x64   : > { %18737 = vst [vmem:[#allocation13_spill] sm:$0xff] %v13804_v50  ;;  %v18748_v30 = vsel %vm13859_vm3, 4294967295, %v18747_v30  ;;  %v13864_v6 = vsub.s32 %v13648_v37, %v467_v15  ;;  %v13868_v8 = vmul.u32.u64.low 3817748708, %v13823_v13  ;;  %v13869_v26 = vmul.u32.u64.high 3817748708, %v13823_v13, %v13868_v8 }
  0x65   : > { %18743 = vst [vmem:[#allocation19_spill] sm:$0xff] %v13839_v40  ;;  %18749 = vst [vmem:[#allocation21_spill] sm:$0xff] %v18748_v30  ;;  %v13872_v41 = vadd.s32 18, %v13804_v50  ;;  %v13885_v37 = vadd.s32 18, %v13816_v3  ;;  %vm18758_vm6 = vcmp.ne.s32.totalorder %v13804_v50, 0  ;;  %vm18759_vm13 = vcmp.lt.s32.totalorder %v13804_v50, 0 }
  0x66   : > { %18750 = vst [vmem:[#allocation22_spill] sm:$0xff] %v13864_v6  ;;  %vm13891_vm11 = vmand %vm18759_vm13, %vm18758_vm6  ;;  %v18760_v49 = vmov 0  ;;  %vm728_vm14 = vcmp.ne.s32.totalorder %v13839_v40, 0  ;;  %v532_v15 = vshrl.u32 %v13808_v62, 4  ;;  %v2259_v8 = vshll.u32 %v12617_v0, 16 }
  0x67   : > { %18751 = vst [vmem:[#allocation23_spill] sm:$0xff] %v13872_v41  ;;  %18757 = vst [vmem:[#allocation25_spill] sm:$0xff] %v13885_v37  ;;  %v18761_v49 = vsel %vm13891_vm11, 4294967295, %v18760_v49  ;;  %v18767_v17 = vsel %vm13905_vm4, 4294967295, %v18766_v17  ;;  %v500_v12 = vmul.u32 18, %v499_v44  ;;  %v13918_v62 = vadd.s32 18, %v13839_v40 }
  0x68   : > { %18762 = vst [vmem:[#allocation26_spill] sm:$0xff] %v18761_v49  ;;  %18768 = vst [vmem:[#allocation28_spill] sm:$0xff] %v18767_v17  ;;  %vm726_vm6 = vcmp.ne.s32.totalorder %v13864_v6, 0  ;;  %vm762_vm1 = vcmp.lt.s32.totalorder %v13864_v6, 0  ;;  %v522_v57 = vmul.u32 18, %v521_v55  ;;  %vm18773_vm8 = vcmp.lt.s32.totalorder %v13839_v40, 0 }
  0x69   : > { %vm13913_vm13 = vmand %vm763_vm9, %vm727_vm5  ;;  %18772 = vst [vmem:[#allocation30_spill] sm:$0xff] %v13918_v62  ;;  %v510_v55 = vshrl.u32 %v13831_v28, 4  ;;  %v13943_v44 = vadd.s32 18, %v13864_v6  ;;  %v533_v18 = vmul.u32 18, %v532_v15  ;;  %v2261_v30 = vrot.slane %v2259_v8, 1 }
  0x6a   : > { %v18770_v63 = vsel %vm13913_vm13, 4294967295, %v18769_v63  ;;  %vm13934_vm10 = vmand %vm18773_vm8, %vm728_vm14  ;;  %v18778_v0 = vmov 0  ;;  %v13966_v15 = vsub.s32 %v13750_v7, %v500_v12  ;;  %v13977_v34 = vsub.s32 %v13761_v14, %v522_v57 }
  0x6b   : > { %18771 = vst [vmem:[#allocation29_spill] sm:$0xff] %v18770_v63  ;;  %v18775_v56 = vsel %vm13934_vm10, 4294967295, %v18774_v56  ;;  %18777 = vst [vmem:[#allocation32_spill] sm:$0xff] %v13943_v44  ;;  %v543_v16 = vshrl.u32 %v13869_v26, 4  ;;  %v511_v3 = vmul.u32 18, %v510_v55  ;;  %v13985_v12 = vadd.s32 168, %v13517_v29 }
  0x6c   : > { %18776 = vst [vmem:[#allocation31_spill] sm:$0xff] %v18775_v56  ;;  %vm13961_vm9 = vmand %vm762_vm1, %vm726_vm6  ;;  %v13981_v37 = vmul.u32.u64.low 3817748708, %v13940_v32  ;;  %v13982_v7 = vmul.u32.u64.high 3817748708, %v13940_v32, %v13981_v37  ;;  %v13992_v28 = vsub.s32 %v13781_v33, %v533_v18  ;;  %v13994_v57 = vor.u32 %v2261_v30, %v2257_v51 }
  0x6d   : > { %v18779_v0 = vsel %vm13961_vm9, 4294967295, %v18778_v0  ;;  %v13997_v14 = vadd.s32 192, %v13517_v29  ;;  %vm729_vm5 = vcmp.ne.s32.totalorder %v13966_v15, 0  ;;  %vm765_vm14 = vcmp.lt.s32.totalorder %v13966_v15, 0 }
  0x6e   : > { %18780 = vst [vmem:[#allocation33_spill] sm:$0xff] %v18779_v0  ;;  %18781 = vst [vmem:[#allocation34_spill] sm:$0xff] %v13992_v28  ;;  %v565_v26 = vshrl.u32 %v13911_v11, 4  ;;  %v14003_v37 = vadd.s32 208, %v13517_v29  ;;  %v14008_v18 = vadd.s32 18, %v13966_v15  ;;  %v544_v33 = vmul.u32 18, %v543_v16 }
  0x6f   : > { %18782 = vst [vmem:[#allocation35_spill] sm:$0xff] %v13994_v57  ;;  %v14011_v51 = vadd.s32 18, %v13977_v34  ;;  %v14014_v30 = vsub.s32 %v13801_v45, %v511_v3  ;;  %v14017_v55 = vmul.u32.u64.low 3817748708, %v13985_v12  ;;  %v14018_v11 = vmul.u32.u64.high 3817748708, %v13985_v12, %v14017_v55  ;;  %vm14075_vm1 = vmand %vm765_vm14, %vm729_vm5 }
  0x70   : > { %v14022_v8 = vmul.u32.u64.low 3817748708, %v13997_v14  ;;  %v14023_v57 = vmul.u32.u64.high 3817748708, %v13997_v14, %v14022_v8  ;;  %v14026_v6 = vadd.s32 216, %v13517_v29  ;;  %v566_v16 = vmul.u32 18, %v565_v26 }
  0x71   : > { %18783 = vst [vmem:[#allocation36_spill] sm:$0xff] %v14014_v30  ;;  %v14029_v44 = vmul.u32.u64.low 3817748708, %v14003_v37  ;;  %v14030_v0 = vmul.u32.u64.high 3817748708, %v14003_v37, %v14029_v44  ;;  %v14033_v45 = vadd.s32 200, %v13517_v29  ;;  %v14037_v3 = vadd.s32 18, %v13992_v28 }
  0x72   : > { %v14040_v55 = vsub.s32 %v13823_v13, %v544_v33  ;;  %v14043_v8 = vadd.s32 224, %v13517_v29  ;;  %v576_v44 = vshrl.u32 %v13982_v7, 4  ;;  %v14049_v26 = vadd.s32 240, %v13517_v29 }
  0x73   : > { %18784 = vst [vmem:[#allocation37_spill] sm:$0xff] %v14037_v3  ;;  %v14052_v40 = vadd.s32 18, %v14014_v30  ;;  %v14055_v62 = vmul.u32.u64.low 3817748708, %v14026_v6  ;;  %v14056_v56 = vmul.u32.u64.high 3817748708, %v14026_v6, %v14055_v62  ;;  %v14059_v13 = vadd.s32 248, %v13517_v29 }
  0x74   : > { %18785 = vst [vmem:[#allocation38_spill] sm:$0xff] %v14040_v55  ;;  %v14062_v33 = vsub.s32 %v13853_v47, %v566_v16  ;;  %v14065_v17 = vmul.u32.u64.low 3817748708, %v14033_v45  ;;  %v14066_v21 = vmul.u32.u64.high 3817748708, %v14033_v45, %v14065_v17  ;;  %v14069_v7 = vadd.s32 232, %v13517_v29 }
  0x75   : > { %18786 = vst [vmem:[#allocation39_spill] sm:$0xff] %v14052_v40  ;;  %v18787_v22 = vmov 0  ;;  %v14081_v47 = vmul.u32.u64.low 3817748708, %v14043_v8  ;;  %v14082_v62 = vmul.u32.u64.high 3817748708, %v14043_v8, %v14081_v47  ;;  %v14085_v16 = vadd.s32 256, %v13517_v29 }
  0x76   : > { %v18788_v22 = vsel %vm14075_vm1, 4294967295, %v18787_v22  ;;  %vm18789_vm6 = vcmp.ne.s32.totalorder %v13977_v34, 0  ;;  %vm18790_vm9 = vcmp.lt.s32.totalorder %v13977_v34, 0  ;;  %v18791_v17 = vmov 0 }
  0x77   : > { %vm14091_vm10 = vmand %vm18790_vm9, %vm18789_vm6  ;;  %v577_v63 = vmul.u32 18, %v576_v44  ;;  %v14097_v42 = vmul.u32.u64.low 3817748708, %v14049_v26  ;;  %v14098_v19 = vmul.u32.u64.high 3817748708, %v14049_v26, %v14097_v42  ;;  %vm18793_vm14 = vcmp.ne.s32.totalorder %v13992_v28, 0 }
  0x78   : > { %v18792_v17 = vsel %vm14091_vm10, 4294967295, %v18791_v17  ;;  %vm18794_vm8 = vcmp.lt.s32.totalorder %v13992_v28, 0  ;;  %v18795_v47 = vmov 0  ;;  %v554_v27 = vshrl.u32 %v14018_v11, 4 }
  0x79   : > { %vm14104_vm4 = vmand %vm18794_vm8, %vm18793_vm14  ;;  %v14110_v50 = vmul.u32.u64.low 3817748708, %v14059_v13  ;;  %v14111_v41 = vmul.u32.u64.high 3817748708, %v14059_v13, %v14110_v50  ;;  %v14114_v44 = vadd.s32 272, %v13517_v29  ;;  %vm18797_vm9 = vcmp.ne.s32.totalorder %v14014_v30, 0 }
  0x7a   : > { %v18796_v47 = vsel %vm14104_vm4, 4294967295, %v18795_v47  ;;  %vm18798_vm6 = vcmp.lt.s32.totalorder %v14014_v30, 0  ;;  %v18799_v42 = vmov 0  ;;  %v609_v49 = vshrl.u32 %v14030_v0, 4 }
  0x7b   : > { %vm14120_vm5 = vmand %vm18798_vm6, %vm18797_vm9  ;;  %v587_v5 = vshrl.u32 %v14023_v57, 4  ;;  %v14127_v11 = vmul.u32.u64.low 3817748708, %v14069_v7  ;;  %v14128_v24 = vmul.u32.u64.high 3817748708, %v14069_v7, %v14127_v11  ;;  %v14143_v0 = vadd.s32 18, %v14040_v55 }
  0x7c   : > { %v18800_v42 = vsel %vm14120_vm5, 4294967295, %v18799_v42  ;;  %v14139_v2 = vmul.u32.u64.low 3817748708, %v14085_v16  ;;  %v14140_v31 = vmul.u32.u64.high 3817748708, %v14085_v16, %v14139_v2  ;;  %v14146_v57 = vsub.s32 %v13940_v32, %v577_v63 }
  0x7d   : > { %18801 = vst [vmem:[#allocation40_spill] sm:$0xff] %v18800_v42  ;;  %18802 = vst [vmem:[#allocation41_spill] sm:$0xff] %v14143_v0  ;;  %v14149_v11 = vmul.u32.u64.low 3817748708, %v14114_v44  ;;  %v14150_v54 = vmul.u32.u64.high 3817748708, %v14114_v44, %v14149_v11  ;;  %vm18803_vm8 = vcmp.ne.s32.totalorder %v14040_v55, 0  ;;  %vm18804_vm14 = vcmp.lt.s32.totalorder %v14040_v55, 0 }
  0x7e   : > { %vm14164_vm9 = vmand %vm18804_vm14, %vm18803_vm8  ;;  %v18805_v32 = vmov 0  ;;  %v555_v63 = vmul.u32 18, %v554_v27  ;;  %v620_v11 = vshrl.u32 %v14056_v56, 4  ;;  %vm735_vm6 = vcmp.ne.s32.totalorder %v14062_v33, 0 }
  0x7f   : > { %v18806_v32 = vsel %vm14164_vm9, 4294967295, %v18805_v32  ;;  %v610_v60 = vmul.u32 18, %v609_v49  ;;  %v588_v50 = vmul.u32 18, %v587_v5  ;;  %v598_v28 = vshrl.u32 %v14066_v21, 4 }
  0x80   : > { %18807 = vst [vmem:[#allocation42_spill] sm:$0xff] %v18806_v32  ;;  %vm771_vm4 = vcmp.lt.s32.totalorder %v14062_v33, 0  ;;  %v14173_v2 = vadd.s32 18, %v14062_v33  ;;  %v631_v30 = vshrl.u32 %v14082_v62, 4  ;;  %v14177_v40 = vadd.s32 280, %v13517_v29 }
  0x81   : > { %vm736_vm8 = vcmp.ne.s32.totalorder %v14146_v57, 0  ;;  %v653_v56 = vshrl.u32 %v14098_v19, 4  ;;  %v14186_v5 = vadd.s32 264, %v13517_v29  ;;  %vm772_vm14 = vcmp.lt.s32.totalorder %v14146_v57, 0  ;;  %vm14195_vm5 = vmand %vm771_vm4, %vm735_vm6 }
  0x82   : > { %v14190_v21 = vsub.s32 %v13985_v12, %v555_v63  ;;  %v621_v49 = vmul.u32 18, %v620_v11  ;;  %v664_v62 = vshrl.u32 %v14111_v41, 4  ;;  %v18808_v32 = vmov 0  ;;  %vm14230_vm4 = vmand %vm772_vm14, %vm736_vm8 }
  0x83   : > { %v18809_v32 = vsel %vm14195_vm5, 4294967295, %v18808_v32  ;;  %v14200_v27 = vsub.s32 %v14003_v37, %v610_v60  ;;  %v14203_v29 = vsub.s32 %v13997_v14, %v588_v50  ;;  %v599_v19 = vmul.u32 18, %v598_v28 }
  0x84   : > { %v642_v55 = vshrl.u32 %v14128_v24, 4  ;;  %v632_v12 = vmul.u32 18, %v631_v30  ;;  %v675_v63 = vshrl.u32 %v14140_v31, 4  ;;  %v654_v0 = vmul.u32 18, %v653_v56 }
  0x85   : > { %18810 = vst [vmem:[#allocation43_spill] sm:$0xff] %v14203_v29  ;;  %v14208_v41 = vmul.u32.u64.low 3817748708, %v14177_v40  ;;  %v14209_v11 = vmul.u32.u64.high 3817748708, %v14177_v40, %v14208_v41  ;;  %v697_v42 = vshrl.u32 %v14150_v54, 4  ;;  %v14221_v24 = vadd.s32 18, %v14146_v57 }
  0x86   : > { %v14213_v3 = vmul.u32.u64.low 3817748708, %v14186_v5  ;;  %v14214_v60 = vmul.u32.u64.high 3817748708, %v14186_v5, %v14213_v3  ;;  %v14224_v31 = vsub.s32 %v14026_v6, %v621_v49  ;;  %v665_v14 = vmul.u32 18, %v664_v62 }
  0x87   : > { %v18812_v54 = vmov 0  ;;  %vm734_vm6 = vcmp.ne.s32.totalorder %v14190_v21, 0  ;;  %vm770_vm9 = vcmp.lt.s32.totalorder %v14190_v21, 0  ;;  %v14237_v37 = vsub.s32 %v14033_v45, %v599_v19 }
  0x88   : > { %18811 = vst [vmem:[#allocation44_spill] sm:$0xff] %v14224_v31  ;;  %v18813_v54 = vsel %vm14230_vm4, 4294967295, %v18812_v54  ;;  %v643_v30 = vmul.u32 18, %v642_v55  ;;  %v14242_v6 = vsub.s32 %v14043_v8, %v632_v12  ;;  %v676_v3 = vmul.u32 18, %v675_v63  ;;  %vm14255_vm1 = vmand %vm770_vm9, %vm734_vm6 }
  0x89   : > { %18814 = vst [vmem:[#allocation45_spill] sm:$0xff] %v14237_v37  ;;  %v14247_v50 = vsub.s32 %v14049_v26, %v654_v0  ;;  %v698_v56 = vmul.u32 18, %v697_v42  ;;  %v18817_v55 = vmov 0  ;;  %vm776_vm8 = vcmp.lt.s32.totalorder %v14224_v31, 0 }
  0x8a   : > { %18815 = vst [vmem:[#allocation46_spill] sm:$0xff] %v14242_v6  ;;  %v18818_v55 = vsel %vm14255_vm1, 4294967295, %v18817_v55  ;;  %v14262_v8 = vsub.s32 %v14059_v13, %v665_v14  ;;  %v18820_v26 = vsel %vm13638_vm12, %v13571_v4, %v13555_v59  ;;  %v18821_v42 = vmov 0 }
  0x8b   : > { %18816 = vst [vmem:[#allocation47_spill] sm:$0xff] %v14247_v50  ;;  %vm14269_vm14 = vcmp.lt.s32.totalorder %v18820_v26, 16  ;;  %v14274_v0 = vadd.s32 18, %v14190_v21  ;;  %vm18824_vm9 = vcmp.ne.s32.totalorder %v14203_v29, 0  ;;  %vm18825_vm6 = vcmp.lt.s32.totalorder %v14203_v29, 0 }
  0x8c   : > { %18819 = vst [vmem:[#allocation48_spill] sm:$0xff] %v14262_v8  ;;  %v18822_v42 = vsel %vm14269_vm14, 4294967295, %v18821_v42  ;;  %vm14280_vm5 = vmand %vm18825_vm6, %vm18824_vm9  ;;  %v18826_v49 = vmov 0  ;;  %vm738_vm4 = vcmp.ne.s32.totalorder %v14237_v37, 0  ;;  %v14287_v59 = vsub.s32 %v14069_v7, %v643_v30 }
  0x8d   : > { %18823 = vst [vmem:[#allocation49_spill] sm:$0xff] %v18822_v42  ;;  %v18827_v49 = vsel %vm14280_vm5, 4294967295, %v18826_v49  ;;  %vm18830_vm12 = vcmp.ne.s32.totalorder %v14200_v27, 0  ;;  %vm18831_vm13 = vcmp.lt.s32.totalorder %v14200_v27, 0  ;;  %v18832_v4 = vmov 0 }
  0x8e   : > { %18828 = vst [vmem:[#allocation50_spill] sm:$0xff] %v18827_v49  ;;  %18829 = vst [vmem:[#allocation51_spill] sm:$0xff] %v14287_v59  ;;  %v14300_v35 = vsub.s32 %v14085_v16, %v676_v3  ;;  %v708_v13 = vshrl.u32 %v14209_v11, 4  ;;  %v18835_v7 = vsel %vm13654_vm15, %v13583_v9, %v13558_v61  ;;  %v18836_v62 = vmov 0 }
  0x8f   : > { %vm14293_vm2 = vmand %vm18831_vm13, %vm18830_vm12  ;;  %vm14308_vm10 = vcmp.lt.s32.totalorder %v18835_v7, 16  ;;  %vm18839_vm13 = vcmp.ne.s32.totalorder %v14224_v31, 0  ;;  %v14321_v16 = vsub.s32 %v14114_v44, %v698_v56  ;;  %v686_v38 = vshrl.u32 %v14214_v60, 4  ;;  %v14343_v44 = vld [vmem:[%s18511_s2] ss:$0 sm:$0xff] }
  0x90   : > { %v18833_v4 = vsel %vm14293_vm2, 4294967295, %v18832_v4  ;;  %18834 = vst [vmem:[#allocation52_spill] sm:$0xff] %v14300_v35  ;;  %v18837_v62 = vsel %vm14308_vm10, 4294967295, %v18836_v62  ;;  %vm14314_vm12 = vmand %vm776_vm8, %vm18839_vm13  ;;  %v14325_v61 = vadd.s32 18, %v14200_v27  ;;  %v14328_v9 = vadd.s32 18, %v14203_v29 }
  0x91   : > { %18838 = vst [vmem:[#allocation53_spill] sm:$0xff] %v18837_v62  ;;  %vm18843_vm15 = vcmp.lt.s32.totalorder %v14237_v37, 0  ;;  %v18844_v12 = vmov 0  ;;  %v18847_v63 = vsel %vm13670_vm0, %v13610_v23, %v13565_v1  ;;  %v18848_v41 = vmov 0 }
  0x92   : > { %18842 = vst [vmem:[#allocation54_spill] sm:$0xff] %v14328_v9  ;;  %vm14334_vm8 = vmand %vm18843_vm15, %vm738_vm4  ;;  %vm14350_vm6 = vcmp.lt.s32.totalorder %v18847_v63, 16  ;;  %v14355_v11 = vadd.s32 18, %v14224_v31  ;;  %v14358_v60 = vadd.s32 18, %v14237_v37  ;;  %vm18852_vm4 = vcmp.ne.s32.totalorder %v14242_v6, 0 }
  0x93   : > { %v18845_v12 = vsel %vm14334_vm8, 4294967295, %v18844_v12  ;;  %v18849_v41 = vsel %vm14350_vm6, 4294967295, %v18848_v41  ;;  %vm18853_vm15 = vcmp.lt.s32.totalorder %v14242_v6, 0  ;;  %v18854_v14 = vmov 0 }
  0x94   : > { %18846 = vst [vmem:[#allocation55_spill] sm:$0xff] %v18845_v12  ;;  %18850 = vst [vmem:[#allocation56_spill] sm:$0xff] %v18849_v41  ;;  %vm18857_vm11 = vcmp.ne.s32.totalorder %v14247_v50, 0  ;;  %vm18858_vm3 = vcmp.lt.s32.totalorder %v14247_v50, 0  ;;  %v18859_v1 = vmov 0  ;;  %v14379_v23 = vadd.s32 18, %v14242_v6 }
  0x95   : > { %18851 = vst [vmem:[#allocation57_spill] sm:$0xff] %v14358_v60  ;;  %vm14364_vm9 = vmand %vm18853_vm15, %vm18852_vm4  ;;  %v709_v43 = vmul.u32 18, %v708_v13  ;;  %vm18863_vm0 = vnez %v18722_v46  ;;  %v18865_v56 = vmov 0  ;;  %v14393_v26 = vadd.s32 18, %v14247_v50 }
  0x96   : > { %v18855_v14 = vsel %vm14364_vm9, 4294967295, %v18854_v14  ;;  %vm14374_vm7 = vmand %vm18858_vm3, %vm18857_vm11  ;;  %18862 = vst [vmem:[#allocation60_spill] sm:$0xff] %v14379_v23  ;;  %v18864_v3 = vsel %vm18863_vm0, %v13643_v36, %v13585_v10  ;;  %vm18869_vm3 = vcmp.ne.s32.totalorder %v14262_v8, 0  ;;  %vm18870_vm11 = vcmp.lt.s32.totalorder %v14262_v8, 0 }
  0x97   : > { %18856 = vst [vmem:[#allocation58_spill] sm:$0xff] %v18855_v14  ;;  %v18860_v1 = vsel %vm14374_vm7, 4294967295, %v18859_v1  ;;  %vm14388_vm13 = vcmp.lt.s32.totalorder %v18864_v3, 16  ;;  %18868 = vst [vmem:[#allocation62_spill] sm:$0xff] %v14393_v26  ;;  %v18871_v7 = vmov 0  ;;  %v687_v10 = vmul.u32 18, %v686_v38 }
  0x98   : > { %18861 = vst [vmem:[#allocation59_spill] sm:$0xff] %v18860_v1  ;;  %v18866_v56 = vsel %vm14388_vm13, 4294967295, %v18865_v56  ;;  %vm14399_vm4 = vmand %vm18870_vm11, %vm18869_vm3  ;;  %v14415_v63 = vadd.s32 18, %v14262_v8  ;;  %vm18875_vm0 = vcmp.ne.s32.totalorder %v14287_v59, 0  ;;  %vm18876_vm3 = vcmp.lt.s32.totalorder %v14287_v59, 0 }
  0x99   : > { %18867 = vst [vmem:[#allocation61_spill] sm:$0xff] %v18866_v56  ;;  %v18872_v7 = vsel %vm14399_vm4, 4294967295, %v18871_v7  ;;  %vm14421_vm11 = vmand %vm18876_vm3, %vm18875_vm0  ;;  %v18877_v38 = vmov 0  ;;  %vm18880_vm1 = vnez %v18726_v52  ;;  %v18882_v13 = vmov 0 }
  0x9a   : > { %18873 = vst [vmem:[#allocation63_spill] sm:$0xff] %v18872_v7  ;;  %18874 = vst [vmem:[#allocation64_spill] sm:$0xff] %v14415_v63  ;;  %v18878_v38 = vsel %vm14421_vm11, 4294967295, %v18877_v38  ;;  %v18881_v3 = vsel %vm18880_vm1, %v13711_v53, %v13617_v25  ;;  %v14439_v45 = vadd.s32 18, %v14287_v59  ;;  %v14442_v28 = vadd.s32 18, %v14321_v16 }
  0x9b   : > { %18879 = vst [vmem:[#allocation65_spill] sm:$0xff] %v18878_v38  ;;  %vm14430_vm5 = vcmp.lt.s32.totalorder %v18881_v3, 16  ;;  %vm18886_vm0 = vcmp.ne.s32.totalorder %v14300_v35, 0  ;;  %vm18887_vm3 = vcmp.lt.s32.totalorder %v14300_v35, 0  ;;  %v18888_v25 = vmov 0 }
  0x9c   : > { %v18883_v13 = vsel %vm14430_vm5, 4294967295, %v18882_v13  ;;  %18885 = vst [vmem:[#allocation67_spill] sm:$0xff] %v14439_v45  ;;  %vm14448_vm1 = vmand %vm18887_vm3, %vm18886_vm0  ;;  %v14453_v52 = vadd.s32 18, %v14300_v35  ;;  %vm18892_vm6 = vcmp.ne.s32.totalorder %v14321_v16, 0  ;;  %vm18893_vm15 = vcmp.lt.s32.totalorder %v14321_v16, 0 }
  0x9d   : > { %18884 = vst [vmem:[#allocation66_spill] sm:$0xff] %v18883_v13  ;;  %v18889_v25 = vsel %vm14448_vm1, 4294967295, %v18888_v25  ;;  %vm14464_vm2 = vmand %vm18893_vm15, %vm18892_vm6  ;;  %v14469_v9 = vsub.s32 %v14177_v40, %v709_v43  ;;  %vm18896_vm0 = vnez %v18724_v48  ;;  %vm18902_vm6 = vnez %v18729_v58  ;;  %v18919_v58 = vld [vmem:[#allocation14_spill] sm:$0xff] }
  0x9e   : > { %18890 = vst [vmem:[#allocation68_spill] sm:$0xff] %v18889_v25  ;;  %18891 = vst [vmem:[#allocation69_spill] sm:$0xff] %v14453_v52  ;;  %vm18926_vm1 = vcmask 519169  }
  0x9f   : > { %v14518_v40 = vadd.s32 18, %v14469_v9 }
  0xe4   : > { %v12374_v30 = vpop.f32.mrf.mxu0  ;;  %v12406_v45 = vpop.f32.mrf.mxu1 }
  0xe5   : > { %v1294_v36 = vadd.f32 %v12374_v30, %v14343_v44 }
  0xe6   : > { %v1285_v30 = vpop.f32.mrf.mxu0 }
  0xe7   : > { %v1430_v53 = vmax.f32 %v1294_v36, 0.0  ;;  %v1286_v3 = vadd.f32 %v14343_v44, %v1285_v30  ;;  %v18897_v36 = vsel %vm18896_vm0, %v13659_v39, %v13603_v20  ;;  %v18898_v30 = vmov 0 }
  0xe8   : > { %v12375_v49 = vpop.f32.mrf.mxu0  ;;  %vm14476_vm3 = vcmp.lt.s32.totalorder %v18897_v36, 16  ;;  %v14493_v20 = vsub.s32 %v14186_v5, %v687_v10  ;;  %vm18901_vm0 = vnez %v18849_v41 }
  0xe9   : > { %v18899_v30 = vsel %vm14476_vm3, 4294967295, %v18898_v30  ;;  %v1538_v39 = vsel %vm14269_vm14, %v1430_v53, 0.0  ;;  %v1428_v43 = vmax.f32 %v1286_v3, 0.0  ;;  %v1297_v36 = vadd.f32 %v12375_v49, %v14343_v44 }
  0xea   : > { %18900 = vst [vmem:[#allocation70_spill] sm:$0xff] %v18899_v30  ;;  %v12225_v46 = vpack.c.bf16 %v1538_v39, %v1538_v39  ;;  %v1288_v50 = vpop.f32.mrf.mxu0  ;;  %v14521_v10 = vadd.s32 18, %v14493_v20  ;;  %vm18925_vm14 = vsmask.f32 7942  ;;  %v18939_v30 = vmov 0 }
  0xeb   : > { %v1536_v53 = vsel %vm14308_vm10, %v1428_v43, 0.0  ;;  %v1431_v3 = vmax.f32 %v1297_v36, 0.0  ;;  %v1289_v39 = vadd.f32 %v14343_v44, %v1288_v50  ;;  %v14527_v36 = vadd.f32 %v12406_v45, %v14343_v44  ;;  %v18903_v45 = vld [vmem:[#allocation7_spill] sm:$0xff]  ;;  %vm14561_vm11 = vmand %vm18926_vm1, %vm18925_vm14 }
  0xec   : > { %v1703_v5 = vshrl.u32 %v12225_v46, 16  ;;  %v1706_v48 = vshll.u32 %v12225_v46, 16  ;;  %v12223_v42 = vpack.c.bf16 %v1536_v53, %v1536_v53  ;;  %v12378_v59 = vpop.f32.mrf.mxu0  ;;  %vm18931_vm14 = vsmask.f32 1280 }
  0xed   : > { %v1539_v49 = vsel %vm18901_vm0, %v1431_v3, 0.0  ;;  %v1429_v35 = vmax.f32 %v1289_v39, 0.0  ;;  %v1310_v43 = vadd.f32 %v12378_v59, %v14343_v44  ;;  %v18904_v59 = vld [vmem:[#allocation5_spill] sm:$0xff] }
  0xee   : > { %v1705_v50 = vrot.slane %v1703_v5, 6  ;;  %v1708_v62 = vrot.slane %v1706_v48, 7  ;;  %v1684_v52 = vshrl.u32 %v12223_v42, 16  ;;  %v1687_v25 = vshll.u32 %v12223_v42, 16  ;;  %v1301_v46 = vpop.f32.mrf.mxu0 }
  0xef   : > { %v12226_v53 = vpack.c.bf16 %v1539_v49, %v1539_v49  ;;  %v1537_v38 = vsel %vm14388_vm13, %v1429_v35, 0.0  ;;  %v1434_v8 = vmax.f32 %v1310_v43, 0.0  ;;  %v1302_v63 = vadd.f32 %v14343_v44, %v1301_v46  ;;  %v18909_v49 = vld [vmem:[#allocation9_spill] sm:$0xff]  ;;  %v18911_v35 = vld [vmem:[#allocation8_spill] sm:$0xff]  ;;  %v18912_v43 = vld [vmem:[#allocation6_spill] sm:$0xff] }
  0xf0   : > { %v1709_v41 = vor.u32 %v1708_v62, %v1705_v50  ;;  %v1686_v3 = vrot.slane %v1684_v52, 6  ;;  %v1689_v39 = vrot.slane %v1687_v25, 7  ;;  %v12224_v7 = vpack.c.bf16 %v1537_v38, %v1537_v38  ;;  %v12379_v42 = vpop.f32.mrf.mxu0  ;;  %v18917_v38 = vld [vmem:[#allocation20_spill] sm:$0xff]  ;;  %v18920_v25 = vld [vmem:[#allocation10_spill] sm:$0xff] }
  0xf1   : > { %v18905_v5 = vsel %vm18902_vm6, %v18903_v45, %v18904_v59  ;;  %v18906_v48 = vmov 0  ;;  %vm18910_vm0 = vnez %v18909_v49  ;;  %v18914_v62 = vmov 0  ;;  %v2082_v45 = vld [vmem:[#allocation2 + $0x8] sm:$0xe] }
  0xf2   : > { %vm14537_vm15 = vcmp.lt.s32.totalorder %v18905_v5, 16  ;;  %v18913_v56 = vsel %vm18910_vm0, %v18911_v35, %v18912_v43  ;;  %vm18918_vm10 = vnez %v18917_v38  ;;  %v18922_v50 = vmov 0 }
  0xf3   : > { %v18907_v48 = vsel %vm14537_vm15, 4294967295, %v18906_v48  ;;  %vm14546_vm13 = vcmp.lt.s32.totalorder %v18913_v56, 16  ;;  %v18921_v52 = vsel %vm18918_vm10, %v18919_v58, %v18920_v25  ;;  %v18927_v46 = vmov 0  ;;  %v1304_v25 = vpop.f32.mrf.mxu0 }
  0xf4   : > { %18908 = vst [vmem:[#allocation7_spill] sm:$0xff] %v18907_v48  ;;  %v18915_v62 = vsel %vm14546_vm13, 4294967295, %v18914_v62  ;;  %vm14555_vm6 = vcmp.lt.s32.totalorder %v18921_v52, 16  ;;  %v18928_v46 = vsel %vm14561_vm11, 4294967295, %v18927_v46  ;;  %v1713_v56 = vshrl.u32 %v12226_v53, 16 }
  0xf5   : > { %18916 = vst [vmem:[#allocation5_spill] sm:$0xff] %v18915_v62  ;;  %v18923_v50 = vsel %vm14555_vm6, 4294967295, %v18922_v50  ;;  %18929 = vst [vmem:[#allocation8_spill] sm:$0xff] %v18928_v46  ;;  %v1716_v59 = vshll.u32 %v12226_v53, 16  ;;  %v1542_v5 = vsel %vm14430_vm5, %v1434_v8, 0.0  ;;  %v1432_v49 = vmax.f32 %v1302_v63, 0.0 }
  0xf6   : > { %18924 = vst [vmem:[#allocation9_spill] sm:$0xff] %v18923_v50  ;;  %v1711_v35 = vrot.slane %v1709_v41, 4  ;;  %v1690_v43 = vor.u32 %v1689_v39, %v1686_v3  ;;  %v1693_v38 = vshrl.u32 %v12224_v7, 16  ;;  %v1696_v58 = vshll.u32 %v12224_v7, 16  ;;  %v12382_v7 = vpop.f32.mrf.mxu0  ;;  %v12652_v3 = vld [vmem:[%s18512_s3 + $0x38] sm:$0xff]  }
  0xf7   : > { %v1715_v52 = vrot.slane %v1713_v56, 6  ;;  %v1718_v6 = vrot.slane %v1716_v59, 7  ;;  %v12229_v23 = vpack.c.bf16 %v1542_v5, %v1542_v5  ;;  %v1540_v14 = vsel %vm14476_vm3, %v1432_v49, 0.0  ;;  %v18934_v49 = vld [vmem:[#allocation21_spill] sm:$0xff]  ;;  %5859 = vmatpush1.bf16.msra.mxu1 %v12652_v3 }
  0xf8   : > { %v1691_v26 = vrot.slane %v1690_v43, 4  ;;  %v2083_v1 = vsel %vm14561_vm11, %v1690_v43, %v2082_v45  ;;  %vm18930_vm10 = vsmask.f32 5392  ;;  %v1695_v63 = vrot.slane %v1693_v38, 6  ;;  %v18936_v45 = vld [vmem:[#allocation16_spill] sm:$0xff]  ;;  %v18937_v43 = vld [vmem:[#allocation11_spill] sm:$0xff] }
  0xf9   : > { %vm14573_vm1 = vmor %vm18931_vm14, %vm18930_vm10  ;;  %v1698_v53 = vrot.slane %v1696_v58, 7  ;;  %2084 = vst [vmem:[#allocation2 + $0x8] sm:$0xe] %v2083_v1  ;;  %v1719_v39 = vor.u32 %v1718_v6, %v1715_v52  ;;  %v1743_v56 = vshrl.u32 %v12229_v23, 16  ;;  %v1746_v59 = vshll.u32 %v12229_v23, 16  ;;  %v1317_v6 = vpop.f32.mrf.mxu0 }
  0xfa   : > { %v12227_v5 = vpack.c.bf16 %v1540_v14, %v1540_v14  ;;  %vm18935_vm0 = vnez %v18934_v49  ;;  %v1313_v58 = vadd.f32 %v12379_v42, %v14343_v44  ;;  %v1305_v13 = vadd.f32 %v14343_v44, %v1304_v25 }
  0xfb   : > { %v18938_v46 = vsel %vm18935_vm0, %v18936_v45, %v18937_v43  ;;  %v1699_v38 = vor.u32 %v1698_v53, %v1695_v63  ;;  %v1326_v1 = vadd.f32 %v12382_v7, %v14343_v44  ;;  %v1720_v14 = vsel %vm14573_vm1, %v1711_v35, %v1719_v39  ;;  %v18942_v45 = vld [vmem:[#allocation26_spill] sm:$0xff]  ;;  %v18945_v43 = vld [vmem:[#allocation13_spill] sm:$0xff]  ;;  %v12383_v3 = vpop.f32.mrf.mxu0 }
  0xfc   : > { %vm14585_vm10 = vcmp.lt.s32.totalorder %v18938_v46, 16  ;;  %v1721_v23 = vrot.slane %v1719_v39, 4  ;;  %v1745_v52 = vrot.slane %v1743_v56, 6  ;;  %v1748_v49 = vrot.slane %v1746_v59, 7  ;;  %v18944_v46 = vld [vmem:[#allocation23_spill] sm:$0xff]  ;;  %v12655_v39 = vld [vmem:[%s18512_s3 + $0x30] sm:$0xff]  }
  0xfd   : > { %v18940_v30 = vsel %vm14585_vm10, 4294967295, %v18939_v30  ;;  %vm18943_vm14 = vnez %v18942_v45  ;;  %v18947_v63 = vmov 0  ;;  %v18949_v42 = vmov 0  }
  0xfe   : > { %18941 = vst [vmem:[#allocation6_spill] sm:$0xff] %v18940_v30  ;;  %v18946_v37 = vsel %vm18943_vm14, %v18944_v46, %v18945_v43  ;;  %5860 = vmatprep.subr.bf16.mxu1 %v18949_v42  ;;  %vm18950_vm11 = vcmask 519168   ;;  %v1700_v25 = vsel %vm14573_vm1, %v1691_v26, %v1699_v38  ;;  %v1701_v35 = vrot.slane %v1699_v38, 4 }
  0xff   : > { %vm14599_vm0 = vcmp.lt.s32.totalorder %v18946_v37, 16  ;;  %2087 = vst.msk [vmem:[#allocation2 + $0x14] sm:$0xf] %vm18950_vm11, %v1720_v14  ;;  %v1723_v53 = vshrl.u32 %v12227_v5, 16  ;;  %v1726_v7 = vshll.u32 %v12227_v5, 16  ;;  %vm18951_vm14 = vmmov %vm18950_vm11  ;;  %v14611_v37 = vor.u32 %v1748_v49, %v1745_v52  ;;  %v1320_v5 = vpop.f32.mrf.mxu0  ;;  %5861 = vmatpush1.bf16.msra.mxu1 %v12655_v39  ;;  %v18955_v49 = vld [vmem:[#allocation12_spill] sm:$0xff] }
 0x100   : > { %v18948_v63 = vsel %vm14599_vm0, 4294967295, %v18947_v63  ;;  %2085 = vst.msk [vmem:[#allocation2 + $0xc] sm:$0xf] %vm18951_vm14, %v1700_v25  ;;  %v1435_v56 = vmax.f32 %v1313_v58, 0.0  ;;  %v1433_v59 = vmax.f32 %v1305_v13, 0.0  ;;  %v1438_v45 = vmax.f32 %v1326_v1, 0.0  ;;  %5862 = vmatprep.subr.bf16.mxu1 %v18949_v42 }
 0x101   : > { %v1710_v14 = vsel %vm14573_vm1, %v1701_v35, %v1709_v41  ;;  %v1725_v46 = vrot.slane %v1723_v53, 6  ;;  %v1728_v26 = vrot.slane %v1726_v7, 7  ;;  %v1318_v38 = vadd.f32 %v14343_v44, %v1317_v6  ;;  %v18952_v41 = vld [vmem:[#allocation24_spill] sm:$0xff]  ;;  %v18954_v1 = vld [vmem:[#allocation18_spill] sm:$0xff] }
 0x102   : > { %2086 = vst.msk [vmem:[#allocation2 + $0x10] sm:$0xf] %vm18950_vm11, %v1710_v14  ;;  %v1751_v43 = vrot.slane %v14611_v37, 4  ;;  %v1543_v52 = vsel %vm14537_vm15, %v1435_v56, 0.0  ;;  %v1541_v13 = vsel %vm14546_vm13, %v1433_v59, 0.0  ;;  %v1546_v58 = vsel %vm14555_vm6, %v1438_v45, 0.0 }
 0x103   : > { %vm18953_vm14 = vnez %v18952_v41  ;;  %v18957_v25 = vmov 0  ;;  %v1729_v35 = vor.u32 %v1728_v26, %v1725_v46  ;;  %v12230_v53 = vpack.c.bf16 %v1543_v52, %v1543_v52  ;;  %v18959_v56 = vld [vmem:[#allocation29_spill] sm:$0xff]  ;;  %v18961_v59 = vld [vmem:[#allocation27_spill] sm:$0xff] }
 0x104   : > { %v18956_v6 = vsel %vm18953_vm14, %v18954_v1, %v18955_v49  ;;  %v12228_v7 = vpack.c.bf16 %v1541_v13, %v1541_v13  ;;  %v12233_v39 = vpack.c.bf16 %v1546_v58, %v1546_v58  ;;  %vm18960_vm11 = vnez %v18959_v56  ;;  %v18962_v14 = vld [vmem:[#allocation17_spill] sm:$0xff]  ;;  %v12386_v1 = vpop.f32.mrf.mxu0 }
 0x105   : > { %vm14629_vm3 = vcmp.lt.s32.totalorder %v18956_v6, 16  ;;  %v18963_v45 = vsel %vm18960_vm11, %v18961_v59, %v18962_v14  ;;  %v18964_v41 = vmov 0  ;;  %v1436_v49 = vmax.f32 %v1318_v38, 0.0  ;;  %v12659_v26 = vld [vmem:[%s18512_s3 + $0x28] sm:$0xff]  }
 0x106   : > { %v18958_v25 = vsel %vm14629_vm3, 4294967295, %v18957_v25  ;;  %vm14639_vm6 = vcmp.lt.s32.totalorder %v18963_v45, 16  ;;  %v1329_v6 = vadd.f32 %v12383_v3, %v14343_v44  ;;  %v1321_v50 = vadd.f32 %v14343_v44, %v1320_v5  ;;  %v1333_v59 = vpop.f32.mrf.mxu0  ;;  %5863 = vmatpush1.bf16.msra.mxu1 %v12659_v26  ;;  %v18967_v26 = vld [vmem:[#allocation28_spill] sm:$0xff] }
 0x107   : > { %v18965_v41 = vsel %vm14639_vm6, 4294967295, %v18964_v41  ;;  %v1342_v46 = vadd.f32 %v12386_v1, %v14343_v44  ;;  %v1730_v52 = vsel %vm14573_vm1, %v1721_v23, %v1729_v35  ;;  %v1731_v13 = vrot.slane %v1729_v35, 4  ;;  %5864 = vmatprep.subr.bf16.mxu1 %v18949_v42 }
 0x108   : > { %v1753_v58 = vshrl.u32 %v12230_v53, 16  ;;  %v1756_v56 = vshll.u32 %v12230_v53, 16  ;;  %vm18966_vm14 = vcmask 519168   ;;  %v1733_v38 = vshrl.u32 %v12228_v7, 16  ;;  %v12387_v62 = vpop.f32.mrf.mxu0 }
 0x109   : > { %2088 = vst.msk [vmem:[#allocation2 + $0x18] sm:$0xf] %vm18966_vm14, %v1730_v52  ;;  %v1736_v14 = vshll.u32 %v12228_v7, 16  ;;  %v1783_v3 = vshrl.u32 %v12233_v39, 16  ;;  %v1786_v45 = vshll.u32 %v12233_v39, 16  ;;  %v1544_v23 = vsel %vm14585_vm10, %v1436_v49, 0.0 }
 0x10a   : > { %v1755_v5 = vrot.slane %v1753_v58, 6  ;;  %v1758_v1 = vrot.slane %v1756_v56, 7  ;;  %v1439_v35 = vmax.f32 %v1329_v6, 0.0  ;;  %v1735_v53 = vrot.slane %v1733_v38, 6  ;;  %v18969_v58 = vld [vmem:[#allocation25_spill] sm:$0xff]  ;;  %v18970_v56 = vld [vmem:[#allocation15_spill] sm:$0xff]  ;;  %v1336_v6 = vpop.f32.mrf.mxu0 }
 0x10b   : > { %v1738_v52 = vrot.slane %v1736_v14, 7  ;;  %v1785_v48 = vrot.slane %v1783_v3, 6  ;;  %v1788_v7 = vrot.slane %v1786_v45, 7  ;;  %v12231_v39 = vpack.c.bf16 %v1544_v23, %v1544_v23 }
 0x10c   : > { %v1759_v60 = vor.u32 %v1758_v1, %v1755_v5  ;;  %v1547_v12 = vsel %vm14599_vm0, %v1439_v35, 0.0  ;;  %v1437_v31 = vmax.f32 %v1321_v50, 0.0  ;;  %vm18968_vm14 = vnez %v18967_v26  ;;  %v18974_v50 = vld [vmem:[#allocation31_spill] sm:$0xff]  ;;  %v18976_v5 = vld [vmem:[#allocation30_spill] sm:$0xff] }
 0x10d   : > { %v18971_v30 = vsel %vm18968_vm14, %v18969_v58, %v18970_v56  ;;  %v18972_v49 = vmov 0  ;;  %v1739_v38 = vor.u32 %v1738_v52, %v1735_v53  ;;  %v14670_v14 = vor.u32 %v1788_v7, %v1785_v48  ;;  %v18977_v1 = vld [vmem:[#allocation19_spill] sm:$0xff]  ;;  %v14683_v53 = vpop.f32.mrf.mxu0 }
 0x10e   : > { %vm14664_vm13 = vcmp.lt.s32.totalorder %v18971_v30, 16  ;;  %v12234_v3 = vpack.c.bf16 %v1547_v12, %v1547_v12  ;;  %v1442_v45 = vmax.f32 %v1342_v46, 0.0  ;;  %vm18975_vm0 = vnez %v18974_v50 }
 0x10f   : > { %v18973_v49 = vsel %vm14664_vm13, 4294967295, %v18972_v49  ;;  %v18978_v23 = vsel %vm18975_vm0, %v18976_v5, %v18977_v1  ;;  %v1760_v35 = vsel %vm14573_vm1, %v1751_v43, %v1759_v60  ;;  %v1761_v26 = vrot.slane %v1759_v60, 4  ;;  %v12662_v43 = vld [vmem:[%s18512_s3 + $0x20] sm:$0xff]   ;;  %v18986_v1 = vld [vmem:[#allocation33_spill] sm:$0xff] }
 0x110   : > { %vm14677_vm14 = vcmp.lt.s32.totalorder %v18978_v23, 16  ;;  %v1763_v58 = vshrl.u32 %v12231_v39, 16  ;;  %v1766_v56 = vshll.u32 %v12231_v39, 16  ;;  %vm18981_vm10 = vcmask 519168   ;;  %v18988_v23 = vld [vmem:[#allocation32_spill] sm:$0xff]  ;;  %5865 = vmatpush1.bf16.msra.mxu1 %v12662_v43 }
 0x111   : > { %2091 = vst.msk [vmem:[#allocation2 + $0x24] sm:$0xf] %vm18981_vm10, %v1760_v35  ;;  %v1740_v12 = vsel %vm14573_vm1, %v1731_v13, %v1739_v38  ;;  %v1741_v48 = vrot.slane %v1739_v38, 4  ;;  %v1791_v46 = vrot.slane %v14670_v14, 4  ;;  %v1793_v52 = vshrl.u32 %v12234_v3, 16  ;;  %v18989_v35 = vld [vmem:[#allocation22_spill] sm:$0xff]  ;;  %5866 = vmatprep.subr.bf16.mxu1 %v18949_v42 }
 0x112   : > { %v18982_v7 = vsel %vm14464_vm2, %v14442_v28, %v14321_v16  ;;  %v18983_v60 = vmov 0  ;;  %2089 = vst.msk [vmem:[#allocation2 + $0x1c] sm:$0xf] %vm18981_vm10, %v1740_v12  ;;  %v1765_v13 = vrot.slane %v1763_v58, 6  ;;  %v1768_v39 = vrot.slane %v1766_v56, 7 }
 0x113   : > { %vm14694_vm0 = vcmp.lt.s32.totalorder %v18982_v7, 16  ;;  %v1796_v38 = vshll.u32 %v12234_v3, 16  ;;  %v1545_v50 = vsel %vm14629_vm3, %v1437_v31, 0.0  ;;  %v1750_v29 = vsel %vm14573_vm1, %v1741_v48, %v14611_v37  ;;  %v14720_v48 = vpop.f32.mrf.mxu0 }
 0x114   : > { %v18984_v60 = vsel %vm14694_vm0, 4294967295, %v18983_v60  ;;  %v1795_v28 = vrot.slane %v1793_v52, 6  ;;  %v12232_v16 = vpack.c.bf16 %v1545_v50, %v1545_v50  ;;  %v1550_v5 = vsel %vm14639_vm6, %v1442_v45, 0.0  ;;  %v12665_v45 = vld [vmem:[%s18512_s3 + $0x18] sm:$0xff]  }
 0x115   : > { %18985 = vst [vmem:[#allocation20_spill] sm:$0xff] %v18984_v60  ;;  %vm18987_vm2 = vnez %v18986_v1  ;;  %vm18993_vm11 = vcmask 519168   ;;  %v1769_v31 = vor.u32 %v1768_v39, %v1765_v13  ;;  %v1798_v3 = vrot.slane %v1796_v38, 7  ;;  %5867 = vmatpush1.bf16.msra.mxu1 %v12665_v45  ;;  %v2676_v45 = vld [vmem:[#allocation2 + $0x8] sm:$0xe] }
 0x116   : > { %v18990_v12 = vsel %vm18987_vm2, %v18988_v23, %v18989_v35  ;;  %2090 = vst.msk [vmem:[#allocation2 + $0x20] sm:$0xf] %vm18993_vm11, %v1750_v29  ;;  %v12237_v37 = vpack.c.bf16 %v1550_v5, %v1550_v5  ;;  %v1334_v56 = vadd.f32 %v14343_v44, %v1333_v59  ;;  %v1773_v52 = vshrl.u32 %v12232_v16, 16  ;;  %v2642_v29 = vld [vmem:[#allocation2 + $0xc] sm:$0xf]  ;;  %5868 = vmatprep.subr.bf16.mxu1 %v18949_v42  ;;  %v12690_v5 = vld [vmem:[%s18512_s3 + $0x58] sm:$0xff]  }
 0x117   : > { %vm14714_vm10 = vcmp.lt.s32.totalorder %v18990_v12, 16  ;;  %v1776_v7 = vshll.u32 %v12232_v16, 16  ;;  %v1345_v50 = vadd.f32 %v12387_v62, %v14343_v44  ;;  %v1337_v43 = vadd.f32 %v14343_v44, %v1336_v6  ;;  %v12391_v12 = vpop.f32.mrf.mxu0 }
 0x118   : > { %v1770_v13 = vsel %vm14573_vm1, %v1761_v26, %v1769_v31  ;;  %v1771_v39 = vrot.slane %v1769_v31, 4  ;;  %v14730_v38 = vor.u32 %v1798_v3, %v1795_v28  ;;  %v1823_v59 = vshrl.u32 %v12237_v37, 16  ;;  %v12668_v26 = vld [vmem:[%s18512_s3 + $0x10] sm:$0xff]  }
 0x119   : > { %vm18994_vm11 = vcmp.ne.s32.totalorder %v14469_v9, 0  ;;  %vm18995_vm2 = vcmp.lt.s32.totalorder %v14469_v9, 0  ;;  %vm18998_vm3 = vcmask 519168   ;;  %v1775_v62 = vrot.slane %v1773_v52, 6  ;;  %5869 = vmatpush1.bf16.msra.mxu1 %v12668_v26 }
 0x11a   : > { %vm14736_vm6 = vmand %vm18995_vm2, %vm18994_vm11  ;;  %2092 = vst.msk [vmem:[#allocation2 + $0x28] sm:$0xf] %vm18998_vm3, %v1770_v13  ;;  %v1778_v6 = vrot.slane %v1776_v7, 7  ;;  %v1826_v16 = vshll.u32 %v12237_v37, 16  ;;  %v1440_v1 = vmax.f32 %v1334_v56, 0.0  ;;  %v1800_v28 = vsel %vm14573_vm1, %v1791_v46, %v14730_v38  ;;  %5870 = vmatprep.subr.bf16.mxu1 %v18949_v42 }
 0x11b   : > { %v1825_v23 = vrot.slane %v1823_v59, 6  ;;  %v1443_v35 = vmax.f32 %v1345_v50, 0.0  ;;  %v1462_v31 = vmax.f32 %v14527_v36, 0.0  ;;  %2095 = vst.msk [vmem:[#allocation2 + $0x34] sm:$0xf] %vm18998_vm3, %v1800_v28  ;;  %vm18999_vm11 = vnez %v18792_v17  ;;  %v19009_v50 = vld [vmem:[#allocation37_spill] sm:$0xff] }
 0x11c   : > { %v1779_v3 = vor.u32 %v1778_v6, %v1775_v62  ;;  %v1828_v37 = vrot.slane %v1826_v16, 7  ;;  %v1548_v56 = vsel %vm14664_vm13, %v1440_v1, 0.0  ;;  %v19000_v46 = vsel %vm18999_vm11, %v14011_v51, %v13977_v34  ;;  %v19010_v17 = vld [vmem:[#allocation34_spill] sm:$0xff]  ;;  %v12671_v28 = vld [vmem:[%s18512_s3 + $0x8] sm:$0xff]  }
 0x11d   : > { %vm14757_vm2 = vcmp.lt.s32.totalorder %v19000_v46, 16  ;;  %v19001_v52 = vmov 0  ;;  %vm19003_vm15 = vnez %v18788_v22  ;;  %v19005_v7 = vmov 0  ;;  %5871 = vmatpush1.bf16.msra.mxu1 %v12671_v28 }
 0x11e   : > { %v19002_v52 = vsel %vm14757_vm2, 4294967295, %v19001_v52  ;;  %v19004_v36 = vsel %vm19003_vm15, %v14008_v18, %v13966_v15  ;;  %vm19008_vm13 = vnez %v18796_v47  ;;  %v19012_v34 = vmov 0  ;;  %5872 = vmatprep.subr.bf16.mxu1 %v18949_v42 }
 0x11f   : > { %vm14766_vm3 = vcmp.lt.s32.totalorder %v19004_v36, 16  ;;  %v19011_v13 = vsel %vm19008_vm13, %v19009_v50, %v19010_v17  ;;  %v892_v22 = vsel %vm14736_vm6, %v14518_v40, %v14469_v9  ;;  %vm19015_vm15 = vcmp.ne.s32.totalorder %v14493_v20, 0 }
 0x120   : > { %v19006_v7 = vsel %vm14766_vm3, 4294967295, %v19005_v7  ;;  %vm14775_vm5 = vcmp.lt.s32.totalorder %v19011_v13, 16  ;;  %vm19016_vm11 = vcmp.lt.s32.totalorder %v14493_v20, 0  ;;  %v12235_v18 = vpack.c.bf16 %v1548_v56, %v1548_v56 }
 0x121   : > { %19007 = vst [vmem:[#allocation14_spill] sm:$0xff] %v19006_v7  ;;  %v19013_v34 = vsel %vm14775_vm5, 4294967295, %v19012_v34  ;;  %vm14787_vm4 = vmand %vm19016_vm11, %vm19015_vm15  ;;  %v1551_v51 = vsel %vm14677_vm14, %v1443_v35, 0.0  ;;  %v1441_v47 = vmax.f32 %v1337_v43, 0.0  ;;  %v11507_v59 = vcombine.low %v2676_v45, %v2642_v29  ;;  %v14802_v43 = vld [vmem:[#allocation2 + $0x8] sm:$0xff]   ;;  %v12616_v45 = vld [vmem:[#allocation2 + $0x10] sm:$0xff]  }
 0x122   : > { %19014 = vst [vmem:[#allocation10_spill] sm:$0xff] %v19013_v34  ;;  %v1780_v62 = vsel %vm14573_vm1, %v1771_v39, %v1779_v3  ;;  %v1781_v6 = vrot.slane %v1779_v3, 4  ;;  %v14795_v16 = vor.u32 %v1828_v37, %v1825_v23  ;;  %v12238_v1 = vpack.c.bf16 %v1551_v51, %v1551_v51  ;;  %v1352_v39 = vpop.f32.mrf.mxu0 }
 0x123   : > { %vm19019_vm15 = vcmask 519168   ;;  %v1803_v56 = vshrl.u32 %v12235_v18, 16  ;;  %v1806_v46 = vshll.u32 %v12235_v18, 16  ;;  %2784 = vrot.lane.b32.xlu0 %v11507_v59, %s13243_s12  ;;  %v14806_v29 = vsel %vm14694_vm0, %v1462_v31, 0.0 }
 0x124   : > { %2093 = vst.msk [vmem:[#allocation2 + $0x2c] sm:$0xf] %vm19019_vm15, %v1780_v62  ;;  %v1801_v23 = vrot.slane %v14730_v38, 4  ;;  %v1790_v35 = vsel %vm14573_vm1, %v1781_v6, %v14670_v14  ;;  %v1833_v3 = vshrl.u32 %v12238_v1, 16  ;;  %v1836_v37 = vshll.u32 %v12238_v1, 16  ;;  %vm19020_vm11 = vmmov %vm19019_vm15  ;;  %v19021_v1 = vld [vmem:[#allocation40_spill] sm:$0xff] }
 0x125   : > { %2094 = vst.msk [vmem:[#allocation2 + $0x30] sm:$0xf] %vm19020_vm11, %v1790_v35  ;;  %v1831_v31 = vrot.slane %v14795_v16, 4  ;;  %v1805_v36 = vrot.slane %v1803_v56, 6  ;;  %v1808_v50 = vrot.slane %v1806_v46, 7  ;;  %v1549_v17 = vsel %vm14714_vm10, %v1441_v47, 0.0 }
 0x126   : > { %v1835_v13 = vrot.slane %v1833_v3, 6  ;;  %v1838_v18 = vrot.slane %v1836_v37, 7  ;;  %v12236_v51 = vpack.c.bf16 %v1549_v17, %v1549_v17  ;;  %v1358_v38 = vadd.f32 %v14683_v53, %v14343_v44  ;;  %v19023_v47 = vld [vmem:[#allocation39_spill] sm:$0xff]  ;;  %v19024_v56 = vld [vmem:[#allocation36_spill] sm:$0xff]  ;;  %v14837_v53 = vpop.f32.mrf.mxu0  ;;  %v14842_v37 = vld [vmem:[#allocation2 + $0x10] sm:$0xff]  }
 0x127   : > { %v1809_v14 = vor.u32 %v1808_v50, %v1805_v36  ;;  %v1350_v59 = vadd.f32 %v14343_v44, %v14720_v48  ;;  %2786 = vrot.lane.b32.xlu0 %v12616_v45, %s13243_s12  ;;  %v1361_v62 = vadd.f32 %v12391_v12, %v14343_v44  ;;  %v2264_v6 = vshll.u32 %v14802_v43, 16 }
 0x128   : > { %vm19022_vm15 = vnez %v19021_v1  ;;  %v19026_v35 = vmov 0  ;;  %v14840_v48 = vor.u32 %v1838_v18, %v1835_v13  ;;  %v1813_v28 = vshrl.u32 %v12236_v51, 16  ;;  %v12674_v1 = vld [vmem:[%s18512_s3] sm:$0xff]  }
 0x129   : > { %v19025_v46 = vsel %vm19022_vm15, %v19023_v47, %v19024_v56  ;;  %v1816_v3 = vshll.u32 %v12236_v51, 16  ;;  %v1446_v12 = vmax.f32 %v1358_v38, 0.0  ;;  %v1810_v45 = vsel %vm14573_vm1, %v1801_v23, %v1809_v14  ;;  %v1365_v47 = vpop.f32.mrf.mxu0  ;;  %5873 = vmatpush1.bf16.msra.mxu1 %v12674_v1  ;;  %v19038_v1 = vld [vmem:[#allocation42_spill] sm:$0xff] }
 0x12a   : > { %vm14833_vm11 = vcmp.lt.s32.totalorder %v19025_v46, 16  ;;  %v1811_v36 = vrot.slane %v1809_v14, 4  ;;  %v1444_v50 = vmax.f32 %v1350_v59, 0.0  ;;  %v1447_v17 = vmax.f32 %v1361_v62, 0.0  ;;  %5874 = vmatprep.subr.bf16.mxu1 %v18949_v42 }
 0x12b   : > { %v19027_v35 = vsel %vm14833_vm11, 4294967295, %v19026_v35  ;;  %vm19029_vm15 = vcmask 519168   ;;  %v1840_v13 = vsel %vm14573_vm1, %v1831_v31, %v14840_v48  ;;  %v1841_v18 = vrot.slane %v14840_v48, 4 }
 0x12c   : > { %19028 = vst [vmem:[#allocation21_spill] sm:$0xff] %v19027_v35  ;;  %2096 = vst.msk [vmem:[#allocation2 + $0x38] sm:$0xf] %vm19029_vm15, %v1810_v45  ;;  %v1815_v51 = vrot.slane %v1813_v28, 6  ;;  %v1818_v38 = vrot.slane %v1816_v3, 7  ;;  %v1554_v23 = vsel %vm14757_vm2, %v1446_v12, 0.0  ;;  %v1353_v12 = vadd.f32 %v14343_v44, %v1352_v39 }
 0x12d   : > { %vm19030_vm13 = vmmov %vm19029_vm15  ;;  %v1552_v14 = vsel %vm14766_vm3, %v1444_v50, 0.0  ;;  %v1555_v59 = vsel %vm14775_vm5, %v1447_v17, 0.0  ;;  %v2266_v62 = vrot.slane %v2264_v6, 1  ;;  %v12241_v31 = vpack.c.bf16 %v1554_v23, %v1554_v23  ;;  %v19031_v28 = vld [vmem:[#allocation35_spill] sm:$0xff] }
 0x12e   : > { %2099 = vst.msk [vmem:[#allocation2 + $0x44] sm:$0xf] %vm19030_vm13, %v1840_v13  ;;  %v1819_v56 = vor.u32 %v1818_v38, %v1815_v51  ;;  %v12239_v46 = vpack.c.bf16 %v1552_v14, %v1552_v14  ;;  %v12242_v48 = vpack.c.bf16 %v1555_v59, %v1555_v59  ;;  %vm19032_vm13 = vsmask.f32 7424  ;;  %v19040_v13 = vld [vmem:[#allocation41_spill] sm:$0xff]  ;;  %v19041_v51 = vld [vmem:[#allocation38_spill] sm:$0xff] }
 0x12f   : > { %v2267_v3 = vsel %vm19032_vm13, %v19031_v28, %v2266_v62  ;;  %v2268_v45 = vshrl.u32 %v14802_v43, 16  ;;  %v2272_v50 = vshll.u32 %v14842_v37, 16  ;;  %vm19033_vm15 = vnez %v18809_v32 }
 0x130   : > { %v19034_v6 = vsel %vm19033_vm15, %v14173_v2, %v14062_v33  ;;  %v19035_v17 = vmov 0  ;;  %vm19039_vm5 = vnez %v19038_v1  ;;  %v19043_v39 = vmov 0  ;;  %2404 = vrot.lane.b32.xlu1 %v2267_v3, %s13243_s12  ;;  %v12620_v33 = vld [vmem:[#allocation2 + $0x18] sm:$0xff]   ;;  %v12395_v1 = vpop.f32.mrf.mxu0 }
 0x131   : > { %vm14872_vm0 = vcmp.lt.s32.totalorder %v19034_v6, 16  ;;  %v19042_v38 = vsel %vm19039_vm5, %v19040_v13, %v19041_v51  ;;  %v1820_v43 = vsel %vm14573_vm1, %v1811_v36, %v1819_v56  ;;  %v1821_v32 = vrot.slane %v1819_v56, 4 }
 0x132   : > { %v19036_v17 = vsel %vm14872_vm0, 4294967295, %v19035_v17  ;;  %vm14881_vm13 = vcmp.lt.s32.totalorder %v19042_v38, 16  ;;  %v1863_v23 = vshrl.u32 %v12241_v31, 16  ;;  %v1866_v14 = vshll.u32 %v12241_v31, 16 }
 0x133   : > { %19037 = vst [vmem:[#allocation16_spill] sm:$0xff] %v19036_v17  ;;  %v19044_v39 = vsel %vm14881_vm13, 4294967295, %v19043_v39  ;;  %vm19046_vm15 = vnez %v18813_v54  ;;  %v19048_v59 = vmov 0  ;;  %vm19051_vm5 = vcmask 519168  }
 0x134   : > { %19045 = vst [vmem:[#allocation11_spill] sm:$0xff] %v19044_v39  ;;  %v19047_v2 = vsel %vm19046_vm15, %v14221_v24, %v14146_v57  ;;  %2097 = vst.msk [vmem:[#allocation2 + $0x3c] sm:$0xf] %vm19051_vm5, %v1820_v43  ;;  %v1843_v28 = vshrl.u32 %v12239_v46, 16  ;;  %v1846_v6 = vshll.u32 %v12239_v46, 16  ;;  %v1873_v36 = vshrl.u32 %v12242_v48, 16  ;;  %2788 = vrot.lane.b32.xlu1 %v12620_v33, %s13243_s12 }
 0x135   : > { %vm14893_vm3 = vcmp.lt.s32.totalorder %v19047_v2, 16  ;;  %v1876_v56 = vshll.u32 %v12242_v48, 16  ;;  %v1830_v31 = vsel %vm14573_vm1, %v1821_v32, %v14795_v16  ;;  %v1865_v3 = vrot.slane %v1863_v23, 6  ;;  %vm19052_vm2 = vmmov %vm19051_vm5  ;;  %v14902_v2 = vld [vmem:[#allocation2 + $0x18] sm:$0xff]   ;;  %v19322_v39 = vld [vmem:[#allocation61_spill] sm:$0xff] }
 0x136   : > { %v19049_v59 = vsel %vm14893_vm3, 4294967295, %v19048_v59  ;;  %v1868_v54 = vrot.slane %v1866_v14, 7  ;;  %v1445_v13 = vmax.f32 %v1353_v12, 0.0  ;;  %2098 = vst.msk [vmem:[#allocation2 + $0x40] sm:$0xf] %vm19052_vm2, %v1830_v31  ;;  %v1845_v57 = vrot.slane %v1843_v28, 6  ;;  %v1368_v14 = vpop.f32.mrf.mxu0 }
 0x137   : > { %19050 = vst [vmem:[#allocation26_spill] sm:$0xff] %v19049_v59  ;;  %v1848_v24 = vrot.slane %v1846_v6, 7  ;;  %v1875_v51 = vrot.slane %v1873_v36, 6  ;;  %v1878_v38 = vrot.slane %v1876_v56, 7  ;;  %v2270_v48 = vor.u32 %v2268_v45, %v2266_v62  ;;  %v12622_v62 = vld [vmem:[#allocation2 + $0x20] sm:$0xff]  }
 0x138   : > { %v14904_v43 = vor.u32 %v1868_v54, %v1865_v3  ;;  %v1553_v46 = vsel %vm14833_vm11, %v1445_v13, 0.0  ;;  %v2274_v26 = vrot.slane %v2272_v50, 1  ;;  %v1374_v23 = vadd.f32 %v14837_v53, %v14343_v44  ;;  %2790 = vrot.lane.b32.xlu1 %v12622_v62, %s13243_s12 }
 0x139   : > { %v1849_v16 = vor.u32 %v1848_v24, %v1845_v57  ;;  %v14909_v32 = vor.u32 %v1878_v38, %v1875_v51  ;;  %v12240_v12 = vpack.c.bf16 %v1553_v46, %v1553_v46  ;;  %vm19053_vm2 = vsmask.f32 7424  ;;  %v12398_v51 = vpop.f32.mrf.mxu0 }
 0x13a   : > { %v1871_v28 = vrot.slane %v14904_v43, 4  ;;  %v2275_v6 = vsel %vm19053_vm2, %v2270_v48, %v2274_v26  ;;  %v1366_v36 = vadd.f32 %v14343_v44, %v1365_v47  ;;  %v1377_v56 = vadd.f32 %v12395_v1, %v14343_v44 }
 0x13b   : > { %vm19054_vm15 = vnez %v18818_v55  ;;  %v19056_v50 = vmov 0  ;;  %v1850_v53 = vsel %vm14573_vm1, %v1841_v18, %v1849_v16  ;;  %v1851_v33 = vrot.slane %v1849_v16, 4  ;;  %2406 = vrot.lane.b32.xlu0 %v2275_v6, %s13243_s12  ;;  %v12677_v55 = vld [vmem:[%s18512_s3 + $0x78] sm:$0xff]   ;;  %v12624_v18 = vld [vmem:[#allocation2 + $0x28] sm:$0xff]  }
 0x13c   : > { %v19055_v45 = vsel %vm19054_vm15, %v14274_v0, %v14190_v21  ;;  %v1881_v31 = vrot.slane %v14909_v32, 4  ;;  %v1853_v3 = vshrl.u32 %v12240_v12, 16  ;;  %vm19059_vm2 = vcmask 519168   ;;  %5875 = vmatpush2.bf16.msra.mxu1 %v12677_v55  ;;  %2792 = vrot.lane.b32.xlu1 %v12624_v18, %s13243_s12  ;;  %v12628_v18 = vld [vmem:[#allocation2 + $0x38] sm:$0xff]  }
 0x13d   : > { %vm14922_vm5 = vcmp.lt.s32.totalorder %v19055_v45, 16  ;;  %2100 = vst.msk [vmem:[#allocation2 + $0x48] sm:$0xf] %vm19059_vm2, %v1850_v53  ;;  %v1880_v21 = vsel %vm14573_vm1, %v1871_v28, %v14909_v32  ;;  %v1856_v0 = vshll.u32 %v12240_v12, 16  ;;  %v1450_v47 = vmax.f32 %v1374_v23, 0.0  ;;  %vm19060_vm15 = vmmov %vm19059_vm2  ;;  %5876 = vmatprep.subr.bf16.mxu1 %v18949_v42  ;;  %v14958_v53 = vld [vmem:[#allocation2 + $0x20] sm:$0xff]  }
 0x13e   : > { %v19057_v50 = vsel %vm14922_vm5, 4294967295, %v19056_v50  ;;  %v1448_v1 = vmax.f32 %v1366_v36, 0.0  ;;  %2103 = vst.msk [vmem:[#allocation2 + $0x54] sm:$0xf] %vm19060_vm15, %v1880_v21  ;;  %v1855_v54 = vrot.slane %v1853_v3, 6  ;;  %v1451_v13 = vmax.f32 %v1377_v56, 0.0  ;;  %v1381_v21 = vpop.f32.mrf.mxu0 }
 0x13f   : > { %19058 = vst [vmem:[#allocation23_spill] sm:$0xff] %v19057_v50  ;;  %v2276_v57 = vshrl.u32 %v14842_v37, 16  ;;  %v2280_v24 = vshll.u32 %v14902_v2, 16  ;;  %v1858_v38 = vrot.slane %v1856_v0, 7  ;;  %v1558_v46 = vsel %vm14872_vm0, %v1450_v47, 0.0  ;;  %v12626_v56 = vld [vmem:[#allocation2 + $0x30] sm:$0xff]  }
 0x140   : > { %v1556_v48 = vsel %vm14881_vm13, %v1448_v1, 0.0  ;;  %v1369_v16 = vadd.f32 %v14343_v44, %v1368_v14  ;;  %vm19061_vm2 = vnez %v18833_v4  ;;  %v19063_v37 = vmov 0  ;;  %2794 = vrot.lane.b32.xlu1 %v12626_v56, %s13243_s12 }
 0x141   : > { %v19062_v12 = vsel %vm19061_vm2, %v14325_v61, %v14200_v27  ;;  %v12245_v23 = vpack.c.bf16 %v1558_v46, %v1558_v46  ;;  %v12243_v28 = vpack.c.bf16 %v1556_v48, %v1556_v48  ;;  %v1559_v6 = vsel %vm14893_vm3, %v1451_v13, 0.0  ;;  %v19066_v13 = vld [vmem:[#allocation50_spill] sm:$0xff] }
 0x142   : > { %vm14951_vm15 = vcmp.lt.s32.totalorder %v19062_v12, 16  ;;  %v2278_v36 = vor.u32 %v2276_v57, %v2274_v26  ;;  %v1859_v62 = vor.u32 %v1858_v38, %v1855_v54  ;;  %v12246_v14 = vpack.c.bf16 %v1559_v6, %v1559_v6  ;;  %v19068_v54 = vld [vmem:[#allocation54_spill] sm:$0xff]  ;;  %v19069_v57 = vld [vmem:[#allocation43_spill] sm:$0xff] }
 0x143   : > { %v19064_v37 = vsel %vm14951_vm15, 4294967295, %v19063_v37  ;;  %v2282_v45 = vrot.slane %v2280_v24, 1  ;;  %v1449_v4 = vmax.f32 %v1369_v16, 0.0  ;;  %v1903_v27 = vshrl.u32 %v12245_v23, 16 }
 0x144   : > { %19065 = vst [vmem:[#allocation13_spill] sm:$0xff] %v19064_v37  ;;  %v1906_v61 = vshll.u32 %v12245_v23, 16  ;;  %v1883_v3 = vshrl.u32 %v12243_v28, 16  ;;  %v1886_v55 = vshll.u32 %v12243_v28, 16  ;;  %v1860_v0 = vsel %vm14573_vm1, %v1851_v33, %v1859_v62  ;;  %2796 = vrot.lane.b32.xlu1 %v12628_v18, %s13243_s12 }
 0x145   : > { %v1861_v47 = vrot.slane %v1859_v62, 4  ;;  %v1913_v1 = vshrl.u32 %v12246_v14, 16  ;;  %v1916_v26 = vshll.u32 %v12246_v14, 16  ;;  %vm19067_vm2 = vnez %v19066_v13  ;;  %v19076_v62 = vld [vmem:[#allocation44_spill] sm:$0xff] }
 0x146   : > { %v19070_v24 = vsel %vm19067_vm2, %v19068_v54, %v19069_v57  ;;  %v19071_v38 = vmov 0  ;;  %vm19074_vm13 = vcmask 519168   ;;  %v1905_v46 = vrot.slane %v1903_v27, 6  ;;  %v15012_v57 = vld [vmem:[#allocation2 + $0x28] sm:$0xff]  }
 0x147   : > { %vm14968_vm3 = vcmp.lt.s32.totalorder %v19070_v24, 16  ;;  %2101 = vst.msk [vmem:[#allocation2 + $0x4c] sm:$0xf] %vm19074_vm13, %v1860_v0  ;;  %v1908_v48 = vrot.slane %v1906_v61, 7  ;;  %v1885_v16 = vrot.slane %v1883_v3, 6  ;;  %v1888_v12 = vrot.slane %v1886_v55, 7  ;;  %v12399_v61 = vpop.f32.mrf.mxu0 }
 0x148   : > { %v19072_v38 = vsel %vm14968_vm3, 4294967295, %v19071_v38  ;;  %v1870_v33 = vsel %vm14573_vm1, %v1861_v47, %v14904_v43  ;;  %v1915_v23 = vrot.slane %v1913_v1, 6  ;;  %v1918_v28 = vrot.slane %v1916_v26, 7  ;;  %v19082_v47 = vld [vmem:[#allocation57_spill] sm:$0xff] }
 0x149   : > { %19073 = vst [vmem:[#allocation24_spill] sm:$0xff] %v19072_v38  ;;  %vm19075_vm0 = vsmask.f32 7424  ;;  %v19077_v14 = vsel %vm14314_vm12, %v14355_v11, %v19076_v62  ;;  %v19078_v13 = vmov 0  ;;  %2102 = vst.msk [vmem:[#allocation2 + $0x50] sm:$0xf] %vm19074_vm13, %v1870_v33  ;;  %v14988_v27 = vor.u32 %v1908_v48, %v1905_v46 }
 0x14a   : > { %v2283_v6 = vsel %vm19075_vm0, %v2278_v36, %v2282_v45  ;;  %vm14982_vm2 = vcmp.lt.s32.totalorder %v19077_v14, 16  ;;  %v1889_v43 = vor.u32 %v1888_v12, %v1885_v16  ;;  %v1557_v36 = vsel %vm14922_vm5, %v1449_v4, 0.0  ;;  %v19083_v1 = vld [vmem:[#allocation45_spill] sm:$0xff]  ;;  %vm19088_vm0 = vmmov %vm19074_vm13  ;;  %v12630_v12 = vld [vmem:[#allocation2 + $0x40] sm:$0xff]  }
 0x14b   : > { %v19079_v13 = vsel %vm14982_vm2, 4294967295, %v19078_v13  ;;  %2408 = vrot.lane.b32.xlu0 %v2283_v6, %s13243_s12  ;;  %v1390_v19 = vadd.f32 %v12398_v51, %v14343_v44  ;;  %v14994_v11 = vor.u32 %v1918_v28, %v1915_v23  ;;  %v12244_v3 = vpack.c.bf16 %v1557_v36, %v1557_v36  ;;  %v15025_v23 = vld [vmem:[%s18511_s2] ss:$0 sm:$0xff]  ;;  %v1384_v6 = vpop.f32.mrf.mxu0  ;;  %v19091_v36 = vld [vmem:[#allocation62_spill] sm:$0xff]  ;;  %2798 = vrot.lane.b32.xlu1 %v12630_v12, %s13243_s12 }
 0x14c   : > { %19080 = vst [vmem:[#allocation18_spill] sm:$0xff] %v19079_v13  ;;  %v2284_v55 = vshrl.u32 %v14902_v2, 16  ;;  %v2288_v56 = vshll.u32 %v14958_v53, 16  ;;  %v19084_v26 = vsel %vm14334_vm8, %v19082_v47, %v19083_v1  ;;  %v19085_v54 = vmov 0  ;;  %vm19089_vm8 = vmmov %vm19088_vm0 }
 0x14d   : > { %vm15003_vm12 = vcmp.lt.s32.totalorder %v19084_v26, 16  ;;  %v1911_v4 = vrot.slane %v14988_v27, 4  ;;  %v1890_v44 = vsel %vm14573_vm1, %v1881_v31, %v1889_v43  ;;  %v1891_v51 = vrot.slane %v1889_v43, 4 }
 0x14e   : > { %v19086_v54 = vsel %vm15003_vm12, 4294967295, %v19085_v54  ;;  %v1454_v2 = vmax.f32 %v1390_v19, 0.0  ;;  %2104 = vst.msk [vmem:[#allocation2 + $0x58] sm:$0xf] %vm19088_vm0, %v1890_v44  ;;  %v1921_v24 = vrot.slane %v14994_v11, 4  ;;  %v1893_v46 = vshrl.u32 %v12244_v3, 16 }
 0x14f   : > { %19087 = vst [vmem:[#allocation12_spill] sm:$0xff] %v19086_v54  ;;  %v1896_v48 = vshll.u32 %v12244_v3, 16  ;;  %v2286_v16 = vor.u32 %v2284_v55, %v2282_v45  ;;  %v1920_v32 = vsel %vm14573_vm1, %v1911_v4, %v14994_v11  ;;  %v2290_v33 = vrot.slane %v2288_v56, 1  ;;  %v19092_v19 = vld [vmem:[#allocation47_spill] sm:$0xff] }
 0x150   : > { %v1562_v31 = vsel %vm14951_vm15, %v1454_v2, 0.0  ;;  %v1382_v28 = vadd.f32 %v15025_v23, %v1381_v21  ;;  %2107 = vst.msk [vmem:[#allocation2 + $0x64] sm:$0xf] %vm19089_vm8, %v1920_v32  ;;  %v1895_v45 = vrot.slane %v1893_v46, 6  ;;  %v1393_v14 = vadd.f32 %v15025_v23, %v12399_v61  ;;  %v12632_v32 = vld [vmem:[#allocation2 + $0x48] sm:$0xff]  }
 0x151   : > { %v1898_v18 = vrot.slane %v1896_v48, 7  ;;  %v12249_v62 = vpack.c.bf16 %v1562_v31, %v1562_v31  ;;  %v19093_v3 = vsel %vm14374_vm7, %v19091_v36, %v19092_v19  ;;  %v19094_v55 = vmov 0  ;;  %v15062_v19 = vld [vmem:[#allocation2 + $0x30] sm:$0xff]   ;;  %2800 = vrot.lane.b32.xlu1 %v12632_v32, %s13243_s12 }
 0x152   : > { %vm15035_vm13 = vcmp.lt.s32.totalorder %v19093_v3, 16  ;;  %vm19097_vm0 = vsmask.f32 7424  ;;  %v1452_v21 = vmax.f32 %v1382_v28, 0.0  ;;  %v2292_v0 = vshrl.u32 %v14958_v53, 16  ;;  %v12634_v3 = vld [vmem:[#allocation2 + $0x50] sm:$0xff]  }
 0x153   : > { %v19095_v55 = vsel %vm15035_vm13, 4294967295, %v19094_v55  ;;  %v2291_v56 = vsel %vm19097_vm0, %v2286_v16, %v2290_v33  ;;  %v2296_v47 = vshll.u32 %v15012_v57, 16  ;;  %v1899_v1 = vor.u32 %v1898_v18, %v1895_v45  ;;  %v12402_v16 = vpop.f32.mrf.mxu0 }
 0x154   : > { %19096 = vst [vmem:[#allocation29_spill] sm:$0xff] %v19095_v55  ;;  %v1943_v26 = vshrl.u32 %v12249_v62, 16  ;;  %v1946_v4 = vshll.u32 %v12249_v62, 16  ;;  %2410 = vrot.lane.b32.xlu0 %v2291_v56, %s13243_s12  ;;  %v1455_v61 = vmax.f32 %v1393_v14, 0.0  ;;  %v1560_v44 = vsel %vm14968_vm3, %v1452_v21, 0.0  ;;  %v19099_v62 = vld [vmem:[#allocation60_spill] sm:$0xff] }
 0x155   : > { %v2294_v2 = vor.u32 %v2292_v0, %v2290_v33  ;;  %v2298_v46 = vrot.slane %v2296_v47, 1  ;;  %v1385_v48 = vadd.f32 %v15025_v23, %v1384_v6  ;;  %v1900_v53 = vsel %vm14573_vm1, %v1891_v51, %v1899_v1  ;;  %v19100_v14 = vld [vmem:[#allocation46_spill] sm:$0xff]  ;;  %2802 = vrot.lane.b32.xlu1 %v12634_v3, %s13243_s12 }
 0x156   : > { %v1901_v31 = vrot.slane %v1899_v1, 4  ;;  %v1945_v28 = vrot.slane %v1943_v26, 6  ;;  %v1948_v45 = vrot.slane %v1946_v4, 7  ;;  %v19101_v12 = vsel %vm14364_vm9, %v19099_v62, %v19100_v14  ;;  %2105 = vst.msk [vmem:[#allocation2 + $0x5c] sm:$0xf] %vm19089_vm8, %v1900_v53  ;;  %vm19105_vm9 = vmmov %vm19089_vm8  ;;  %v15401_v55 = vld [vmem:[#allocation2 + $0x50] sm:$0xff]  }
 0x157   : > { %vm15054_vm7 = vcmp.lt.s32.totalorder %v19101_v12, 16  ;;  %v19102_v43 = vmov 0  ;;  %v12247_v33 = vpack.c.bf16 %v1560_v44, %v1560_v44  ;;  %v1563_v6 = vsel %vm14982_vm2, %v1455_v61, 0.0  ;;  %v1397_v44 = vpop.f32.mrf.mxu0 }
 0x158   : > { %v19103_v43 = vsel %vm15054_vm7, 4294967295, %v19102_v43  ;;  %v2299_v51 = vsel %vm19097_vm0, %v2294_v2, %v2298_v46  ;;  %v1453_v36 = vmax.f32 %v1385_v48, 0.0  ;;  %v1910_v56 = vsel %vm14573_vm1, %v1901_v31, %v14988_v27  ;;  %v19106_v31 = vld [vmem:[#allocation63_spill] sm:$0xff] }
 0x159   : > { %19104 = vst [vmem:[#allocation27_spill] sm:$0xff] %v19103_v43  ;;  %v15067_v21 = vor.u32 %v1948_v45, %v1945_v28  ;;  %v12250_v0 = vpack.c.bf16 %v1563_v6, %v1563_v6  ;;  %2412 = vrot.lane.b32.xlu0 %v2299_v51, %s13243_s12  ;;  %v1406_v47 = vadd.f32 %v15025_v23, %v12402_v16  ;;  %2106 = vst.msk [vmem:[#allocation2 + $0x60] sm:$0xf] %vm19105_vm9, %v1910_v56  ;;  %v19108_v16 = vld [vmem:[#allocation64_spill] sm:$0xff]  ;;  %v19111_v18 = vmov 0 }
 0x15a   : > { %v1923_v1 = vshrl.u32 %v12247_v33, 16  ;;  %v1926_v26 = vshll.u32 %v12247_v33, 16  ;;  %v1561_v4 = vsel %vm15003_vm12, %v1453_v36, 0.0  ;;  %v2300_v61 = vshrl.u32 %v15012_v57, 16  ;;  %v19109_v28 = vld [vmem:[#allocation48_spill] sm:$0xff]  ;;  %v12680_v57 = vld [vmem:[%s18512_s3 + $0x70] sm:$0xff]  }
 0x15b   : > { %v1951_v27 = vrot.slane %v15067_v21, 4  ;;  %v1953_v2 = vshrl.u32 %v12250_v0, 16  ;;  %v1956_v48 = vshll.u32 %v12250_v0, 16  ;;  %v12248_v53 = vpack.c.bf16 %v1561_v4, %v1561_v4  ;;  %5877 = vmatpush2.bf16.msra.mxu1 %v12680_v57 }
 0x15c   : > { %vm19107_vm8 = vnez %v19106_v31  ;;  %v1925_v62 = vrot.slane %v1923_v1, 6  ;;  %v1928_v32 = vrot.slane %v1926_v26, 7  ;;  %v1458_v14 = vmax.f32 %v1406_v47, 0.0  ;;  %v19116_v1 = vld [vmem:[#allocation67_spill] sm:$0xff]  ;;  %5878 = vmatprep.subr.bf16.mxu1 %v18949_v42 }
 0x15d   : > { %v19110_v45 = vsel %vm19107_vm8, %v19108_v16, %v19109_v28  ;;  %v2302_v12 = vor.u32 %v2300_v61, %v2298_v46  ;;  %v1955_v33 = vrot.slane %v1953_v2, 6  ;;  %v1958_v6 = vrot.slane %v1956_v48, 7  ;;  %v12403_v16 = vpop.f32.mrf.mxu0  ;;  %v19114_v28 = vld [vmem:[#allocation65_spill] sm:$0xff]  ;;  %v19117_v26 = vld [vmem:[#allocation51_spill] sm:$0xff] }
 0x15e   : > { %vm15082_vm0 = vcmp.lt.s32.totalorder %v19110_v45, 16  ;;  %v1933_v51 = vshrl.u32 %v12248_v53, 16  ;;  %v1936_v36 = vshll.u32 %v12248_v53, 16  ;;  %v1929_v56 = vor.u32 %v1928_v32, %v1925_v62  ;;  %v12685_v37 = vld [vmem:[#allocation2 + $0x58] sm:$0xff]  }
 0x15f   : > { %v19112_v18 = vsel %vm15082_vm0, 4294967295, %v19111_v18  ;;  %v1566_v0 = vsel %vm15035_vm13, %v1458_v14, 0.0  ;;  %v2304_v4 = vshll.u32 %v15062_v19, 16  ;;  %v1398_v31 = vadd.f32 %v15025_v23, %v1397_v44  ;;  %v12636_v44 = vld [vmem:[#allocation2 + $0x58] sm:$0xff]  }
 0x160   : > { %19113 = vst [vmem:[#allocation17_spill] sm:$0xff] %v19112_v18  ;;  %vm19115_vm9 = vnez %v19114_v28  ;;  %v19119_v46 = vmov 0  ;;  %v15104_v61 = vor.u32 %v1958_v6, %v1955_v33  ;;  %v1935_v2 = vrot.slane %v1933_v51, 6  ;;  %v12629_v14 = vld [vmem:[#allocation2 + $0x38] sm:$0xff]   ;;  %2804 = vrot.lane.b32.xlu1 %v12636_v44, %s13243_s12  ;;  %v19129_v44 = vld [vmem:[#allocation52_spill] sm:$0xff] }
 0x161   : > { %v19118_v47 = vsel %vm19115_vm9, %v19116_v1, %v19117_v26  ;;  %v1938_v48 = vrot.slane %v1936_v36, 7  ;;  %v12253_v53 = vpack.c.bf16 %v1566_v0, %v1566_v0  ;;  %v1930_v45 = vsel %vm14573_vm1, %v1921_v24, %v1929_v56  ;;  %v12638_v36 = vld [vmem:[#allocation2 + $0x60] sm:$0xff]  }
 0x162   : > { %vm15098_vm8 = vcmp.lt.s32.totalorder %v19118_v47, 16  ;;  %v1931_v57 = vrot.slane %v1929_v56, 4  ;;  %v2306_v62 = vrot.slane %v2304_v4, 1  ;;  %v1456_v32 = vmax.f32 %v1398_v31, 0.0  ;;  %v1400_v4 = vpop.f32.mrf.mxu0 }
 0x163   : > { %v19120_v46 = vsel %vm15098_vm8, 4294967295, %v19119_v46  ;;  %vm19122_vm9 = vcmask 519168   ;;  %v1960_v3 = vsel %vm14573_vm1, %v1951_v27, %v15104_v61  ;;  %v1961_v33 = vrot.slane %v15104_v61, 4 }
 0x164   : > { %19121 = vst [vmem:[#allocation28_spill] sm:$0xff] %v19120_v46  ;;  %2108 = vst.msk [vmem:[#allocation2 + $0x68] sm:$0xf] %vm19122_vm9, %v1930_v45  ;;  %v1939_v6 = vor.u32 %v1938_v48, %v1935_v2  ;;  %v1983_v51 = vshrl.u32 %v12253_v53, 16  ;;  %v1986_v11 = vshll.u32 %v12253_v53, 16  ;;  %v1564_v56 = vsel %vm15054_vm7, %v1456_v32, 0.0  ;;  %2806 = vrot.lane.b32.xlu1 %v12638_v36, %s13243_s12 }
 0x165   : > { %vm19123_vm13 = vmmov %vm19122_vm9  ;;  %vm19124_vm12 = vsmask.f32 7424  ;;  %v1409_v0 = vadd.f32 %v15025_v23, %v12403_v16  ;;  %v12251_v1 = vpack.c.bf16 %v1564_v56, %v1564_v56  ;;  %v2308_v47 = vshrl.u32 %v15062_v19, 16  ;;  %v15126_v48 = vld [vmem:[#allocation2 + $0x40] sm:$0xff]   ;;  %v19128_v53 = vld [vmem:[#allocation69_spill] sm:$0xff] }
 0x166   : > { %2111 = vst.msk [vmem:[#allocation2 + $0x74] sm:$0xf] %vm19123_vm13, %v1960_v3  ;;  %v2307_v24 = vsel %vm19124_vm12, %v2302_v12, %v2306_v62  ;;  %v1940_v27 = vsel %vm14573_vm1, %v1931_v57, %v1939_v6  ;;  %v1941_v31 = vrot.slane %v1939_v6, 4  ;;  %v1985_v28 = vrot.slane %v1983_v51, 6  ;;  %vm19125_vm13 = vmmov %vm19122_vm9  ;;  %v19126_v16 = vld [vmem:[#allocation68_spill] sm:$0xff]  ;;  %v12683_v32 = vld [vmem:[%s18512_s3 + $0x68] sm:$0xff]  }
 0x167   : > { %2414 = vrot.lane.b32.xlu0 %v2307_v24, %s13243_s12  ;;  %2109 = vst.msk [vmem:[#allocation2 + $0x6c] sm:$0xf] %vm19125_vm13, %v1940_v27  ;;  %v1988_v26 = vrot.slane %v1986_v11, 7  ;;  %v1459_v12 = vmax.f32 %v1409_v0, 0.0  ;;  %v2312_v2 = vshll.u32 %v12629_v14, 16  ;;  %vm19127_vm12 = vnez %v19126_v16  ;;  %v1413_v27 = vpop.f32.mrf.mxu1  ;;  %5879 = vmatpush2.bf16.msra.mxu1 %v12683_v32  ;;  %v15353_v46 = vld [vmem:[#allocation2 + $0x40] sm:$0xff]  }
 0x168   : > { %v19130_v45 = vsel %vm19127_vm12, %v19128_v53, %v19129_v44  ;;  %v19131_v57 = vmov 0  ;;  %v1950_v19 = vsel %vm14573_vm1, %v1941_v31, %v15067_v21  ;;  %v1963_v3 = vshrl.u32 %v12251_v1, 16  ;;  %5880 = vmatprep.subr.bf16.mxu1 %v18949_v42  ;;  %v15160_v44 = vld [vmem:[#allocation2 + $0x48] sm:$0xff]  }
 0x169   : > { %vm15133_vm9 = vcmp.lt.s32.totalorder %v19130_v45, 16  ;;  %v1966_v6 = vshll.u32 %v12251_v1, 16  ;;  %v1401_v51 = vadd.f32 %v15025_v23, %v1400_v4  ;;  %2110 = vst.msk [vmem:[#allocation2 + $0x70] sm:$0xf] %vm19125_vm13, %v1950_v19  ;;  %v15145_v11 = vor.u32 %v1988_v26, %v1985_v28 }
 0x16a   : > { %v19132_v57 = vsel %vm15133_vm9, 4294967295, %v19131_v57  ;;  %v1567_v24 = vsel %vm15082_vm0, %v1459_v12, 0.0  ;;  %v2310_v56 = vor.u32 %v2308_v47, %v2306_v62  ;;  %v2314_v0 = vrot.slane %v2312_v2, 1  ;;  %v12687_v62 = vld [vmem:[%s18512_s3 + $0x60] sm:$0xff]  }
 0x16b   : > { %19133 = vst [vmem:[#allocation25_spill] sm:$0xff] %v19132_v57  ;;  %v1965_v16 = vrot.slane %v1963_v3, 6  ;;  %v1968_v53 = vrot.slane %v1966_v6, 7  ;;  %v12254_v21 = vpack.c.bf16 %v1567_v24, %v1567_v24  ;;  %v1457_v31 = vmax.f32 %v1401_v51, 0.0  ;;  %v12407_v6 = vpop.f32.mrf.mxu1  ;;  %5881 = vmatpush2.bf16.msra.mxu1 %v12687_v62 }
 0x16c   : > { %vm19134_vm12 = vsmask.f32 7424  ;;  %v2316_v1 = vshrl.u32 %v12629_v14, 16  ;;  %v2320_v28 = vshll.u32 %v15126_v48, 16  ;;  %v1414_v26 = vadd.f32 %v15025_v23, %v1413_v27  ;;  %5882 = vmatprep.subr.bf16.mxu1 %v18949_v42 }
 0x16d   : > { %v2315_v4 = vsel %vm19134_vm12, %v2310_v56, %v2314_v0  ;;  %v1969_v12 = vor.u32 %v1968_v53, %v1965_v16  ;;  %v1993_v36 = vshrl.u32 %v12254_v21, 16  ;;  %v1996_v47 = vshll.u32 %v12254_v21, 16 }
 0x16e   : > { %2416 = vrot.lane.b32.xlu0 %v2315_v4, %s13243_s12  ;;  %v1565_v2 = vsel %vm15098_vm8, %v1457_v31, 0.0  ;;  %v2318_v14 = vor.u32 %v2316_v1, %v2314_v0  ;;  %v2322_v32 = vrot.slane %v2320_v28, 1  ;;  %v12257_v19 = vpack.c.bf16 %v14806_v29, %v14806_v29  ;;  %v12640_v29 = vld [vmem:[#allocation2 + $0x68] sm:$0xff]   ;;  %v1416_v28 = vpop.f32.mrf.mxu1 }
 0x16f   : > { %v12252_v45 = vpack.c.bf16 %v1565_v2, %v1565_v2  ;;  %vm15169_vm13 = vcmp.lt.s32.totalorder %v892_v22, 16  ;;  %v19135_v3 = vmov 0  ;;  %v19138_v51 = vsel %vm14787_vm4, %v14521_v10, %v14493_v20  ;;  %2808 = vrot.lane.b32.xlu1 %v12640_v29, %s13243_s12  ;;  %5883 = vmatpush2.bf16.msra.mxu1 %v12690_v5 }
 0x170   : > { %v19136_v3 = vsel %vm15169_vm13, 4294967295, %v19135_v3  ;;  %vm15178_vm12 = vcmp.lt.s32.totalorder %v19138_v51, 16  ;;  %v19139_v24 = vmov 0  ;;  %v1991_v9 = vrot.slane %v15145_v11, 4  ;;  %v12642_v53 = vld [vmem:[#allocation2 + $0x70] sm:$0xff]   ;;  %5884 = vmatprep.subr.bf16.mxu1 %v18949_v42 }
 0x171   : > { %19137 = vst [vmem:[#allocation15_spill] sm:$0xff] %v19136_v3  ;;  %v19140_v24 = vsel %vm15178_vm12, 4294967295, %v19139_v24  ;;  %v1970_v40 = vsel %vm14573_vm1, %v1961_v33, %v1969_v12  ;;  %v1995_v22 = vrot.slane %v1993_v36, 6  ;;  %v1998_v15 = vrot.slane %v1996_v47, 7 }
 0x172   : > { %19141 = vst [vmem:[#allocation31_spill] sm:$0xff] %v19140_v24  ;;  %vm19142_vm4 = vcmask 519168   ;;  %v1973_v20 = vshrl.u32 %v12252_v45, 16  ;;  %v1976_v10 = vshll.u32 %v12252_v45, 16  ;;  %vm19143_vm6 = vsmask.f32 7424 }
 0x173   : > { %2112 = vst.msk [vmem:[#allocation2 + $0x78] sm:$0xf] %vm19142_vm4, %v1970_v40  ;;  %v2323_v56 = vsel %vm19143_vm6, %v2318_v14, %v2322_v32  ;;  %v2023_v0 = vshrl.u32 %v12257_v19, 16  ;;  %v15193_v27 = vor.u32 %v1998_v15, %v1995_v22  ;;  %v2026_v61 = vshll.u32 %v12257_v19, 16  ;;  %v12635_v14 = vld [vmem:[#allocation2 + $0x50] sm:$0xff]   ;;  %2810 = vrot.lane.b32.xlu1 %v12642_v53, %s13243_s12 }
 0x174   : > { %2418 = vrot.lane.b32.xlu0 %v2323_v56, %s13243_s12  ;;  %v1460_v16 = vmax.f32 %v1414_v26, 0.0  ;;  %v2324_v33 = vshrl.u32 %v15126_v48, 16  ;;  %v1971_v21 = vrot.slane %v1969_v12, 4  ;;  %v1975_v31 = vrot.slane %v1973_v20, 6 }
 0x175   : > { %v1978_v4 = vrot.slane %v1976_v10, 7  ;;  %v2328_v1 = vshll.u32 %v15160_v44, 16  ;;  %v2000_v62 = vsel %vm14573_vm1, %v1991_v9, %v15193_v27  ;;  %v2025_v36 = vrot.slane %v2023_v0, 6 }
 0x176   : > { %v2028_v47 = vrot.slane %v2026_v61, 7  ;;  %v1568_v26 = vsel %vm15133_vm9, %v1460_v16, 0.0  ;;  %2115 = vst.msk [vmem:[#allocation2 + $0x84] sm:$0xf] %vm19142_vm4, %v2000_v62  ;;  %v2326_v2 = vor.u32 %v2324_v33, %v2322_v32  ;;  %v2001_v19 = vrot.slane %v15193_v27, 4  ;;  %v12637_v32 = vld [vmem:[#allocation2 + $0x58] sm:$0xff]  }
 0x177   : > { %v1979_v48 = vor.u32 %v1978_v4, %v1975_v31  ;;  %v12255_v12 = vpack.c.bf16 %v1568_v26, %v1568_v26  ;;  %v2330_v45 = vrot.slane %v2328_v1, 1  ;;  %v1425_v51 = vadd.f32 %v15025_v23, %v12407_v6  ;;  %v15231_v62 = vld [vmem:[#allocation2 + $0x68] sm:$0xff]  }
 0x178   : > { %v1417_v5 = vadd.f32 %v15025_v23, %v1416_v28  ;;  %v2332_v9 = vshrl.u32 %v15160_v44, 16  ;;  %v15214_v20 = vor.u32 %v2028_v47, %v2025_v36  ;;  %v15217_v23 = vld [vmem:[#allocation2 + $0x60] sm:$0xff]   ;;  %v12693_v44 = vld [vmem:[%s18512_s3 + $0x50] sm:$0xff]   ;;  %v2340_v31 = vshrl.u32 %v12635_v14, 16 }
 0x179   : > { %v1980_v40 = vsel %vm14573_vm1, %v1971_v21, %v1979_v48  ;;  %v1981_v22 = vrot.slane %v1979_v48, 4  ;;  %v2003_v15 = vshrl.u32 %v12255_v12, 16  ;;  %v2006_v29 = vshll.u32 %v12255_v12, 16  ;;  %5885 = vmatpush2.bf16.msra.mxu1 %v12693_v44 }
 0x17a   : > { %2113 = vst.msk [vmem:[#allocation2 + $0x7c] sm:$0xf] %vm19142_vm4, %v1980_v40  ;;  %v2331_v10 = vsel %vm19143_vm6, %v2326_v2, %v2330_v45  ;;  %v1463_v6 = vmax.f32 %v1425_v51, 0.0  ;;  %v1461_v56 = vmax.f32 %v1417_v5, 0.0  ;;  %v2334_v16 = vor.u32 %v2332_v9, %v2330_v45  ;;  %5886 = vmatprep.subr.bf16.mxu1 %v18949_v42  ;;  %v12696_v51 = vld [vmem:[%s18512_s3 + $0x48] sm:$0xff]   ;;  %vm19144_vm6 = vmmov %vm19142_vm4 }
 0x17b   : > { %v1990_v0 = vsel %vm14573_vm1, %v1981_v22, %v15145_v11  ;;  %v2005_v27 = vrot.slane %v2003_v15, 6  ;;  %v2008_v61 = vrot.slane %v2006_v29, 7  ;;  %2420 = vrot.lane.b32.xlu0 %v2331_v10, %s13243_s12  ;;  %v2336_v21 = vshll.u32 %v12635_v14, 16  ;;  %v15245_v10 = vld [vmem:[#allocation2 + $0x1c] sm:$0xf] }
 0x17c   : > { %2114 = vst.msk [vmem:[#allocation2 + $0x80] sm:$0xf] %vm19142_vm4, %v1990_v0  ;;  %v1571_v33 = vsel %vm15169_vm13, %v1463_v6, 0.0  ;;  %v1569_v53 = vsel %vm15178_vm12, %v1461_v56, 0.0  ;;  %v2344_v11 = vshll.u32 %v12637_v32, 16  ;;  %v2031_v36 = vrot.slane %v15214_v20, 4 }
 0x17d   : > { %v2009_v4 = vor.u32 %v2008_v61, %v2005_v27  ;;  %v12258_v1 = vpack.c.bf16 %v1571_v33, %v1571_v33  ;;  %v12256_v28 = vpack.c.bf16 %v1569_v53, %v1569_v53  ;;  %v2338_v47 = vrot.slane %v2336_v21, 1  ;;  %5887 = vmatpush2.bf16.msra.mxu1 %v12696_v51  ;;  %v2122_v56 = vld [vmem:[#allocation2 + $0x98] sm:$0x3]  ;;  %v12643_v61 = vld [vmem:[#allocation2 + $0x70] sm:$0xff]  }
 0x17e   : > { %v2348_v26 = vshrl.u32 %v12637_v32, 16  ;;  %v2352_v48 = vshll.u32 %v15217_v23, 16  ;;  %v2356_v14 = vshrl.u32 %v15217_v23, 16  ;;  %vm19145_vm4 = vsmask.f32 7424  ;;  %v15254_v33 = vld [vmem:[#allocation2 + $0x10] sm:$0xff]   ;;  %5888 = vmatprep.subr.bf16.mxu1 %v18949_v42 }
 0x17f   : > { %v2010_v12 = vsel %vm14573_vm1, %v2001_v19, %v2009_v4  ;;  %v2033_v2 = vshrl.u32 %v12258_v1, 16  ;;  %v2036_v45 = vshll.u32 %v12258_v1, 16  ;;  %v2013_v5 = vshrl.u32 %v12256_v28, 16  ;;  %v15267_v51 = vld [vmem:[#allocation2 + $0x18] sm:$0xff]  }
 0x180   : > { %2116 = vst.msk [vmem:[#allocation2 + $0x88] sm:$0xf] %vm19144_vm6, %v2010_v12  ;;  %v2016_v9 = vshll.u32 %v12256_v28, 16  ;;  %v2339_v40 = vsel %vm19145_vm4, %v2334_v16, %v2338_v47  ;;  %v2342_v22 = vor.u32 %v2340_v31, %v2338_v47  ;;  %v2011_v15 = vrot.slane %v2009_v4, 4  ;;  %vm19151_vm6 = vmmov %vm19145_vm4 }
 0x181   : > { %v2035_v29 = vrot.slane %v2033_v2, 6  ;;  %v2038_v32 = vrot.slane %v2036_v45, 7  ;;  %2422 = vrot.lane.b32.xlu0 %v2339_v40, %s13243_s12  ;;  %v2346_v19 = vrot.slane %v2344_v11, 1  ;;  %vm19146_vm13 = vsmask.f32 1280  ;;  %v12644_v16 = vld [vmem:[#allocation2 + $0x78] sm:$0xff]  }
 0x182   : > { %vm19147_vm12 = vcmask 517120   ;;  %v19148_v6 = vmov 0  ;;  %v2015_v23 = vrot.slane %v2013_v5, 6  ;;  %v2018_v44 = vrot.slane %v2016_v9, 7  ;;  %v15258_v4 = vld [vmem:[#allocation2 + $0x78] sm:$0xff]   ;;  %2812 = vrot.lane.b32.xlu1 %v12644_v16, %s13243_s12 }
 0x183   : > { %vm15249_vm9 = vmand %vm19147_vm12, %vm19146_vm13  ;;  %v2354_v0 = vrot.slane %v2352_v48, 1  ;;  %v2360_v27 = vshll.u32 %v15231_v62, 16  ;;  %v2039_v53 = vor.u32 %v2038_v32, %v2035_v29  ;;  %v2347_v21 = vsel %vm19151_vm6, %v2342_v22, %v2346_v19  ;;  %v12646_v11 = vld [vmem:[#allocation2 + $0x80] sm:$0xff]   ;;  %v15273_v22 = vld [vmem:[#allocation2 + $0x10] sm:$0xfc]  }
 0x184   : > { %v19149_v6 = vsel %vm15249_vm9, 4294967295, %v19148_v6  ;;  %v2350_v31 = vor.u32 %v2348_v26, %v2346_v19  ;;  %v2019_v1 = vor.u32 %v2018_v44, %v2015_v23  ;;  %v2364_v28 = vshrl.u32 %v15231_v62, 16  ;;  %v15262_v47 = vld [vmem:[#allocation2 + $0x80] sm:$0xff]   ;;  %v3157_v26 = vld [vmem:[#allocation2 + $0xc] sm:$0xf]  ;;  %vm19153_vm12 = vmmov %vm19145_vm4 }
 0x185   : > { %19150 = vst [vmem:[#allocation30_spill] sm:$0xff] %v19149_v6  ;;  %v2040_v48 = vsel %vm14573_vm1, %v2031_v36, %v2039_v53  ;;  %v2041_v12 = vrot.slane %v2039_v53, 4  ;;  %2424 = vrot.lane.b32.xlu0 %v2347_v21, %s13243_s12  ;;  %v2358_v2 = vor.u32 %v2356_v14, %v2354_v0  ;;  %v2362_v45 = vrot.slane %v2360_v27, 1  ;;  %v3193_v32 = vld [vmem:[#allocation2 + $0x8] sm:$0xc]  ;;  %v15295_v16 = vld [vmem:[%s18512_s3 + $0x118] sm:$0xff]  }
 0x186   : > { %vm19152_vm13 = vcmask 519168   ;;  %v2020_v62 = vsel %vm14573_vm1, %v2011_v15, %v2019_v1  ;;  %v2021_v5 = vrot.slane %v2019_v1, 4  ;;  %v2355_v9 = vsel %vm19153_vm12, %v2350_v31, %v2354_v0  ;;  %v12699_v15 = vld [vmem:[%s18512_s3 + $0x40] sm:$0xff]   ;;  %2814 = vrot.lane.b32.xlu1 %v12646_v11, %s13243_s12  ;;  %v12657_v0 = vld [vmem:[#allocation2 + $0x18] sm:$0xff]  }
 0x187   : > { %2119 = vst.msk [vmem:[#allocation2 + $0x94] sm:$0xf] %vm19152_vm13, %v2040_v48  ;;  %v2368_v40 = vshll.u32 %v12643_v61, 16  ;;  %v18643_v36 = vrot.slane %v15245_v10, 7  ;;  %v2123_v14 = vsel %vm15249_vm9, %v2041_v12, %v2122_v56  ;;  %vm19154_vm4 = vmmov %vm19152_vm13  ;;  %v2376_v29 = vshll.u32 %v15258_v4, 16  ;;  %5889 = vmatpush2.bf16.msra.mxu1 %v12699_v15  ;;  %v15298_v31 = vld [vmem:[#allocation2 + $0x20] sm:$0xff]  }
 0x188   : > { %2117 = vst.msk [vmem:[#allocation2 + $0x8c] sm:$0xf] %vm19154_vm4, %v2020_v62  ;;  %2124 = vst [vmem:[#allocation2 + $0x98] sm:$0x3] %v2123_v14  ;;  %v2030_v19 = vsel %vm14573_vm1, %v2021_v5, %v15214_v20  ;;  %v2372_v23 = vshrl.u32 %v12643_v61, 16  ;;  %v2384_v44 = vshll.u32 %v15262_v47, 16  ;;  %v2366_v61 = vor.u32 %v2364_v28, %v2362_v45  ;;  %12408 = vmatprep.subr.bf16.mxu1 %v15295_v16 }
 0x189   : > { %v3298_v56 = vshll.u32 %v15254_v33, 16  ;;  %vm19155_vm6 = vmmov %vm19154_vm4  ;;  %2426 = vrot.lane.b32.xlu0 %v2355_v9, %s13243_s12  ;;  %v3306_v27 = vshll.u32 %v15267_v51, 16  ;;  %v2370_v53 = vrot.slane %v2368_v40, 1  ;;  %v11567_v21 = vcombine.low %v3193_v32, %v3157_v26  ;;  %v12717_v1 = vld [vmem:[%s18512_s3 + $0xb8] sm:$0xff]   ;;  %v15310_v28 = vld [vmem:[#allocation2 + $0x8] sm:$0xf] }
 0x18a   : > { %2118 = vst.msk [vmem:[#allocation2 + $0x90] sm:$0xf] %vm19155_vm6, %v2030_v19  ;;  %vm19156_vm13 = vmmov %vm19153_vm12  ;;  %v15305_v11 = vrot.slane %v18643_v36, 4  ;;  %v2378_v48 = vrot.slane %v2376_v29, 1  ;;  %v2380_v12 = vshrl.u32 %v15258_v4, 16  ;;  %v3302_v62 = vshrl.u32 %v15254_v33, 16  ;;  %6036 = vmatpush1.bf16.msra.mxu0 %v12717_v1 }
 0x18b   : > { %v2363_v20 = vsel %vm19156_vm13, %v2358_v2, %v2362_v45  ;;  %v2374_v2 = vor.u32 %v2372_v23, %v2370_v53  ;;  %v2386_v45 = vrot.slane %v2384_v44, 1  ;;  %v15312_v26 = vrot.slane %v3298_v56, 1  ;;  %v15315_v9 = vld [vmem:[#allocation2 + $0x28] sm:$0xff]   ;;  %v12721_v40 = vld [vmem:[%s18512_s3 + $0xb0] sm:$0xff]   ;;  %v15322_v32 = vld [vmem:[#allocation2 + $0x20] sm:$0xff]   ;;  %6037 = vmatprep.subr.bf16.mxu0 %v18949_v42 }
 0x18c   : > { %v4191_v5 = vshll.u32 %v15273_v22, 16  ;;  %v3308_v33 = vrot.slane %v3306_v27, 1  ;;  %v2388_v4 = vshrl.u32 %v15262_v47, 16  ;;  %v3293_v14 = vshll.u32 %v11567_v21, 16  ;;  %v15327_v44 = vld [vmem:[#allocation2 + $0xc] sm:$0xf]  ;;  %vm19157_vm4 = vmmov %vm19153_vm12 }
 0x18d   : > { %2428 = vrot.lane.b32.xlu0 %v2363_v20, %s13243_s12  ;;  %v4196_v29 = vshll.u32 %v12657_v0, 16  ;;  %v2371_v15 = vsel %vm19153_vm12, %v2366_v61, %v2370_v53  ;;  %v4204_v23 = vshll.u32 %v15298_v31, 16  ;;  %v3291_v27 = vshrl.u32 %v11567_v21, 16  ;;  %v15333_v53 = vld [vmem:[#allocation2 + $0x30] sm:$0xff]   ;;  %vm19158_vm6 = vmmov %vm19157_vm4 }
 0x18e   : > { %v3295_v1 = vrot.slane %v3293_v14, 1  ;;  %v2382_v36 = vor.u32 %v2380_v12, %v2378_v48  ;;  %v4189_v3 = vshrl.u32 %v15273_v22, 16  ;;  %v4193_v60 = vrot.slane %v4191_v5, 1  ;;  %6038 = vmatpush1.bf16.msra.mxu0 %v12721_v40  ;;  %vm19159_vm13 = vmmov %vm19157_vm4 }
 0x18f   : > { %v12648_v19 = vld [vmem:[#allocation2 + $0x88] sm:$0xff]   ;;  %v4198_v47 = vrot.slane %v4196_v29, 1  ;;  %v4200_v61 = vshrl.u32 %v12657_v0, 16  ;;  %v2379_v24 = vsel %vm19157_vm4, %v2374_v2, %v2378_v48  ;;  %v3304_v56 = vor.u32 %v3302_v62, %v15312_v26  ;;  %6039 = vmatprep.subr.bf16.mxu0 %v18949_v42  ;;  %vm19160_vm12 = vmmov %vm19157_vm4 }
 0x190   : > { %v12653_v20 = vld [vmem:[#allocation2 + $0x88] sm:$0xff]   ;;  %2816 = vrot.lane.b32.xlu1 %v12648_v19, %s13243_s12  ;;  %v3296_v14 = vor.u32 %v3295_v1, %v3291_v27  ;;  %v4206_v57 = vrot.slane %v4204_v23, 1  ;;  %v4212_v22 = vshll.u32 %v15315_v9, 16  ;;  %v3314_v48 = vshll.u32 %v15322_v32, 16  ;;  %v15347_v1 = vld [vmem:[#allocation2 + $0x38] sm:$0xff]  }
 0x191   : > { %v12651_v6 = vld [vmem:[#allocation2 + $0x90] sm:$0xff]   ;;  %2430 = vrot.lane.b32.xlu0 %v2371_v15, %s13243_s12  ;;  %v2392_v21 = vshll.u32 %v12653_v20, 16  ;;  %v2396_v12 = vshrl.u32 %v12653_v20, 16  ;;  %v4202_v19 = vor.u32 %v4200_v61, %v4198_v47  ;;  %v15340_v0 = vld [vmem:[#allocation2 + $0x28] sm:$0xff]   ;;  %v3310_v15 = vshrl.u32 %v15267_v51, 16 }
 0x192   : > { %v12660_v29 = vld [vmem:[#allocation2 + $0x90] ss:$0 sps:$4 sm:$0x11]   ;;  %v2387_v62 = vsel %vm19158_vm6, %v2382_v36, %v2386_v45  ;;  %v3309_v2 = vsel %vm19159_vm13, %v3304_v56, %v3308_v33  ;;  %v2390_v27 = vor.u32 %v2388_v4, %v2386_v45  ;;  %v4214_v20 = vrot.slane %v4212_v22, 1  ;;  %vm19161_vm6 = vmmov %vm19157_vm4 }
 0x193   : > { %v2394_v5 = vrot.slane %v2392_v21, 1  ;;  %v2400_v40 = vshll.u32 %v12660_v29, 16  ;;  %v4194_v23 = vor.u32 %v4193_v60, %v4189_v3  ;;  %v4208_v21 = vshrl.u32 %v15298_v31, 16  ;;  %v15351_v51 = vld [vmem:[#allocation2 + $0x30] sm:$0xff]   ;;  %v12673_v31 = vld [vmem:[#allocation2 + $0x38] sm:$0xff]   ;;  %vm19162_vm13 = vmmov %vm19157_vm4 }
 0x194   : > { %2818 = vrot.lane.b32.xlu1 %v12651_v6, %s13243_s12  ;;  %v3312_v29 = vor.u32 %v3310_v15, %v3308_v33  ;;  %v3316_v18 = vrot.slane %v3314_v48, 1  ;;  %v4216_v56 = vshrl.u32 %v15315_v9, 16  ;;  %v4220_v6 = vshll.u32 %v15333_v53, 16  ;;  %v12658_v33 = vld [vmem:[#allocation2 + $0x98] ss:$0 sps:$4 sm:$0x11]  }
 0x195   : > { %2432 = vrot.lane.b32.xlu0 %v2379_v24, %s13243_s12  ;;  %v2398_v61 = vor.u32 %v2396_v12, %v2394_v5  ;;  %v2402_v36 = vrot.slane %v2400_v40, 1  ;;  %v3301_v45 = vsel %vm19160_vm12, %v3296_v14, %v15312_v26  ;;  %v15360_v24 = vsel %vm19157_vm4, %v4194_v23, %v4198_v47  ;;  %v12722_v26 = vld [vmem:[%s18512_s3 + $0xa8] sm:$0xff]   ;;  %vm19163_vm12 = vmmov %vm19157_vm4 }
 0x196   : > { %v4207_v60 = vsel %vm19161_vm6, %v4202_v19, %v4206_v57  ;;  %v3322_v3 = vshll.u32 %v15340_v0, 16  ;;  %v4210_v4 = vor.u32 %v4208_v21, %v4206_v57  ;;  %v4218_v12 = vor.u32 %v4216_v56, %v4214_v20  ;;  %v12675_v15 = vld [vmem:[#allocation2 + $0x48] sm:$0xff]   ;;  %vm19164_vm6 = vmmov %vm19157_vm4  ;;  %v12676_v56 = vld [vmem:[#allocation2 + $0x40] sm:$0xff]   ;;  %6040 = vmatpush1.bf16.msra.mxu0 %v12722_v26 }
 0x197   : > { %v4222_v22 = vrot.slane %v4220_v6, 1  ;;  %v4228_v9 = vshll.u32 %v15347_v1, 16  ;;  %v2395_v47 = vsel %vm19162_vm13, %v2390_v27, %v2394_v5  ;;  %v3318_v14 = vshrl.u32 %v15322_v32, 16  ;;  %v12726_v32 = vld [vmem:[%s18512_s3 + $0xa0] sm:$0xff]   ;;  %6041 = vmatprep.subr.bf16.mxu0 %v18949_v42  ;;  %vm19165_vm13 = vmmov %vm19157_vm4 }
 0x198   : > { %3441 = vrot.lane.b32.xlu1 %v3301_v45, %s13243_s12  ;;  %v3324_v19 = vrot.slane %v3322_v3, 1  ;;  %v4224_v40 = vshrl.u32 %v15333_v53, 16  ;;  %v15374_v57 = vsel %vm19163_vm12, %v2398_v61, %v2402_v36  ;;  %v15377_v48 = vsel %vm19157_vm4, %v4210_v4, %v4214_v20  ;;  %v12678_v61 = vld [vmem:[#allocation2 + $0x50] sm:$0xff]   ;;  %vm19166_vm12 = vmmov %vm19157_vm4  ;;  %v12679_v3 = vld [vmem:[#allocation2 + $0x48] sm:$0xff]  }
 0x199   : > { %2434 = vrot.lane.b32.xlu0 %v2387_v62, %s13243_s12  ;;  %v3317_v23 = vsel %vm19164_vm6, %v3312_v29, %v3316_v18  ;;  %v3330_v21 = vshll.u32 %v15351_v51, 16  ;;  %v3320_v5 = vor.u32 %v3318_v14, %v3316_v18  ;;  %v3326_v53 = vshrl.u32 %v15340_v0, 16  ;;  %vm19167_vm6 = vmmov %vm19157_vm4 }
 0x19a   : > { %v4232_v62 = vshrl.u32 %v15347_v1, 16  ;;  %v4236_v27 = vshll.u32 %v15353_v46, 16  ;;  %v15390_v20 = vsel %vm19165_vm13, %v4218_v12, %v4222_v22  ;;  %v4230_v29 = vrot.slane %v4228_v9, 1  ;;  %v12681_v12 = vld [vmem:[#allocation2 + $0x58] sm:$0xff]   ;;  %6042 = vmatpush1.bf16.msra.mxu0 %v12726_v32  ;;  %vm19168_vm13 = vmmov %vm19157_vm4 }
 0x19b   : > { %v3334_v36 = vshrl.u32 %v15351_v51, 16  ;;  %v3338_v6 = vshll.u32 %v12673_v31, 16  ;;  %v15395_v18 = vsel %vm19166_vm12, %v3320_v5, %v3324_v19  ;;  %v4226_v0 = vor.u32 %v4224_v40, %v4222_v22  ;;  %v12727_v51 = vld [vmem:[%s18512_s3 + $0x98] sm:$0xff]   ;;  %6043 = vmatprep.subr.bf16.mxu0 %v18949_v42  ;;  %vm19169_vm12 = vmmov %vm19157_vm4 }
 0x19c   : > { %2820 = vrot.lane.b32.xlu1 %v12658_v33, %s13243_s12  ;;  %v4240_v1 = vshrl.u32 %v15353_v46, 16  ;;  %v4244_v45 = vshll.u32 %v12675_v15, 16  ;;  %v3332_v4 = vrot.slane %v3330_v21, 1  ;;  %v3342_v33 = vshrl.u32 %v12673_v31, 16  ;;  %v15405_v21 = vld [vmem:[#allocation2 + $0x60] sm:$0xff]  }
 0x19d   : > { %3443 = vrot.lane.b32.xlu0 %v3309_v2, %s13243_s12  ;;  %v3340_v26 = vrot.slane %v3338_v6, 1  ;;  %v3346_v14 = vshll.u32 %v12676_v56, 16  ;;  %v4238_v9 = vrot.slane %v4236_v27, 1  ;;  %v4248_v43 = vshrl.u32 %v12675_v15, 16 }
 0x19e   : > { %v4246_v2 = vrot.slane %v4244_v45, 1  ;;  %v4252_v5 = vshll.u32 %v12678_v61, 16  ;;  %v3328_v46 = vor.u32 %v3326_v53, %v3324_v19  ;;  %v4234_v22 = vor.u32 %v4232_v62, %v4230_v29  ;;  %6044 = vmatpush1.bf16.msra.mxu0 %v12727_v51 }
 0x19f   : > { %v3336_v31 = vor.u32 %v3334_v36, %v3332_v4  ;;  %v3350_v40 = vshrl.u32 %v12676_v56, 16  ;;  %v4242_v32 = vor.u32 %v4240_v1, %v4238_v9  ;;  %v3344_v6 = vor.u32 %v3342_v33, %v3340_v26  ;;  %6045 = vmatprep.subr.bf16.mxu0 %v18949_v42 }
 0x1a0   : > { %4341 = vrot.lane.b32.xlu1 %v4207_v60, %s13243_s12  ;;  %v3348_v27 = vrot.slane %v3346_v14, 1  ;;  %v3354_v45 = vshll.u32 %v12679_v3, 16  ;;  %v4250_v15 = vor.u32 %v4248_v43, %v4246_v2  ;;  %v4254_v54 = vrot.slane %v4252_v5, 1  ;;  %v12731_v60 = vld [vmem:[%s18512_s3 + $0x90] sm:$0xff]  }
 0x1a1   : > { %2436 = vrot.lane.b32.xlu0 %v2395_v47, %s13243_s12  ;;  %v4256_v13 = vshrl.u32 %v12678_v61, 16  ;;  %v4260_v38 = vshll.u32 %v12681_v12, 16  ;;  %v3358_v53 = vshrl.u32 %v12679_v3, 16  ;;  %v3362_v62 = vshll.u32 %v15401_v55, 16  ;;  %v15432_v5 = vld [vmem:[#allocation2 + $0x70] sm:$0xff]  }
 0x1a2   : > { %v3352_v19 = vor.u32 %v3350_v40, %v3348_v27  ;;  %v3356_v56 = vrot.slane %v3354_v45, 1  ;;  %v15415_v43 = vsel %vm19157_vm4, %v4226_v0, %v4230_v29  ;;  %v4264_v61 = vshrl.u32 %v12681_v12, 16  ;;  %v15429_v29 = vld [vmem:[#allocation2 + $0x60] sm:$0xff]   ;;  %6046 = vmatpush1.bf16.msra.mxu0 %v12731_v60  ;;  %v15453_v40 = vld [vmem:[#allocation2 + $0x68] sm:$0xff]  }
 0x1a3   : > { %v4262_v47 = vrot.slane %v4260_v38, 1  ;;  %v4268_v36 = vshll.u32 %v15405_v21, 16  ;;  %v3333_v1 = vsel %vm19167_vm6, %v3328_v46, %v3332_v4  ;;  %v15422_v3 = vsel %vm19168_vm13, %v4234_v22, %v4238_v9  ;;  %vm19170_vm6 = vmmov %vm19157_vm4  ;;  %6047 = vmatprep.subr.bf16.mxu0 %v18949_v42 }
 0x1a4   : > { %3445 = vrot.lane.b32.xlu1 %v3317_v23, %s13243_s12  ;;  %v15425_v33 = vsel %vm19169_vm12, %v3336_v31, %v3340_v26  ;;  %v4258_v14 = vor.u32 %v4256_v13, %v4254_v54  ;;  %v15427_v23 = vld [vmem:[#allocation2 + $0x68] sm:$0xff]   ;;  %v3360_v38 = vor.u32 %v3358_v53, %v3356_v56  ;;  %v3364_v0 = vrot.slane %v3362_v62, 1  ;;  %vm19171_vm13 = vmmov %vm19157_vm4  ;;  %v12686_v31 = vld [vmem:[#allocation2] sm:$0xfe]  }
 0x1a5   : > { %4339 = vrot.lane.b32.xlu0 %v15360_v24, %s13243_s12  ;;  %v3366_v12 = vshrl.u32 %v15401_v55, 16  ;;  %v3370_v51 = vshll.u32 %v12685_v37, 16  ;;  %v12733_v24 = vld [vmem:[%s18512_s3 + $0x88] sm:$0xff]   ;;  %v15438_v4 = vsel %vm19157_vm4, %v4242_v32, %v4246_v2  ;;  %v15441_v13 = vsel %vm19170_vm6, %v3344_v6, %v3348_v27  ;;  %vm19172_vm12 = vmmov %vm19157_vm4 }
 0x1a6   : > { %v15444_v26 = vsel %vm19171_vm13, %v4250_v15, %v4254_v54  ;;  %v15447_v9 = vsel %vm19172_vm12, %v3352_v19, %v3356_v56  ;;  %v4266_v55 = vor.u32 %v4264_v61, %v4262_v47  ;;  %v4270_v46 = vrot.slane %v4268_v36, 1  ;;  %vm19173_vm6 = vmmov %vm19157_vm4  ;;  %v15466_v15 = vld [vmem:[#allocation2 + $0x78] sm:$0xff]   ;;  %6048 = vmatpush1.bf16.msra.mxu0 %v12733_v24  ;;  %v12695_v61 = vld [vmem:[#allocation2 + $0x70] sm:$0xff]  }
 0x1a7   : > { %v3372_v22 = vrot.slane %v3370_v51, 1  ;;  %v4272_v2 = vshrl.u32 %v15405_v21, 16  ;;  %v4276_v54 = vshll.u32 %v15427_v23, 16  ;;  %v3374_v32 = vshrl.u32 %v12685_v37, 16  ;;  %vm19174_vm13 = vmmov %vm19157_vm4  ;;  %v2785_v37 = vpop.permute.xlu0 %2784  ;;  %6049 = vmatprep.subr.bf16.mxu0 %v18949_v42 }
 0x1a8   : > { %3447 = vrot.lane.b32.xlu1 %v15395_v18, %s13243_s12  ;;  %v3378_v6 = vshll.u32 %v15429_v29, 16  ;;  %v15460_v27 = vsel %vm19173_vm6, %v4258_v14, %v4262_v47  ;;  %v15463_v18 = vsel %vm19174_vm13, %v3360_v38, %v3364_v0  ;;  %v3368_v45 = vor.u32 %v3366_v12, %v3364_v0  ;;  %vm19176_vm13 = vmmov %vm19172_vm12 }
 0x1a9   : > { %2438 = vrot.lane.b32.xlu0 %v15374_v57, %s13243_s12  ;;  %v4284_v21 = vshll.u32 %v15432_v5, 16  ;;  %v12737_v57 = vld [vmem:[%s18512_s3 + $0x80] sm:$0xff]   ;;  %vm2973_vm4 = vcmask 1046532   ;;  %v4274_v60 = vor.u32 %v4272_v2, %v4270_v46  ;;  %v4278_v19 = vrot.slane %v4276_v54, 1 }
 0x1aa   : > { %vm19175_vm6 = vcmask 523264   ;;  %v3376_v53 = vor.u32 %v3374_v32, %v3372_v22  ;;  %v3380_v62 = vrot.slane %v3378_v6, 1  ;;  %v3386_v47 = vshll.u32 %v15453_v40, 16  ;;  %6050 = vmatpush1.bf16.msra.mxu0 %v12737_v57  ;;  %v12697_v54 = vld [vmem:[#allocation2 + $0x80] sm:$0xff]   ;;  %v15511_v57 = vld [vmem:[#allocation2 + $0x78] sm:$0xff]  }
 0x1ab   : > { %v2824_v56 = vsel %vm19175_vm6, %v12686_v31, %v2785_v37  ;;  %v15478_v36 = vsel %vm19176_vm13, %v4266_v55, %v4270_v46  ;;  %v4280_v0 = vshrl.u32 %v15427_v23, 16  ;;  %v15482_v12 = vsel %vm19172_vm12, %v3368_v45, %v3372_v22  ;;  %v12738_v23 = vld [vmem:[%s18512_s3 + $0xf8] sm:$0xff]   ;;  %v2787_v31 = vpop.permute.xlu0 %2786  ;;  %6051 = vmatprep.subr.bf16.mxu0 %v18949_v42 }
 0x1ac   : > { %3449 = vrot.lane.b32.xlu1 %v3333_v1, %s13243_s12  ;;  %v11510_v14 = vcombine.low %v2824_v56, %v2824_v56  ;;  %v11511_v38 = vcombine.high %v2824_v56, %v2824_v56  ;;  %vm19177_vm6 = vcmask 1042432   ;;  %v19178_v1 = vmov 0 }
 0x1ad   : > { %4343 = vrot.lane.b32.xlu0 %v15377_v48, %s13243_s12  ;;  %vm15486_vm9 = vmor %vm19177_vm6, %vm2973_vm4  ;;  %v15490_v51 = vrot.slane %v4284_v21, 1  ;;  %v3382_v48 = vshrl.u32 %v15429_v29, 16  ;;  %v4292_v24 = vshll.u32 %v15466_v15, 16  ;;  %v15498_v22 = vsel %vm19172_vm12, %v4274_v60, %v4278_v19 }
 0x1ae   : > { %v19179_v1 = vsel %vm15486_vm9, 4294967295, %v19178_v1  ;;  %v11547_v55 = vrot.slane %v11510_v14, 9  ;;  %v2977_v46 = vrot.slane %v11511_v38, 5  ;;  %v4288_v2 = vshrl.u32 %v15432_v5, 16  ;;  %vm19181_vm4 = vmmov %vm19172_vm12  ;;  %6052 = vmatpush2.bf16.msra.mxu0 %v12738_v23  ;;  %v15535_v23 = vld [vmem:[#allocation2 + $0x80] sm:$0xff]  }
 0x1af   : > { %19180 = vst [vmem:[#allocation19_spill] sm:$0xff] %v19179_v1  ;;  %v15505_v29 = vsel %vm19181_vm4, %v3376_v53, %v3380_v62  ;;  %v19182_v32 = vcombine.low %v15310_v28, %v15327_v44  ;;  %vm19183_vm13 = vcmask 523264   ;;  %v3388_v45 = vrot.slane %v3386_v47, 1  ;;  %v15519_v47 = vld [vmem:[#allocation2 + $0x88] sm:$0xff]   ;;  %6053 = vmatprep.subr.bf16.mxu0 %v18949_v42  ;;  %vm19185_vm12 = vmmov %vm19181_vm4 }
 0x1b0   : > { %3451 = vrot.lane.b32.xlu1 %v15425_v33, %s13243_s12  ;;  %v3394_v21 = vshll.u32 %v12695_v61, 16  ;;  %v2978_v5 = vsel %vm15486_vm9, %v11547_v55, %v2977_v46  ;;  %v3390_v60 = vshrl.u32 %v15453_v40, 16  ;;  %v4282_v56 = vor.u32 %v4280_v0, %v4278_v19  ;;  %vm19184_vm6 = vmmov %vm19183_vm13 }
 0x1b1   : > { %v2827_v6 = vsel %vm19183_vm13, %v19182_v32, %v2787_v31  ;;  %4345 = vrot.lane.b32.xlu0 %v15390_v20, %s13243_s12  ;;  %3120 = vst [vmem:[#allocation4 + $0x4] sm:$0xf] %v2978_v5  ;;  %v3384_v53 = vor.u32 %v3382_v48, %v3380_v62  ;;  %v4294_v28 = vrot.slane %v4292_v24, 1  ;;  %v4296_v44 = vshrl.u32 %v15466_v15, 16  ;;  %v12742_v20 = vld [vmem:[%s18512_s3 + $0xf0] sm:$0xff]   ;;  %vm19186_vm13 = vmmov %vm19181_vm4 }
 0x1b2   : > { %v11512_v37 = vcombine.low %v2827_v6, %v2827_v6  ;;  %v11513_v33 = vcombine.high %v2827_v6, %v2827_v6  ;;  %v2979_v14 = vrot.slane %v2977_v46, 4  ;;  %v4300_v55 = vshll.u32 %v12697_v54, 16  ;;  %6054 = vmatpush2.bf16.msra.mxu0 %v12742_v20 }
 0x1b3   : > { %v3398_v31 = vshrl.u32 %v12695_v61, 16  ;;  %v4290_v40 = vor.u32 %v4288_v2, %v15490_v51  ;;  %v3396_v19 = vrot.slane %v3394_v21, 1  ;;  %v3402_v15 = vshll.u32 %v15511_v57, 16  ;;  %v13089_v21 = vld [vmem:[#allocation2] sm:$0xff]   ;;  %6055 = vmatprep.subr.bf16.mxu0 %v18949_v42 }
 0x1b4   : > { %v2980_v38 = vrot.slane %v11512_v37, 5  ;;  %3453 = vrot.lane.b32.xlu1 %v15441_v13, %s13243_s12  ;;  %v4304_v62 = vshrl.u32 %v12697_v54, 16  ;;  %v15533_v24 = vrot.slane %v11513_v33, 5  ;;  %v3392_v61 = vor.u32 %v3390_v60, %v3388_v45  ;;  %v2405_v13 = vpop.permute.xlu1 %2404  ;;  %v15546_v60 = vld [vmem:[#allocation2 + $0x90] sm:$0xff]  }
 0x1b5   : > { %4347 = vrot.lane.b32.xlu0 %v15415_v43, %s13243_s12  ;;  %v4298_v46 = vor.u32 %v4296_v44, %v4294_v28  ;;  %v4302_v2 = vrot.slane %v4300_v55, 1  ;;  %v3400_v32 = vor.u32 %v3398_v31, %v3396_v19  ;;  %v4308_v6 = vshll.u32 %v15519_v47, 16  ;;  %v12744_v43 = vld [vmem:[%s18512_s3 + $0xe8] sm:$0xff]  }
 0x1b6   : > { %v2981_v0 = vsel %vm15486_vm9, %v2979_v14, %v2980_v38  ;;  %v2982_v48 = vrot.slane %v2980_v38, 4  ;;  %v2442_v5 = vsel %vm19184_vm6, %v13089_v21, %v2405_v13  ;;  %v3404_v37 = vrot.slane %v3402_v15, 1  ;;  %v15551_v55 = vld [vmem:[#allocation2 + $0x88] sm:$0xff]   ;;  %vm19187_vm6 = vmmov %vm19181_vm4  ;;  %6056 = vmatpush2.bf16.msra.mxu0 %v12744_v43 }
 0x1b7   : > { %3121 = vst [vmem:[#allocation4 + $0x18] sm:$0xf] %v2981_v0  ;;  %v3406_v33 = vshrl.u32 %v15511_v57, 16  ;;  %v11452_v44 = vcombine.low %v2442_v5, %v2442_v5  ;;  %v11453_v20 = vcombine.high %v2442_v5, %v2442_v5  ;;  %v4306_v14 = vor.u32 %v4304_v62, %v4302_v2  ;;  %v15566_v0 = vld [vmem:[#allocation2 + $0x98] sm:$0xff]   ;;  %6057 = vmatprep.subr.bf16.mxu0 %v18949_v42 }
 0x1b8   : > { %v2984_v54 = vsel %vm15486_vm9, %v2982_v48, %v15533_v24  ;;  %3455 = vrot.lane.b32.xlu1 %v15447_v9, %s13243_s12  ;;  %v4310_v38 = vrot.slane %v4308_v6, 1  ;;  %v15557_v57 = vsel %vm19185_vm12, %v4282_v56, %v15490_v51  ;;  %v15560_v31 = vsel %vm19181_vm4, %v3384_v53, %v3388_v45  ;;  %v2789_v48 = vpop.permute.xlu1 %2788  ;;  %vm19188_vm12 = vmmov %vm19181_vm4  ;;  %v12749_v56 = vld [vmem:[%s18512_s3 + $0xe0] sm:$0xff]   ;;  %v13090_v53 = vld [vmem:[#allocation2 + $0x10] sm:$0xff]  }
 0x1b9   : > { %3122 = vst [vmem:[#allocation4 + $0x2c] sm:$0xf] %v2984_v54  ;;  %4349 = vrot.lane.b32.xlu0 %v15422_v3, %s13243_s12  ;;  %v15563_v15 = vsel %vm19186_vm13, %v4290_v40, %v4294_v28  ;;  %v3410_v9 = vshll.u32 %v15535_v23, 16  ;;  %v2985_v62 = vrot.slane %v15533_v24, 4  ;;  %2603 = vst [vmem:[#allocation4] sm:$0xf] %v11452_v44  ;;  %v15570_v3 = vsel %vm19187_vm6, %v3392_v61, %v3396_v19 }
 0x1ba   : > { %2604 = vst [vmem:[#allocation4 + $0x14] sm:$0xf] %v11453_v20  ;;  %v15573_v51 = vsel %vm19188_vm12, %v4298_v46, %v4302_v2  ;;  %v4312_v45 = vshrl.u32 %v15519_v47, 16  ;;  %vm19189_vm4 = vcmask 523264   ;;  %vm19190_vm13 = vmmov %vm19187_vm6  ;;  %v3408_v24 = vor.u32 %v3406_v33, %v3404_v37  ;;  %v2407_v2 = vpop.permute.xlu0 %2406  ;;  %v15599_v20 = vld [vmem:[#allocation2 + $0x90] sm:$0xff]   ;;  %6058 = vmatpush2.bf16.msra.mxu0 %v12749_v56 }
 0x1bb   : > { %v2830_v28 = vsel %vm19189_vm4, %v13090_v53, %v2789_v48  ;;  %v15581_v40 = vsel %vm19190_vm13, %v3400_v32, %v3404_v37  ;;  %v4316_v19 = vshll.u32 %v15546_v60, 16  ;;  %v15588_v13 = vsel %vm19187_vm6, %v4306_v14, %v4310_v38  ;;  %vm19191_vm12 = vmmov %vm19189_vm4  ;;  %v13092_v48 = vld [vmem:[#allocation2 + $0x18] sm:$0xff]   ;;  %6059 = vmatprep.subr.bf16.mxu0 %v18949_v42 }
 0x1bc   : > { %3457 = vrot.lane.b32.xlu1 %v15463_v18, %s13243_s12  ;;  %v11514_v47 = vcombine.low %v2830_v28, %v2830_v28  ;;  %v11515_v61 = vcombine.high %v2830_v28, %v2830_v28  ;;  %v3418_v46 = vshll.u32 %v15551_v55, 16  ;;  %v15593_v32 = vrot.slane %v3410_v9, 1  ;;  %v13091_v18 = vld [vmem:[#allocation2 + $0x8] sm:$0xff]   ;;  %v2791_v33 = vpop.permute.xlu1 %2790  ;;  %v15605_v28 = vld [vmem:[#allocation2 + $0xa0] ss:$0 sps:$4 sm:$0x77]   ;;  %vm19192_vm13 = vmmov %vm19187_vm6 }
 0x1bd   : > { %4351 = vrot.lane.b32.xlu0 %v15438_v4, %s13243_s12  ;;  %v3414_v6 = vshrl.u32 %v15535_v23, 16  ;;  %v4320_v43 = vshrl.u32 %v15546_v60, 16  ;;  %v4324_v54 = vshll.u32 %v15566_v0, 16  ;;  %v2444_v21 = vsel %vm19191_vm12, %v13091_v18, %v2407_v2  ;;  %v12750_v4 = vld [vmem:[%s18512_s3 + $0xd8] sm:$0xff]   ;;  %vm19193_vm6 = vmmov %vm19189_vm4 }
 0x1be   : > { %v2986_v5 = vrot.slane %v11514_v47, 5  ;;  %v2989_v37 = vrot.slane %v11515_v61, 5  ;;  %v4314_v44 = vor.u32 %v4312_v45, %v4310_v38  ;;  %v11454_v14 = vcombine.low %v2444_v21, %v2444_v21  ;;  %v15608_v47 = vld [vmem:[#allocation2 + $0x20] sm:$0xf]  ;;  %v12703_v18 = vld [vmem:[#allocation4 + $0x4] ss:$20 sps:$4 sm:$0xff]   ;;  %6060 = vmatpush2.bf16.msra.mxu0 %v12750_v4  ;;  %vm19194_vm12 = vmmov %vm19192_vm13 }
 0x1bf   : > { %v11455_v9 = vcombine.high %v2444_v21, %v2444_v21  ;;  %v2833_v60 = vsel %vm19189_vm4, %v13092_v48, %v2791_v33  ;;  %v4318_v53 = vrot.slane %v4316_v19, 1  ;;  %v15614_v61 = vrot.slane %v3418_v46, 1  ;;  %v15619_v19 = vld [vmem:[%s18512_s3 + $0x110] sm:$0xff]   ;;  %5890 = vmatprep.mubr.bf16.mxu1 %v12703_v18  ;;  %6061 = vmatprep.subr.bf16.mxu0 %v18949_v42 }
 0x1c0   : > { %3459 = vrot.lane.b32.xlu1 %v15482_v12, %s13243_s12  ;;  %v2987_v38 = vsel %vm15486_vm9, %v2985_v62, %v2986_v5  ;;  %v2988_v45 = vrot.slane %v2986_v5, 4  ;;  %v11516_v56 = vcombine.low %v2833_v60, %v2833_v60  ;;  %2605 = vst [vmem:[#allocation4 + $0x28] sm:$0xf] %v11454_v14  ;;  %v2991_v2 = vrot.slane %v2989_v37, 4  ;;  %v2793_v33 = vpop.permute.xlu1 %2792 }
 0x1c1   : > { %4353 = vrot.lane.b32.xlu0 %v15444_v26, %s13243_s12  ;;  %2606 = vst [vmem:[#allocation4 + $0x3c] sm:$0xf] %v11455_v9  ;;  %3123 = vst [vmem:[#allocation4 + $0x40] sm:$0xf] %v2987_v38  ;;  %v11517_v12 = vcombine.high %v2833_v60, %v2833_v60  ;;  %v15625_v62 = vsel %vm19192_vm13, %v3408_v24, %v15593_v32  ;;  %v15627_v46 = vrot.slane %v4324_v54, 1  ;;  %v3422_v26 = vshrl.u32 %v15551_v55, 16 }
 0x1c2   : > { %v2990_v21 = vsel %vm15486_vm9, %v2988_v45, %v2989_v37  ;;  %v2992_v5 = vrot.slane %v11516_v56, 5  ;;  %v12705_v48 = vld [vmem:[#allocation4] ss:$20 sps:$4 sm:$0xff]   ;;  %v3426_v14 = vshll.u32 %v15599_v20, 16  ;;  %v12754_v9 = vld [vmem:[%s18512_s3 + $0xd0] sm:$0xff]   ;;  %v13093_v60 = vld [vmem:[#allocation2 + $0x20] sm:$0xff]  }
 0x1c3   : > { %3124 = vst [vmem:[#allocation4 + $0x54] sm:$0xf] %v2990_v21  ;;  %v2995_v24 = vrot.slane %v11517_v12, 5  ;;  %v2836_v54 = vsel %vm19193_vm6, %v13093_v60, %v2793_v33  ;;  %v4328_v37 = vshrl.u32 %v15566_v0, 16  ;;  %v4332_v38 = vshll.u32 %v15605_v28, 16  ;;  %5891 = vmatmul.mubr.bf16.vlgmr.msra.gmra.mxu1 %v12705_v48  ;;  %6062 = vmatpush2.bf16.msra.mxu0 %v12754_v9  ;;  %v13094_v60 = vld [vmem:[#allocation2 + $0x28] sm:$0xff]   ;;  %vm19195_vm13 = vmmov %vm19189_vm4 }
 0x1c4   : > { %3461 = vrot.lane.b32.xlu1 %v15505_v29, %s13243_s12  ;;  %v2993_v55 = vsel %vm15486_vm9, %v2991_v2, %v2992_v5  ;;  %v2994_v4 = vrot.slane %v2992_v5, 4  ;;  %v11518_v45 = vcombine.low %v2836_v54, %v2836_v54  ;;  %v11519_v56 = vcombine.high %v2836_v54, %v2836_v54  ;;  %12409 = vmatpush3.bf16.msra.mxu1 %v15295_v16  ;;  %v2795_v33 = vpop.permute.xlu1 %2794  ;;  %v2409_v16 = vpop.permute.xlu0 %2408  ;;  %vm19196_vm6 = vmmov %vm19194_vm12 }
 0x1c5   : > { %v4781_v12 = vrot.slane %v15608_v47, 7  ;;  %4355 = vrot.lane.b32.xlu0 %v15460_v27, %s13243_s12  ;;  %3125 = vst [vmem:[#allocation4 + $0x68] sm:$0xf] %v2993_v55  ;;  %v15649_v0 = vsel %vm19194_vm12, %v4314_v44, %v4318_v53  ;;  %v3416_v29 = vor.u32 %v3414_v6, %v15593_v32  ;;  %v4322_v2 = vor.u32 %v4320_v43, %v4318_v53  ;;  %v15657_v27 = vld [vmem:[#allocation2 + $0x98] ss:$0 sps:$4 sm:$0x33]   ;;  %vm19197_vm12 = vmmov %vm19196_vm6 }
 0x1c6   : > { %v2996_v18 = vsel %vm15486_vm9, %v2994_v4, %v2995_v24  ;;  %v2997_v21 = vrot.slane %v2995_v24, 4  ;;  %v2998_v5 = vrot.slane %v11518_v45, 5  ;;  %v3424_v48 = vor.u32 %v3422_v26, %v15614_v61  ;;  %12410 = vmatprep.subr.bf16.mxu1 %v15619_v19  ;;  %6063 = vmatprep.subr.bf16.mxu0 %v18949_v42  ;;  %v12755_v43 = vld [vmem:[%s18512_s3 + $0xc8] sm:$0xff]   ;;  %v13095_v26 = vld [vmem:[#allocation2 + $0x10] sm:$0xff]  }
 0x1c7   : > { %3126 = vst [vmem:[#allocation4 + $0x7c] sm:$0xf] %v2996_v18  ;;  %v3001_v44 = vrot.slane %v11519_v56, 5  ;;  %v2839_v23 = vsel %vm19189_vm4, %v13094_v60, %v2795_v33  ;;  %v15661_v32 = vrot.slane %v3426_v14, 1  ;;  %v4330_v6 = vor.u32 %v4328_v37, %v15627_v46  ;;  %v12756_v53 = vld [vmem:[%s18512_s3 + $0x108] sm:$0xff]   ;;  %6064 = vmatpush2.bf16.msra.mxu0 %v12755_v43 }
 0x1c8   : > { %3463 = vrot.lane.b32.xlu1 %v15560_v31, %s13243_s12  ;;  %v2446_v9 = vsel %vm19195_vm13, %v13095_v26, %v2409_v16  ;;  %v2999_v14 = vsel %vm15486_vm9, %v2997_v21, %v2998_v5  ;;  %v3000_v24 = vrot.slane %v2998_v5, 4  ;;  %v12708_v54 = vld [vmem:[#allocation4 + $0x2c] ss:$20 sps:$4 sm:$0xff]   ;;  %v15676_v37 = vrot.slane %v4332_v38, 1  ;;  %v2797_v21 = vpop.permute.xlu1 %2796  ;;  %v12712_v5 = vld [vmem:[#allocation4 + $0x28] ss:$20 sps:$4 sm:$0xff]   ;;  %12411 = vmatpush3.bf16.msra.mxu1 %v15619_v19  ;;  %vm19198_vm13 = vmmov %vm19196_vm6 }
 0x1c9   : > { %4357 = vrot.lane.b32.xlu0 %v15478_v36, %s13243_s12  ;;  %v11456_v55 = vcombine.low %v2446_v9, %v2446_v9  ;;  %v11457_v4 = vcombine.high %v2446_v9, %v2446_v9  ;;  %3127 = vst [vmem:[#allocation4 + $0x90] sm:$0xf] %v2999_v14  ;;  %v11520_v45 = vcombine.low %v2839_v23, %v2839_v23  ;;  %v3434_v36 = vshll.u32 %v15657_v27, 16  ;;  %v4700_v47 = vld [vmem:[#allocation2 + $0x2c] sm:$0xf] }
 0x1ca   : > { %v11521_v56 = vcombine.high %v2839_v23, %v2839_v23  ;;  %v3002_v31 = vsel %vm15486_vm9, %v3000_v24, %v3001_v44  ;;  %v15684_v18 = vsel %vm19196_vm6, %v3416_v29, %v15614_v61  ;;  %5898 = vmatprep.mubr.bf16.mxu1 %v12708_v54  ;;  %v15688_v38 = vsel %vm19197_vm12, %v4322_v2, %v15627_v46  ;;  %v13096_v23 = vld [vmem:[#allocation2 + $0x30] sm:$0xff]   ;;  %v12760_v46 = vld [vmem:[%s18512_s3 + $0xc0] sm:$0xff]   ;;  %vm19199_vm12 = vmmov %vm19189_vm4 }
 0x1cb   : > { %2607 = vst [vmem:[#allocation4 + $0x50] sm:$0xf] %v11456_v55  ;;  %2608 = vst [vmem:[#allocation4 + $0x64] sm:$0xf] %v11457_v4  ;;  %v3003_v33 = vrot.slane %v3001_v44, 4  ;;  %v3004_v16 = vrot.slane %v11520_v45, 5  ;;  %v2842_v61 = vsel %vm19189_vm4, %v13096_v23, %v2797_v21  ;;  %12412 = vmatprep.subr.bf16.mxu1 %v12756_v53  ;;  %v15700_v2 = vsel %vm19198_vm13, %v3424_v48, %v15661_v32  ;;  %v2411_v48 = vpop.permute.xlu0 %2410 }
 0x1cc   : > { %3128 = vst [vmem:[#allocation4 + $0xa4] sm:$0xf] %v3002_v31  ;;  %v3007_v60 = vrot.slane %v11521_v56, 5  ;;  %3465 = vrot.lane.b32.xlu1 %v15570_v3, %s13243_s12  ;;  %v11522_v29 = vcombine.low %v2842_v61, %v2842_v61  ;;  %v11523_v19 = vcombine.high %v2842_v61, %v2842_v61  ;;  %5899 = vmatmul.mubr.bf16.gmra.mxu1 %v12712_v5  ;;  %v3430_v44 = vshrl.u32 %v15599_v20, 16  ;;  %v2799_v54 = vpop.permute.xlu1 %2798  ;;  %v13098_v45 = vld [vmem:[#allocation2 + $0x38] sm:$0xff]  }
 0x1cd   : > { %4359 = vrot.lane.b32.xlu0 %v15498_v22, %s13243_s12  ;;  %v3005_v43 = vsel %vm15486_vm9, %v3003_v33, %v3004_v16  ;;  %v3006_v26 = vrot.slane %v3004_v16, 4  ;;  %v15709_v9 = vsel %vm19196_vm6, %v4330_v6, %v15676_v37  ;;  %v4336_v3 = vshrl.u32 %v15605_v28, 16  ;;  %6065 = vmatprep.subr.bf16.mxu0 %v18949_v42  ;;  %v13097_v22 = vld [vmem:[#allocation2 + $0x18] sm:$0xff]   ;;  %v4693_v21 = vld [vmem:[#allocation2 + $0x10] sm:$0x8]  ;;  %v13108_v28 = vld [vmem:[#allocation2 + $0x68] sm:$0xff]  }
 0x1ce   : > { %v3009_v14 = vrot.slane %v3007_v60, 4  ;;  %3129 = vst [vmem:[#allocation4 + $0xb8] sm:$0xf] %v3005_v43  ;;  %v3010_v24 = vrot.slane %v11522_v29, 5  ;;  %v3013_v20 = vrot.slane %v11523_v19, 5  ;;  %v15713_v55 = vrot.slane %v3434_v36, 1  ;;  %12413 = vmatpush3.bf16.msra.mxu1 %v12756_v53  ;;  %6066 = vmatpush2.bf16.msra.mxu0 %v12760_v46 }
 0x1cf   : > { %v2448_v4 = vsel %vm19199_vm12, %v13097_v22, %v2411_v48  ;;  %v3008_v6 = vsel %vm15486_vm9, %v3006_v26, %v3007_v60  ;;  %v2845_v56 = vsel %vm19189_vm4, %v13098_v45, %v2799_v54  ;;  %v3438_v31 = vshrl.u32 %v15657_v27, 16  ;;  %v4694_v16 = vld [vmem:[#allocation2 + $0x14] sm:$0xf]  ;;  %10725 = vmatprep.subr.bf16.mxu0 %v18949_v42  ;;  %v4695_v46 = vld [vmem:[#allocation2 + $0x18] sm:$0xf]  ;;  %v13099_v48 = vld [vmem:[#allocation2 + $0x20] sm:$0xff]  }
 0x1d0   : > { %3467 = vrot.lane.b32.xlu1 %v15581_v40, %s13243_s12  ;;  %v11458_v5 = vcombine.low %v2448_v4, %v2448_v4  ;;  %v11459_v36 = vcombine.high %v2448_v4, %v2448_v4  ;;  %3130 = vst [vmem:[#allocation4 + $0xcc] sm:$0xf] %v3008_v6  ;;  %v3011_v53 = vsel %vm15486_vm9, %v3009_v14, %v3010_v24  ;;  %v3012_v33 = vrot.slane %v3010_v24, 4  ;;  %v2413_v40 = vpop.permute.xlu0 %2412  ;;  %v12715_v43 = vld [vmem:[#allocation4 + $0x54] ss:$20 sps:$4 sm:$0xff]   ;;  %vm19200_vm12 = vmmov %vm19189_vm4  ;;  %v2801_v54 = vpop.permute.xlu1 %2800 }
 0x1d1   : > { %4361 = vrot.lane.b32.xlu0 %v15557_v57, %s13243_s12  ;;  %v3015_v60 = vrot.slane %v3013_v20, 4  ;;  %3131 = vst [vmem:[#allocation4 + $0xe0] sm:$0xf] %v3011_v53  ;;  %v11524_v23 = vcombine.low %v2845_v56, %v2845_v56  ;;  %v11525_v61 = vcombine.high %v2845_v56, %v2845_v56  ;;  %vm4767_vm13 = vcmask 1040384   ;;  %5906 = vmatprep.mubr.bf16.mxu1 %v12715_v43  ;;  %vm19203_vm8 = vmmov %vm19200_vm12 }
 0x1d2   : > { %2609 = vst [vmem:[#allocation4 + $0x78] sm:$0xf] %v11458_v5  ;;  %2610 = vst [vmem:[#allocation4 + $0x8c] sm:$0xf] %v11459_v36  ;;  %v3014_v29 = vsel %vm15486_vm9, %v3012_v33, %v3013_v20  ;;  %v3432_v19 = vor.u32 %v3430_v44, %v15661_v32  ;;  %vm4768_vm6 = vcmask 1044484   ;;  %v11663_v26 = vrot.slane %v4693_v21, 11 }
 0x1d3   : > { %v2450_v57 = vsel %vm19200_vm12, %v13099_v48, %v2413_v40  ;;  %3132 = vst [vmem:[#allocation4 + $0xf4] sm:$0xf] %v3014_v29  ;;  %v3016_v14 = vrot.slane %v11524_v23, 5  ;;  %v3019_v24 = vrot.slane %v11525_v61, 5  ;;  %v12718_v22 = vld [vmem:[#allocation4 + $0x50] ss:$20 sps:$4 sm:$0xff]   ;;  %vm15732_vm4 = vmor %vm4767_vm13, %vm4768_vm6 }
 0x1d4   : > { %v4772_v6 = vrot.slane %v4694_v16, 7  ;;  %3469 = vrot.lane.b32.xlu1 %v15625_v62, %s13243_s12  ;;  %v11460_v32 = vcombine.low %v2450_v57, %v2450_v57  ;;  %v11461_v44 = vcombine.high %v2450_v57, %v2450_v57  ;;  %v13100_v20 = vld [vmem:[#allocation2 + $0x40] sm:$0xff]   ;;  %v4775_v56 = vrot.slane %v4695_v46, 7  ;;  %5907 = vmatmul.mubr.bf16.gmra.mxu1 %v12718_v22  ;;  %v2803_v46 = vpop.permute.xlu1 %2802  ;;  %v4699_v29 = vld [vmem:[#allocation2 + $0x28] sm:$0xf]  ;;  %vm19205_vm13 = vmmov %vm19200_vm12 }
 0x1d5   : > { %v2848_v45 = vsel %vm19203_vm8, %v13100_v20, %v2801_v54  ;;  %4363 = vrot.lane.b32.xlu0 %v15563_v15, %s13243_s12  ;;  %v3017_v21 = vsel %vm15486_vm9, %v3015_v60, %v3016_v14  ;;  %v3018_v5 = vrot.slane %v3016_v14, 4  ;;  %v3021_v36 = vrot.slane %v3019_v24, 4  ;;  %v4698_v40 = vld [vmem:[#allocation2 + $0x24] sm:$0xf]  ;;  %v13101_v48 = vld [vmem:[#allocation2 + $0x48] sm:$0xff]  }
 0x1d6   : > { %v11526_v53 = vcombine.low %v2848_v45, %v2848_v45  ;;  %2611 = vst [vmem:[#allocation4 + $0xa0] sm:$0xf] %v11460_v32  ;;  %2612 = vst [vmem:[#allocation4 + $0xb4] sm:$0xf] %v11461_v44  ;;  %v11527_v62 = vcombine.high %v2848_v45, %v2848_v45  ;;  %v4773_v33 = vsel %vm15732_vm4, %v11663_v26, %v4772_v6  ;;  %v4774_v16 = vrot.slane %v4772_v6, 4 }
 0x1d7   : > { %3133 = vst [vmem:[#allocation4 + $0x108] sm:$0xf] %v3017_v21  ;;  %v4777_v23 = vrot.slane %v4775_v56, 4  ;;  %v3020_v61 = vsel %vm15486_vm9, %v3018_v5, %v3019_v24  ;;  %vm19204_vm8 = vcmask 519168   ;;  %v4782_v60 = vsel %vm15732_vm4, %v15305_v11, %v4781_v12  ;;  %v12719_v32 = vld [vmem:[#allocation4 + $0x7c] ss:$20 sps:$4 sm:$0xff]  }
 0x1d8   : > { %v3022_v15 = vrot.slane %v11526_v53, 5  ;;  %4915 = vst.msk [vmem:[#allocation4 + $0x10] sm:$0xf] %vm19204_vm8, %v4773_v33  ;;  %v4783_v43 = vrot.slane %v4781_v12, 4  ;;  %3471 = vrot.lane.b32.xlu1 %v15684_v18, %s13243_s12  ;;  %3134 = vst [vmem:[#allocation4 + $0x11c] sm:$0xf] %v3020_v61  ;;  %v2851_v57 = vsel %vm19205_vm13, %v13101_v48, %v2803_v46  ;;  %v4776_v14 = vsel %vm15732_vm4, %v4774_v16, %v4775_v56  ;;  %v2805_v5 = vpop.permute.xlu1 %2804 }
 0x1d9   : > { %v3025_v26 = vrot.slane %v11527_v62, 5  ;;  %v19206_v24 = vrot.slane %v15245_v10, 7  ;;  %vm19207_vm6 = vmmov %vm19204_vm8  ;;  %v15765_v12 = vld [vmem:[#allocation2 + $0x30] sm:$0xf]  ;;  %4365 = vrot.lane.b32.xlu0 %v15573_v51, %s13243_s12  ;;  %v11528_v22 = vcombine.low %v2851_v57, %v2851_v57  ;;  %v11529_v6 = vcombine.high %v2851_v57, %v2851_v57  ;;  %5914 = vmatprep.mubr.bf16.mxu1 %v12719_v32  ;;  %v2415_v62 = vpop.permute.xlu0 %2414  ;;  %v13104_v32 = vld [vmem:[#allocation2 + $0x58] sm:$0xff]  }
 0x1da   : > { %4918 = vst.msk [vmem:[#allocation4 + $0x4c] sm:$0xf] %vm19207_vm6, %v4782_v60  ;;  %v3023_v18 = vsel %vm15486_vm9, %v3021_v36, %v3022_v15  ;;  %v3024_v54 = vrot.slane %v3022_v15, 4  ;;  %vm19208_vm12 = vmmov %vm19207_vm6  ;;  %vm19210_vm13 = vsmask.f32 7424  ;;  %v4784_v20 = vrot.slane %v4698_v40, 7 }
 0x1db   : > { %v4779_v11 = vsel %vm15732_vm4, %v4777_v23, %v19206_v24  ;;  %4916 = vst.msk [vmem:[#allocation4 + $0x24] sm:$0xf] %vm19208_vm12, %v4776_v14  ;;  %vm19209_vm8 = vmmov %vm19207_vm6  ;;  %v3437_v10 = vsel %vm19210_vm13, %v3432_v19, %v15713_v55  ;;  %v3027_v44 = vrot.slane %v3025_v26, 4  ;;  %v4787_v45 = vrot.slane %v4699_v29, 7  ;;  %v12723_v36 = vld [vmem:[#allocation4 + $0x78] ss:$20 sps:$4 sm:$0xff]  }
 0x1dc   : > { %4917 = vst.msk [vmem:[#allocation4 + $0x38] sm:$0xf] %vm19209_vm8, %v4779_v11  ;;  %3135 = vst [vmem:[#allocation4 + $0x130] sm:$0xf] %v3023_v18  ;;  %v3026_v51 = vsel %vm15486_vm9, %v3024_v54, %v3025_v26  ;;  %v3028_v56 = vrot.slane %v11528_v22, 5  ;;  %v3031_v21 = vrot.slane %v11529_v6, 5  ;;  %3473 = vrot.lane.b32.xlu1 %v15700_v2, %s13243_s12  ;;  %v4785_v16 = vsel %vm15732_vm4, %v4783_v43, %v4784_v20  ;;  %v2807_v24 = vpop.permute.xlu1 %2806 }
 0x1dd   : > { %v4790_v53 = vrot.slane %v4700_v47, 7  ;;  %3136 = vst [vmem:[#allocation4 + $0x144] sm:$0xf] %v3026_v51  ;;  %v13102_v33 = vld [vmem:[#allocation2 + $0x50] sm:$0xff]   ;;  %vm19211_vm6 = vcmask 523264   ;;  %v4786_v23 = vrot.slane %v4784_v20, 4  ;;  %4367 = vrot.lane.b32.xlu0 %v15588_v13, %s13243_s12  ;;  %5915 = vmatmul.mubr.bf16.gmra.mxu1 %v12723_v36 }
 0x1de   : > { %v2854_v19 = vsel %vm19211_vm6, %v13102_v33, %v2805_v5  ;;  %v4793_v61 = vrot.slane %v15765_v12, 7  ;;  %v13103_v15 = vld [vmem:[#allocation2 + $0x28] sm:$0xff]   ;;  %vm19212_vm12 = vmmov %vm19211_vm6  ;;  %v3029_v60 = vsel %vm15486_vm9, %v3027_v44, %v3028_v56  ;;  %v3030_v2 = vrot.slane %v3028_v56, 4  ;;  %v12724_v40 = vld [vmem:[#allocation4 + $0xa4] ss:$20 sps:$4 sm:$0xff]  }
 0x1df   : > { %v2452_v46 = vsel %vm19212_vm12, %v13103_v15, %v2415_v62  ;;  %4919 = vst.msk [vmem:[#allocation4 + $0x60] sm:$0xf] %vm19209_vm8, %v4785_v16  ;;  %v4789_v29 = vrot.slane %v4787_v45, 4  ;;  %3137 = vst [vmem:[#allocation4 + $0x158] sm:$0xf] %v3029_v60  ;;  %v11530_v48 = vcombine.low %v2854_v19, %v2854_v19  ;;  %v11531_v57 = vcombine.high %v2854_v19, %v2854_v19  ;;  %v13105_v19 = vld [vmem:[#allocation2 + $0x30] sm:$0xff]  }
 0x1e0   : > { %v11462_v26 = vcombine.low %v2452_v46, %v2452_v46  ;;  %v11463_v43 = vcombine.high %v2452_v46, %v2452_v46  ;;  %v4702_v14 = vld [vmem:[#allocation2 + $0x34] sm:$0xf]  ;;  %v3032_v13 = vsel %vm15486_vm9, %v3030_v2, %v3031_v21  ;;  %5922 = vmatprep.mubr.bf16.mxu1 %v12724_v40  ;;  %v4788_v11 = vsel %vm15732_vm4, %v4786_v23, %v4787_v45  ;;  %v15795_v18 = vld [vmem:[#allocation2 + $0x38] sm:$0xf]  ;;  %vm19213_vm13 = vmmov %vm19211_vm6 }
 0x1e1   : > { %v4791_v47 = vsel %vm15732_vm4, %v4789_v29, %v4790_v53  ;;  %v4792_v12 = vrot.slane %v4790_v53, 4  ;;  %3475 = vrot.lane.b32.xlu1 %v3437_v10, %s13243_s12  ;;  %v3033_v54 = vrot.slane %v3031_v21, 4  ;;  %3138 = vst [vmem:[#allocation4 + $0x16c] sm:$0xf] %v3032_v13  ;;  %v3034_v22 = vrot.slane %v11530_v48, 5  ;;  %vm19214_vm6 = vmmov %vm19209_vm8  ;;  %4369 = vrot.lane.b32.xlu0 %v15649_v0, %s13243_s12  ;;  %v2417_v21 = vpop.permute.xlu0 %2416  ;;  %v2809_v48 = vpop.permute.xlu1 %2808 }
 0x1e2   : > { %2613 = vst [vmem:[#allocation4 + $0xc8] sm:$0xf] %v11462_v26  ;;  %2614 = vst [vmem:[#allocation4 + $0xdc] sm:$0xf] %v11463_v43  ;;  %v3037_v6 = vrot.slane %v11531_v57, 5  ;;  %v2857_v44 = vsel %vm19213_vm13, %v13104_v32, %v2807_v24  ;;  %v4795_v10 = vrot.slane %v4793_v61, 4  ;;  %v3440_v5 = vor.u32 %v3438_v31, %v15713_v55 }
 0x1e3   : > { %4920 = vst.msk [vmem:[#allocation4 + $0x74] sm:$0xf] %vm19214_vm6, %v4788_v11  ;;  %vm19215_vm12 = vmmov %vm19214_vm6  ;;  %v11532_v20 = vcombine.low %v2857_v44, %v2857_v44  ;;  %v11533_v45 = vcombine.high %v2857_v44, %v2857_v44  ;;  %v4794_v51 = vsel %vm15732_vm4, %v4792_v12, %v4793_v61  ;;  %v15805_v56 = vld [vmem:[#allocation2 + $0x3c] sm:$0xf]  ;;  %v3035_v36 = vsel %vm15486_vm9, %v3033_v54, %v3034_v22  ;;  %v15813_v62 = vld [vmem:[#allocation2 + $0x40] sm:$0xf] }
 0x1e4   : > { %4921 = vst.msk [vmem:[#allocation4 + $0x88] sm:$0xf] %vm19215_vm12, %v4791_v47  ;;  %v3036_v53 = vrot.slane %v3034_v22, 4  ;;  %vm19216_vm8 = vmmov %vm19214_vm6  ;;  %v4796_v0 = vrot.slane %v4702_v14, 7  ;;  %v15815_v33 = vld [vmem:[#allocation2 + $0x44] sm:$0xf]  ;;  %v2454_v16 = vsel %vm19213_vm13, %v13105_v19, %v2417_v21 }
 0x1e5   : > { %4922 = vst.msk [vmem:[#allocation4 + $0x9c] sm:$0xf] %vm19216_vm8, %v4794_v51  ;;  %v3039_v23 = vrot.slane %v3037_v6, 4  ;;  %3139 = vst [vmem:[#allocation4 + $0x180] sm:$0xf] %v3035_v36  ;;  %v3040_v61 = vrot.slane %v11532_v20, 5  ;;  %v11464_v55 = vcombine.low %v2454_v16, %v2454_v16  ;;  %v11465_v31 = vcombine.high %v2454_v16, %v2454_v16  ;;  %3477 = vrot.lane.b32.xlu1 %v3440_v5, %s13243_s12 }
 0x1e6   : > { %v12728_v15 = vld [vmem:[#allocation4 + $0xa0] ss:$20 sps:$4 sm:$0xff]   ;;  %v4799_v27 = vrot.slane %v15795_v18, 7  ;;  %v3038_v46 = vsel %vm15486_vm9, %v3036_v53, %v3037_v6  ;;  %v4797_v60 = vsel %vm15732_vm4, %v4795_v10, %v4796_v0  ;;  %4371 = vrot.lane.b32.xlu0 %v15688_v38, %s13243_s12  ;;  %v3043_v29 = vrot.slane %v11533_v45, 5  ;;  %v2419_v43 = vpop.permute.xlu0 %2418  ;;  %vm19217_vm12 = vmmov %vm19213_vm13  ;;  %v13107_v12 = vld [vmem:[#allocation2 + $0x60] sm:$0xff]   ;;  %v2811_v53 = vpop.permute.xlu1 %2810 }
 0x1e7   : > { %3140 = vst [vmem:[#allocation4 + $0x194] sm:$0xf] %v3038_v46  ;;  %v3041_v2 = vsel %vm15486_vm9, %v3039_v23, %v3040_v61  ;;  %v3042_v40 = vrot.slane %v3040_v61, 4  ;;  %5923 = vmatmul.mubr.bf16.gmra.mxu1 %v12728_v15  ;;  %v4798_v26 = vrot.slane %v4796_v0, 4  ;;  %4923 = vst.msk [vmem:[#allocation4 + $0xb0] sm:$0xf] %vm19214_vm6, %v4797_v60  ;;  %v4338_v10 = vor.u32 %v4336_v3, %v15676_v37 }
 0x1e8   : > { %2615 = vst [vmem:[#allocation4 + $0xf0] sm:$0xf] %v11464_v55  ;;  %2616 = vst [vmem:[#allocation4 + $0x104] sm:$0xf] %v11465_v31  ;;  %v4801_v57 = vrot.slane %v4799_v27, 4  ;;  %v4802_v14 = vrot.slane %v15805_v56, 7 }
 0x1e9   : > { %3141 = vst [vmem:[#allocation4 + $0x1a8] sm:$0xf] %v3041_v2  ;;  %v4805_v38 = vrot.slane %v15813_v62, 7  ;;  %v4808_v13 = vrot.slane %v15815_v33, 7  ;;  %v13106_v24 = vld [vmem:[#allocation2 + $0x38] sm:$0xff]   ;;  %v3044_v47 = vsel %vm15486_vm9, %v3042_v40, %v3043_v29  ;;  %vm19218_vm8 = vmmov %vm19217_vm12  ;;  %v4800_v22 = vsel %vm15732_vm4, %v4798_v26, %v4799_v27  ;;  %v12787_v0 = vld [vmem:[%s18512_s3 + $0x100] sm:$0xff]  }
 0x1ea   : > { %v2456_v11 = vsel %vm19217_vm12, %v13106_v24, %v2419_v43  ;;  %v2860_v18 = vsel %vm19218_vm8, %v13107_v12, %v2809_v48  ;;  %v12729_v54 = vld [vmem:[#allocation4 + $0xcc] ss:$20 sps:$4 sm:$0xff]   ;;  %3142 = vst [vmem:[#allocation4 + $0x1bc] sm:$0xf] %v3044_v47  ;;  %vm19219_vm13 = vmmov %vm19214_vm6  ;;  %v4707_v45 = vld [vmem:[#allocation2 + $0x48] sm:$0xf]  ;;  %4373 = vrot.lane.b32.xlu0 %v15709_v9, %s13243_s12  ;;  %v4803_v21 = vsel %vm15732_vm4, %v4801_v57, %v4802_v14 }
 0x1eb   : > { %v11466_v6 = vcombine.low %v2456_v11, %v2456_v11  ;;  %v11467_v32 = vcombine.high %v2456_v11, %v2456_v11  ;;  %v11534_v44 = vcombine.low %v2860_v18, %v2860_v18  ;;  %v11535_v20 = vcombine.high %v2860_v18, %v2860_v18  ;;  %4924 = vst.msk [vmem:[#allocation4 + $0xc4] sm:$0xf] %vm19219_vm13, %v4800_v22  ;;  %v4708_v51 = vld [vmem:[#allocation2 + $0x4c] sm:$0xf]  ;;  %vm19220_vm12 = vmmov %vm19218_vm8  ;;  %v12734_v3 = vld [vmem:[#allocation4 + $0xc8] ss:$20 sps:$4 sm:$0xff]  }
 0x1ec   : > { %v3045_v56 = vrot.slane %v3043_v29, 4  ;;  %5930 = vmatprep.mubr.bf16.mxu1 %v12729_v54  ;;  %v4804_v62 = vrot.slane %v4802_v14, 4  ;;  %4925 = vst.msk [vmem:[#allocation4 + $0xd8] sm:$0xf] %vm19214_vm6, %v4803_v21  ;;  %v4807_v9 = vrot.slane %v4805_v38, 4  ;;  %v2863_v37 = vsel %vm19220_vm12, %v13108_v28, %v2811_v53  ;;  %12414 = vmatprep.subr.bf16.mxu1 %v12787_v0  ;;  %v13109_v26 = vld [vmem:[#allocation2 + $0x40] sm:$0xff]   ;;  %vm19221_vm13 = vmmov %vm19214_vm6 }
 0x1ed   : > { %2617 = vst [vmem:[#allocation4 + $0x118] sm:$0xf] %v11466_v6  ;;  %2618 = vst [vmem:[#allocation4 + $0x12c] sm:$0xf] %v11467_v32  ;;  %v3046_v5 = vrot.slane %v11534_v44, 5  ;;  %v3049_v36 = vrot.slane %v11535_v20, 5  ;;  %v11536_v27 = vcombine.low %v2863_v37, %v2863_v37  ;;  %v2421_v31 = vpop.permute.xlu0 %2420  ;;  %v11537_v46 = vcombine.high %v2863_v37, %v2863_v37  ;;  %12415 = vmatpush3.bf16.msra.mxu1 %v12787_v0 }
 0x1ee   : > { %v4810_v33 = vrot.slane %v4808_v13, 4  ;;  %v4811_v19 = vrot.slane %v4707_v45, 7  ;;  %v4814_v16 = vrot.slane %v4708_v51, 7  ;;  %v4709_v55 = vld [vmem:[#allocation2 + $0x50] sm:$0xf]  ;;  %4375 = vrot.lane.b32.xlu0 %v4338_v10, %s13243_s12  ;;  %v4806_v2 = vsel %vm15732_vm4, %v4804_v62, %v4805_v38  ;;  %vm19222_vm12 = vmmov %vm19214_vm6  ;;  %10902 = vmatprep.subr.bf16.mxu1 %v18949_v42  ;;  %v13110_v28 = vld [vmem:[#allocation2 + $0x48] sm:$0xff]  }
 0x1ef   : > { %v3047_v23 = vsel %vm15486_vm9, %v3045_v56, %v3046_v5  ;;  %v3048_v61 = vrot.slane %v3046_v5, 4  ;;  %v3051_v15 = vrot.slane %v3049_v36, 4  ;;  %5931 = vmatmul.mubr.bf16.gmra.mxu1 %v12734_v3  ;;  %v12735_v60 = vld [vmem:[#allocation4 + $0xf4] ss:$20 sps:$4 sm:$0xff]   ;;  %v4809_v40 = vsel %vm15732_vm4, %v4807_v9, %v4808_v13  ;;  %4926 = vst.msk [vmem:[#allocation4 + $0xec] sm:$0xf] %vm19221_vm13, %v4806_v2  ;;  %vm19224_vm13 = vmmov %vm19214_vm6 }
 0x1f0   : > { %3143 = vst [vmem:[#allocation4 + $0x1d0] sm:$0xf] %v3047_v23  ;;  %v4813_v29 = vrot.slane %v4811_v19, 4  ;;  %v2458_v43 = vsel %vm19218_vm8, %v13109_v26, %v2421_v31  ;;  %v3052_v57 = vrot.slane %v11536_v27, 5  ;;  %v4812_v14 = vsel %vm15732_vm4, %v4810_v33, %v4811_v19  ;;  %4927 = vst.msk [vmem:[#allocation4 + $0x100] sm:$0xf] %vm19214_vm6, %v4809_v40  ;;  %5938 = vmatprep.mubr.bf16.mxu1 %v12735_v60 }
 0x1f1   : > { %v3050_v48 = vsel %vm15486_vm9, %v3048_v61, %v3049_v36  ;;  %v4710_v38 = vld [vmem:[#allocation2 + $0x54] sm:$0xf]  ;;  %v4711_v24 = vld [vmem:[#allocation2 + $0x58] sm:$0xf]  ;;  %v11468_v11 = vcombine.low %v2458_v43, %v2458_v43  ;;  %v11469_v13 = vcombine.high %v2458_v43, %v2458_v43  ;;  %v15865_v47 = vrot.slane %v11537_v46, 5  ;;  %vm19223_vm8 = vmmov %vm19214_vm6 }
 0x1f2   : > { %3144 = vst [vmem:[#allocation4 + $0x1e4] sm:$0xf] %v3050_v48  ;;  %4928 = vst.msk [vmem:[#allocation4 + $0x114] sm:$0xf] %vm19222_vm12, %v4812_v14  ;;  %v4815_v12 = vsel %vm15732_vm4, %v4813_v29, %v4814_v16  ;;  %v4712_v18 = vld [vmem:[#allocation2 + $0x5c] sm:$0xf]  ;;  %v3053_v54 = vsel %vm15486_vm9, %v3051_v15, %v3052_v57 }
 0x1f3   : > { %v3054_v22 = vrot.slane %v3052_v57, 4  ;;  %v4816_v6 = vrot.slane %v4814_v16, 4  ;;  %v4817_v32 = vrot.slane %v4709_v55, 7  ;;  %4929 = vst.msk [vmem:[#allocation4 + $0x128] sm:$0xf] %vm19223_vm8, %v4815_v12  ;;  %v4820_v20 = vrot.slane %v4710_v38, 7  ;;  %v2423_v36 = vpop.permute.xlu0 %2422  ;;  %vm19226_vm12 = vmmov %vm19223_vm8 }
 0x1f4   : > { %v4714_v44 = vld [vmem:[#allocation2 + $0x64] sm:$0xf]  ;;  %2619 = vst [vmem:[#allocation4 + $0x140] sm:$0xf] %v11468_v11  ;;  %2620 = vst [vmem:[#allocation4 + $0x154] sm:$0xf] %v11469_v13  ;;  %v2813_v31 = vpop.permute.xlu1 %2812 }
 0x1f5   : > { %3145 = vst [vmem:[#allocation4 + $0x1f8] sm:$0xf] %v3053_v54  ;;  %v4713_v45 = vld [vmem:[#allocation2 + $0x60] sm:$0xf]  ;;  %v3056_v51 = vsel %vm15486_vm9, %v3054_v22, %v15865_v47  ;;  %v4818_v10 = vsel %vm15732_vm4, %v4816_v6, %v4817_v32  ;;  %v4819_v56 = vrot.slane %v4817_v32, 4  ;;  %v4823_v21 = vrot.slane %v4711_v24, 7 }
 0x1f6   : > { %v4715_v5 = vld [vmem:[#allocation2 + $0x68] sm:$0xf]  ;;  %3146 = vst [vmem:[#allocation4 + $0x20c] sm:$0xf] %v3056_v51  ;;  %4930 = vst.msk [vmem:[#allocation4 + $0x13c] sm:$0xf] %vm19224_vm13, %v4818_v10 }
 0x1f7   : > { %v12739_v53 = vld [vmem:[#allocation4 + $0xf0] ss:$20 sps:$4 sm:$0xff]   ;;  %v4822_v0 = vrot.slane %v4820_v20, 4  ;;  %v4826_v62 = vrot.slane %v4712_v18, 7  ;;  %v4832_v9 = vrot.slane %v4714_v44, 7  ;;  %vm19225_vm6 = vcmask 523264   ;;  %v2425_v29 = vpop.permute.xlu0 %2424 }
 0x1f8   : > { %v2460_v37 = vsel %vm19225_vm6, %v13110_v28, %v2423_v36  ;;  %v12740_v3 = vld [vmem:[#allocation4 + $0x11c] ss:$20 sps:$4 sm:$0xff]   ;;  %v4821_v33 = vsel %vm15732_vm4, %v4819_v56, %v4820_v20  ;;  %v4825_v19 = vrot.slane %v4823_v21, 4  ;;  %v4829_v16 = vrot.slane %v4713_v45, 7  ;;  %v4716_v23 = vld [vmem:[#allocation2 + $0x6c] sm:$0xf]  ;;  %5939 = vmatmul.mubr.bf16.gmra.mxu1 %v12739_v53  ;;  %vm19227_vm13 = vmmov %vm19225_vm6  ;;  %v2815_v51 = vpop.permute.xlu1 %2814 }
 0x1f9   : > { %v11470_v61 = vcombine.low %v2460_v37, %v2460_v37  ;;  %v11471_v15 = vcombine.high %v2460_v37, %v2460_v37  ;;  %v4824_v27 = vsel %vm15732_vm4, %v4822_v0, %v4823_v21  ;;  %4931 = vst.msk [vmem:[#allocation4 + $0x150] sm:$0xf] %vm19226_vm12, %v4821_v33  ;;  %v4835_v55 = vrot.slane %v4715_v5, 7  ;;  %5946 = vmatprep.mubr.bf16.mxu1 %v12740_v3  ;;  %v4717_v40 = vld [vmem:[#allocation2 + $0x70] sm:$0xf]  ;;  %vm19228_vm6 = vmmov %vm19223_vm8  ;;  %v13113_v21 = vld [vmem:[#allocation2 + $0x78] sm:$0xff]  }
 0x1fa   : > { %4932 = vst.msk [vmem:[#allocation4 + $0x164] sm:$0xf] %vm19223_vm8, %v4824_v27  ;;  %v4827_v46 = vsel %vm15732_vm4, %v4825_v19, %v4826_v62  ;;  %v4828_v60 = vrot.slane %v4826_v62, 4  ;;  %v4831_v2 = vrot.slane %v4829_v16, 4  ;;  %v13111_v26 = vld [vmem:[#allocation2 + $0x70] sm:$0xff]   ;;  %v4834_v48 = vrot.slane %v4832_v9, 4  ;;  %vm19229_vm12 = vmmov %vm19227_vm13 }
 0x1fb   : > { %2621 = vst [vmem:[#allocation4 + $0x168] sm:$0xf] %v11470_v61  ;;  %2622 = vst [vmem:[#allocation4 + $0x17c] sm:$0xf] %v11471_v15  ;;  %v2866_v43 = vsel %vm19227_vm13, %v13111_v26, %v2813_v31  ;;  %v4837_v57 = vrot.slane %v4835_v55, 4  ;;  %v4838_v14 = vrot.slane %v4716_v23, 7  ;;  %v2427_v56 = vpop.permute.xlu0 %2426  ;;  %v2869_v5 = vsel %vm19229_vm12, %v13113_v21, %v2815_v51 }
 0x1fc   : > { %4933 = vst.msk [vmem:[#allocation4 + $0x178] sm:$0xf] %vm19228_vm6, %v4827_v46  ;;  %v13112_v38 = vld [vmem:[#allocation2 + $0x50] sm:$0xff]   ;;  %v11538_v11 = vcombine.low %v2866_v43, %v2866_v43  ;;  %v11539_v13 = vcombine.high %v2866_v43, %v2866_v43  ;;  %v4830_v12 = vsel %vm15732_vm4, %v4828_v60, %v4829_v16  ;;  %vm19230_vm8 = vmmov %vm19228_vm6  ;;  %v4833_v6 = vsel %vm15732_vm4, %v4831_v2, %v4832_v9  ;;  %v13114_v62 = vld [vmem:[#allocation2 + $0x58] sm:$0xff]  }
 0x1fd   : > { %v2462_v24 = vsel %vm19229_vm12, %v13112_v38, %v2425_v29  ;;  %v4718_v18 = vld [vmem:[#allocation2 + $0x74] sm:$0xf]  ;;  %4934 = vst.msk [vmem:[#allocation4 + $0x18c] sm:$0xf] %vm19230_vm8, %v4830_v12  ;;  %v4836_v32 = vsel %vm15732_vm4, %v4834_v48, %v4835_v55  ;;  %v3057_v44 = vrot.slane %v15865_v47, 4  ;;  %vm19231_vm13 = vmmov %vm19228_vm6  ;;  %v4839_v10 = vsel %vm15732_vm4, %v4837_v57, %v4838_v14  ;;  %v13115_v26 = vld [vmem:[#allocation2 + $0x60] sm:$0xff]  }
 0x1fe   : > { %v11472_v54 = vcombine.low %v2462_v24, %v2462_v24  ;;  %v11473_v22 = vcombine.high %v2462_v24, %v2462_v24  ;;  %v3058_v20 = vrot.slane %v11538_v11, 5  ;;  %v3061_v45 = vrot.slane %v11539_v13, 5  ;;  %4935 = vst.msk [vmem:[#allocation4 + $0x1a0] sm:$0xf] %vm19231_vm13, %v4833_v6  ;;  %v12746_v36 = vld [vmem:[#allocation4 + $0x118] ss:$20 sps:$4 sm:$0xff]   ;;  %vm19232_vm8 = vmmov %vm19228_vm6 }
 0x1ff   : > { %4936 = vst.msk [vmem:[#allocation4 + $0x1b4] sm:$0xf] %vm19228_vm6, %v4836_v32  ;;  %v4840_v53 = vrot.slane %v4838_v14, 4  ;;  %v4841_v0 = vrot.slane %v4717_v40, 7  ;;  %v4844_v47 = vrot.slane %v4718_v18, 7  ;;  %vm19233_vm0 = vmmov %vm19229_vm12  ;;  %v11540_v16 = vcombine.low %v2869_v5, %v2869_v5  ;;  %v2429_v60 = vpop.permute.xlu0 %2428  ;;  %v13117_v51 = vld [vmem:[#allocation2 + $0x68] sm:$0xff]  }
 0x200   : > { %2623 = vst [vmem:[#allocation4 + $0x190] sm:$0xf] %v11472_v54  ;;  %2624 = vst [vmem:[#allocation4 + $0x1a4] sm:$0xf] %v11473_v22  ;;  %v2464_v9 = vsel %vm19233_vm0, %v13114_v62, %v2427_v56  ;;  %v3059_v28 = vsel %vm15486_vm9, %v3057_v44, %v3058_v20  ;;  %v3060_v37 = vrot.slane %v3058_v20, 4  ;;  %v11541_v23 = vcombine.high %v2869_v5, %v2869_v5  ;;  %v13116_v44 = vld [vmem:[#allocation2 + $0x80] sm:$0xff]  }
 0x201   : > { %4937 = vst.msk [vmem:[#allocation4 + $0x1c8] sm:$0xf] %vm19232_vm8, %v4839_v10  ;;  %v12747_v3 = vld [vmem:[#allocation4 + $0x144] ss:$20 sps:$4 sm:$0xff]   ;;  %v11474_v33 = vcombine.low %v2464_v9, %v2464_v9  ;;  %v11475_v19 = vcombine.high %v2464_v9, %v2464_v9  ;;  %3147 = vst [vmem:[#allocation4 + $0x220] sm:$0xf] %v3059_v28  ;;  %5947 = vmatmul.mubr.bf16.gmra.mxu1 %v12746_v36  ;;  %v4842_v55 = vsel %vm15732_vm4, %v4840_v53, %v4841_v0 }
 0x202   : > { %v4719_v61 = vld [vmem:[#allocation2 + $0x78] sm:$0xf]  ;;  %v4720_v15 = vld [vmem:[#allocation2 + $0x7c] sm:$0xf]  ;;  %v3062_v27 = vsel %vm15486_vm9, %v3060_v37, %v3061_v45  ;;  %5954 = vmatprep.mubr.bf16.mxu1 %v12747_v3  ;;  %v4843_v31 = vrot.slane %v4841_v0, 4  ;;  %v4846_v46 = vrot.slane %v4844_v47, 4  ;;  %vm19234_vm0 = vmmov %vm19228_vm6  ;;  %v2817_v12 = vpop.permute.xlu1 %2816 }
 0x203   : > { %2625 = vst [vmem:[#allocation4 + $0x1b8] sm:$0xf] %v11474_v33  ;;  %2626 = vst [vmem:[#allocation4 + $0x1cc] sm:$0xf] %v11475_v19  ;;  %v3063_v2 = vrot.slane %v3061_v45, 4  ;;  %v3064_v40 = vrot.slane %v11540_v16, 5  ;;  %v2431_v6 = vpop.permute.xlu0 %2430  ;;  %v2872_v20 = vsel %vm19229_vm12, %v13116_v44, %v2817_v12 }
 0x204   : > { %3148 = vst [vmem:[#allocation4 + $0x234] sm:$0xf] %v3062_v27  ;;  %v3067_v29 = vrot.slane %v11541_v23, 5  ;;  %4938 = vst.msk [vmem:[#allocation4 + $0x1dc] sm:$0xf] %vm19234_vm0, %v4842_v55  ;;  %v4845_v48 = vsel %vm15732_vm4, %v4843_v31, %v4844_v47  ;;  %v4847_v57 = vrot.slane %v4719_v61, 7  ;;  %v11542_v56 = vcombine.low %v2872_v20, %v2872_v20 }
 0x205   : > { %vm19235_vm13 = vmmov %vm19229_vm12  ;;  %v4850_v14 = vrot.slane %v4720_v15, 7  ;;  %v3065_v11 = vsel %vm15486_vm9, %v3063_v2, %v3064_v40  ;;  %v3066_v13 = vrot.slane %v3064_v40, 4  ;;  %v4721_v54 = vld [vmem:[#allocation2 + $0x80] sm:$0xf]  ;;  %v12751_v45 = vld [vmem:[#allocation4 + $0x140] ss:$20 sps:$4 sm:$0xff]   ;;  %v11543_v21 = vcombine.high %v2872_v20, %v2872_v20 }
 0x206   : > { %v2466_v43 = vsel %vm19235_vm13, %v13115_v26, %v2429_v60  ;;  %vm19236_vm6 = vmmov %vm19234_vm0  ;;  %3149 = vst [vmem:[#allocation4 + $0x248] sm:$0xf] %v3065_v11  ;;  %v4848_v18 = vsel %vm15732_vm4, %v4846_v46, %v4847_v57  ;;  %v4849_v22 = vrot.slane %v4847_v57, 4  ;;  %v12752_v5 = vld [vmem:[#allocation4 + $0x16c] ss:$20 sps:$4 sm:$0xff]   ;;  %v4853_v62 = vrot.slane %v4721_v54, 7  ;;  %v2819_v37 = vpop.permute.xlu1 %2818 }
 0x207   : > { %v11476_v38 = vcombine.low %v2466_v43, %v2466_v43  ;;  %v11477_v24 = vcombine.high %v2466_v43, %v2466_v43  ;;  %4939 = vst.msk [vmem:[#allocation4 + $0x1f0] sm:$0xf] %vm19236_vm6, %v4845_v48  ;;  %v3068_v32 = vsel %vm15486_vm9, %v3066_v13, %v3067_v29  ;;  %vm19237_vm8 = vmmov %vm19234_vm0  ;;  %v4852_v47 = vrot.slane %v4850_v14, 4  ;;  %v3156_v3 = vld [vmem:[#allocation2 + $0x8] sm:$0xe]  ;;  %v2433_v33 = vpop.permute.xlu0 %2432  ;;  %v13119_v27 = vld [vmem:[#allocation2 + $0x70] sm:$0xff]  }
 0x208   : > { %4940 = vst.msk [vmem:[#allocation4 + $0x204] sm:$0xf] %vm19237_vm8, %v4848_v18  ;;  %vm19238_vm0 = vmmov %vm19229_vm12  ;;  %v4851_v36 = vsel %vm15732_vm4, %v4849_v22, %v4850_v14  ;;  %v3069_v9 = vrot.slane %v3067_v29, 4  ;;  %v3070_v28 = vrot.slane %v11542_v56, 5  ;;  %v3073_v19 = vrot.slane %v11543_v21, 5  ;;  %v13118_v16 = vld [vmem:[#allocation2 + $0x88] sm:$0xff]  }
 0x209   : > { %2627 = vst [vmem:[#allocation4 + $0x1e0] sm:$0xf] %v11476_v38  ;;  %2628 = vst [vmem:[#allocation4 + $0x1f4] sm:$0xf] %v11477_v24  ;;  %v2468_v10 = vsel %vm19238_vm0, %v13117_v51, %v2431_v6  ;;  %5955 = vmatmul.mubr.bf16.gmra.mxu1 %v12751_v45  ;;  %v4854_v61 = vsel %vm15732_vm4, %v4852_v47, %v4853_v62  ;;  %v15933_v15 = vld [vmem:[#allocation2 + $0x84] sm:$0xf] }
 0x20a   : > { %3150 = vst [vmem:[#allocation4 + $0x25c] sm:$0xf] %v3068_v32  ;;  %v11478_v53 = vcombine.low %v2468_v10, %v2468_v10  ;;  %v11479_v0 = vcombine.high %v2468_v10, %v2468_v10  ;;  %vm19239_vm13 = vmmov %vm19236_vm6  ;;  %5962 = vmatprep.mubr.bf16.mxu1 %v12752_v5  ;;  %v3071_v31 = vsel %vm15486_vm9, %v3069_v9, %v3070_v28  ;;  %v3072_v46 = vrot.slane %v3070_v28, 4  ;;  %v13120_v60 = vld [vmem:[#allocation2 + $0xc] sm:$0xf]  ;;  %v3442_v57 = vpop.permute.xlu1 %3441  ;;  %v13121_v22 = vld [vmem:[#allocation2 + $0x78] sm:$0xff]  }
 0x20b   : > { %4941 = vst.msk [vmem:[#allocation4 + $0x218] sm:$0xf] %vm19239_vm13, %v4851_v36  ;;  %vm19240_vm6 = vmmov %vm19238_vm0  ;;  %v11548_v2 = vcombine.low %v3156_v3, %v13120_v60  ;;  %v12757_v14 = vld [vmem:[#allocation4 + $0x168] ss:$20 sps:$4 sm:$0xff]   ;;  %v4855_v38 = vrot.slane %v4853_v62, 4  ;;  %v4856_v24 = vrot.slane %v15933_v15, 7  ;;  %v2435_v11 = vpop.permute.xlu0 %2434 }
 0x20c   : > { %2629 = vst [vmem:[#allocation4 + $0x208] sm:$0xf] %v11478_v53  ;;  %2630 = vst [vmem:[#allocation4 + $0x21c] sm:$0xf] %v11479_v0  ;;  %v2875_v23 = vsel %vm19240_vm6, %v13118_v16, %v2819_v37  ;;  %v3074_v48 = vsel %vm15486_vm9, %v3072_v46, %v3073_v19  ;;  %v3075_v13 = vrot.slane %v3073_v19, 4  ;;  %v13122_v3 = vld [vmem:[#allocation2 + $0x10] sm:$0xff]  }
 0x20d   : > { %vm19241_vm12 = vmmov %vm19238_vm0  ;;  %4942 = vst.msk [vmem:[#allocation4 + $0x22c] sm:$0xf] %vm19237_vm8, %v4854_v61  ;;  %v11544_v26 = vcombine.low %v2875_v23, %v2875_v23  ;;  %v11545_v43 = vcombine.high %v2875_v23, %v2875_v23  ;;  %v12758_v20 = vld [vmem:[#allocation4 + $0x194] ss:$20 sps:$4 sm:$0xff]   ;;  %v4857_v45 = vsel %vm15732_vm4, %v4855_v38, %v4856_v24 }
 0x20e   : > { %v2470_v55 = vsel %vm19241_vm12, %v13119_v27, %v2433_v33  ;;  %3151 = vst [vmem:[#allocation4 + $0x270] sm:$0xf] %v3071_v31  ;;  %3152 = vst [vmem:[#allocation4 + $0x284] sm:$0xf] %v3074_v48  ;;  %v2821_v47 = vpop.permute.xlu1 %2820 }
 0x20f   : > { %v11480_v40 = vcombine.low %v2470_v55, %v2470_v55  ;;  %v11481_v29 = vcombine.high %v2470_v55, %v2470_v55  ;;  %v3076_v12 = vrot.slane %v11544_v26, 5  ;;  %v15942_v18 = vrot.slane %v11545_v43, 5  ;;  %vm19242_vm13 = vmmov %vm19238_vm0  ;;  %v12745_v5 = vld [vmem:[#allocation2 + $0x90] ss:$0 sps:$4 sm:$0x11]   ;;  %v3444_v62 = vpop.permute.xlu0 %3443 }
 0x210   : > { %v3481_v54 = vsel %vm19242_vm13, %v11548_v2, %v3442_v57  ;;  %vm19243_vm6 = vmmov %vm19238_vm0  ;;  %v15957_v2 = vrot.slane %v4856_v24, 4  ;;  %v12764_v57 = vld [vmem:[#allocation4 + $0x190] ss:$20 sps:$4 sm:$0xff]  }
 0x211   : > { %2631 = vst [vmem:[#allocation4 + $0x230] sm:$0xf] %v11480_v40  ;;  %2632 = vst [vmem:[#allocation4 + $0x244] sm:$0xf] %v11481_v29  ;;  %v2472_v6 = vsel %vm19243_vm6, %v13121_v22, %v2435_v11  ;;  %v11568_v32 = vcombine.low %v3481_v54, %v3481_v54  ;;  %v11569_v44 = vcombine.high %v3481_v54, %v3481_v54  ;;  %v3078_v21 = vrot.slane %v3076_v12, 4 }
 0x212   : > { %v11482_v51 = vcombine.low %v2472_v6, %v2472_v6  ;;  %v11483_v10 = vcombine.high %v2472_v6, %v2472_v6  ;;  %v3077_v56 = vsel %vm15486_vm9, %v3075_v13, %v3076_v12  ;;  %5963 = vmatmul.mubr.bf16.gmra.mxu1 %v12757_v14  ;;  %vm19244_vm12 = vmmov %vm19237_vm8  ;;  %vm3612_vm8 = vsmask.f32 6416  ;;  %v4342_v60 = vpop.permute.xlu1 %4341  ;;  %v13123_v14 = vld [vmem:[#allocation2 + $0x80] sm:$0xff]   ;;  %v12765_v54 = vld [vmem:[#allocation4 + $0x1bc] ss:$20 sps:$4 sm:$0xff]  }
 0x213   : > { %4943 = vst.msk [vmem:[#allocation4 + $0x240] sm:$0xf] %vm19244_vm12, %v4857_v45  ;;  %3153 = vst [vmem:[#allocation4 + $0x298] sm:$0xf] %v3077_v56  ;;  %v3615_v36 = vshrl.u32 %v11568_v32, 16  ;;  %v3618_v53 = vshll.u32 %v11568_v32, 16  ;;  %5970 = vmatprep.mubr.bf16.mxu1 %v12758_v20  ;;  %v3080_v9 = vsel %vm15486_vm9, %v3078_v21, %v15942_v18  ;;  %v2437_v48 = vpop.permute.xlu0 %2436 }
 0x214   : > { %v3624_v0 = vshrl.u32 %v11569_v44, 16  ;;  %2633 = vst [vmem:[#allocation4 + $0x258] sm:$0xf] %v11482_v51  ;;  %2634 = vst [vmem:[#allocation4 + $0x26c] sm:$0xf] %v11483_v10  ;;  %v3627_v28 = vshll.u32 %v11569_v44, 16 }
 0x215   : > { %vm19245_vm13 = vmmov %vm19238_vm0  ;;  %3154 = vst [vmem:[#allocation4 + $0x2ac] sm:$0xf] %v3080_v9  ;;  %v3617_v19 = vrot.slane %v3615_v36, 5  ;;  %v3620_v16 = vrot.slane %v3618_v53, 6  ;;  %v3081_v31 = vrot.slane %v15942_v18, 4  ;;  %v19249_v18 = vmov 0 }
 0x216   : > { %v2878_v37 = vsel %vm19245_vm13, %v12745_v5, %v2821_v47  ;;  %vm19246_vm6 = vmmov %vm19238_vm0  ;;  %v3626_v23 = vrot.slane %v3624_v0, 5  ;;  %v3629_v27 = vrot.slane %v3627_v28, 6  ;;  %vm4510_vm0 = vcmask 1045508   ;;  %v3446_v10 = vpop.permute.xlu1 %3445  ;;  %v13124_v53 = vld [vmem:[#allocation2 + $0x18] sm:$0xff]   ;;  %v13125_v47 = vld [vmem:[#allocation2 + $0x10] sm:$0xfc]  }
 0x217   : > { %v3483_v33 = vsel %vm19246_vm6, %v13122_v3, %v3444_v62  ;;  %v11546_v55 = vcombine.low %v2878_v37, %v2878_v37  ;;  %v3621_v46 = vor.u32 %v3620_v16, %v3617_v19  ;;  %vm19247_vm13 = vmmov %vm19246_vm6  ;;  %vm19248_vm6 = vsmask.f32 2304  ;;  %v4340_v5 = vpop.permute.xlu0 %4339  ;;  %v13126_v37 = vld [vmem:[#allocation2 + $0x18] sm:$0xff]  }
 0x218   : > { %v11570_v61 = vcombine.low %v3483_v33, %v3483_v33  ;;  %v11571_v15 = vcombine.high %v3483_v33, %v3483_v33  ;;  %v2474_v38 = vsel %vm19247_vm13, %v13123_v14, %v2437_v48  ;;  %v3630_v13 = vor.u32 %v3629_v27, %v3626_v23  ;;  %vm15962_vm12 = vmor %vm19248_vm6, %vm3612_vm8 }
 0x219   : > { %v3622_v11 = vrot.slane %v3621_v46, 4  ;;  %v3082_v12 = vrot.slane %v11546_v55, 5  ;;  %v19250_v18 = vsel %vm15962_vm12, 4294967295, %v19249_v18  ;;  %v11484_v44 = vcombine.low %v2474_v38, %v2474_v38  ;;  %vm19252_vm8 = vmmov %vm19247_vm13 }
 0x21a   : > { %v3634_v40 = vshrl.u32 %v11570_v61, 16  ;;  %v3637_v29 = vshll.u32 %v11570_v61, 16  ;;  %v3644_v26 = vshrl.u32 %v11571_v15, 16  ;;  %v3647_v43 = vshll.u32 %v11571_v15, 16  ;;  %19251 = vst [vmem:[#allocation33_spill] sm:$0xff] %v19250_v18  ;;  %5971 = vmatmul.mubr.bf16.gmra.mxu1 %v12764_v57  ;;  %vm19253_vm13 = vmmov %vm19252_vm8 }
 0x21b   : > { %v11485_v20 = vcombine.high %v2474_v38, %v2474_v38  ;;  %v3631_v45 = vsel %vm15962_vm12, %v3622_v11, %v3630_v13  ;;  %v3632_v51 = vrot.slane %v3630_v13, 4  ;;  %5978 = vmatprep.mubr.bf16.mxu1 %v12765_v54  ;;  %v3083_v36 = vsel %vm15486_vm9, %v3081_v31, %v3082_v12  ;;  %2635 = vst [vmem:[#allocation4 + $0x280] sm:$0xf] %v11484_v44  ;;  %vm19254_vm6 = vmmov %vm19252_vm8  ;;  %v3448_v31 = vpop.permute.xlu1 %3447  ;;  %v12770_v57 = vld [vmem:[#allocation4 + $0x1b8] ss:$20 sps:$4 sm:$0xff]   ;;  %v13128_v38 = vld [vmem:[#allocation2 + $0x88] sm:$0xff]  }
 0x21c   : > { %v3636_v24 = vrot.slane %v3634_v40, 5  ;;  %v3639_v22 = vrot.slane %v3637_v29, 6  ;;  %v3646_v6 = vrot.slane %v3644_v26, 5  ;;  %v3649_v32 = vrot.slane %v3647_v43, 6  ;;  %4018 = vst [vmem:[#allocation4 + $0x8] sm:$0xf] %v3631_v45  ;;  %v2439_v29 = vpop.permute.xlu0 %2438  ;;  %vm19259_vm9 = vmmov %vm19254_vm6 }
 0x21d   : > { %v4380_v0 = vsel %vm19252_vm8, %v13124_v53, %v4342_v60  ;;  %2636 = vst [vmem:[#allocation4 + $0x294] sm:$0xf] %v11485_v20  ;;  %v4378_v62 = vsel %vm19253_vm13, %v13125_v47, %v4340_v5  ;;  %3155 = vst [vmem:[#allocation4 + $0x2c0] sm:$0xf] %v3083_v36  ;;  %v3485_v3 = vsel %vm19254_vm6, %v13126_v37, %v3446_v10  ;;  %vm19255_vm8 = vcmask 1041408   ;;  %v13127_v43 = vld [vmem:[#allocation2 + $0x20] sm:$0xff]  }
 0x21e   : > { %v3640_v56 = vor.u32 %v3639_v22, %v3636_v24  ;;  %v15968_v21 = vor.u32 %v3649_v32, %v3646_v6  ;;  %v11627_v9 = vcombine.low %v4380_v0, %v4380_v0  ;;  %v11628_v28 = vcombine.high %v4380_v0, %v4380_v0  ;;  %vm15985_vm13 = vmor %vm19255_vm8, %vm4510_vm0  ;;  %v12773_v54 = vld [vmem:[#allocation4 + $0x1e4] ss:$20 sps:$4 sm:$0xff]   ;;  %v13129_v0 = vld [vmem:[#allocation2 + $0x20] sm:$0xff]  }
 0x21f   : > { %v11625_v23 = vcombine.low %v4378_v62, %v4378_v62  ;;  %v11626_v61 = vcombine.high %v4378_v62, %v4378_v62  ;;  %v11572_v55 = vcombine.low %v3485_v3, %v3485_v3  ;;  %v19256_v60 = vmov 0  ;;  %vm19261_vm0 = vmmov %vm19254_vm6 }
 0x220   : > { %v3642_v33 = vrot.slane %v3640_v56, 4  ;;  %v3652_v19 = vrot.slane %v15968_v21, 4  ;;  %v3641_v16 = vsel %vm15962_vm12, %v3632_v51, %v3640_v56  ;;  %v4517_v15 = vrot.slane %v11627_v9, 6  ;;  %v4344_v10 = vpop.permute.xlu0 %4343  ;;  %vm19262_vm8 = vmmov %vm19261_vm0 }
 0x221   : > { %4019 = vst [vmem:[#allocation4 + $0x1c] sm:$0xf] %v3641_v16  ;;  %v15978_v27 = vrot.slane %v11628_v28, 6  ;;  %v19257_v60 = vsel %vm15985_vm13, 4294967295, %v19256_v60  ;;  %v11662_v40 = vrot.slane %v11625_v23, 10  ;;  %v11573_v26 = vcombine.high %v3485_v3, %v3485_v3  ;;  %v3450_v16 = vpop.permute.xlu1 %3449 }
 0x222   : > { %v3651_v46 = vsel %vm15962_vm12, %v3642_v33, %v15968_v21  ;;  %19258 = vst [vmem:[#allocation32_spill] sm:$0xff] %v19257_v60  ;;  %v3487_v48 = vsel %vm19254_vm6, %v13127_v43, %v3448_v31  ;;  %v4514_v14 = vrot.slane %v11626_v61, 6  ;;  %v2476_v11 = vsel %vm19259_vm9, %v13128_v38, %v2439_v29  ;;  %5979 = vmatmul.mubr.bf16.gmra.mxu1 %v12770_v57  ;;  %vm19260_vm9 = vmmov %vm19254_vm6 }
 0x223   : > { %4020 = vst [vmem:[#allocation4 + $0x30] sm:$0xf] %v3651_v46  ;;  %v4519_v13 = vrot.slane %v4517_v15, 4  ;;  %v4522_v12 = vrot.slane %v15978_v27, 4  ;;  %v11486_v24 = vcombine.low %v2476_v11, %v2476_v11  ;;  %v11487_v22 = vcombine.high %v2476_v11, %v2476_v11  ;;  %5986 = vmatprep.mubr.bf16.mxu1 %v12773_v54  ;;  %v12779_v11 = vld [vmem:[#allocation4 + $0x20c] ss:$20 sps:$4 sm:$0xff]   ;;  %vm19263_vm6 = vmmov %vm19261_vm0 }
 0x224   : > { %v3654_v6 = vshrl.u32 %v11572_v55, 16  ;;  %v3657_v32 = vshll.u32 %v11572_v55, 16  ;;  %v4515_v44 = vsel %vm15985_vm13, %v11662_v40, %v4514_v14  ;;  %v4516_v20 = vrot.slane %v4514_v14, 4  ;;  %v4346_v29 = vpop.permute.xlu0 %4345 }
 0x225   : > { %v4521_v45 = vsel %vm15985_vm13, %v4519_v13, %v15978_v27  ;;  %v3664_v51 = vshrl.u32 %v11573_v26, 16  ;;  %4657 = vst [vmem:[#allocation4 + $0xc] sm:$0xf] %v4515_v44  ;;  %2637 = vst [vmem:[#allocation4 + $0x2a8] sm:$0xf] %v11486_v24  ;;  %v3667_v5 = vshll.u32 %v11573_v26, 16  ;;  %v11574_v36 = vcombine.low %v3487_v48, %v3487_v48 }
 0x226   : > { %2638 = vst [vmem:[#allocation4 + $0x2bc] sm:$0xf] %v11487_v22  ;;  %4659 = vst [vmem:[#allocation4 + $0x34] sm:$0xf] %v4521_v45  ;;  %v3656_v56 = vrot.slane %v3654_v6, 5  ;;  %v3659_v21 = vrot.slane %v3657_v32, 6  ;;  %v4518_v53 = vsel %vm15985_vm13, %v4516_v20, %v4517_v15  ;;  %v4382_v47 = vsel %vm19260_vm9, %v13129_v0, %v4344_v10 }
 0x227   : > { %v3666_v62 = vrot.slane %v3664_v51, 5  ;;  %v11575_v9 = vcombine.high %v3487_v48, %v3487_v48  ;;  %4658 = vst [vmem:[#allocation4 + $0x20] sm:$0xf] %v4518_v53  ;;  %v11629_v28 = vcombine.low %v4382_v47, %v4382_v47  ;;  %v11630_v37 = vcombine.high %v4382_v47, %v4382_v47  ;;  %v12778_v26 = vld [vmem:[#allocation4 + $0x1e0] ss:$20 sps:$4 sm:$0xff]   ;;  %v13131_v53 = vld [vmem:[#allocation2 + $0x30] sm:$0xff]   ;;  %vm19264_vm9 = vmmov %vm19261_vm0 }
 0x228   : > { %v3660_v3 = vor.u32 %v3659_v21, %v3656_v56  ;;  %v3669_v33 = vrot.slane %v3667_v5, 6  ;;  %v3674_v23 = vshrl.u32 %v11574_v36, 16  ;;  %v3677_v61 = vshll.u32 %v11574_v36, 16  ;;  %v13130_v48 = vld [vmem:[#allocation2 + $0x28] sm:$0xff]   ;;  %v3452_v56 = vpop.permute.xlu1 %3451 }
 0x229   : > { %v3684_v27 = vshrl.u32 %v11575_v9, 16  ;;  %v3687_v55 = vshll.u32 %v11575_v9, 16  ;;  %v4523_v31 = vrot.slane %v11629_v28, 6  ;;  %v4526_v46 = vrot.slane %v11630_v37, 6 }
 0x22a   : > { %v3661_v15 = vsel %vm15962_vm12, %v3652_v19, %v3660_v3  ;;  %v3662_v40 = vrot.slane %v3660_v3, 4  ;;  %v3670_v43 = vor.u32 %v3669_v33, %v3666_v62  ;;  %v4384_v57 = vsel %vm19261_vm0, %v13130_v48, %v4346_v29  ;;  %5987 = vmatmul.mubr.bf16.gmra.mxu1 %v12778_v26  ;;  %v12763_v3 = vld [vmem:[#allocation4 + $0x8] ss:$20 sps:$4 sm:$0xff]  }
 0x22b   : > { %4021 = vst [vmem:[#allocation4 + $0x44] sm:$0xf] %v3661_v15  ;;  %v3676_v14 = vrot.slane %v3674_v23, 5  ;;  %v3679_v38 = vrot.slane %v3677_v61, 6  ;;  %v4524_v13 = vsel %vm15985_vm13, %v4522_v12, %v4523_v31  ;;  %v4525_v54 = vrot.slane %v4523_v31, 4  ;;  %5994 = vmatprep.mubr.bf16.mxu1 %v12779_v11  ;;  %v4348_v12 = vpop.permute.xlu0 %4347  ;;  %v13132_v61 = vld [vmem:[#allocation2 + $0x28] sm:$0xff]  }
 0x22c   : > { %v4528_v24 = vrot.slane %v4526_v46, 4  ;;  %v11631_v22 = vcombine.low %v4384_v57, %v4384_v57  ;;  %4660 = vst [vmem:[#allocation4 + $0x48] sm:$0xf] %v4524_v13  ;;  %v3671_v19 = vsel %vm15962_vm12, %v3662_v40, %v3670_v43  ;;  %v3672_v6 = vrot.slane %v3670_v43, 4  ;;  %v12784_v43 = vld [vmem:[#allocation4 + $0x208] ss:$20 sps:$4 sm:$0xff]  }
 0x22d   : > { %v11632_v32 = vcombine.high %v4384_v57, %v4384_v57  ;;  %v3680_v44 = vor.u32 %v3679_v38, %v3676_v14  ;;  %v4527_v20 = vsel %vm15985_vm13, %v4525_v54, %v4526_v46  ;;  %4022 = vst [vmem:[#allocation4 + $0x58] sm:$0xf] %v3671_v19  ;;  %v3686_v51 = vrot.slane %v3684_v27, 5  ;;  %v13134_v14 = vld [vmem:[#allocation2 + $0x38] sm:$0xff]   ;;  %v12785_v11 = vld [vmem:[#allocation4 + $0x234] ss:$20 sps:$4 sm:$0xff]  }
 0x22e   : > { %v4529_v45 = vrot.slane %v11631_v22, 6  ;;  %v3689_v10 = vrot.slane %v3687_v55, 6  ;;  %4661 = vst [vmem:[#allocation4 + $0x5c] sm:$0xf] %v4527_v20  ;;  %v4386_v0 = vsel %vm19262_vm8, %v13131_v53, %v4348_v12  ;;  %v12761_v47 = vld [vmem:[#allocation4 + $0xc] ss:$20 sps:$4 sm:$0xff]   ;;  %v3489_v27 = vsel %vm19263_vm6, %v13132_v61, %v3450_v16  ;;  %vm19265_vm8 = vmmov %vm19261_vm0 }
 0x22f   : > { %v4532_v21 = vrot.slane %v11632_v32, 6  ;;  %v3681_v5 = vsel %vm15962_vm12, %v3672_v6, %v3680_v44  ;;  %v3682_v36 = vrot.slane %v3680_v44, 4  ;;  %v11633_v37 = vcombine.low %v4386_v0, %v4386_v0  ;;  %v13133_v55 = vld [vmem:[#allocation2 + $0x30] sm:$0xff]   ;;  %6067 = vmatprep.mubr.bf16.mxu0 %v12761_v47  ;;  %v4350_v26 = vpop.permute.xlu0 %4349  ;;  %vm19266_vm6 = vmmov %vm19261_vm0 }
 0x230   : > { %v4530_v62 = vsel %vm15985_vm13, %v4528_v24, %v4529_v45  ;;  %v4531_v9 = vrot.slane %v4529_v45, 4  ;;  %v16014_v28 = vor.u32 %v3689_v10, %v3686_v51  ;;  %4023 = vst [vmem:[#allocation4 + $0x6c] sm:$0xf] %v3681_v5  ;;  %v11634_v23 = vcombine.high %v4386_v0, %v4386_v0  ;;  %6068 = vmatmul.mubr.bf16.vlgmr.msra.gmra.mxu0 %v12763_v3 }
 0x231   : > { %v4534_v33 = vrot.slane %v4532_v21, 4  ;;  %4662 = vst [vmem:[#allocation4 + $0x70] sm:$0xf] %v4530_v62  ;;  %v3491_v31 = vsel %vm19264_vm9, %v13133_v55, %v3452_v56  ;;  %v4535_v29 = vrot.slane %v11633_v37, 6  ;;  %v11576_v48 = vcombine.low %v3489_v27, %v3489_v27  ;;  %vm19267_vm9 = vmmov %vm19261_vm0 }
 0x232   : > { %v4533_v46 = vsel %vm15985_vm13, %v4531_v9, %v4532_v21  ;;  %v3691_v15 = vsel %vm15962_vm12, %v3682_v36, %v16014_v28  ;;  %v3692_v40 = vrot.slane %v16014_v28, 4  ;;  %v4538_v16 = vrot.slane %v11634_v23, 6  ;;  %5995 = vmatmul.mubr.bf16.gmra.mxu1 %v12784_v43  ;;  %v3454_v21 = vpop.permute.xlu1 %3453  ;;  %v12769_v5 = vld [vmem:[#allocation4 + $0x30] ss:$20 sps:$4 sm:$0xff]  }
 0x233   : > { %4663 = vst [vmem:[#allocation4 + $0x84] sm:$0xf] %v4533_v46  ;;  %4024 = vst [vmem:[#allocation4 + $0x80] sm:$0xf] %v3691_v15  ;;  %v11577_v57 = vcombine.high %v3489_v27, %v3489_v27  ;;  %v4388_v38 = vsel %vm19261_vm0, %v13134_v14, %v4350_v26  ;;  %v4536_v13 = vsel %vm15985_vm13, %v4534_v33, %v4535_v29  ;;  %v4537_v54 = vrot.slane %v4535_v29, 4  ;;  %v4352_v56 = vpop.permute.xlu0 %4351  ;;  %v13135_v15 = vld [vmem:[#allocation2 + $0x40] sm:$0xff]  }
 0x234   : > { %v11635_v24 = vcombine.low %v4388_v38, %v4388_v38  ;;  %v11636_v22 = vcombine.high %v4388_v38, %v4388_v38  ;;  %v12767_v19 = vld [vmem:[#allocation4 + $0x34] ss:$20 sps:$4 sm:$0xff]   ;;  %v4540_v6 = vrot.slane %v4538_v16, 4  ;;  %4664 = vst [vmem:[#allocation4 + $0x98] sm:$0xf] %v4536_v13  ;;  %v3694_v32 = vshrl.u32 %v11576_v48, 16  ;;  %6002 = vmatprep.mubr.bf16.mxu1 %v12785_v11 }
 0x235   : > { %v3697_v44 = vshll.u32 %v11576_v48, 16  ;;  %v3704_v20 = vshrl.u32 %v11577_v57, 16  ;;  %v4539_v45 = vsel %vm15985_vm13, %v4537_v54, %v4538_v16  ;;  %v3707_v51 = vshll.u32 %v11577_v57, 16  ;;  %6075 = vmatprep.mubr.bf16.mxu0 %v12767_v19  ;;  %v13136_v26 = vld [vmem:[#allocation2 + $0x38] sm:$0xff]   ;;  %v12792_v38 = vld [vmem:[#allocation4 + $0x25c] ss:$20 sps:$4 sm:$0xff]  }
 0x236   : > { %v4541_v10 = vrot.slane %v11635_v24, 6  ;;  %v4544_v12 = vrot.slane %v11636_v22, 6  ;;  %4665 = vst [vmem:[#allocation4 + $0xac] sm:$0xf] %v4539_v45  ;;  %v3696_v36 = vrot.slane %v3694_v32, 5  ;;  %v11578_v47 = vcombine.low %v3491_v31, %v3491_v31  ;;  %v3456_v19 = vpop.permute.xlu1 %3455 }
 0x237   : > { %v3699_v53 = vrot.slane %v3697_v44, 6  ;;  %v3706_v0 = vrot.slane %v3704_v20, 5  ;;  %v3709_v62 = vrot.slane %v3707_v51, 6  ;;  %v11579_v23 = vcombine.high %v3491_v31, %v3491_v31  ;;  %v12791_v16 = vld [vmem:[#allocation4 + $0x230] ss:$20 sps:$4 sm:$0xff]   ;;  %v4354_v22 = vpop.permute.xlu0 %4353 }
 0x238   : > { %v4542_v9 = vsel %vm15985_vm13, %v4540_v6, %v4541_v10  ;;  %v4543_v28 = vrot.slane %v4541_v10, 4  ;;  %v4546_v37 = vrot.slane %v4544_v12, 4  ;;  %v12771_v3 = vld [vmem:[#allocation4 + $0x5c] ss:$20 sps:$4 sm:$0xff]   ;;  %v3714_v61 = vshrl.u32 %v11578_v47, 16  ;;  %6076 = vmatmul.mubr.bf16.gmra.mxu0 %v12769_v5 }
 0x239   : > { %v3700_v33 = vor.u32 %v3699_v53, %v3696_v36  ;;  %4666 = vst [vmem:[#allocation4 + $0xc0] sm:$0xf] %v4542_v9  ;;  %v3717_v27 = vshll.u32 %v11578_v47, 16  ;;  %v3710_v55 = vor.u32 %v3709_v62, %v3706_v0  ;;  %v4390_v29 = vsel %vm19265_vm8, %v13135_v15, %v4352_v56  ;;  %6083 = vmatprep.mubr.bf16.mxu0 %v12771_v3  ;;  %v12775_v62 = vld [vmem:[#allocation4 + $0x58] ss:$20 sps:$4 sm:$0xff]   ;;  %vm19268_vm8 = vmmov %vm19261_vm0 }
 0x23a   : > { %v4545_v46 = vsel %vm15985_vm13, %v4543_v28, %v4544_v12  ;;  %v3493_v43 = vsel %vm19266_vm6, %v13136_v26, %v3454_v21  ;;  %v3716_v31 = vrot.slane %v3714_v61, 5  ;;  %v3724_v13 = vshrl.u32 %v11579_v23, 16  ;;  %6003 = vmatmul.mubr.bf16.gmra.mxu1 %v12791_v16  ;;  %v3458_v15 = vpop.permute.xlu1 %3457  ;;  %v13137_v26 = vld [vmem:[#allocation2 + $0x48] sm:$0xff]   ;;  %v13138_v16 = vld [vmem:[#allocation2 + $0x40] sm:$0xff]   ;;  %vm19269_vm6 = vmmov %vm19261_vm0 }
 0x23b   : > { %v3701_v48 = vsel %vm15962_vm12, %v3692_v40, %v3700_v33  ;;  %v3702_v57 = vrot.slane %v3700_v33, 4  ;;  %4667 = vst [vmem:[#allocation4 + $0xd4] sm:$0xf] %v4545_v46  ;;  %v3719_v14 = vrot.slane %v3717_v27, 6  ;;  %v3712_v11 = vrot.slane %v3710_v55, 4  ;;  %6010 = vmatprep.mubr.bf16.mxu1 %v12792_v38  ;;  %v4356_v46 = vpop.permute.xlu0 %4355 }
 0x23c   : > { %4025 = vst [vmem:[#allocation4 + $0x94] sm:$0xf] %v3701_v48  ;;  %v3727_v54 = vshll.u32 %v11579_v23, 16  ;;  %v11637_v24 = vcombine.low %v4390_v29, %v4390_v29  ;;  %v11638_v44 = vcombine.high %v4390_v29, %v4390_v29  ;;  %v11580_v40 = vcombine.low %v3493_v43, %v3493_v43 }
 0x23d   : > { %v3711_v6 = vsel %vm15962_vm12, %v3702_v57, %v3710_v55  ;;  %v3720_v32 = vor.u32 %v3719_v14, %v3716_v31  ;;  %v3726_v20 = vrot.slane %v3724_v13, 5  ;;  %v11581_v10 = vcombine.high %v3493_v43, %v3493_v43  ;;  %v12776_v57 = vld [vmem:[#allocation4 + $0x84] ss:$20 sps:$4 sm:$0xff]  }
 0x23e   : > { %4026 = vst [vmem:[#allocation4 + $0xa8] sm:$0xf] %v3711_v6  ;;  %v3729_v45 = vrot.slane %v3727_v54, 6  ;;  %v4547_v51 = vrot.slane %v11637_v24, 6  ;;  %v4550_v21 = vrot.slane %v11638_v44, 6  ;;  %v3734_v5 = vshrl.u32 %v11580_v40, 16 }
 0x23f   : > { %v3721_v12 = vsel %vm15962_vm12, %v3712_v11, %v3720_v32  ;;  %v3722_v56 = vrot.slane %v3720_v32, 4  ;;  %v3737_v47 = vshll.u32 %v11580_v40, 16  ;;  %v3744_v3 = vshrl.u32 %v11581_v10, 16  ;;  %v13139_v24 = vld [vmem:[#allocation2 + $0x50] sm:$0xff]   ;;  %v13140_v32 = vld [vmem:[#allocation2 + $0x48] sm:$0xff]  }
 0x240   : > { %v3730_v36 = vor.u32 %v3729_v45, %v3726_v20  ;;  %4027 = vst [vmem:[#allocation4 + $0xbc] sm:$0xf] %v3721_v12  ;;  %v4548_v53 = vsel %vm15985_vm13, %v4546_v37, %v4547_v51  ;;  %v4549_v0 = vrot.slane %v4547_v51, 4  ;;  %v4552_v9 = vrot.slane %v4550_v21, 4  ;;  %6084 = vmatmul.mubr.bf16.gmra.mxu0 %v12775_v62 }
 0x241   : > { %4668 = vst [vmem:[#allocation4 + $0xe8] sm:$0xf] %v4548_v53  ;;  %v3736_v28 = vrot.slane %v3734_v5, 5  ;;  %v3747_v33 = vshll.u32 %v11581_v10, 16  ;;  %v3739_v55 = vrot.slane %v3737_v47, 6  ;;  %v3746_v37 = vrot.slane %v3744_v3, 5  ;;  %6091 = vmatprep.mubr.bf16.mxu0 %v12776_v57  ;;  %v4358_v53 = vpop.permute.xlu0 %4357 }
 0x242   : > { %v3731_v23 = vsel %vm15962_vm12, %v3722_v56, %v3730_v36  ;;  %v3732_v61 = vrot.slane %v3730_v36, 4  ;;  %v4551_v27 = vsel %vm15985_vm13, %v4549_v0, %v4550_v21  ;;  %v4392_v43 = vsel %vm19267_vm9, %v13137_v26, %v4354_v22  ;;  %v3460_v0 = vpop.permute.xlu1 %3459  ;;  %vm19270_vm9 = vmmov %vm19261_vm0 }
 0x243   : > { %4028 = vst [vmem:[#allocation4 + $0xd0] sm:$0xf] %v3731_v23  ;;  %4669 = vst [vmem:[#allocation4 + $0xfc] sm:$0xf] %v4551_v27  ;;  %v3749_v29 = vrot.slane %v3747_v33, 6  ;;  %v3495_v48 = vsel %vm19261_vm0, %v13138_v16, %v3456_v19  ;;  %v3740_v31 = vor.u32 %v3739_v55, %v3736_v28  ;;  %v11639_v14 = vcombine.low %v4392_v43, %v4392_v43 }
 0x244   : > { %v11640_v38 = vcombine.high %v4392_v43, %v4392_v43  ;;  %v11582_v11 = vcombine.low %v3495_v48, %v3495_v48  ;;  %v11583_v54 = vcombine.high %v3495_v48, %v3495_v48  ;;  %v4394_v6 = vsel %vm19268_vm8, %v13139_v24, %v4356_v46  ;;  %v12781_v47 = vld [vmem:[#allocation4 + $0x80] ss:$20 sps:$4 sm:$0xff]   ;;  %vm19271_vm8 = vmmov %vm19261_vm0 }
 0x245   : > { %v3750_v13 = vor.u32 %v3749_v29, %v3746_v37  ;;  %v3497_v44 = vsel %vm19269_vm6, %v13140_v32, %v3458_v15  ;;  %v3741_v22 = vsel %vm15962_vm12, %v3732_v61, %v3740_v31  ;;  %v3742_v40 = vrot.slane %v3740_v31, 4  ;;  %v12782_v23 = vld [vmem:[#allocation4 + $0xac] ss:$20 sps:$4 sm:$0xff]   ;;  %v4360_v32 = vpop.permute.xlu0 %4359  ;;  %vm19272_vm6 = vmmov %vm19261_vm0 }
 0x246   : > { %v4553_v20 = vrot.slane %v11639_v14, 6  ;;  %v4556_v19 = vrot.slane %v11640_v38, 6  ;;  %4029 = vst [vmem:[#allocation4 + $0xe4] sm:$0xf] %v3741_v22  ;;  %v3754_v51 = vshrl.u32 %v11582_v11, 16  ;;  %v3757_v10 = vshll.u32 %v11582_v11, 16 }
 0x247   : > { %v3752_v45 = vrot.slane %v3750_v13, 4  ;;  %v3764_v12 = vshrl.u32 %v11583_v54, 16  ;;  %v3751_v56 = vsel %vm15962_vm12, %v3742_v40, %v3750_v13  ;;  %v3767_v33 = vshll.u32 %v11583_v54, 16  ;;  %v13141_v29 = vld [vmem:[#allocation2 + $0x58] sm:$0xff]  }
 0x248   : > { %v4554_v21 = vsel %vm15985_vm13, %v4552_v9, %v4553_v20  ;;  %v4555_v5 = vrot.slane %v4553_v20, 4  ;;  %v4558_v36 = vrot.slane %v4556_v19, 4  ;;  %4030 = vst [vmem:[#allocation4 + $0xf8] sm:$0xf] %v3751_v56  ;;  %v3756_v62 = vrot.slane %v3754_v51, 5  ;;  %6092 = vmatmul.mubr.bf16.gmra.mxu0 %v12781_v47 }
 0x249   : > { %4670 = vst [vmem:[#allocation4 + $0x110] sm:$0xf] %v4554_v21  ;;  %v3759_v28 = vrot.slane %v3757_v10, 6  ;;  %v3766_v3 = vrot.slane %v3764_v12, 5  ;;  %v11641_v27 = vcombine.low %v4394_v6, %v4394_v6  ;;  %v11642_v55 = vcombine.high %v4394_v6, %v4394_v6  ;;  %6099 = vmatprep.mubr.bf16.mxu0 %v12782_v23  ;;  %v12788_v56 = vld [vmem:[#allocation4 + $0xa8] ss:$20 sps:$4 sm:$0xff]  }
 0x24a   : > { %v4557_v61 = vsel %vm15985_vm13, %v4555_v5, %v4556_v19  ;;  %v11584_v46 = vcombine.low %v3497_v44, %v3497_v44  ;;  %v3769_v15 = vrot.slane %v3767_v33, 6  ;;  %v11585_v37 = vcombine.high %v3497_v44, %v3497_v44  ;;  %v3462_v44 = vpop.permute.xlu1 %3461  ;;  %v13142_v5 = vld [vmem:[#allocation2 + $0x50] sm:$0xff]  }
 0x24b   : > { %4671 = vst [vmem:[#allocation4 + $0x124] sm:$0xf] %v4557_v61  ;;  %v3760_v9 = vor.u32 %v3759_v28, %v3756_v62  ;;  %v4396_v26 = vsel %vm19270_vm9, %v13141_v29, %v4358_v53  ;;  %v4559_v43 = vrot.slane %v11641_v27, 6  ;;  %v4562_v16 = vrot.slane %v11642_v55, 6  ;;  %v13143_v53 = vld [vmem:[#allocation2 + $0x60] sm:$0xff]   ;;  %v13144_v62 = vld [vmem:[#allocation2 + $0x58] sm:$0xff]   ;;  %vm19273_vm9 = vmmov %vm19261_vm0 }
 0x24c   : > { %v3774_v48 = vshrl.u32 %v11584_v46, 16  ;;  %v3777_v57 = vshll.u32 %v11584_v46, 16  ;;  %v3770_v38 = vor.u32 %v3769_v15, %v3766_v3  ;;  %v3784_v11 = vshrl.u32 %v11585_v37, 16  ;;  %v12789_v3 = vld [vmem:[#allocation4 + $0xd4] ss:$20 sps:$4 sm:$0xff]  }
 0x24d   : > { %v3761_v31 = vsel %vm15962_vm12, %v3752_v45, %v3760_v9  ;;  %v3762_v14 = vrot.slane %v3760_v9, 4  ;;  %v4560_v13 = vsel %vm15985_vm13, %v4558_v36, %v4559_v43  ;;  %v4561_v54 = vrot.slane %v4559_v43, 4 }
 0x24e   : > { %4031 = vst [vmem:[#allocation4 + $0x10c] sm:$0xf] %v3761_v31  ;;  %v4564_v24 = vrot.slane %v4562_v16, 4  ;;  %v3776_v6 = vrot.slane %v3774_v48, 5  ;;  %v3772_v40 = vrot.slane %v3770_v38, 4  ;;  %v3779_v20 = vrot.slane %v3777_v57, 6 }
 0x24f   : > { %v3771_v22 = vsel %vm15962_vm12, %v3762_v14, %v3770_v38  ;;  %4672 = vst [vmem:[#allocation4 + $0x138] sm:$0xf] %v4560_v13  ;;  %v3786_v19 = vrot.slane %v3784_v11, 5  ;;  %v4563_v45 = vsel %vm15985_vm13, %v4561_v54, %v4562_v16  ;;  %v3787_v51 = vshll.u32 %v11585_v37, 16  ;;  %v4362_v13 = vpop.permute.xlu0 %4361  ;;  %v3464_v54 = vpop.permute.xlu1 %3463 }
 0x250   : > { %4032 = vst [vmem:[#allocation4 + $0x120] sm:$0xf] %v3771_v22  ;;  %v11643_v10 = vcombine.low %v4396_v26, %v4396_v26  ;;  %v11644_v12 = vcombine.high %v4396_v26, %v4396_v26  ;;  %4673 = vst [vmem:[#allocation4 + $0x14c] sm:$0xf] %v4563_v45  ;;  %v3780_v21 = vor.u32 %v3779_v20, %v3776_v6  ;;  %6100 = vmatmul.mubr.bf16.gmra.mxu0 %v12788_v56  ;;  %v12794_v45 = vld [vmem:[#allocation4 + $0xd0] ss:$20 sps:$4 sm:$0xff]  }
 0x251   : > { %v3499_v36 = vsel %vm19261_vm0, %v13142_v5, %v3460_v0  ;;  %v4398_v47 = vsel %vm19271_vm8, %v13143_v53, %v4360_v32  ;;  %v3501_v28 = vsel %vm19272_vm6, %v13144_v62, %v3462_v44  ;;  %v3789_v33 = vrot.slane %v3787_v51, 6  ;;  %6107 = vmatprep.mubr.bf16.mxu0 %v12789_v3  ;;  %vm19274_vm8 = vmmov %vm19261_vm0 }
 0x252   : > { %v4565_v23 = vrot.slane %v11643_v10, 6  ;;  %v4568_v61 = vrot.slane %v11644_v12, 6  ;;  %v11586_v27 = vcombine.low %v3499_v36, %v3499_v36  ;;  %v3781_v55 = vsel %vm15962_vm12, %v3772_v40, %v3780_v21  ;;  %v13145_v12 = vld [vmem:[#allocation2 + $0x68] sm:$0xff]   ;;  %vm19275_vm6 = vmmov %vm19261_vm0 }
 0x253   : > { %v3782_v46 = vrot.slane %v3780_v21, 4  ;;  %v11587_v9 = vcombine.high %v3499_v36, %v3499_v36  ;;  %v11645_v15 = vcombine.low %v4398_v47, %v4398_v47  ;;  %v3790_v0 = vor.u32 %v3789_v33, %v3786_v19  ;;  %4033 = vst [vmem:[#allocation4 + $0x134] sm:$0xf] %v3781_v55  ;;  %v13146_v21 = vld [vmem:[#allocation2 + $0x60] sm:$0xff]   ;;  %v12795_v36 = vld [vmem:[#allocation4 + $0xfc] ss:$20 sps:$4 sm:$0xff]  }
 0x254   : > { %v4566_v37 = vsel %vm15985_vm13, %v4564_v24, %v4565_v23  ;;  %v4567_v29 = vrot.slane %v4565_v23, 4  ;;  %v4570_v26 = vrot.slane %v4568_v61, 4  ;;  %v3794_v43 = vshrl.u32 %v11586_v27, 16 }
 0x255   : > { %4674 = vst [vmem:[#allocation4 + $0x160] sm:$0xf] %v4566_v37  ;;  %v3797_v16 = vshll.u32 %v11586_v27, 16  ;;  %v3804_v48 = vshrl.u32 %v11587_v9, 16  ;;  %v3807_v57 = vshll.u32 %v11587_v9, 16  ;;  %v3791_v31 = vsel %vm15962_vm12, %v3782_v46, %v3790_v0 }
 0x256   : > { %v3792_v14 = vrot.slane %v3790_v0, 4  ;;  %v4569_v38 = vsel %vm15985_vm13, %v4567_v29, %v4568_v61  ;;  %v11646_v11 = vcombine.high %v4398_v47, %v4398_v47  ;;  %4034 = vst [vmem:[#allocation4 + $0x148] sm:$0xf] %v3791_v31  ;;  %v3796_v24 = vrot.slane %v3794_v43, 5 }
 0x257   : > { %4675 = vst [vmem:[#allocation4 + $0x174] sm:$0xf] %v4569_v38  ;;  %v3799_v6 = vrot.slane %v3797_v16, 6  ;;  %v3806_v32 = vrot.slane %v3804_v48, 5  ;;  %v3809_v44 = vrot.slane %v3807_v57, 6  ;;  %v4571_v22 = vrot.slane %v11645_v15, 6  ;;  %v4364_v15 = vpop.permute.xlu0 %4363 }
 0x258   : > { %v4574_v40 = vrot.slane %v11646_v11, 6  ;;  %v11588_v20 = vcombine.low %v3501_v28, %v3501_v28  ;;  %v11589_v19 = vcombine.high %v3501_v28, %v3501_v28  ;;  %v4400_v56 = vsel %vm19273_vm9, %v13145_v12, %v4362_v13  ;;  %6108 = vmatmul.mubr.bf16.gmra.mxu0 %v12794_v45  ;;  %v13147_v11 = vld [vmem:[#allocation2 + $0x70] sm:$0xff]   ;;  %vm19276_vm9 = vmmov %vm19261_vm0 }
 0x259   : > { %v3800_v51 = vor.u32 %v3799_v6, %v3796_v24  ;;  %v3810_v10 = vor.u32 %v3809_v44, %v3806_v32  ;;  %v3503_v5 = vsel %vm19261_vm0, %v13146_v21, %v3464_v54  ;;  %v4572_v53 = vsel %vm15985_vm13, %v4570_v26, %v4571_v22  ;;  %6115 = vmatprep.mubr.bf16.mxu0 %v12795_v36  ;;  %v3466_v54 = vpop.permute.xlu1 %3465 }
 0x25a   : > { %v4573_v47 = vrot.slane %v4571_v22, 4  ;;  %v4576_v62 = vrot.slane %v4574_v40, 4  ;;  %v3814_v3 = vshrl.u32 %v11588_v20, 16  ;;  %4676 = vst [vmem:[#allocation4 + $0x188] sm:$0xf] %v4572_v53  ;;  %v3817_v61 = vshll.u32 %v11588_v20, 16 }
 0x25b   : > { %v3801_v28 = vsel %vm15962_vm12, %v3792_v14, %v3800_v51  ;;  %v3802_v33 = vrot.slane %v3800_v51, 4  ;;  %v3812_v23 = vrot.slane %v3810_v10, 4  ;;  %v3824_v46 = vshrl.u32 %v11589_v19, 16  ;;  %v12799_v22 = vld [vmem:[#allocation4 + $0xf8] ss:$20 sps:$4 sm:$0xff]  }
 0x25c   : > { %4035 = vst [vmem:[#allocation4 + $0x15c] sm:$0xf] %v3801_v28  ;;  %v4575_v27 = vsel %vm15985_vm13, %v4573_v47, %v4574_v40  ;;  %v3816_v55 = vrot.slane %v3814_v3, 5  ;;  %v3827_v9 = vshll.u32 %v11589_v19, 16  ;;  %v3819_v37 = vrot.slane %v3817_v61, 6 }
 0x25d   : > { %v3811_v0 = vsel %vm15962_vm12, %v3802_v33, %v3810_v10  ;;  %4677 = vst [vmem:[#allocation4 + $0x19c] sm:$0xf] %v4575_v27  ;;  %v11647_v29 = vcombine.low %v4400_v56, %v4400_v56  ;;  %v11648_v26 = vcombine.high %v4400_v56, %v4400_v56  ;;  %v3826_v43 = vrot.slane %v3824_v46, 5  ;;  %v12800_v51 = vld [vmem:[#allocation4 + $0x124] ss:$20 sps:$4 sm:$0xff]  }
 0x25e   : > { %4036 = vst [vmem:[#allocation4 + $0x170] sm:$0xf] %v3811_v0  ;;  %v3829_v16 = vrot.slane %v3827_v9, 6  ;;  %v11590_v48 = vcombine.low %v3503_v5, %v3503_v5  ;;  %v11591_v57 = vcombine.high %v3503_v5, %v3503_v5  ;;  %v3820_v31 = vor.u32 %v3819_v37, %v3816_v55  ;;  %v4366_v5 = vpop.permute.xlu0 %4365  ;;  %v13149_v9 = vld [vmem:[#allocation2 + $0x78] sm:$0xff]   ;;  %v3468_v0 = vpop.permute.xlu1 %3467 }
 0x25f   : > { %v4577_v14 = vrot.slane %v11647_v29, 6  ;;  %v4580_v38 = vrot.slane %v11648_v26, 6  ;;  %v4402_v13 = vsel %vm19274_vm8, %v13147_v11, %v4364_v15  ;;  %v4404_v15 = vsel %vm19276_vm9, %v13149_v9, %v4366_v5  ;;  %v13151_v5 = vld [vmem:[#allocation2 + $0x80] sm:$0xff]   ;;  %vm19277_vm8 = vmmov %vm19261_vm0 }
 0x260   : > { %v3830_v24 = vor.u32 %v3829_v16, %v3826_v43  ;;  %v3834_v6 = vshrl.u32 %v11590_v48, 16  ;;  %v3837_v32 = vshll.u32 %v11590_v48, 16  ;;  %v3844_v44 = vshrl.u32 %v11591_v57, 16  ;;  %6116 = vmatmul.mubr.bf16.gmra.mxu0 %v12799_v22  ;;  %vm19279_vm9 = vmmov %vm19261_vm0 }
 0x261   : > { %v3821_v40 = vsel %vm15962_vm12, %v3812_v23, %v3820_v31  ;;  %v3822_v20 = vrot.slane %v3820_v31, 4  ;;  %v4578_v19 = vsel %vm15985_vm13, %v4576_v62, %v4577_v14  ;;  %v4579_v45 = vrot.slane %v4577_v14, 4  ;;  %6123 = vmatprep.mubr.bf16.mxu0 %v12800_v51  ;;  %v13148_v23 = vld [vmem:[#allocation2 + $0x68] sm:$0xff]  }
 0x262   : > { %v3832_v10 = vrot.slane %v3830_v24, 4  ;;  %4037 = vst [vmem:[#allocation4 + $0x184] sm:$0xf] %v3821_v40  ;;  %v4582_v12 = vrot.slane %v4580_v38, 4  ;;  %4678 = vst [vmem:[#allocation4 + $0x1b0] sm:$0xf] %v4578_v19  ;;  %v11649_v28 = vcombine.low %v4402_v13, %v4402_v13  ;;  %v11650_v33 = vcombine.high %v4402_v13, %v4402_v13 }
 0x263   : > { %v3836_v56 = vrot.slane %v3834_v6, 5  ;;  %v3839_v21 = vrot.slane %v3837_v32, 6  ;;  %v3831_v36 = vsel %vm15962_vm12, %v3822_v20, %v3830_v24  ;;  %v4581_v53 = vsel %vm15985_vm13, %v4579_v45, %v4580_v38  ;;  %v12805_v24 = vld [vmem:[#allocation4 + $0x120] ss:$20 sps:$4 sm:$0xff]  }
 0x264   : > { %v3846_v47 = vrot.slane %v3844_v44, 5  ;;  %v3847_v3 = vshll.u32 %v11591_v57, 16  ;;  %4038 = vst [vmem:[#allocation4 + $0x198] sm:$0xf] %v3831_v36  ;;  %4679 = vst [vmem:[#allocation4 + $0x1c4] sm:$0xf] %v4581_v53  ;;  %v3505_v61 = vsel %vm19275_vm6, %v13148_v23, %v3466_v54  ;;  %v4368_v54 = vpop.permute.xlu0 %4367  ;;  %v11651_v51 = vcombine.low %v4404_v15, %v4404_v15  ;;  %v3470_v53 = vpop.permute.xlu1 %3469 }
 0x265   : > { %v3840_v62 = vor.u32 %v3839_v21, %v3836_v56  ;;  %v11592_v55 = vcombine.low %v3505_v61, %v3505_v61  ;;  %v11593_v46 = vcombine.high %v3505_v61, %v3505_v61  ;;  %v4583_v26 = vrot.slane %v11649_v28, 6  ;;  %v12806_v40 = vld [vmem:[#allocation4 + $0x14c] ss:$20 sps:$4 sm:$0xff]   ;;  %v13150_v56 = vld [vmem:[#allocation2 + $0x70] sm:$0xff]   ;;  %vm19278_vm6 = vmmov %vm19261_vm0 }
 0x266   : > { %v3849_v27 = vrot.slane %v3847_v3, 6  ;;  %v4586_v43 = vrot.slane %v11650_v33, 6  ;;  %v3507_v21 = vsel %vm19261_vm0, %v13150_v56, %v3468_v0  ;;  %v4406_v36 = vsel %vm19277_vm8, %v13151_v5, %v4368_v54  ;;  %vm19280_vm8 = vmmov %vm19261_vm0 }
 0x267   : > { %v3841_v37 = vsel %vm15962_vm12, %v3832_v10, %v3840_v62  ;;  %v3842_v29 = vrot.slane %v3840_v62, 4  ;;  %v3854_v48 = vshrl.u32 %v11592_v55, 16  ;;  %v3857_v57 = vshll.u32 %v11592_v55, 16 }
 0x268   : > { %v3850_v16 = vor.u32 %v3849_v27, %v3846_v47  ;;  %4039 = vst [vmem:[#allocation4 + $0x1ac] sm:$0xf] %v3841_v37  ;;  %v3864_v31 = vshrl.u32 %v11593_v46, 16  ;;  %v4584_v14 = vsel %vm15985_vm13, %v4582_v12, %v4583_v26  ;;  %v4585_v38 = vrot.slane %v4583_v26, 4  ;;  %6124 = vmatmul.mubr.bf16.gmra.mxu0 %v12805_v24  ;;  %v3472_v24 = vpop.permute.xlu1 %3471 }
 0x269   : > { %v4588_v11 = vrot.slane %v4586_v43, 4  ;;  %v3867_v13 = vshll.u32 %v11593_v46, 16  ;;  %4680 = vst [vmem:[#allocation4 + $0x1d8] sm:$0xf] %v4584_v14  ;;  %v3856_v44 = vrot.slane %v3854_v48, 5  ;;  %v3859_v22 = vrot.slane %v3857_v57, 6  ;;  %6131 = vmatprep.mubr.bf16.mxu0 %v12806_v40 }
 0x26a   : > { %v3851_v6 = vsel %vm15962_vm12, %v3842_v29, %v3850_v16  ;;  %v3852_v32 = vrot.slane %v3850_v16, 4  ;;  %v4587_v20 = vsel %vm15985_vm13, %v4585_v38, %v4586_v43  ;;  %v3866_v19 = vrot.slane %v3864_v31, 5  ;;  %v4370_v43 = vpop.permute.xlu0 %4369 }
 0x26b   : > { %4040 = vst [vmem:[#allocation4 + $0x1c0] sm:$0xf] %v3851_v6  ;;  %v3869_v45 = vrot.slane %v3867_v13, 6  ;;  %4681 = vst [vmem:[#allocation4 + $0x1ec] sm:$0xf] %v4587_v20  ;;  %v3860_v10 = vor.u32 %v3859_v22, %v3856_v44  ;;  %v11652_v12 = vcombine.high %v4404_v15, %v4404_v15  ;;  %v4589_v3 = vrot.slane %v11651_v51, 6 }
 0x26c   : > { %v11594_v62 = vcombine.low %v3507_v21, %v3507_v21  ;;  %v11595_v28 = vcombine.high %v3507_v21, %v3507_v21  ;;  %v11653_v27 = vcombine.low %v4406_v36, %v4406_v36  ;;  %v11654_v31 = vcombine.high %v4406_v36, %v4406_v36  ;;  %v13152_v13 = vld [vmem:[#allocation2 + $0x78] sm:$0xff]  }
 0x26d   : > { %v3870_v47 = vor.u32 %v3869_v45, %v3866_v19  ;;  %v3861_v33 = vsel %vm15962_vm12, %v3852_v32, %v3860_v10  ;;  %v3862_v23 = vrot.slane %v3860_v10, 4  ;;  %v4592_v61 = vrot.slane %v11652_v12, 6  ;;  %v13153_v45 = vld [vmem:[#allocation2 + $0x88] sm:$0xff]  }
 0x26e   : > { %4041 = vst [vmem:[#allocation4 + $0x1d4] sm:$0xf] %v3861_v33  ;;  %v4590_v46 = vsel %vm15985_vm13, %v4588_v11, %v4589_v3  ;;  %v4591_v9 = vrot.slane %v4589_v3, 4  ;;  %v3874_v15 = vshrl.u32 %v11594_v62, 16  ;;  %v3877_v29 = vshll.u32 %v11594_v62, 16  ;;  %v4372_v3 = vpop.permute.xlu0 %4371 }
 0x26f   : > { %v3872_v55 = vrot.slane %v3870_v47, 4  ;;  %v3871_v0 = vsel %vm15962_vm12, %v3862_v23, %v3870_v47  ;;  %v4594_v37 = vrot.slane %v4592_v61, 4  ;;  %4682 = vst [vmem:[#allocation4 + $0x200] sm:$0xf] %v4590_v46  ;;  %v3884_v26 = vshrl.u32 %v11595_v28, 16 }
 0x270   : > { %4042 = vst [vmem:[#allocation4 + $0x1e8] sm:$0xf] %v3871_v0  ;;  %v4593_v16 = vsel %vm15985_vm13, %v4591_v9, %v4592_v61  ;;  %v3876_v48 = vrot.slane %v3874_v15, 5  ;;  %v3887_v57 = vshll.u32 %v11595_v28, 16  ;;  %v3879_v14 = vrot.slane %v3877_v29, 6  ;;  %v3474_v15 = vpop.permute.xlu1 %3473 }
 0x271   : > { %4683 = vst [vmem:[#allocation4 + $0x214] sm:$0xf] %v4593_v16  ;;  %v3886_v38 = vrot.slane %v3884_v26, 5  ;;  %v4595_v11 = vrot.slane %v11653_v27, 6  ;;  %v3509_v54 = vsel %vm19278_vm6, %v13152_v13, %v3470_v53  ;;  %v4598_v32 = vrot.slane %v11654_v31, 6  ;;  %v13155_v26 = vld [vmem:[#allocation2 + $0x90] sm:$0xff]   ;;  %vm19281_vm6 = vmmov %vm19261_vm0 }
 0x272   : > { %v3889_v6 = vrot.slane %v3887_v57, 6  ;;  %v11596_v44 = vcombine.low %v3509_v54, %v3509_v54  ;;  %v11597_v22 = vcombine.high %v3509_v54, %v3509_v54  ;;  %v3880_v40 = vor.u32 %v3879_v14, %v3876_v48 }
 0x273   : > { %v4596_v20 = vsel %vm15985_vm13, %v4594_v37, %v4595_v11  ;;  %v4597_v19 = vrot.slane %v4595_v11, 4  ;;  %v4408_v51 = vsel %vm19279_vm9, %v13153_v45, %v4370_v43  ;;  %v4600_v12 = vrot.slane %v4598_v32, 4  ;;  %v13154_v37 = vld [vmem:[#allocation2 + $0x80] sm:$0xff]   ;;  %vm19282_vm9 = vmmov %vm19261_vm0 }
 0x274   : > { %v3890_v10 = vor.u32 %v3889_v6, %v3886_v38  ;;  %4684 = vst [vmem:[#allocation4 + $0x228] sm:$0xf] %v4596_v20  ;;  %v3894_v56 = vshrl.u32 %v11596_v44, 16  ;;  %v3897_v21 = vshll.u32 %v11596_v44, 16  ;;  %v3881_v5 = vsel %vm15962_vm12, %v3872_v55, %v3880_v40 }
 0x275   : > { %v3882_v36 = vrot.slane %v3880_v40, 4  ;;  %v4599_v53 = vsel %vm15985_vm13, %v4597_v19, %v4598_v32  ;;  %v3904_v47 = vshrl.u32 %v11597_v22, 16  ;;  %4043 = vst [vmem:[#allocation4 + $0x1fc] sm:$0xf] %v3881_v5  ;;  %v3907_v23 = vshll.u32 %v11597_v22, 16  ;;  %v5044_v19 = vld [vmem:[#allocation4 + $0x26c] sm:$0xff] }
 0x276   : > { %v3892_v62 = vrot.slane %v3890_v10, 4  ;;  %4685 = vst [vmem:[#allocation4 + $0x23c] sm:$0xf] %v4599_v53  ;;  %v3896_v28 = vrot.slane %v3894_v56, 5  ;;  %v3899_v33 = vrot.slane %v3897_v21, 6  ;;  %v11655_v46 = vcombine.low %v4408_v51, %v4408_v51  ;;  %v4374_v21 = vpop.permute.xlu0 %4373 }
 0x277   : > { %v3891_v61 = vsel %vm15962_vm12, %v3882_v36, %v3890_v10  ;;  %v3906_v27 = vrot.slane %v3904_v47, 5  ;;  %v11656_v9 = vcombine.high %v4408_v51, %v4408_v51  ;;  %v3909_v0 = vrot.slane %v3907_v23, 6  ;;  %v13156_v47 = vld [vmem:[#allocation2 + $0x88] sm:$0xff]  }
 0x278   : > { %4044 = vst [vmem:[#allocation4 + $0x210] sm:$0xf] %v3891_v61  ;;  %v3900_v55 = vor.u32 %v3899_v33, %v3896_v28  ;;  %v3511_v29 = vsel %vm19261_vm0, %v13154_v37, %v3472_v24  ;;  %v4410_v43 = vsel %vm19280_vm8, %v13155_v26, %v4372_v3  ;;  %v4601_v16 = vrot.slane %v11655_v46, 6  ;;  %vm19283_vm8 = vmmov %vm19261_vm0 }
 0x279   : > { %v4604_v48 = vrot.slane %v11656_v9, 6  ;;  %v11598_v57 = vcombine.low %v3511_v29, %v3511_v29  ;;  %v11599_v31 = vcombine.high %v3511_v29, %v3511_v29  ;;  %v3910_v11 = vor.u32 %v3909_v0, %v3906_v27 }
 0x27a   : > { %v3901_v14 = vsel %vm15962_vm12, %v3892_v62, %v3900_v55  ;;  %v3902_v38 = vrot.slane %v3900_v55, 4  ;;  %v11657_v13 = vcombine.low %v4410_v43, %v4410_v43  ;;  %v4602_v54 = vsel %vm15985_vm13, %v4600_v12, %v4601_v16  ;;  %v3476_v12 = vpop.permute.xlu1 %3475  ;;  %v5041_v62 = vld [vmem:[#allocation4 + $0x258] sm:$0xff] }
 0x27b   : > { %4045 = vst [vmem:[#allocation4 + $0x224] sm:$0xf] %v3901_v14  ;;  %v4603_v6 = vrot.slane %v4601_v16, 4  ;;  %v4606_v32 = vrot.slane %v4604_v48, 4  ;;  %v3914_v24 = vshrl.u32 %v11598_v57, 16  ;;  %v3912_v22 = vrot.slane %v3910_v11, 4 }
 0x27c   : > { %v3911_v44 = vsel %vm15962_vm12, %v3902_v38, %v3910_v11  ;;  %4686 = vst [vmem:[#allocation4 + $0x250] sm:$0xf] %v4602_v54  ;;  %v3917_v40 = vshll.u32 %v11598_v57, 16  ;;  %v3924_v20 = vshrl.u32 %v11599_v31, 16  ;;  %v3927_v10 = vshll.u32 %v11599_v31, 16  ;;  %v4376_v54 = vpop.permute.xlu0 %4375 }
 0x27d   : > { %4046 = vst [vmem:[#allocation4 + $0x238] sm:$0xf] %v3911_v44  ;;  %v4605_v45 = vsel %vm15985_vm13, %v4603_v6, %v4604_v48  ;;  %v3916_v51 = vrot.slane %v3914_v24, 5  ;;  %v11658_v56 = vcombine.high %v4410_v43, %v4410_v43  ;;  %v4607_v53 = vrot.slane %v11657_v13, 6  ;;  %v12797_v43 = vld [vmem:[#allocation4 + $0x284] ss:$20 sps:$4 sm:$0xff]  }
 0x27e   : > { %4687 = vst [vmem:[#allocation4 + $0x264] sm:$0xf] %v4605_v45  ;;  %v3919_v5 = vrot.slane %v3917_v40, 6  ;;  %v3926_v36 = vrot.slane %v3924_v20, 5  ;;  %v3513_v3 = vsel %vm19281_vm6, %v13156_v47, %v3474_v15  ;;  %v3929_v28 = vrot.slane %v3927_v10, 6  ;;  %v3478_v6 = vpop.permute.xlu1 %3477  ;;  %v13157_v44 = vld [vmem:[#allocation2 + $0x98] sm:$0xff]   ;;  %vm19284_vm6 = vmmov %vm19261_vm0 }
 0x27f   : > { %v4610_v33 = vrot.slane %v11658_v56, 6  ;;  %v11600_v23 = vcombine.low %v3513_v3, %v3513_v3  ;;  %v11601_v61 = vcombine.high %v3513_v3, %v3513_v3  ;;  %v4608_v46 = vsel %vm15985_vm13, %v4606_v32, %v4607_v53  ;;  %v12802_v31 = vld [vmem:[#allocation2 + $0xa0] ss:$0 sps:$4 sm:$0x33]   ;;  %v13158_v40 = vld [vmem:[#allocation2 + $0x90] sm:$0xff]  }
 0x280   : > { %v3920_v27 = vor.u32 %v3919_v5, %v3916_v51  ;;  %v4609_v9 = vrot.slane %v4607_v53, 4  ;;  %v11740_v55 = vcombine.low %v5041_v62, %v5044_v19  ;;  %v3930_v0 = vor.u32 %v3929_v28, %v3926_v36  ;;  %4688 = vst [vmem:[#allocation4 + $0x278] sm:$0xf] %v4608_v46  ;;  %v13159_v53 = vld [vmem:[#allocation2 + $0x98] ss:$0 sps:$4 sm:$0x33]  }
 0x281   : > { %v4612_v37 = vrot.slane %v4610_v33, 4  ;;  %v3934_v29 = vshrl.u32 %v11600_v23, 16  ;;  %v3937_v26 = vshll.u32 %v11600_v23, 16  ;;  %v3944_v57 = vshrl.u32 %v11601_v61, 16  ;;  %v16151_v3 = vld [vmem:[#allocation2 + $0x88] sm:$0xf] }
 0x282   : > { %v3921_v15 = vsel %vm15962_vm12, %v3912_v22, %v3920_v27  ;;  %v3922_v16 = vrot.slane %v3920_v27, 4  ;;  %v4611_v48 = vsel %vm15985_vm13, %v4609_v9, %v4610_v33  ;;  %6011 = vmatmul.mubr.bf16.gmra.mxu1 %v11740_v55  ;;  %v3932_v14 = vrot.slane %v3930_v0, 4  ;;  %v5047_v9 = vld [vmem:[#allocation4 + $0x280] sm:$0xff]  ;;  %v5050_v55 = vld [vmem:[#allocation4 + $0x294] sm:$0xff] }
 0x283   : > { %4047 = vst [vmem:[#allocation4 + $0x24c] sm:$0xf] %v3921_v15  ;;  %4689 = vst [vmem:[#allocation4 + $0x28c] sm:$0xf] %v4611_v48  ;;  %v3936_v38 = vrot.slane %v3934_v29, 5  ;;  %v3939_v11 = vrot.slane %v3937_v26, 6  ;;  %6018 = vmatprep.mubr.bf16.mxu1 %v12797_v43  ;;  %v4412_v22 = vsel %vm19282_vm9, %v13157_v44, %v4374_v21  ;;  %v3515_v20 = vsel %vm19261_vm0, %v13158_v40, %v3476_v12 }
 0x284   : > { %v3947_v13 = vshll.u32 %v11601_v61, 16  ;;  %v3931_v32 = vsel %vm15962_vm12, %v3922_v16, %v3930_v0  ;;  %v3946_v24 = vrot.slane %v3944_v57, 5  ;;  %v11659_v51 = vcombine.low %v4412_v22, %v4412_v22  ;;  %v5003_v26 = vld [vmem:[#allocation4 + $0x15c] sm:$0xff] }
 0x285   : > { %4048 = vst [vmem:[#allocation4 + $0x260] sm:$0xf] %v3931_v32  ;;  %v3940_v19 = vor.u32 %v3939_v11, %v3936_v38  ;;  %v11660_v10 = vcombine.high %v4412_v22, %v4412_v22  ;;  %v11602_v56 = vcombine.low %v3515_v20, %v3515_v20  ;;  %v11603_v5 = vcombine.high %v3515_v20, %v3515_v20  ;;  %v12803_v44 = vld [vmem:[#allocation4 + $0x2ac] ss:$20 sps:$4 sm:$0xff]  }
 0x286   : > { %v3949_v45 = vrot.slane %v3947_v13, 6  ;;  %v4415_v36 = vsel %vm19283_vm8, %v12802_v31, %v4376_v54  ;;  %v3517_v47 = vsel %vm19284_vm6, %v13159_v53, %v3478_v6  ;;  %v4613_v12 = vrot.slane %v11659_v51, 6  ;;  %v5000_v13 = vld [vmem:[#allocation4 + $0x148] sm:$0xff]  ;;  %v16162_v54 = vpop.f32.mrf.mxu1 }
 0x287   : > { %v3941_v21 = vsel %vm15962_vm12, %v3932_v14, %v3940_v19  ;;  %v3942_v62 = vrot.slane %v3940_v19, 4  ;;  %v4616_v33 = vrot.slane %v11660_v10, 6  ;;  %v3954_v23 = vshrl.u32 %v11602_v56, 16  ;;  %v12810_v51 = vld [vmem:[#allocation4 + $0x174] ss:$20 sps:$4 sm:$0xff]  }
 0x288   : > { %v3950_v28 = vor.u32 %v3949_v45, %v3946_v24  ;;  %4049 = vst [vmem:[#allocation4 + $0x274] sm:$0xf] %v3941_v21  ;;  %v3957_v61 = vshll.u32 %v11602_v56, 16  ;;  %v3964_v27 = vshrl.u32 %v11603_v5, 16  ;;  %v4614_v0 = vsel %vm15985_vm13, %v4612_v37, %v4613_v12  ;;  %v4724_v37 = vld [vmem:[#allocation2 + $0x8c] sm:$0xf]  ;;  %v5894_v10 = vpop.f32.mrf.mxu1 }
 0x289   : > { %v4615_v29 = vrot.slane %v4613_v12, 4  ;;  %v4859_v43 = vrot.slane %v16151_v3, 7  ;;  %4690 = vst [vmem:[#allocation4 + $0x2a0] sm:$0xf] %v4614_v0  ;;  %v3956_v16 = vrot.slane %v3954_v23, 5  ;;  %v3967_v14 = vshll.u32 %v11603_v5, 16 }
 0x28a   : > { %v3951_v46 = vsel %vm15962_vm12, %v3942_v62, %v3950_v28  ;;  %v3952_v15 = vrot.slane %v3950_v28, 4  ;;  %v3959_v48 = vrot.slane %v3957_v61, 6  ;;  %v3966_v57 = vrot.slane %v3964_v27, 5  ;;  %v16168_v62 = vpop.f32.mrf.mxu1  ;;  %v4725_v28 = vld [vmem:[#allocation2 + $0x90] sm:$0xf] }
 0x28b   : > { %4050 = vst [vmem:[#allocation4 + $0x288] sm:$0xf] %v3951_v46  ;;  %v4617_v31 = vsel %vm15985_vm13, %v4615_v29, %v4616_v33  ;;  %v11661_v38 = vcombine.low %v4415_v36, %v4415_v36  ;;  %v11604_v11 = vcombine.low %v3517_v47, %v3517_v47  ;;  %v4618_v6 = vrot.slane %v4616_v33, 4  ;;  %v4726_v12 = vld [vmem:[#allocation2 + $0x94] sm:$0xf]  ;;  %v5009_v46 = vld [vmem:[#allocation4 + $0x184] sm:$0xff] }
 0x28c   : > { %4691 = vst [vmem:[#allocation4 + $0x2b4] sm:$0xf] %v4617_v31  ;;  %v3960_v32 = vor.u32 %v3959_v48, %v3956_v16  ;;  %v11745_v24 = vcombine.low %v5047_v9, %v5050_v55  ;;  %v11707_v22 = vcombine.low %v5000_v13, %v5003_v26  ;;  %v3969_v40 = vrot.slane %v3967_v14, 6  ;;  %v4727_v33 = vld [vmem:[#allocation2 + $0x98] sm:$0xf]  ;;  %v5897_v55 = vpop.f32.mrf.mxu1  ;;  %v5006_v48 = vld [vmem:[#allocation4 + $0x170] sm:$0xff] }
 0x28d   : > { %v4619_v20 = vrot.slane %v11661_v38, 6  ;;  %v3974_v19 = vshrl.u32 %v11604_v11, 16  ;;  %v3977_v45 = vshll.u32 %v11604_v11, 16  ;;  %v4862_v36 = vrot.slane %v4724_v37, 7  ;;  %v4728_v0 = vld [vmem:[#allocation2 + $0x9c] sm:$0xf] }
 0x28e   : > { %v3961_v56 = vsel %vm15962_vm12, %v3952_v15, %v3960_v32  ;;  %v3962_v5 = vrot.slane %v3960_v32, 4  ;;  %6019 = vmatmul.mubr.bf16.gmra.mxu1 %v11745_v24  ;;  %6132 = vmatmul.mubr.bf16.gmra.mxu0 %v11707_v22  ;;  %v3970_v53 = vor.u32 %v3969_v40, %v3966_v57  ;;  %v4860_v9 = vsel %vm15732_vm4, %v15957_v2, %v4859_v43  ;;  %v4729_v29 = vld [vmem:[#allocation2 + $0xa0] sm:$0x7]  ;;  %v16178_v57 = vpop.f32.mrf.mxu1  ;;  %v16180_v11 = vld [vmem:[#allocation3 + $0x9c] sm:$0xf] }
 0x28f   : > { %4051 = vst [vmem:[#allocation4 + $0x29c] sm:$0xf] %v3961_v56  ;;  %v4620_v47 = vsel %vm15985_vm13, %v4618_v6, %v4619_v20  ;;  %v3976_v3 = vrot.slane %v3974_v19, 5  ;;  %v3979_v21 = vrot.slane %v3977_v45, 6  ;;  %6026 = vmatprep.mubr.bf16.mxu1 %v12803_v44  ;;  %6139 = vmatprep.mubr.bf16.mxu0 %v12810_v51  ;;  %vm19285_vm9 = vcmask 519168   ;;  %19286 = vst [vmem:[#allocation22_spill] sm:$0xff] %v16180_v11 }
 0x290   : > { %4692 = vst [vmem:[#allocation4 + $0x2c8] sm:$0xf] %v4620_v47  ;;  %v3971_v23 = vsel %vm15962_vm12, %v3962_v5, %v3970_v53  ;;  %v3972_v61 = vrot.slane %v3970_v53, 4  ;;  %4944 = vst.msk [vmem:[#allocation4 + $0x254] sm:$0xf] %vm19285_vm9, %v4860_v9  ;;  %v4861_v26 = vrot.slane %v4859_v43, 4  ;;  %v11712_v37 = vcombine.low %v5006_v48, %v5009_v46  ;;  %v5902_v20 = vpop.f32.mrf.mxu1 }
 0x291   : > { %v3980_v27 = vor.u32 %v3979_v21, %v3976_v3  ;;  %4052 = vst [vmem:[#allocation4 + $0x2b0] sm:$0xf] %v3971_v23  ;;  %v4864_v15 = vrot.slane %v4862_v36, 4  ;;  %v4865_v31 = vrot.slane %v4725_v28, 7  ;;  %v4868_v14 = vrot.slane %v4726_v12, 7  ;;  %vm19287_vm0 = vmmov %vm19285_vm9  ;;  %v5015_v3 = vld [vmem:[#allocation4 + $0x1ac] sm:$0xff] }
 0x292   : > { %v4871_v38 = vrot.slane %v4727_v33, 7  ;;  %v12808_v2 = vld [vmem:[#allocation4 + $0x2a8] ss:$20 sps:$4 sm:$0xff]   ;;  %v12809_v13 = vld [vmem:[#allocation4 + $0x10] ss:$20 sps:$4 sm:$0xff]   ;;  %v4863_v6 = vsel %vm15732_vm4, %v4861_v26, %v4862_v36  ;;  %v4874_v43 = vrot.slane %v4728_v0, 7  ;;  %vm19288_vm8 = vmmov %vm19287_vm0  ;;  %v16194_v5 = vpop.f32.mrf.mxu1 }
 0x293   : > { %v3981_v16 = vsel %vm15962_vm12, %v3972_v61, %v3980_v27  ;;  %v4877_v32 = vrot.slane %v4729_v29, 7  ;;  %v12814_v24 = vld [vmem:[#allocation4 + $0x19c] ss:$20 sps:$4 sm:$0xff]   ;;  %v4866_v44 = vsel %vm15732_vm4, %v4864_v15, %v4865_v31  ;;  %4945 = vst.msk [vmem:[#allocation4 + $0x268] sm:$0xf] %vm19287_vm0, %v4863_v6  ;;  %v4867_v22 = vrot.slane %v4865_v31, 4  ;;  %vm19289_vm9 = vmmov %vm19287_vm0 }
 0x294   : > { %4053 = vst [vmem:[#allocation4 + $0x2c4] sm:$0xf] %v3981_v16  ;;  %v4870_v40 = vrot.slane %v4868_v14, 4  ;;  %v4873_v19 = vrot.slane %v4871_v38, 4  ;;  %4946 = vst.msk [vmem:[#allocation4 + $0x27c] sm:$0xf] %vm19288_vm8, %v4866_v44  ;;  %v5905_v21 = vpop.f32.mrf.mxu1 }
 0x295   : > { %v4876_v45 = vrot.slane %v4874_v43, 4  ;;  %v18662_v51 = vrot.slane %v16180_v11, 7  ;;  %v4869_v10 = vsel %vm15732_vm4, %v4867_v22, %v4868_v14  ;;  %v9599_v36 = vld [vmem:[#allocation3 + $0xa0] sm:$0x7]  ;;  %vm19290_vm8 = vmmov %vm19287_vm0  ;;  %v5012_v33 = vld [vmem:[#allocation4 + $0x198] sm:$0xff] }
 0x296   : > { %6027 = vmatmul.mubr.bf16.gmra.mxu1 %v12808_v2  ;;  %6140 = vmatmul.mubr.bf16.gmra.mxu0 %v11712_v37  ;;  %v4872_v56 = vsel %vm15732_vm4, %v4870_v40, %v4871_v38  ;;  %4947 = vst.msk [vmem:[#allocation4 + $0x290] sm:$0xf] %vm19289_vm9, %v4869_v10  ;;  %v4875_v53 = vsel %vm15732_vm4, %v4873_v19, %v4874_v43  ;;  %v9744_v12 = vrot.slane %v9599_v36, 7  ;;  %v12812_v23 = vld [vmem:[#allocation4 + $0x38] ss:$20 sps:$4 sm:$0xff]   ;;  %v16206_v27 = vpop.f32.mrf.mxu1  ;;  %vm19292_vm9 = vcmask 523264  }
 0x297   : > { %12416 = vmatprep.mubr.msk.bf16.mxu1 %vm19284_vm6, %v12809_v13  ;;  %6147 = vmatprep.mubr.bf16.mxu0 %v12814_v24  ;;  %4948 = vst.msk [vmem:[#allocation4 + $0x2a4] sm:$0xf] %vm19287_vm0, %v4872_v56  ;;  %v4878_v47 = vsel %vm15732_vm4, %v4876_v45, %v4877_v32  ;;  %vm19291_vm6 = vmmov %vm19287_vm0  ;;  %v9743_v28 = vrot.slane %v18662_v51, 4  ;;  %v11717_v61 = vcombine.low %v5012_v33, %v5015_v3  ;;  %v12813_v46 = vld [vmem:[#allocation4 + $0x60] ss:$20 sps:$4 sm:$0xff]   ;;  %v5024_v24 = vld [vmem:[#allocation4 + $0x1e8] sm:$0xff] }
 0x298   : > { %4949 = vst.msk [vmem:[#allocation4 + $0x2b8] sm:$0xf] %vm19290_vm8, %v4875_v53  ;;  %v12818_v9 = vld [vmem:[#allocation4 + $0x1c4] ss:$20 sps:$4 sm:$0xff]   ;;  %v5910_v0 = vpop.f32.mrf.mxu1  ;;  %vm19293_vm0 = vmmov %vm19292_vm9  ;;  %v12816_v31 = vld [vmem:[#allocation4 + $0x88] ss:$20 sps:$4 sm:$0xff]  }
 0x299   : > { %4950 = vst.msk [vmem:[#allocation4 + $0x2cc] sm:$0xf] %vm19291_vm6, %v4878_v47  ;;  %v9745_v55 = vsel %vm15732_vm4, %v9743_v28, %v9744_v12  ;;  %v5021_v15 = vld [vmem:[#allocation4 + $0x1d4] sm:$0xff]  ;;  %vm19294_vm8 = vmmov %vm19291_vm6  ;;  %v5018_v48 = vld [vmem:[#allocation4 + $0x1c0] sm:$0xff] }
 0x29a   : > { %v16214_v26 = vpop.f32.mrf.mxu1  ;;  %v11722_v14 = vcombine.low %v5018_v48, %v5021_v15  ;;  %v12817_v2 = vld [vmem:[#allocation4 + $0xb0] ss:$20 sps:$4 sm:$0xff]   ;;  %v12822_v13 = vld [vmem:[#allocation4 + $0x1ec] ss:$20 sps:$4 sm:$0xff]   ;;  %vm19295_vm6 = vmmov %vm19293_vm0 }
 0x29b   : > { %v5027_v43 = vld [vmem:[#allocation4 + $0x1fc] sm:$0xff]  ;;  %v12820_v44 = vld [vmem:[#allocation4 + $0xd8] ss:$20 sps:$4 sm:$0xff]   ;;  %v12826_v19 = vld [vmem:[#allocation4 + $0x214] ss:$20 sps:$4 sm:$0xff]  }
 0x29c   : > { %v5913_v16 = vpop.f32.mrf.mxu1  ;;  %v11727_v22 = vcombine.low %v5024_v24, %v5027_v43  ;;  %v12821_v20 = vld [vmem:[#allocation4 + $0x100] ss:$20 sps:$4 sm:$0xff]   ;;  %v5033_v56 = vld [vmem:[#allocation4 + $0x224] sm:$0xff]  ;;  %v12830_v12 = vld [vmem:[#allocation4 + $0x23c] ss:$20 sps:$4 sm:$0xff]  }
 0x29d   : > { %v5030_v53 = vld [vmem:[#allocation4 + $0x210] sm:$0xff]  ;;  %v12824_v47 = vld [vmem:[#allocation4 + $0x128] ss:$20 sps:$4 sm:$0xff]   ;;  %v12834_v48 = vld [vmem:[#allocation4 + $0x264] ss:$20 sps:$4 sm:$0xff]  }
 0x29e   : > { %12417 = vmatmul.mubr.msk.bf16.vlgmr.msra.gmra.mxu1 %vm19292_vm9, %v12812_v23  ;;  %6148 = vmatmul.mubr.bf16.gmra.mxu0 %v11717_v61  ;;  %v16217_v38 = vpop.f32.mrf.mxu1  ;;  %vm19296_vm9 = vmmov %vm19293_vm0  ;;  %v11732_v3 = vcombine.low %v5030_v53, %v5033_v56  ;;  %v12825_v28 = vld [vmem:[#allocation4 + $0x150] ss:$20 sps:$4 sm:$0xff]   ;;  %v12829_v16 = vld [vmem:[#allocation4 + $0x1a0] ss:$20 sps:$4 sm:$0xff]  }
 0x29f   : > { %12420 = vmatprep.mubr.msk.bf16.mxu1 %vm19293_vm0, %v12813_v46  ;;  %6155 = vmatprep.mubr.bf16.mxu0 %v12818_v9  ;;  %v5039_v61 = vld [vmem:[#allocation4 + $0x24c] sm:$0xff]  ;;  %v5036_v9 = vld [vmem:[#allocation4 + $0x238] sm:$0xff] }
 0x2a0   : > { %v16212_v29 = vld [vmem:[#allocation4 + $0x2b8] ss:$20 sps:$4 sm:$0xff]   ;;  %v5918_v37 = vpop.f32.mrf.mxu1  ;;  %v11737_v0 = vcombine.low %v5036_v9, %v5039_v61  ;;  %v12832_v43 = vld [vmem:[#allocation4 + $0x1c8] ss:$20 sps:$4 sm:$0xff]  }
 0x2a1   : > { %9817 = vst.msk [vmem:[#allocation4 + $0x2cc] sm:$0xf] %vm19294_vm8, %v9745_v55  ;;  %vm19297_vm8 = vmmov %vm19293_vm0  ;;  %v12828_v55 = vld [vmem:[#allocation4 + $0x178] ss:$20 sps:$4 sm:$0xff]   ;;  %v5042_v37 = vld [vmem:[#allocation4 + $0x260] sm:$0xff] }
 0x2a2   : > { %v16221_v6 = vpop.f32.mrf.mxu1  ;;  %v12836_v53 = vld [vmem:[#allocation4 + $0x218] ss:$20 sps:$4 sm:$0xff]  }
 0x2a4   : > { %v5921_v32 = vpop.f32.mrf.mxu1 }
 0x2a6   : > { %12421 = vmatmul.mubr.msk.bf16.gmra.mxu1 %vm19295_vm6, %v12816_v31  ;;  %6156 = vmatmul.mubr.bf16.gmra.mxu0 %v11722_v14  ;;  %vm19298_vm6 = vmmov %vm19293_vm0 }
 0x2a7   : > { %12424 = vmatprep.mubr.msk.bf16.mxu1 %vm19296_vm9, %v12817_v2  ;;  %6163 = vmatprep.mubr.bf16.mxu0 %v12822_v13  ;;  %v16223_v40 = vpop.f32.mrf.mxu1  ;;  %vm19299_vm9 = vmmov %vm19293_vm0  ;;  %v5045_v2 = vld [vmem:[#allocation4 + $0x274] sm:$0xff] }
 0x2a8   : > { %v11742_v32 = vcombine.low %v5042_v37, %v5045_v2 }
 0x2a9   : > { %v5926_v45 = vpop.f32.mrf.mxu1 }
 0x2aa   : > { %v5051_v45 = vld [vmem:[#allocation4 + $0x29c] sm:$0xff] }
 0x2ab   : > { %v16227_v10 = vpop.f32.mrf.mxu1 }
 0x2ad   : > { %v5929_v36 = vpop.f32.mrf.mxu1 }
 0x2ae   : > { %12425 = vmatmul.mubr.msk.bf16.gmra.mxu1 %vm19293_vm0, %v12820_v44  ;;  %6164 = vmatmul.mubr.bf16.gmra.mxu0 %v11727_v22  ;;  %v12833_v44 = vld [vmem:[#allocation4 + $0x1f0] ss:$20 sps:$4 sm:$0xff]   ;;  %v12838_v22 = vld [vmem:[#allocation4 + $0x28c] ss:$20 sps:$4 sm:$0xff]  }
 0x2af   : > { %12428 = vmatprep.mubr.msk.bf16.mxu1 %vm19297_vm8, %v12821_v20  ;;  %6171 = vmatprep.mubr.bf16.mxu0 %v12826_v19  ;;  %v16229_v21 = vpop.f32.mrf.mxu1  ;;  %vm19300_vm8 = vmmov %vm19293_vm0  ;;  %v5048_v36 = vld [vmem:[#allocation4 + $0x288] sm:$0xff] }
 0x2b1   : > { %v5934_v33 = vpop.f32.mrf.mxu1 }
 0x2b3   : > { %v16233_v23 = vpop.f32.mrf.mxu1 }
 0x2b5   : > { %v5937_v46 = vpop.f32.mrf.mxu1 }
 0x2b6   : > { %12429 = vmatmul.mubr.msk.bf16.gmra.mxu1 %vm19298_vm6, %v12824_v47  ;;  %6172 = vmatmul.mubr.bf16.gmra.mxu0 %v11732_v3  ;;  %vm19301_vm6 = vmmov %vm19293_vm0  ;;  %v11747_v47 = vcombine.low %v5048_v36, %v5051_v45  ;;  %v5057_v46 = vld [vmem:[#allocation4 + $0x2c4] sm:$0xff] }
 0x2b7   : > { %12432 = vmatprep.mubr.msk.bf16.mxu1 %vm19299_vm9, %v12825_v28  ;;  %6179 = vmatprep.mubr.bf16.mxu0 %v12830_v12  ;;  %vm19302_vm9 = vmmov %vm19293_vm0  ;;  %v12837_v28 = vld [vmem:[#allocation4 + $0x240] ss:$20 sps:$4 sm:$0xff]  }
 0x2b8   : > { %v16235_v15 = vpop.f32.mrf.mxu1  ;;  %v12842_v12 = vld [vmem:[#allocation4 + $0x2b4] ss:$20 sps:$4 sm:$0xff]  }
 0x2ba   : > { %v5942_v31 = vpop.f32.mrf.mxu1 }
 0x2bb   : > { %v12841_v31 = vld [vmem:[#allocation4 + $0x290] ss:$20 sps:$4 sm:$0xff]  }
 0x2bc   : > { %v16239_v14 = vpop.f32.mrf.mxu1 }
 0x2be   : > { %12433 = vmatmul.mubr.msk.bf16.gmra.mxu1 %vm19293_vm0, %v12828_v55  ;;  %6180 = vmatmul.mubr.bf16.gmra.mxu0 %v11737_v0  ;;  %v5945_v13 = vpop.f32.mrf.mxu1  ;;  %v5054_v55 = vld [vmem:[#allocation4 + $0x2b0] sm:$0xff]  ;;  %v12840_v0 = vld [vmem:[#allocation4 + $0x268] ss:$20 sps:$4 sm:$0xff]  }
 0x2bf   : > { %12436 = vmatprep.mubr.msk.bf16.mxu1 %vm19300_vm8, %v12829_v16  ;;  %6187 = vmatprep.mubr.bf16.mxu0 %v12834_v48  ;;  %vm19303_vm8 = vmmov %vm19293_vm0  ;;  %v11752_v16 = vcombine.low %v5054_v55, %v5057_v46 }
 0x2c1   : > { %v16241_v24 = vpop.f32.mrf.mxu1 }
 0x2c3   : > { %v5950_v20 = vpop.f32.mrf.mxu1 }
 0x2c5   : > { %v16245_v19 = vpop.f32.mrf.mxu1 }
 0x2c6   : > { %12437 = vmatmul.mubr.msk.bf16.gmra.mxu1 %vm19301_vm6, %v12832_v43  ;;  %6188 = vmatmul.mubr.bf16.gmra.mxu0 %v11742_v32  ;;  %vm19304_vm6 = vmmov %vm19293_vm0 }
 0x2c7   : > { %12440 = vmatprep.mubr.msk.bf16.mxu1 %vm19302_vm9, %v12833_v44  ;;  %6195 = vmatprep.mubr.bf16.mxu0 %v12838_v22  ;;  %v5953_v56 = vpop.f32.mrf.mxu1  ;;  %vm19305_vm9 = vmmov %vm19293_vm0 }
 0x2c9   : > { %v16247_v3 = vpop.f32.mrf.mxu1 }
 0x2cb   : > { %v5958_v33 = vpop.f32.mrf.mxu1 }
 0x2cd   : > { %v16251_v61 = vpop.f32.mrf.mxu1 }
 0x2ce   : > { %12441 = vmatmul.mubr.msk.bf16.gmra.mxu1 %vm19293_vm0, %v12836_v53  ;;  %6196 = vmatmul.mubr.bf16.gmra.mxu0 %v11747_v47  ;;  %v16274_v47 = vld [vmem:[%s18513_s4] ss:$0 sm:$0xff] }
 0x2cf   : > { %12444 = vmatprep.mubr.msk.bf16.mxu1 %vm19303_vm8, %v12837_v28  ;;  %6203 = vmatprep.mubr.bf16.mxu0 %v12842_v12  ;;  %v5961_v9 = vpop.f32.mrf.mxu1 }
 0x2d2   : > { %v16253_v48 = vpop.f32.mrf.mxu1 }
 0x2d4   : > { %v5966_v2 = vpop.f32.mrf.mxu1 }
 0x2d6   : > { %12445 = vmatmul.mubr.msk.bf16.gmra.mxu1 %vm19304_vm6, %v12840_v0  ;;  %6204 = vmatmul.mubr.bf16.gmra.mxu0 %v11752_v16  ;;  %v16257_v13 = vpop.f32.mrf.mxu1  ;;  %v5896_v16 = vadd.f32 %v16274_v47, %v16168_v62  ;;  %v5904_v62 = vadd.f32 %v16274_v47, %v16194_v5 }
 0x2d7   : > { %12448 = vmatprep.mubr.msk.bf16.mxu1 %vm19305_vm9, %v12841_v31 }
 0x2d8   : > { %v5969_v37 = vpop.f32.mrf.mxu1 }
 0x2da   : > { %v16259_v43 = vpop.f32.mrf.mxu1 }
 0x2db   : > { %v5973_v1 = vadd.f32 %v16274_v47, %v16259_v43  ;;  %v16408_v43 = vadd.f32 %v16274_v47, %v16257_v13  ;;  %v16423_v13 = vld [vmem:[#allocation3] sm:$0xff]  }
 0x2dc   : > { %v5974_v32 = vpop.f32.mrf.mxu1 }
 0x2de   : > { %12449 = vmatmul.mubr.msk.bf16.gmra.mxu1 %vm19293_vm0, %v16212_v29  ;;  %v16263_v44 = vpop.f32.mrf.mxu1  ;;  %v5893_v29 = vadd.f32 %v16274_v47, %v16162_v54  ;;  %v5901_v54 = vadd.f32 %v16274_v47, %v16178_v57  ;;  %v5909_v57 = vadd.f32 %v16274_v47, %v16206_v27  ;;  %v5920_v27 = vadd.f32 %v16274_v47, %v16221_v6 }
 0x2df   : > { %vm19323_vm0 = vnez %v19322_v39 }
 0x2e0   : > { %v5977_v22 = vpop.f32.mrf.mxu1 }
 0x2e2   : > { %v16265_v20 = vpop.f32.mrf.mxu1 }
 0x2e4   : > { %v5982_v45 = vpop.f32.mrf.mxu1 }
 0x2e6   : > { %v16267_v56 = vpop.f32.mrf.mxu1 }
 0x2e8   : > { %v5985_v36 = vpop.f32.mrf.mxu1 }
 0x2ea   : > { %v16269_v53 = vpop.f32.mrf.mxu1 }
 0x2ec   : > { %v5990_v28 = vpop.f32.mrf.mxu1 }
 0x2ee   : > { %v16276_v12 = vpop.f32.mrf.mxu1 }
 0x2f0   : > { %v6069_v33 = vpop.f32.mrf.mxu0  ;;  %v5993_v46 = vpop.f32.mrf.mxu1 }
 0x2f1   : > { %v16280_v9 = vadd.f32 %v6069_v33, %v5893_v29 }
 0x2f2   : > { %v6071_v55 = vpop.f32.mrf.mxu0  ;;  %v16282_v0 = vpop.f32.mrf.mxu1 }
 0x2f4   : > { %v6072_v31 = vpop.f32.mrf.mxu0  ;;  %v5998_v2 = vpop.f32.mrf.mxu1 }
 0x2f5   : > { %v16286_v37 = vadd.f32 %v6072_v31, %v5896_v16 }
 0x2f6   : > { %v6074_v32 = vpop.f32.mrf.mxu0  ;;  %v16288_v22 = vpop.f32.mrf.mxu1 }
 0x2f8   : > { %v6077_v45 = vpop.f32.mrf.mxu0  ;;  %v6001_v36 = vpop.f32.mrf.mxu1 }
 0x2f9   : > { %v16292_v28 = vadd.f32 %v6077_v45, %v5901_v54 }
 0x2fa   : > { %v6079_v29 = vpop.f32.mrf.mxu0  ;;  %v16294_v33 = vpop.f32.mrf.mxu1 }
 0x2fb   : > { %v5912_v29 = vadd.f32 %v16274_v47, %v16214_v26  ;;  %v5925_v26 = vadd.f32 %v16274_v47, %v16223_v40  ;;  %v5933_v40 = vadd.f32 %v16274_v47, %v16229_v21 }
 0x2fc   : > { %v6080_v46 = vpop.f32.mrf.mxu0  ;;  %v6006_v55 = vpop.f32.mrf.mxu1 }
 0x2fd   : > { %v16298_v16 = vadd.f32 %v6080_v46, %v5904_v62  ;;  %v5917_v62 = vadd.f32 %v16274_v47, %v16217_v38  ;;  %v12845_v38 = vld [vmem:[%s18514_s5 + $0x38] sm:$0xff]  }
 0x2fe   : > { %v6082_v31 = vpop.f32.mrf.mxu0  ;;  %v16300_v2 = vpop.f32.mrf.mxu1  ;;  %10726 = vmatpush1.bf16.msra.mxu0 %v12845_v38  ;;  %v5941_v38 = vadd.f32 %v16274_v47, %v16235_v15  ;;  %v5949_v15 = vadd.f32 %v16274_v47, %v16241_v24  ;;  %v12858_v24 = vld [vmem:[%s18514_s5 + $0x20] sm:$0xff]  }
 0x2ff   : > { %10727 = vmatprep.subr.bf16.mxu0 %v18949_v42 }
 0x300   : > { %v6085_v32 = vpop.f32.mrf.mxu0  ;;  %v6009_v36 = vpop.f32.mrf.mxu1 }
 0x301   : > { %v16304_v54 = vadd.f32 %v6085_v32, %v5909_v57 }
 0x302   : > { %v6087_v45 = vpop.f32.mrf.mxu0 }
 0x304   : > { %v6088_v51 = vpop.f32.mrf.mxu0 }
 0x305   : > { %v16308_v5 = vadd.f32 %v6088_v51, %v5912_v29 }
 0x306   : > { %v6090_v55 = vpop.f32.mrf.mxu0 }
 0x308   : > { %v6093_v46 = vpop.f32.mrf.mxu0 }
 0x309   : > { %v16312_v31 = vadd.f32 %v6093_v46, %v5917_v62 }
 0x30a   : > { %v6095_v60 = vpop.f32.mrf.mxu0 }
 0x30b   : > { %v5928_v60 = vadd.f32 %v16274_v47, %v16227_v10 }
 0x30c   : > { %v6096_v57 = vpop.f32.mrf.mxu0 }
 0x30d   : > { %v16316_v32 = vadd.f32 %v6096_v57, %v5920_v27 }
 0x30e   : > { %v6098_v36 = vpop.f32.mrf.mxu0 }
 0x30f   : > { %v5936_v36 = vadd.f32 %v16274_v47, %v16233_v23 }
 0x310   : > { %v6101_v51 = vpop.f32.mrf.mxu0 }
 0x311   : > { %v16320_v45 = vadd.f32 %v6101_v51, %v5925_v26 }
 0x312   : > { %v6103_v29 = vpop.f32.mrf.mxu0 }
 0x314   : > { %v6104_v6 = vpop.f32.mrf.mxu0 }
 0x315   : > { %v16328_v55 = vadd.f32 %v6104_v6, %v5928_v60  ;;  %v12846_v60 = vld [vmem:[%s18514_s5 + $0x30] sm:$0xff]  }
 0x316   : > { %v6106_v62 = vpop.f32.mrf.mxu0  ;;  %10728 = vmatpush1.bf16.msra.mxu0 %v12846_v60  ;;  %v12852_v60 = vld [vmem:[%s18514_s5 + $0x28] sm:$0xff]  }
 0x317   : > { %v5944_v62 = vadd.f32 %v16274_v47, %v16239_v14  ;;  %10729 = vmatprep.subr.bf16.mxu0 %v18949_v42 }
 0x318   : > { %v6109_v46 = vpop.f32.mrf.mxu0 }
 0x319   : > { %v16332_v27 = vadd.f32 %v6109_v46, %v5933_v40 }
 0x31a   : > { %v6111_v57 = vpop.f32.mrf.mxu0  ;;  %10730 = vmatpush1.bf16.msra.mxu0 %v12852_v60 }
 0x31b   : > { %10731 = vmatprep.subr.bf16.mxu0 %v18949_v42 }
 0x31c   : > { %v6112_v26 = vpop.f32.mrf.mxu0 }
 0x31d   : > { %v16336_v51 = vadd.f32 %v6112_v26, %v5936_v36 }
 0x31e   : > { %v6114_v10 = vpop.f32.mrf.mxu0  ;;  %10732 = vmatpush1.bf16.msra.mxu0 %v12858_v24 }
 0x31f   : > { %v5952_v10 = vadd.f32 %v16274_v47, %v16245_v19  ;;  %10733 = vmatprep.subr.bf16.mxu0 %v18949_v42 }
 0x320   : > { %v6117_v29 = vpop.f32.mrf.mxu0 }
 0x321   : > { %v16343_v21 = vadd.f32 %v6117_v29, %v5941_v38 }
 0x322   : > { %v6119_v6 = vpop.f32.mrf.mxu0 }
 0x324   : > { %v6120_v23 = vpop.f32.mrf.mxu0 }
 0x325   : > { %v16348_v40 = vadd.f32 %v6120_v23, %v5944_v62 }
 0x326   : > { %v6122_v46 = vpop.f32.mrf.mxu0 }
 0x327   : > { %v5957_v46 = vadd.f32 %v16274_v47, %v16247_v3 }
 0x328   : > { %v6125_v57 = vpop.f32.mrf.mxu0 }
 0x329   : > { %v16352_v36 = vadd.f32 %v6125_v57, %v5949_v15 }
 0x32a   : > { %v6127_v26 = vpop.f32.mrf.mxu0 }
 0x32c   : > { %v6128_v38 = vpop.f32.mrf.mxu0 }
 0x32d   : > { %v16356_v29 = vadd.f32 %v6128_v38, %v5952_v10 }
 0x32e   : > { %v6130_v14 = vpop.f32.mrf.mxu0 }
 0x32f   : > { %v5960_v14 = vadd.f32 %v16274_v47, %v16251_v61 }
 0x342   : > { %v16362_v6 = vpop.f32.mrf.mxu1 }
 0x344   : > { %v6014_v62 = vpop.f32.mrf.mxu1 }
 0x346   : > { %v16367_v19 = vpop.f32.mrf.mxu1 }
 0x348   : > { %v6017_v23 = vpop.f32.mrf.mxu1 }
 0x349   : > { %v12864_v23 = vld [vmem:[%s18514_s5 + $0x18] sm:$0xff]  }
 0x34a   : > { %10734 = vmatpush1.bf16.msra.mxu0 %v12864_v23 }
 0x34b   : > { %10735 = vmatprep.subr.bf16.mxu0 %v18949_v42 }
 0x34e   : > { %v16372_v15 = vpop.f32.mrf.mxu1  ;;  %v6133_v57 = vpop.f32.mrf.mxu0 }
 0x34f   : > { %19306 = vst [vmem:[#allocation37_spill] sm:$0xff] %v16372_v15  ;;  %v16374_v26 = vadd.f32 %v6133_v57, %v5957_v46 }
 0x350   : > { %v6022_v10 = vpop.f32.mrf.mxu1  ;;  %v6135_v38 = vpop.f32.mrf.mxu0 }
 0x352   : > { %v16378_v60 = vpop.f32.mrf.mxu1  ;;  %v6136_v24 = vpop.f32.mrf.mxu0 }
 0x353   : > { %19307 = vst [vmem:[#allocation34_spill] sm:$0xff] %v16378_v60  ;;  %v16380_v62 = vadd.f32 %v6136_v24, %v5960_v14 }
 0x354   : > { %v6025_v3 = vpop.f32.mrf.mxu1  ;;  %v6138_v18 = vpop.f32.mrf.mxu0 }
 0x356   : > { %v16385_v11 = vpop.f32.mrf.mxu1  ;;  %v16387_v46 = vpop.f32.mrf.mxu0 }
 0x357   : > { %19308 = vst [vmem:[#allocation40_spill] sm:$0xff] %v16385_v11 }
 0x358   : > { %v6030_v57 = vpop.f32.mrf.mxu1  ;;  %v6143_v61 = vpop.f32.mrf.mxu0 }
 0x359   : > { %v5976_v57 = vadd.f32 %v16274_v47, %v16263_v44 }
 0x35a   : > { %v16390_v10 = vpop.f32.mrf.mxu1  ;;  %v16392_v38 = vpop.f32.mrf.mxu0 }
 0x35b   : > { %19309 = vst [vmem:[#allocation39_spill] sm:$0xff] %v16390_v10 }
 0x35c   : > { %v6033_v14 = vpop.f32.mrf.mxu1  ;;  %v6146_v24 = vpop.f32.mrf.mxu0 }
 0x35d   : > { %v16404_v14 = vadd.f32 %v16274_v47, %v16253_v48  ;;  %v19312_v24 = vld [vmem:[#allocation49_spill] sm:$0xff] }
 0x35e   : > { %v12418_v3 = vpop.f32.mrf.mxu1  ;;  %v6149_v18 = vpop.f32.mrf.mxu0  ;;  %vm19313_vm8 = vnez %v19312_v24 }
 0x35f   : > { %v6255_v23 = vadd.f32 %v12418_v3, %v16292_v28  ;;  %v16397_v11 = vadd.f32 %v6149_v18, %v5973_v1  ;;  %v16412_v1 = vadd.f32 %v16274_v47, %v16265_v20  ;;  %v16416_v28 = vadd.f32 %v16274_v47, %v16267_v56 }
 0x360   : > { %v6246_v60 = vpop.f32.mrf.mxu1  ;;  %v6151_v15 = vpop.f32.mrf.mxu0  ;;  %v16427_v20 = vadd.f32 %v16274_v47, %v16269_v53  ;;  %v16431_v56 = vadd.f32 %v16274_v47, %v16276_v12  ;;  %v16435_v18 = vadd.f32 %v16274_v47, %v16282_v0  ;;  %v16446_v12 = vadd.f32 %v16274_v47, %v16294_v33 }
 0x361   : > { %19310 = vst [vmem:[#allocation36_spill] sm:$0xff] %v16397_v11  ;;  %v6391_v61 = vmax.f32 %v6255_v23, 0.0  ;;  %v6247_v10 = vadd.f32 %v6246_v60, %v16280_v9  ;;  %19311 = vst [vmem:[#allocation35_spill] sm:$0xff] %v16416_v28  ;;  %v19325_v28 = vld [vmem:[#allocation66_spill] sm:$0xff] }
 0x362   : > { %v12419_v44 = vpop.f32.mrf.mxu1  ;;  %v6152_v15 = vpop.f32.mrf.mxu0  ;;  %19315 = vst [vmem:[#allocation41_spill] sm:$0xff] %v16435_v18  ;;  %19319 = vst [vmem:[#allocation50_spill] sm:$0xff] %v16446_v12 }
 0x363   : > { %v6427_v9 = vsel %vm19313_vm8, %v6391_v61, 0.0  ;;  %v6389_v60 = vmax.f32 %v6247_v10, 0.0  ;;  %v6258_v48 = vadd.f32 %v12419_v44, %v16298_v16  ;;  %v16421_v3 = vadd.f32 %v6152_v15, %v5976_v57  ;;  %v19317_v57 = vld [vmem:[#allocation53_spill] sm:$0xff] }
 0x364   : > { %v12261_v23 = vpack.c.bf16 %v6427_v9, %v6427_v9  ;;  %v6249_v10 = vpop.f32.mrf.mxu1  ;;  %v6154_v61 = vpop.f32.mrf.mxu0  ;;  %v16439_v16 = vadd.f32 %v16274_v47, %v16288_v22  ;;  %vm19318_vm6 = vnez %v19317_v57  ;;  %vm19326_vm8 = vnez %v19325_v28 }
 0x365   : > { %19314 = vst [vmem:[#allocation42_spill] sm:$0xff] %v16421_v3  ;;  %v6425_v44 = vsel %vm19318_vm6, %v6389_v60, 0.0  ;;  %v6392_v53 = vmax.f32 %v6258_v48, 0.0  ;;  %v6250_v15 = vadd.f32 %v6249_v10, %v16286_v37  ;;  %v19320_v61 = vld [vmem:[#allocation56_spill] sm:$0xff]  ;;  %v7139_v60 = vshll.u32 %v16423_v13, 16 }
 0x366   : > { %19316 = vst [vmem:[#allocation38_spill] sm:$0xff] %v16439_v16  ;;  %v6589_v24 = vshrl.u32 %v12261_v23, 16  ;;  %v6592_v0 = vshll.u32 %v12261_v23, 16  ;;  %v12259_v50 = vpack.c.bf16 %v6425_v44, %v6425_v44  ;;  %v12422_v9 = vpop.f32.mrf.mxu1  ;;  %v16448_v3 = vpop.f32.mrf.mxu0  ;;  %vm19321_vm9 = vnez %v19320_v61  ;;  %v12869_v23 = vld [vmem:[%s18514_s5 + $0x10] sm:$0xff]  }
 0x367   : > { %v6428_v22 = vsel %vm19321_vm9, %v6392_v53, 0.0  ;;  %v6390_v16 = vmax.f32 %v6250_v15, 0.0  ;;  %v6271_v57 = vadd.f32 %v12422_v9, %v16312_v31  ;;  %10736 = vmatpush1.bf16.msra.mxu0 %v12869_v23 }
 0x368   : > { %v6591_v48 = vrot.slane %v6589_v24, 6  ;;  %v6594_v37 = vrot.slane %v6592_v0, 7  ;;  %v6570_v10 = vshrl.u32 %v12259_v50, 16  ;;  %v6573_v59 = vshll.u32 %v12259_v50, 16  ;;  %v6262_v33 = vpop.f32.mrf.mxu1  ;;  %v6159_v12 = vpop.f32.mrf.mxu0  ;;  %v6965_v50 = vld [vmem:[#allocation3 + $0x8] sm:$0xe]  ;;  %10737 = vmatprep.subr.bf16.mxu0 %v18949_v42 }
 0x369   : > { %v12262_v44 = vpack.c.bf16 %v6428_v22, %v6428_v22  ;;  %v6426_v61 = vsel %vm19323_vm0, %v6390_v16, 0.0  ;;  %v6395_v53 = vmax.f32 %v6271_v57, 0.0  ;;  %v6263_v15 = vadd.f32 %v6262_v33, %v16304_v54 }
 0x36a   : > { %v6595_v31 = vor.u32 %v6594_v37, %v6591_v48  ;;  %v6572_v9 = vrot.slane %v6570_v10, 6  ;;  %v6575_v11 = vrot.slane %v6573_v59, 7  ;;  %v12260_v24 = vpack.c.bf16 %v6426_v61, %v6426_v61  ;;  %v12423_v0 = vpop.f32.mrf.mxu1  ;;  %v16460_v18 = vpop.f32.mrf.mxu0  ;;  %v19327_v61 = vld [vmem:[#allocation70_spill] sm:$0xff] }
 0x36b   : > { %19324 = vst [vmem:[#allocation54_spill] sm:$0xff] %v16460_v18  ;;  %v6599_v12 = vshrl.u32 %v12262_v44, 16  ;;  %v6602_v17 = vshll.u32 %v12262_v44, 16  ;;  %v6431_v22 = vsel %vm19326_vm8, %v6395_v53, 0.0  ;;  %v6393_v35 = vmax.f32 %v6263_v15, 0.0  ;;  %v19329_v44 = vld [vmem:[#allocation8_spill] sm:$0xff] }
 0x36c   : > { %v6597_v39 = vrot.slane %v6595_v31, 4  ;;  %v6576_v16 = vor.u32 %v6575_v11, %v6572_v9  ;;  %v6579_v54 = vshrl.u32 %v12260_v24, 16  ;;  %v6582_v57 = vshll.u32 %v12260_v24, 16  ;;  %v6265_v48 = vpop.f32.mrf.mxu1  ;;  %v6162_v59 = vpop.f32.mrf.mxu0 }
 0x36d   : > { %v6601_v37 = vrot.slane %v6599_v12, 6  ;;  %v6604_v10 = vrot.slane %v6602_v17, 7  ;;  %v12265_v33 = vpack.c.bf16 %v6431_v22, %v6431_v22  ;;  %vm19328_vm6 = vnez %v19327_v61 }
 0x36e   : > { %v6429_v23 = vsel %vm19328_vm6, %v6393_v35, 0.0  ;;  %v6577_v18 = vrot.slane %v6576_v16, 4  ;;  %vm19330_vm9 = vnez %v19329_v44  ;;  %v6581_v53 = vrot.slane %v6579_v54, 6  ;;  %v12426_v34 = vpop.f32.mrf.mxu1  ;;  %v16469_v7 = vpop.f32.mrf.mxu0 }
 0x36f   : > { %v6966_v28 = vsel %vm19330_vm9, %v6576_v16, %v6965_v50  ;;  %v6584_v15 = vrot.slane %v6582_v57, 7  ;;  %v6605_v11 = vor.u32 %v6604_v10, %v6601_v37  ;;  %v6629_v9 = vshrl.u32 %v12265_v33, 16 }
 0x370   : > { %6967 = vst [vmem:[#allocation3 + $0x8] sm:$0xe] %v6966_v28  ;;  %v6632_v24 = vshll.u32 %v12265_v33, 16  ;;  %v12263_v59 = vpack.c.bf16 %v6429_v23, %v6429_v23  ;;  %v6274_v17 = vadd.f32 %v12423_v0, %v16316_v32  ;;  %v6266_v22 = vadd.f32 %v6265_v48, %v16308_v5  ;;  %v6278_v61 = vpop.f32.mrf.mxu1  ;;  %v6167_v44 = vpop.f32.mrf.mxu0 }
 0x371   : > { %v6585_v12 = vor.u32 %v6584_v15, %v6581_v53  ;;  %v6287_v35 = vadd.f32 %v12426_v34, %v16332_v27  ;;  %v6606_v50 = vsel %vm14573_vm1, %v6597_v39, %v6605_v11  ;;  %v6631_v16 = vrot.slane %v6629_v9, 6  ;;  %v19334_v9 = vld [vmem:[#allocation7_spill] sm:$0xff] }
 0x372   : > { %v7137_v54 = vshrl.u32 %v16423_v13, 16  ;;  %v7141_v57 = vrot.slane %v7139_v60, 1  ;;  %vm19331_vm0 = vcmask 519168   ;;  %v6609_v32 = vshrl.u32 %v12263_v59, 16  ;;  %v12427_v5 = vpop.f32.mrf.mxu1  ;;  %v16480_v48 = vpop.f32.mrf.mxu0 }
 0x373   : > { %6970 = vst.msk [vmem:[#allocation3 + $0x14] sm:$0xf] %vm19331_vm0, %v6606_v50  ;;  %v6586_v37 = vsel %vm14573_vm1, %v6577_v18, %v6585_v12  ;;  %v6587_v10 = vrot.slane %v6585_v12, 4  ;;  %v6612_v0 = vshll.u32 %v12263_v59, 16  ;;  %vm19332_vm8 = vmmov %vm19331_vm0  ;;  %v6634_v34 = vrot.slane %v6632_v24, 7  ;;  %v19336_v12 = vld [vmem:[#allocation5_spill] sm:$0xff] }
 0x374   : > { %6968 = vst.msk [vmem:[#allocation3 + $0xc] sm:$0xf] %vm19332_vm8, %v6586_v37  ;;  %v6396_v27 = vmax.f32 %v6274_v17, 0.0  ;;  %v6394_v39 = vmax.f32 %v6266_v22, 0.0  ;;  %v6399_v33 = vmax.f32 %v6287_v35, 0.0  ;;  %v6611_v60 = vrot.slane %v6609_v32, 6  ;;  %v6281_v18 = vpop.f32.mrf.mxu1  ;;  %v6170_v53 = vpop.f32.mrf.mxu0  ;;  %vm19333_vm6 = vmmov %vm19331_vm0 }
 0x375   : > { %v6596_v13 = vsel %vm14573_vm1, %v6587_v10, %v6595_v31  ;;  %v6614_v23 = vrot.slane %v6612_v0, 7  ;;  %v6279_v28 = vadd.f32 %v6278_v61, %v16320_v45  ;;  %v6607_v15 = vrot.slane %v6605_v11, 4  ;;  %v19338_v17 = vld [vmem:[#allocation9_spill] sm:$0xff] }
 0x376   : > { %6969 = vst.msk [vmem:[#allocation3 + $0x10] sm:$0xf] %vm19333_vm6, %v6596_v13  ;;  %vm19335_vm9 = vnez %v19334_v9  ;;  %vm19337_vm0 = vnez %v19336_v12  ;;  %vm19339_vm8 = vnez %v19338_v17  ;;  %v12430_v37 = vpop.f32.mrf.mxu1  ;;  %v16493_v45 = vpop.f32.mrf.mxu0  ;;  %v16497_v11 = vadd.f32 %v16274_v47, %v16300_v2 }
 0x377   : > { %v6432_v59 = vsel %vm19335_vm9, %v6396_v27, 0.0  ;;  %v6430_v24 = vsel %vm19337_vm0, %v6394_v39, 0.0  ;;  %v6435_v22 = vsel %vm19339_vm8, %v6399_v33, 0.0  ;;  %v6615_v35 = vor.u32 %v6614_v23, %v6611_v60  ;;  %vm19342_vm0 = vmmov %vm19333_vm6 }
 0x378   : > { %v12266_v31 = vpack.c.bf16 %v6432_v59, %v6432_v59  ;;  %v12264_v44 = vpack.c.bf16 %v6430_v24, %v6430_v24  ;;  %v12269_v50 = vpack.c.bf16 %v6435_v22, %v6435_v22  ;;  %v6635_v61 = vor.u32 %v6634_v34, %v6631_v16  ;;  %v6175_v13 = vpop.f32.mrf.mxu0  ;;  %v19340_v16 = vld [vmem:[#allocation6_spill] sm:$0xff] }
 0x379   : > { %v6397_v10 = vmax.f32 %v6279_v28, 0.0  ;;  %v6290_v32 = vadd.f32 %v12427_v5, %v16336_v51  ;;  %v6616_v0 = vsel %vm14573_vm1, %v6607_v15, %v6615_v35  ;;  %v6282_v33 = vadd.f32 %v6281_v18, %v16328_v55  ;;  %v16506_v51 = vpop.f32.mrf.mxu1 }
 0x37a   : > { %v6639_v27 = vshrl.u32 %v12266_v31, 16  ;;  %v6642_v39 = vshll.u32 %v12266_v31, 16  ;;  %6971 = vst.msk [vmem:[#allocation3 + $0x18] sm:$0xf] %vm19333_vm6, %v6616_v0  ;;  %v6619_v60 = vshrl.u32 %v12264_v44, 16  ;;  %v6622_v23 = vshll.u32 %v12264_v44, 16  ;;  %v16510_v28 = vpop.f32.mrf.mxu0  ;;  %vm19344_vm6 = vmmov %vm19342_vm0 }
 0x37b   : > { %v6669_v53 = vshrl.u32 %v12269_v50, 16  ;;  %v6672_v9 = vshll.u32 %v12269_v50, 16  ;;  %vm19341_vm9 = vnez %v19340_v16  ;;  %v16508_v5 = vor.u32 %v7141_v57, %v7137_v54  ;;  %v16517_v57 = vld [vmem:[#allocation3 + $0x14] sm:$0xf] }
 0x37c   : > { %v6641_v2 = vrot.slane %v6639_v27, 6  ;;  %v6644_v59 = vrot.slane %v6642_v39, 7  ;;  %v6433_v34 = vsel %vm19341_vm9, %v6397_v10, 0.0  ;;  %v6621_v15 = vrot.slane %v6619_v60, 6  ;;  %v6178_v44 = vpop.f32.mrf.mxu0 }
 0x37d   : > { %v6624_v55 = vrot.slane %v6622_v23, 7  ;;  %v6671_v18 = vrot.slane %v6669_v53, 6  ;;  %v6674_v12 = vrot.slane %v6672_v9, 7  ;;  %v6637_v24 = vrot.slane %v6635_v61, 4  ;;  %v12849_v39 = vld [vmem:[#allocation3 + $0x10] sm:$0xff]   ;;  %v12431_v53 = vpop.f32.mrf.mxu1 }
 0x37e   : > { %v6645_v17 = vor.u32 %v6644_v59, %v6641_v2  ;;  %v12267_v22 = vpack.c.bf16 %v6433_v34, %v6433_v34  ;;  %v6400_v31 = vmax.f32 %v6290_v32, 0.0  ;;  %v6617_v50 = vrot.slane %v6615_v35, 4  ;;  %v16521_v32 = vpop.f32.mrf.mxu0  ;;  %7665 = vrot.lane.b32.xlu0 %v12849_v39, %s13243_s12 }
 0x37f   : > { %v6625_v0 = vor.u32 %v6624_v55, %v6621_v15  ;;  %v6398_v27 = vmax.f32 %v6282_v33, 0.0  ;;  %v6303_v10 = vadd.f32 %v12430_v37, %v16352_v36  ;;  %v16515_v54 = vadd.f32 %v16274_v47, %v16362_v6  ;;  %v12875_v15 = vld [vmem:[%s18514_s5 + $0x8] sm:$0xff]  }
 0x380   : > { %v6646_v13 = vsel %vm14573_vm1, %v6637_v24, %v6645_v17  ;;  %v6649_v60 = vshrl.u32 %v12267_v22, 16  ;;  %v6652_v23 = vshll.u32 %v12267_v22, 16  ;;  %v16526_v37 = vor.u32 %v6674_v12, %v6671_v18  ;;  %v6183_v34 = vpop.f32.mrf.mxu0  ;;  %10738 = vmatpush1.bf16.msra.mxu0 %v12875_v15 }
 0x381   : > { %6974 = vst.msk [vmem:[#allocation3 + $0x24] sm:$0xf] %vm19342_vm0, %v6646_v13  ;;  %v6626_v36 = vsel %vm14573_vm1, %v6617_v50, %v6625_v0  ;;  %v6627_v35 = vrot.slane %v6625_v0, 4  ;;  %vm19343_vm8 = vnez %v18948_v63  ;;  %v16531_v33 = vld [vmem:[#allocation3 + $0x18] sm:$0xf]  ;;  %vm19345_vm9 = vnez %v18958_v25  ;;  %v6297_v25 = vpop.f32.mrf.mxu1  ;;  %10739 = vmatprep.subr.bf16.mxu0 %v18949_v42 }
 0x382   : > { %v6436_v6 = vsel %vm19343_vm8, %v6400_v31, 0.0  ;;  %6972 = vst.msk [vmem:[#allocation3 + $0x1c] sm:$0xf] %vm19344_vm6, %v6626_v36  ;;  %v6651_v9 = vrot.slane %v6649_v60, 6  ;;  %v6654_v2 = vrot.slane %v6652_v23, 7  ;;  %v6434_v16 = vsel %vm19345_vm9, %v6398_v27, 0.0  ;;  %v16543_v50 = vpop.f32.mrf.mxu0  ;;  %vm19347_vm6 = vmmov %vm19342_vm0 }
 0x383   : > { %v12270_v59 = vpack.c.bf16 %v6436_v6, %v6436_v6  ;;  %v18683_v63 = vrot.slane %v16517_v57, 7  ;;  %v6636_v55 = vsel %vm14573_vm1, %v6627_v35, %v6635_v61  ;;  %v12268_v18 = vpack.c.bf16 %v6434_v16, %v6434_v16  ;;  %v12882_v36 = vld [vmem:[%s18514_s5] sm:$0xff]   ;;  %v12434_v15 = vpop.f32.mrf.mxu1  ;;  %vm19348_vm9 = vmmov %vm19342_vm0 }
 0x384   : > { %v6403_v12 = vmax.f32 %v6303_v10, 0.0  ;;  %v6647_v24 = vrot.slane %v6645_v17, 4  ;;  %6973 = vst.msk [vmem:[#allocation3 + $0x20] sm:$0xf] %vm19342_vm0, %v6636_v55  ;;  %v6655_v22 = vor.u32 %v6654_v2, %v6651_v9  ;;  %v6677_v0 = vrot.slane %v16526_v37, 4  ;;  %v6186_v23 = vpop.f32.mrf.mxu0  ;;  %10740 = vmatpush1.bf16.msra.mxu0 %v12882_v36 }
 0x385   : > { %v6679_v31 = vshrl.u32 %v12270_v59, 16  ;;  %v6682_v44 = vshll.u32 %v12270_v59, 16  ;;  %v6659_v27 = vshrl.u32 %v12268_v18, 16  ;;  %v6662_v39 = vshll.u32 %v12268_v18, 16  ;;  %10741 = vmatprep.subr.bf16.mxu0 %v18949_v42  ;;  %v16592_v36 = vpop.f32.mrf.mxu1 }
 0x386   : > { %vm19346_vm8 = vnez %v18965_v41  ;;  %v18682_v61 = vrot.slane %v16531_v33, 7  ;;  %v6656_v17 = vsel %vm14573_vm1, %v6647_v24, %v6655_v22  ;;  %v6295_v9 = vadd.f32 %v16506_v51, %v16343_v21  ;;  %v16565_v55 = vpop.f32.mrf.mxu0  ;;  %v7521_v21 = vld [vmem:[#allocation3 + $0xc] sm:$0xf] }
 0x387   : > { %v6439_v13 = vsel %vm19346_vm8, %v6403_v12, 0.0  ;;  %v6681_v10 = vrot.slane %v6679_v31, 6  ;;  %v6684_v60 = vrot.slane %v6682_v44, 7  ;;  %6975 = vst.msk [vmem:[#allocation3 + $0x28] sm:$0xf] %vm19347_vm6, %v6656_v17  ;;  %v6661_v35 = vrot.slane %v6659_v27, 6  ;;  %vm19349_vm8 = vmmov %vm19342_vm0 }
 0x388   : > { %v6664_v6 = vrot.slane %v6662_v39, 7  ;;  %v12273_v41 = vpack.c.bf16 %v6439_v13, %v6439_v13  ;;  %v6657_v2 = vrot.slane %v6655_v22, 4  ;;  %v6306_v16 = vadd.f32 %v12431_v53, %v16356_v29  ;;  %v16569_v22 = vld [vmem:[#allocation3 + $0x10] sm:$0x8]  ;;  %v6191_v27 = vpop.f32.mrf.mxu0 }
 0x389   : > { %v16558_v59 = vor.u32 %v6684_v60, %v6681_v10  ;;  %v16563_v34 = vadd.f32 %v16469_v7, %v16427_v20  ;;  %v9566_v18 = vld [vmem:[#allocation3 + $0x1c] sm:$0xf]  ;;  %v6298_v44 = vadd.f32 %v6297_v25, %v16348_v40  ;;  %v9644_v7 = vrot.slane %v18682_v61, 4  ;;  %v16580_v40 = vld [vmem:[#allocation3 + $0x24] sm:$0xf] }
 0x38a   : > { %v6665_v12 = vor.u32 %v6664_v6, %v6661_v35  ;;  %v6709_v24 = vshrl.u32 %v12273_v41, 16  ;;  %v6712_v31 = vshll.u32 %v12273_v41, 16  ;;  %v12853_v51 = vld [vmem:[#allocation3 + $0x18] sm:$0xff]   ;;  %v9645_v29 = vrot.slane %v9566_v18, 7  ;;  %v7555_v60 = vld [vmem:[#allocation3 + $0x8] sm:$0xe]  ;;  %v16594_v35 = vpop.f32.mrf.mxu0 }
 0x38b   : > { %v6686_v20 = vsel %vm14573_vm1, %v6677_v0, %v16558_v59  ;;  %v6401_v53 = vmax.f32 %v6295_v9, 0.0  ;;  %v16578_v39 = vadd.f32 %v16274_v47, %v16367_v19  ;;  %v16582_v25 = vld [vmem:[#allocation3 + $0x20] sm:$0xf]  ;;  %7667 = vrot.lane.b32.xlu0 %v12853_v51, %s13243_s12  ;;  %vm19350_vm6 = vnez %v18973_v49 }
 0x38c   : > { %6978 = vst.msk [vmem:[#allocation3 + $0x34] sm:$0xf] %vm19348_vm9, %v6686_v20  ;;  %v6666_v13 = vsel %vm14573_vm1, %v6657_v2, %v6665_v12  ;;  %v6667_v17 = vrot.slane %v6665_v12, 4  ;;  %v6711_v10 = vrot.slane %v6709_v24, 6  ;;  %v9646_v0 = vsel %vm15732_vm4, %v9644_v7, %v9645_v29  ;;  %v12855_v18 = vld [vmem:[#allocation3 + $0x20] sm:$0xff]   ;;  %vm19351_vm9 = vmmov %vm19342_vm0  ;;  %v6194_v7 = vpop.f32.mrf.mxu0  ;;  %v12435_v20 = vpop.f32.mrf.mxu1 }
 0x38d   : > { %v9647_v23 = vrot.slane %v9645_v29, 4  ;;  %v18681_v47 = vrot.slane %v16582_v25, 7  ;;  %6976 = vst.msk [vmem:[#allocation3 + $0x2c] sm:$0xf] %vm19342_vm0, %v6666_v13  ;;  %v6714_v19 = vrot.slane %v6712_v31, 7  ;;  %v6437_v41 = vsel %vm19350_vm6, %v6401_v53, 0.0  ;;  %vm19356_vm6 = vmmov %vm19342_vm0 }
 0x38e   : > { %9784 = vst.msk [vmem:[#allocation4 + $0x38] sm:$0xf] %vm19349_vm8, %v9646_v0  ;;  %v6676_v6 = vsel %vm14573_vm1, %v6667_v17, %v16526_v37  ;;  %v6404_v9 = vmax.f32 %v6306_v16, 0.0  ;;  %v6402_v2 = vmax.f32 %v6298_v44, 0.0  ;;  %v6142_v12 = vadd.f32 %v16387_v46, %v16404_v14  ;;  %v16622_v53 = vpop.f32.mrf.mxu0  ;;  %v16624_v27 = vld [vmem:[#allocation3 + $0x28] sm:$0xf]  ;;  %vm19355_vm8 = vmmov %vm19342_vm0 }
 0x38f   : > { %v9649_v24 = vsel %vm15732_vm4, %v9647_v23, %v18681_v47  ;;  %6977 = vst.msk [vmem:[#allocation3 + $0x30] sm:$0xf] %vm19351_vm9, %v6676_v6  ;;  %v12271_v31 = vpack.c.bf16 %v6437_v41, %v6437_v41  ;;  %v11919_v51 = vcombine.low %v7555_v60, %v7521_v21  ;;  %v16611_v49 = vrot.slane %v18683_v63, 4  ;;  %7669 = vrot.lane.b32.xlu0 %v12855_v18, %s13243_s12  ;;  %v16630_v41 = vld [vmem:[#allocation3 + $0x8] sm:$0xff]   ;;  %vm19357_vm9 = vmmov %vm19342_vm0  ;;  %v19368_v61 = vld [vmem:[#allocation41_spill] sm:$0xff] }
 0x390   : > { %9785 = vst.msk [vmem:[#allocation4 + $0x4c] sm:$0xf] %vm19342_vm0, %v9649_v24  ;;  %v6440_v46 = vsel %vm14677_vm14, %v6404_v9, 0.0  ;;  %v6438_v14 = vsel %vm14714_vm10, %v6402_v2, 0.0  ;;  %v18677_v16 = vrot.slane %v16580_v40, 7  ;;  %v6715_v13 = vor.u32 %v6714_v19, %v6711_v10  ;;  %v6199_v9 = vpop.f32.mrf.mxu0  ;;  %vm19354_vm10 = vmmov %vm19342_vm0 }
 0x391   : > { %v6689_v44 = vshrl.u32 %v12271_v31, 16  ;;  %v6692_v21 = vshll.u32 %v12271_v31, 16  ;;  %v12274_v29 = vpack.c.bf16 %v6440_v46, %v6440_v46  ;;  %7663 = vrot.lane.b32.xlu1 %v11919_v51, %s13243_s12  ;;  %v12272_v30 = vpack.c.bf16 %v6438_v14, %v6438_v14 }
 0x392   : > { %v6319_v17 = vadd.f32 %v12434_v15, %v6142_v12  ;;  %v16628_v58 = vadd.f32 %v16480_v48, %v16431_v56  ;;  %v6687_v2 = vrot.slane %v16558_v59, 4  ;;  %v18679_v15 = vrot.slane %v16624_v27, 7  ;;  %v6313_v48 = vpop.f32.mrf.mxu1  ;;  %v16636_v7 = vpop.f32.mrf.mxu0 }
 0x393   : > { %v6691_v60 = vrot.slane %v6689_v44, 6  ;;  %v6694_v0 = vrot.slane %v6692_v21, 7  ;;  %v6719_v23 = vshrl.u32 %v12274_v29, 16  ;;  %v6722_v6 = vshll.u32 %v12274_v29, 16  ;;  %v16633_v18 = vld [vmem:[#allocation3 + $0x34] sm:$0xf] }
 0x394   : > { %19352 = vst [vmem:[#allocation43_spill] sm:$0xff] %v16633_v18  ;;  %v6699_v24 = vshrl.u32 %v12272_v30, 16  ;;  %v6702_v31 = vshll.u32 %v12272_v30, 16  ;;  %v6407_v10 = vmax.f32 %v6319_v17, 0.0  ;;  %v12857_v51 = vld [vmem:[#allocation3 + $0x28] sm:$0xff]   ;;  %v6717_v46 = vrot.slane %v6715_v13, 4 }
 0x395   : > { %v6695_v19 = vor.u32 %v6694_v0, %v6691_v60  ;;  %v6721_v12 = vrot.slane %v6719_v23, 6  ;;  %v6724_v56 = vrot.slane %v6722_v6, 7  ;;  %vm19353_vm14 = vnez %v19002_v52  ;;  %v16643_v30 = vld [vmem:[#allocation3 + $0x2c] sm:$0xf]  ;;  %7671 = vrot.lane.b32.xlu0 %v12857_v51, %s13243_s12  ;;  %v6202_v0 = vpop.f32.mrf.mxu0 }
 0x396   : > { %v6701_v14 = vrot.slane %v6699_v24, 6  ;;  %v6704_v44 = vrot.slane %v6702_v31, 7  ;;  %v6443_v59 = vsel %vm19353_vm14, %v6407_v10, 0.0  ;;  %v6145_v21 = vadd.f32 %v16392_v38, %v16408_v43  ;;  %v12438_v31 = vpop.f32.mrf.mxu1  ;;  %v12860_v10 = vld [vmem:[#allocation3 + $0x30] sm:$0xff]   ;;  %v19360_v0 = vld [vmem:[#allocation10_spill] sm:$0xff] }
 0x397   : > { %v18678_v29 = vrot.slane %v16633_v18, 7  ;;  %v6696_v17 = vsel %vm14573_vm1, %v6687_v2, %v6695_v19  ;;  %v6697_v60 = vrot.slane %v6695_v19, 4  ;;  %v16649_v23 = vor.u32 %v6724_v56, %v6721_v12  ;;  %v16657_v19 = vpop.f32.mrf.mxu0  ;;  %v16716_v18 = vld [vmem:[#allocation3 + $0x18] sm:$0xff]  }
 0x398   : > { %6979 = vst.msk [vmem:[#allocation3 + $0x38] sm:$0xf] %vm19354_vm10, %v6696_v17  ;;  %v6705_v52 = vor.u32 %v6704_v44, %v6701_v14  ;;  %v12277_v6 = vpack.c.bf16 %v6443_v59, %v6443_v59  ;;  %v6311_v38 = vadd.f32 %v16592_v36, %v16374_v26  ;;  %v6158_v43 = vadd.f32 %v16448_v3, %v16412_v1  ;;  %v19358_v17 = vld [vmem:[#allocation14_spill] sm:$0xff] }
 0x399   : > { %v6322_v9 = vadd.f32 %v12435_v20, %v6145_v21  ;;  %v7144_v24 = vshll.u32 %v16630_v41, 16  ;;  %v6314_v2 = vadd.f32 %v6313_v48, %v16380_v62  ;;  %v18680_v12 = vrot.slane %v16643_v30, 7  ;;  %7673 = vrot.lane.b32.xlu0 %v12860_v10, %s13243_s12  ;;  %v6207_v48 = vpop.f32.mrf.mxu0 }
 0x39a   : > { %v6726_v56 = vsel %vm14573_vm1, %v6717_v46, %v16649_v23  ;;  %v6706_v26 = vsel %vm14573_vm1, %v6697_v60, %v6705_v52  ;;  %v6707_v36 = vrot.slane %v6705_v52, 4  ;;  %v6749_v1 = vshrl.u32 %v12277_v6, 16 }
 0x39b   : > { %6982 = vst.msk [vmem:[#allocation3 + $0x44] sm:$0xf] %vm19355_vm8, %v6726_v56  ;;  %v6752_v62 = vshll.u32 %v12277_v6, 16  ;;  %v6405_v3 = vmax.f32 %v6311_v38, 0.0  ;;  %v6408_v20 = vmax.f32 %v6322_v9, 0.0  ;;  %v7146_v14 = vrot.slane %v7144_v24, 1  ;;  %v6326_v6 = vpop.f32.mrf.mxu1  ;;  %v16675_v38 = vpop.f32.mrf.mxu0  ;;  %vm19371_vm8 = vmmov %vm19356_vm6 }
 0x39c   : > { %6980 = vst.msk [vmem:[#allocation3 + $0x3c] sm:$0xf] %vm19356_vm6, %v6706_v26  ;;  %v6716_v51 = vsel %vm14573_vm1, %v6707_v36, %v6715_v13  ;;  %v6406_v46 = vmax.f32 %v6314_v2, 0.0  ;;  %v6335_v44 = vadd.f32 %v12438_v31, %v6158_v43  ;;  %v6751_v59 = vrot.slane %v6749_v1, 6  ;;  %v16689_v56 = vld [vmem:[#allocation3 + $0x30] sm:$0xf] }
 0x39d   : > { %6981 = vst.msk [vmem:[#allocation3 + $0x40] sm:$0xf] %vm19357_vm9, %v6716_v51  ;;  %v6754_v21 = vrot.slane %v6752_v62, 7  ;;  %vm19359_vm0 = vnez %v19358_v17  ;;  %vm19361_vm14 = vnez %v19360_v0  ;;  %vm19362_vm10 = vsmask.f32 7424  ;;  %v19364_v26 = vld [vmem:[#allocation35_spill] sm:$0xff]  ;;  %vm19372_vm9 = vmmov %vm19356_vm6 }
 0x39e   : > { %v6441_v60 = vsel %vm19359_vm0, %v6405_v3, 0.0  ;;  %v6444_v52 = vsel %vm19361_vm14, %v6408_v20, 0.0  ;;  %v7147_v13 = vsel %vm19362_vm10, %v16508_v5, %v7146_v14  ;;  %v6442_v43 = vsel %vm14833_vm11, %v6406_v46, 0.0  ;;  %v19365_v36 = vld [vmem:[#allocation54_spill] sm:$0xff]  ;;  %v6210_v5 = vpop.f32.mrf.mxu0  ;;  %vm19373_vm0 = vmmov %vm19356_vm6 }
 0x39f   : > { %v12275_v9 = vpack.c.bf16 %v6441_v60, %v6441_v60  ;;  %v12278_v10 = vpack.c.bf16 %v6444_v52, %v6444_v52  ;;  %v16683_v2 = vrot.slane %v18677_v16, 4  ;;  %v16687_v31 = vrot.slane %v18679_v15, 4  ;;  %7284 = vrot.lane.b32.xlu1 %v7147_v13, %s13243_s12  ;;  %v12439_v52 = vpop.f32.mrf.mxu1  ;;  %v19366_v16 = vld [vmem:[#allocation16_spill] sm:$0xff]  ;;  %vm19374_vm14 = vmmov %vm19362_vm10 }
 0x3a0   : > { %v6161_v1 = vadd.f32 %v19365_v36, %v19364_v26  ;;  %v12276_v62 = vpack.c.bf16 %v6442_v43, %v6442_v43  ;;  %v6411_v51 = vmax.f32 %v6335_v44, 0.0  ;;  %v6755_v46 = vor.u32 %v6754_v21, %v6751_v59  ;;  %v12854_v36 = vld [vmem:[#allocation3 + $0x10] sm:$0xff]   ;;  %v16707_v15 = vld [vmem:[#allocation3 + $0x38] sm:$0xf] }
 0x3a1   : > { %v6729_v3 = vshrl.u32 %v12275_v9, 16  ;;  %v6732_v20 = vshll.u32 %v12275_v9, 16  ;;  %v6759_v48 = vshrl.u32 %v12278_v10, 16  ;;  %v6762_v17 = vshll.u32 %v12278_v10, 16  ;;  %v6329_v37 = vpop.f32.mrf.mxu1 }
 0x3a2   : > { %v6739_v60 = vshrl.u32 %v12276_v62, 16  ;;  %v6742_v0 = vshll.u32 %v12276_v62, 16  ;;  %v16696_v24 = vrot.slane %v18678_v29, 4  ;;  %v16700_v26 = vrot.slane %v18680_v12, 4 }
 0x3a3   : > { %v6731_v43 = vrot.slane %v6729_v3, 6  ;;  %v6727_v9 = vrot.slane %v16649_v23, 4  ;;  %v6734_v44 = vrot.slane %v6732_v20, 7  ;;  %v6761_v59 = vrot.slane %v6759_v48, 6  ;;  %v12862_v23 = vld [vmem:[#allocation3 + $0x38] sm:$0xff]  }
 0x3a4   : > { %v7148_v21 = vshrl.u32 %v16630_v41, 16  ;;  %v6764_v10 = vrot.slane %v6762_v17, 7  ;;  %v6741_v62 = vrot.slane %v6739_v60, 6  ;;  %v6744_v5 = vrot.slane %v6742_v0, 7  ;;  %7675 = vrot.lane.b32.xlu0 %v12862_v23, %s13243_s12 }
 0x3a5   : > { %vm19367_vm11 = vnez %v19366_v16  ;;  %v6757_v12 = vrot.slane %v6755_v46, 4  ;;  %v6735_v47 = vor.u32 %v6734_v44, %v6731_v43  ;;  %v6174_v3 = vadd.f32 %v16493_v45, %v19368_v61  ;;  %v16720_v61 = vld [vmem:[#allocation3 + $0x44] sm:$0xf] }
 0x3a6   : > { %v6447_v29 = vsel %vm19367_vm11, %v6411_v51, 0.0  ;;  %v7150_v13 = vor.u32 %v7148_v21, %v7146_v14  ;;  %v16711_v20 = vor.u32 %v6764_v10, %v6761_v59  ;;  %v6745_v48 = vor.u32 %v6744_v5, %v6741_v62  ;;  %v19369_v51 = vld [vmem:[#allocation36_spill] sm:$0xff]  ;;  %19370 = vst [vmem:[#allocation44_spill] sm:$0xff] %v16720_v61  ;;  %v12442_v59 = vpop.f32.mrf.mxu1  ;;  %v12865_v21 = vld [vmem:[#allocation3 + $0x40] sm:$0xff]  }
 0x3a7   : > { %v12281_v41 = vpack.c.bf16 %v6447_v29, %v6447_v29  ;;  %v7152_v17 = vshll.u32 %v12854_v36, 16  ;;  %v6736_v60 = vsel %vm14573_vm1, %v6727_v9, %v6735_v47  ;;  %v6737_v16 = vrot.slane %v6735_v47, 4  ;;  %v12888_v47 = vld [vmem:[%s18514_s5 + $0x78] sm:$0xff]  }
 0x3a8   : > { %v6327_v0 = vadd.f32 %v6326_v6, %v19369_v51  ;;  %v6338_v63 = vadd.f32 %v12439_v52, %v6161_v1  ;;  %v18687_v45 = vrot.slane %v16707_v15, 7  ;;  %6983 = vst.msk [vmem:[#allocation3 + $0x48] sm:$0xf] %vm19371_vm8, %v6736_v60  ;;  %v6766_v29 = vsel %vm14573_vm1, %v6757_v12, %v16711_v20  ;;  %v16729_v6 = vld [vmem:[#allocation3 + $0x3c] sm:$0xf]  ;;  %10742 = vmatpush2.bf16.msra.mxu0 %v12888_v47  ;;  %v19379_v51 = vld [vmem:[#allocation50_spill] sm:$0xff]  ;;  %vm19381_vm8 = vmmov %vm19374_vm14 }
 0x3a9   : > { %v6747_v14 = vrot.slane %v6745_v48, 4  ;;  %v6789_v43 = vshrl.u32 %v12281_v41, 16  ;;  %6986 = vst.msk [vmem:[#allocation3 + $0x54] sm:$0xf] %vm19356_vm6, %v6766_v29  ;;  %v6746_v1 = vsel %vm14573_vm1, %v6737_v16, %v6745_v48  ;;  %v6792_v52 = vshll.u32 %v12281_v41, 16  ;;  %v19375_v48 = vld [vmem:[#allocation11_spill] sm:$0xff]  ;;  %7677 = vrot.lane.b32.xlu0 %v12865_v21, %s13243_s12  ;;  %10743 = vmatprep.subr.bf16.mxu0 %v18949_v42  ;;  %vm19387_vm6 = vmmov %vm19373_vm0 }
 0x3aa   : > { %v7154_v9 = vrot.slane %v7152_v17, 1  ;;  %v6409_v44 = vmax.f32 %v6327_v0, 0.0  ;;  %6984 = vst.msk [vmem:[#allocation3 + $0x4c] sm:$0xf] %vm19372_vm9, %v6746_v1  ;;  %v6412_v62 = vmax.f32 %v6338_v63, 0.0  ;;  %v7156_v5 = vshrl.u32 %v12854_v36, 16  ;;  %vm19393_vm9 = vmmov %vm19373_vm0 }
 0x3ab   : > { %v6756_v12 = vsel %vm14573_vm1, %v6747_v14, %v6755_v46  ;;  %v6791_v10 = vrot.slane %v6789_v43, 6  ;;  %v6794_v23 = vrot.slane %v6792_v52, 7  ;;  %vm19376_vm10 = vnez %v19375_v48  ;;  %v12893_v63 = vld [vmem:[%s18514_s5 + $0x70] sm:$0xff]   ;;  %v6342_v52 = vpop.f32.mrf.mxu1 }
 0x3ac   : > { %6985 = vst.msk [vmem:[#allocation3 + $0x50] sm:$0xf] %vm19373_vm0, %v6756_v12  ;;  %v7155_v60 = vsel %vm19374_vm14, %v7150_v13, %v7154_v9  ;;  %v6445_v41 = vsel %vm19376_vm10, %v6409_v44, 0.0  ;;  %v7160_v17 = vshll.u32 %v16716_v18, 16  ;;  %v18685_v46 = vrot.slane %v16720_v61, 7  ;;  %v19377_v16 = vld [vmem:[#allocation26_spill] sm:$0xff]  ;;  %10744 = vmatpush2.bf16.msra.mxu0 %v12893_v63 }
 0x3ad   : > { %7286 = vrot.lane.b32.xlu1 %v7155_v60, %s13243_s12  ;;  %v12279_v36 = vpack.c.bf16 %v6445_v41, %v6445_v41  ;;  %vm19378_vm11 = vnez %v19377_v16  ;;  %v16753_v0 = vadd.f32 %v16521_v32, %v19379_v51  ;;  %v7158_v14 = vor.u32 %v7156_v5, %v7154_v9  ;;  %v19380_v47 = vld [vmem:[#allocation42_spill] sm:$0xff]  ;;  %10745 = vmatprep.subr.bf16.mxu0 %v18949_v42 }
 0x3ae   : > { %v6448_v13 = vsel %vm19378_vm11, %v6412_v62, 0.0  ;;  %v7162_v43 = vrot.slane %v7160_v17, 1  ;;  %v6330_v1 = vadd.f32 %v6329_v37, %v19380_v47  ;;  %v18686_v44 = vrot.slane %v16729_v6, 7  ;;  %v12898_v62 = vld [vmem:[%s18514_s5 + $0x68] sm:$0xff]   ;;  %v19382_v63 = vld [vmem:[#allocation38_spill] sm:$0xff] }
 0x3af   : > { %v12282_v29 = vpack.c.bf16 %v6448_v13, %v6448_v13  ;;  %v6769_v21 = vshrl.u32 %v12279_v36, 16  ;;  %v6772_v12 = vshll.u32 %v12279_v36, 16  ;;  %v6351_v48 = vadd.f32 %v12442_v59, %v6174_v3  ;;  %v16769_v59 = vld [vmem:[#allocation3 + $0x40] sm:$0xf]  ;;  %v12443_v13 = vpop.f32.mrf.mxu1  ;;  %v16799_v47 = vld [vmem:[#allocation3 + $0x28] sm:$0xff]  }
 0x3b0   : > { %v16760_v60 = vor.u32 %v6794_v23, %v6791_v10  ;;  %v7163_v9 = vsel %vm19381_vm8, %v7158_v14, %v7162_v43  ;;  %v16766_v37 = vrot.slane %v18687_v45, 4  ;;  %v6410_v3 = vmax.f32 %v6330_v1, 0.0  ;;  %v12859_v1 = vld [vmem:[#allocation3 + $0x20] sm:$0xff]   ;;  %10746 = vmatpush2.bf16.msra.mxu0 %v12898_v62 }
 0x3b1   : > { %v6799_v32 = vshrl.u32 %v12282_v29, 16  ;;  %v6802_v41 = vshll.u32 %v12282_v29, 16  ;;  %v6771_v5 = vrot.slane %v6769_v21, 6  ;;  %v6774_v17 = vrot.slane %v6772_v12, 7  ;;  %7288 = vrot.lane.b32.xlu1 %v7163_v9, %s13243_s12  ;;  %v12867_v12 = vld [vmem:[#allocation3 + $0x48] sm:$0xff]   ;;  %10747 = vmatprep.subr.bf16.mxu0 %v18949_v42 }
 0x3b2   : > { %v6177_v10 = vadd.f32 %v16510_v28, %v19382_v63  ;;  %v6415_v16 = vmax.f32 %v6351_v48, 0.0  ;;  %v16775_v51 = vrot.slane %v18685_v46, 4  ;;  %v6767_v29 = vrot.slane %v16711_v20, 4  ;;  %7679 = vrot.lane.b32.xlu0 %v12867_v12, %s13243_s12  ;;  %v16807_v20 = vld [vmem:[#allocation3 + $0x48] sm:$0xf] }
 0x3b3   : > { %v6801_v23 = vrot.slane %v6799_v32, 6  ;;  %v6804_v36 = vrot.slane %v6802_v41, 7  ;;  %v6775_v14 = vor.u32 %v6774_v17, %v6771_v5  ;;  %v6446_v21 = vsel %vm14922_vm5, %v6410_v3, 0.0  ;;  %vm19386_vm5 = vmmov %vm19373_vm0 }
 0x3b4   : > { %19383 = vst [vmem:[#allocation55_spill] sm:$0xff] %v16775_v51  ;;  %v16782_v28 = vrot.slane %v18686_v44, 4  ;;  %v6797_v48 = vrot.slane %v16760_v60, 4  ;;  %v12280_v41 = vpack.c.bf16 %v6446_v21, %v6446_v21  ;;  %v6451_v17 = vsel %vm14951_vm15, %v6415_v16, 0.0  ;;  %v6345_v21 = vpop.f32.mrf.mxu1  ;;  %vm19390_vm15 = vmmov %vm19381_vm8  ;;  %v13163_v51 = vld [vmem:[#allocation3 + $0x10] sm:$0xff]  }
 0x3b5   : > { %v16785_v32 = vor.u32 %v6804_v36, %v6801_v23  ;;  %v6776_v9 = vsel %vm14573_vm1, %v6767_v29, %v6775_v14  ;;  %v7164_v62 = vshrl.u32 %v16716_v18, 16  ;;  %v6777_v3 = vrot.slane %v6775_v14, 4  ;;  %v12870_v14 = vld [vmem:[#allocation3 + $0x50] sm:$0xff]  }
 0x3b6   : > { %6987 = vst.msk [vmem:[#allocation3 + $0x58] sm:$0xf] %vm19386_vm5, %v6776_v9  ;;  %v6779_v23 = vshrl.u32 %v12280_v41, 16  ;;  %v6782_v36 = vshll.u32 %v12280_v41, 16  ;;  %v12285_v29 = vpack.c.bf16 %v6451_v17, %v6451_v17  ;;  %v7168_v5 = vshll.u32 %v12859_v1, 16  ;;  %7681 = vrot.lane.b32.xlu0 %v12870_v14, %s13243_s12 }
 0x3b7   : > { %v6806_v63 = vsel %vm14573_vm1, %v6797_v48, %v16785_v32  ;;  %v7166_v16 = vor.u32 %v7164_v62, %v7162_v43  ;;  %v16804_v18 = vadd.f32 %v16543_v50, %v16497_v11  ;;  %v6343_v46 = vadd.f32 %v6342_v52, %v16563_v34  ;;  %v16810_v43 = vld [vmem:[#allocation3 + $0x54] sm:$0xf]  ;;  %v19389_v52 = vld [vmem:[#allocation37_spill] sm:$0xff] }
 0x3b8   : > { %6990 = vst.msk [vmem:[#allocation3 + $0x64] sm:$0xf] %vm19387_vm6, %v6806_v63  ;;  %v6781_v12 = vrot.slane %v6779_v23, 6  ;;  %v6784_v9 = vrot.slane %v6782_v36, 7  ;;  %v6354_v48 = vadd.f32 %v12443_v13, %v6177_v10  ;;  %v6829_v41 = vshrl.u32 %v12285_v29, 16  ;;  %19388 = vst [vmem:[#allocation57_spill] sm:$0xff] %v16810_v43  ;;  %v12446_v63 = vpop.f32.mrf.mxu1 }
 0x3b9   : > { %v6832_v44 = vshll.u32 %v12285_v29, 16  ;;  %v7170_v45 = vrot.slane %v7168_v5, 1  ;;  %v7172_v61 = vshrl.u32 %v12859_v1, 16  ;;  %v6413_v62 = vmax.f32 %v6343_v46, 0.0  ;;  %v16816_v34 = vld [vmem:[%s18513_s4] ss:$0 sm:$0xff] }
 0x3ba   : > { %v6785_v17 = vor.u32 %v6784_v9, %v6781_v12  ;;  %v6416_v11 = vmax.f32 %v6354_v48, 0.0  ;;  %v7176_v50 = vshll.u32 %v16799_v47, 16  ;;  %v16820_v10 = vadd.f32 %v16816_v34, %v19389_v52  ;;  %v16841_v52 = vld [vmem:[#allocation3 + $0x30] sm:$0xff]   ;;  %v16846_v29 = vld [vmem:[#allocation3 + $0x4c] sm:$0xf] }
 0x3bb   : > { %v6831_v13 = vrot.slane %v6829_v41, 6  ;;  %v6834_v1 = vrot.slane %v6832_v44, 7  ;;  %v7171_v23 = vsel %vm19390_vm15, %v7166_v16, %v7170_v45  ;;  %v6449_v5 = vsel %vm14968_vm3, %v6413_v62, 0.0  ;;  %vm19394_vm3 = vmmov %vm19373_vm0  ;;  %19395 = vst [vmem:[#allocation45_spill] sm:$0xff] %v16846_v29 }
 0x3bc   : > { %v6786_v46 = vsel %vm14573_vm1, %v6777_v3, %v6785_v17  ;;  %v6787_v36 = vrot.slane %v6785_v17, 4  ;;  %7290 = vrot.lane.b32.xlu1 %v7171_v23, %s13243_s12  ;;  %v6452_v12 = vsel %vm14982_vm2, %v6416_v11, 0.0  ;;  %v12283_v48 = vpack.c.bf16 %v6449_v5, %v6449_v5  ;;  %v12904_v3 = vld [vmem:[%s18514_s5 + $0x60] sm:$0xff]   ;;  %vm19396_vm2 = vmmov %vm19381_vm8 }
 0x3bd   : > { %6988 = vst.msk [vmem:[#allocation3 + $0x5c] sm:$0xf] %vm19393_vm9, %v6786_v46  ;;  %v16831_v9 = vor.u32 %v6834_v1, %v6831_v13  ;;  %v12286_v44 = vpack.c.bf16 %v6452_v12, %v6452_v12  ;;  %v7178_v41 = vrot.slane %v7176_v50, 1  ;;  %v18690_v16 = vrot.slane %v16807_v20, 7  ;;  %v6358_v13 = vpop.f32.mrf.mxu1  ;;  %10748 = vmatpush2.bf16.msra.mxu0 %v12904_v3  ;;  %vm19402_vm14 = vmmov %vm19394_vm3 }
 0x3be   : > { %v6796_v17 = vsel %vm14573_vm1, %v6787_v36, %v16760_v60  ;;  %v7174_v62 = vor.u32 %v7172_v61, %v7170_v45  ;;  %v6346_v11 = vadd.f32 %v6345_v21, %v16628_v58  ;;  %v18689_v1 = vrot.slane %v16810_v43, 7  ;;  %10749 = vmatprep.subr.bf16.mxu0 %v18949_v42  ;;  %vm19403_vm10 = vmmov %vm19394_vm3 }
 0x3bf   : > { %v6807_v50 = vrot.slane %v16785_v32, 4  ;;  %6989 = vst.msk [vmem:[#allocation3 + $0x60] sm:$0xf] %vm19394_vm3, %v6796_v17  ;;  %v6809_v23 = vshrl.u32 %v12283_v48, 16  ;;  %v6812_v46 = vshll.u32 %v12283_v48, 16  ;;  %v6839_v5 = vshrl.u32 %v12286_v44, 16  ;;  %vm19406_vm8 = vmmov %vm19396_vm2 }
 0x3c0   : > { %v6842_v14 = vshll.u32 %v12286_v44, 16  ;;  %v7179_v45 = vsel %vm19396_vm2, %v7174_v62, %v7178_v41  ;;  %v6190_v58 = vadd.f32 %v16565_v55, %v16515_v54  ;;  %v6837_v61 = vrot.slane %v16831_v9, 4  ;;  %v12447_v44 = vpop.f32.mrf.mxu1  ;;  %v12910_v17 = vld [vmem:[%s18514_s5 + $0x58] sm:$0xff]   ;;  %v19397_v54 = vld [vmem:[#allocation34_spill] sm:$0xff]  ;;  %vm19411_vm5 = vmmov %vm19394_vm3 }
 0x3c1   : > { %v6811_v60 = vrot.slane %v6809_v23, 6  ;;  %v6814_v32 = vrot.slane %v6812_v46, 7  ;;  %7292 = vrot.lane.b32.xlu1 %v7179_v45, %s13243_s12  ;;  %v6414_v21 = vmax.f32 %v6346_v11, 0.0  ;;  %v6841_v36 = vrot.slane %v6839_v5, 6  ;;  %v19398_v23 = vld [vmem:[#allocation12_spill] sm:$0xff]  ;;  %10750 = vmatpush2.bf16.msra.mxu0 %v12910_v17  ;;  %vm19415_vm15 = vmmov %vm19396_vm2 }
 0x3c2   : > { %v6844_v12 = vrot.slane %v6842_v14, 7  ;;  %v6367_v48 = vadd.f32 %v12446_v63, %v6190_v58  ;;  %v7180_v3 = vshrl.u32 %v16799_v47, 16  ;;  %v16860_v55 = vadd.f32 %v16816_v34, %v19397_v54  ;;  %v16874_v54 = vld [vmem:[#allocation3 + $0x38] sm:$0xff]   ;;  %10751 = vmatprep.subr.bf16.mxu0 %v18949_v42 }
 0x3c3   : > { %v6815_v62 = vor.u32 %v6814_v32, %v6811_v60  ;;  %vm19399_vm0 = vnez %v19398_v23  ;;  %v7184_v11 = vshll.u32 %v16841_v52, 16  ;;  %v16869_v45 = vrot.slane %v18690_v16, 4 }
 0x3c4   : > { %v6450_v46 = vsel %vm19399_vm0, %v6414_v21, 0.0  ;;  %v16865_v5 = vor.u32 %v6844_v12, %v6841_v36  ;;  %v6419_v14 = vmax.f32 %v6367_v48, 0.0  ;;  %v7182_v47 = vor.u32 %v7180_v3, %v7178_v41  ;;  %v6361_v48 = vpop.f32.mrf.mxu1 }
 0x3c5   : > { %v12284_v63 = vpack.c.bf16 %v6450_v46, %v6450_v46  ;;  %19400 = vst [vmem:[#allocation59_spill] sm:$0xff] %v16869_v45  ;;  %v6816_v60 = vsel %vm14573_vm1, %v6807_v50, %v6815_v62  ;;  %v7186_v32 = vrot.slane %v7184_v11, 1  ;;  %v16879_v21 = vrot.slane %v18689_v1, 4  ;;  %v19404_v50 = vld [vmem:[#allocation29_spill] sm:$0xff] }
 0x3c6   : > { %6991 = vst.msk [vmem:[#allocation3 + $0x68] sm:$0xf] %vm19402_vm14, %v6816_v60  ;;  %v6846_v41 = vsel %vm14573_vm1, %v6837_v61, %v16865_v5  ;;  %v6817_v3 = vrot.slane %v6815_v62, 4  ;;  %vm19405_vm11 = vnez %v19404_v50  ;;  %v6193_v46 = vadd.f32 %v16594_v35, %v16578_v39  ;;  %v16899_v50 = vld [vmem:[#allocation3 + $0x58] sm:$0xf] }
 0x3c7   : > { %19401 = vst [vmem:[#allocation62_spill] sm:$0xff] %v16879_v21  ;;  %v6819_v36 = vshrl.u32 %v12284_v63, 16  ;;  %v6822_v12 = vshll.u32 %v12284_v63, 16  ;;  %6994 = vst.msk [vmem:[#allocation3 + $0x74] sm:$0xf] %vm19403_vm10, %v6846_v41  ;;  %v6455_v17 = vsel %vm19405_vm11, %v6419_v14, 0.0  ;;  %v7187_v23 = vsel %vm19406_vm8, %v7182_v47, %v7186_v32 }
 0x3c8   : > { %v12289_v1 = vpack.c.bf16 %v6455_v17, %v6455_v17  ;;  %7294 = vrot.lane.b32.xlu1 %v7187_v23, %s13243_s12  ;;  %v6359_v61 = vadd.f32 %v6358_v13, %v16753_v0  ;;  %v19407_v63 = vld [vmem:[#allocation40_spill] sm:$0xff]  ;;  %v16897_v41 = vld [vmem:[#allocation3 + $0x50] sm:$0xf]  ;;  %19409 = vst [vmem:[#allocation58_spill] sm:$0xff] %v16899_v50  ;;  %v6370_v14 = vadd.f32 %v12447_v44, %v6193_v46  ;;  %v7188_v47 = vshrl.u32 %v16841_v52, 16  ;;  %v16905_v0 = vpop.f32.mrf.mxu1  ;;  %v12915_v44 = vld [vmem:[%s18514_s5 + $0x50] sm:$0xff]  }
 0x3c9   : > { %v6821_v11 = vrot.slane %v6819_v36, 6  ;;  %v6824_v60 = vrot.slane %v6822_v12, 7  ;;  %v16895_v62 = vadd.f32 %v16816_v34, %v19407_v63  ;;  %19408 = vst [vmem:[#allocation47_spill] sm:$0xff] %v16897_v41  ;;  %v7192_v39 = vshll.u32 %v16874_v54, 16  ;;  %v16903_v35 = vld [vmem:[#allocation3 + $0x64] sm:$0xf]  ;;  %10752 = vmatpush2.bf16.msra.mxu0 %v12915_v44 }
 0x3ca   : > { %19410 = vst [vmem:[#allocation60_spill] sm:$0xff] %v16903_v35  ;;  %v6869_v12 = vshrl.u32 %v12289_v1, 16  ;;  %v6872_v17 = vshll.u32 %v12289_v1, 16  ;;  %v6417_v23 = vmax.f32 %v6359_v61, 0.0  ;;  %v6420_v13 = vmax.f32 %v6370_v14, 0.0  ;;  %v19413_v61 = vld [vmem:[#allocation17_spill] sm:$0xff]  ;;  %10753 = vmatprep.subr.bf16.mxu0 %v18949_v42 }
 0x3cb   : > { %v6825_v36 = vor.u32 %v6824_v60, %v6821_v11  ;;  %v7190_v63 = vor.u32 %v7188_v47, %v7186_v32  ;;  %v7194_v16 = vrot.slane %v7192_v39, 1  ;;  %v6362_v58 = vadd.f32 %v6361_v48, %v16804_v18 }
 0x3cc   : > { %v6871_v21 = vrot.slane %v6869_v12, 6  ;;  %v6874_v11 = vrot.slane %v6872_v17, 7  ;;  %v6453_v60 = vsel %vm15054_vm7, %v6417_v23, 0.0  ;;  %vm19414_vm6 = vnez %v19413_v61  ;;  %v6374_v12 = vpop.f32.mrf.mxu1  ;;  %vm19416_vm7 = vmmov %vm19394_vm3 }
 0x3cd   : > { %v6826_v52 = vsel %vm14573_vm1, %v6817_v3, %v6825_v36  ;;  %v6827_v46 = vrot.slane %v6825_v36, 4  ;;  %v6456_v32 = vsel %vm19414_vm6, %v6420_v13, 0.0  ;;  %v7195_v18 = vsel %vm19415_vm15, %v7190_v63, %v7194_v16  ;;  %v16925_v36 = vld [vmem:[#allocation3 + $0x40] sm:$0xff]   ;;  %vm19422_vm3 = vmmov %vm19396_vm2 }
 0x3ce   : > { %6992 = vst.msk [vmem:[#allocation3 + $0x6c] sm:$0xf] %vm19411_vm5, %v6826_v52  ;;  %v6418_v48 = vmax.f32 %v6362_v58, 0.0  ;;  %v18691_v47 = vrot.slane %v16899_v50, 7  ;;  %v12287_v39 = vpack.c.bf16 %v6453_v60, %v6453_v60  ;;  %7296 = vrot.lane.b32.xlu1 %v7195_v18, %s13243_s12  ;;  %v12921_v58 = vld [vmem:[%s18514_s5 + $0x48] sm:$0xff]   ;;  %v6847_v23 = vrot.slane %v16865_v5, 4  ;;  %vm19426_vm2 = vmmov %vm19411_vm5 }
 0x3cf   : > { %v6836_v3 = vsel %vm14573_vm1, %v6827_v46, %v16831_v9  ;;  %v12290_v13 = vpack.c.bf16 %v6456_v32, %v6456_v32  ;;  %v19417_v9 = vld [vmem:[#allocation28_spill] sm:$0xff]  ;;  %v6198_v46 = vadd.f32 %v16622_v53, %v16820_v10  ;;  %v7196_v1 = vshrl.u32 %v16874_v54, 16  ;;  %10754 = vmatpush2.bf16.msra.mxu0 %v12921_v58  ;;  %v12923_v5 = vld [vmem:[%s18514_s5 + $0xb8] sm:$0xff]   ;;  %v12926_v53 = vld [vmem:[%s18514_s5 + $0xb0] sm:$0xff]  }
 0x3d0   : > { %6993 = vst.msk [vmem:[#allocation3 + $0x70] sm:$0xf] %vm19416_vm7, %v6836_v3  ;;  %vm19418_vm9 = vnez %v19417_v9  ;;  %v6849_v44 = vshrl.u32 %v12287_v39, 16  ;;  %v6852_v52 = vshll.u32 %v12287_v39, 16  ;;  %v16939_v60 = vor.u32 %v6874_v11, %v6871_v21  ;;  %v16945_v9 = vpop.f32.mrf.mxu1  ;;  %10755 = vmatprep.subr.bf16.mxu0 %v18949_v42  ;;  %10903 = vmatpush1.bf16.msra.mxu1 %v12923_v5  ;;  %vm19427_vm0 = vmmov %vm19426_vm2 }
 0x3d1   : > { %v6454_v63 = vsel %vm19418_vm9, %v6418_v48, 0.0  ;;  %v6879_v61 = vshrl.u32 %v12290_v13, 16  ;;  %v6882_v18 = vshll.u32 %v12290_v13, 16  ;;  %v7198_v48 = vor.u32 %v7196_v1, %v7194_v16  ;;  %10904 = vmatprep.subr.bf16.mxu1 %v18949_v42  ;;  %vm19431_vm10 = vmmov %vm19427_vm0 }
 0x3d2   : > { %v12288_v14 = vpack.c.bf16 %v6454_v63, %v6454_v63  ;;  %v6851_v32 = vrot.slane %v6849_v44, 6  ;;  %v6854_v3 = vrot.slane %v6852_v52, 7  ;;  %v7200_v39 = vshll.u32 %v16925_v36, 16  ;;  %v8033_v44 = vld [vmem:[#allocation3 + $0xc] sm:$0xf]  ;;  %v16955_v52 = vld [vmem:[#allocation3 + $0x10] sm:$0xff]   ;;  %vm19433_vm11 = vmmov %vm19427_vm0 }
 0x3d3   : > { %v6881_v10 = vrot.slane %v6879_v61, 6  ;;  %v6884_v54 = vrot.slane %v6882_v18, 7  ;;  %v6201_v16 = vadd.f32 %v16636_v7, %v16860_v55  ;;  %v6375_v63 = vadd.f32 %v6374_v12, %v6198_v46  ;;  %v6377_v46 = vpop.f32.mrf.mxu1  ;;  %vm19439_vm6 = vmmov %vm19422_vm3 }
 0x3d4   : > { %v6859_v21 = vshrl.u32 %v12288_v14, 16  ;;  %v6862_v11 = vshll.u32 %v12288_v14, 16  ;;  %v6855_v58 = vor.u32 %v6854_v3, %v6851_v32  ;;  %v16951_v13 = vrot.slane %v7200_v39, 1  ;;  %v8069_v14 = vld [vmem:[#allocation3 + $0x8] sm:$0xc]  ;;  %10905 = vmatpush1.bf16.msra.mxu1 %v12926_v53  ;;  %vm19443_vm15 = vmmov %vm19427_vm0 }
 0x3d5   : > { %v6877_v1 = vrot.slane %v16939_v60, 4  ;;  %v16959_v17 = vor.u32 %v6884_v54, %v6881_v10  ;;  %v19419_v5 = vrot.slane %v16846_v29, 7  ;;  %v16965_v3 = vld [vmem:[#allocation3 + $0x5c] sm:$0xf]  ;;  %v6421_v12 = vmax.f32 %v6375_v63, 0.0  ;;  %10906 = vmatprep.subr.bf16.mxu1 %v18949_v42  ;;  %vm19444_vm7 = vmmov %vm19422_vm3  ;;  %v17349_v29 = vld [vmem:[#allocation3 + $0x68] sm:$0xff]  }
 0x3d6   : > { %v6861_v61 = vrot.slane %v6859_v21, 6  ;;  %v6864_v18 = vrot.slane %v6862_v11, 7  ;;  %19421 = vst [vmem:[#allocation63_spill] sm:$0xff] %v16965_v3  ;;  %v6856_v7 = vsel %vm14573_vm1, %v6847_v23, %v6855_v58  ;;  %v7203_v55 = vsel %vm19422_vm3, %v7198_v48, %v16951_v13  ;;  %v19428_v11 = vld [vmem:[#allocation25_spill] sm:$0xff]  ;;  %vm19448_vm9 = vmmov %vm19422_vm3 }
 0x3d7   : > { %v16963_v32 = vrot.slane %v19419_v5, 4  ;;  %v16973_v39 = vrot.slane %v18691_v47, 4  ;;  %v19424_v10 = vrot.slane %v16903_v35, 7  ;;  %v6857_v21 = vrot.slane %v6855_v58, 4  ;;  %6995 = vst.msk [vmem:[#allocation3 + $0x78] sm:$0xf] %vm19426_vm2, %v6856_v7  ;;  %7298 = vrot.lane.b32.xlu1 %v7203_v55, %s13243_s12  ;;  %vm19449_vm3 = vmmov %vm19427_vm0 }
 0x3d8   : > { %v6886_v23 = vsel %vm14573_vm1, %v6877_v1, %v16959_v17  ;;  %v6865_v48 = vor.u32 %v6864_v18, %v6861_v61  ;;  %vm19429_vm14 = vnez %v19428_v11  ;;  %v11979_v5 = vcombine.low %v8069_v14, %v8033_v44  ;;  %v16990_v7 = vld [vmem:[#allocation3 + $0x68] sm:$0xf]  ;;  %v19432_v35 = vld [vmem:[#allocation39_spill] sm:$0xff]  ;;  %vm19450_vm2 = vmmov %vm19427_vm0 }
 0x3d9   : > { %19420 = vst [vmem:[#allocation46_spill] sm:$0xff] %v16963_v32  ;;  %19423 = vst [vmem:[#allocation64_spill] sm:$0xff] %v16973_v39  ;;  %v16977_v54 = vrot.slane %v19424_v10, 4  ;;  %v6457_v63 = vsel %vm19429_vm14, %v6421_v12, 0.0  ;;  %v8174_v10 = vshll.u32 %v16955_v52, 16  ;;  %v6206_v1 = vadd.f32 %v16657_v19, %v16895_v62  ;;  %v16994_v55 = vld [vmem:[#allocation3 + $0x48] sm:$0xff]  }
 0x3da   : > { %6998 = vst.msk [vmem:[#allocation3 + $0x84] sm:$0xf] %vm19427_vm0, %v6886_v23  ;;  %19430 = vst [vmem:[#allocation65_spill] sm:$0xff] %v16990_v7  ;;  %v12291_v47 = vpack.c.bf16 %v6457_v63, %v6457_v63  ;;  %v6378_v53 = vadd.f32 %v6377_v46, %v6201_v16  ;;  %v6866_v61 = vsel %vm14573_vm1, %v6857_v21, %v6865_v48  ;;  %v6867_v18 = vrot.slane %v6865_v48, 4  ;;  %v17000_v63 = vld [vmem:[#allocation3 + $0x18] sm:$0xff]  }
 0x3db   : > { %19425 = vst [vmem:[#allocation48_spill] sm:$0xff] %v16977_v54  ;;  %v8167_v44 = vshrl.u32 %v11979_v5, 16  ;;  %v8169_v14 = vshll.u32 %v11979_v5, 16  ;;  %6996 = vst.msk [vmem:[#allocation3 + $0x7c] sm:$0xf] %vm19431_vm10, %v6866_v61  ;;  %v8176_v11 = vrot.slane %v8174_v10, 1  ;;  %v6383_v58 = vadd.f32 %v16905_v0, %v6206_v1 }
 0x3dc   : > { %v6889_v12 = vshrl.u32 %v12291_v47, 16  ;;  %v6892_v23 = vshll.u32 %v12291_v47, 16  ;;  %v6032_v19 = vadd.f32 %v16816_v34, %v19432_v35  ;;  %v6876_v62 = vsel %vm14573_vm1, %v6867_v18, %v16939_v60  ;;  %v19434_v61 = vld [vmem:[#allocation31_spill] sm:$0xff]  ;;  %v12929_v35 = vld [vmem:[%s18514_s5 + $0x40] sm:$0xff]   ;;  %v17016_v60 = vld [vmem:[#allocation3 + $0x60] sm:$0xf] }
 0x3dd   : > { %v8171_v16 = vrot.slane %v8169_v14, 1  ;;  %v6422_v46 = vmax.f32 %v6378_v53, 0.0  ;;  %6997 = vst.msk [vmem:[#allocation3 + $0x80] sm:$0xf] %vm19433_vm11, %v6876_v62  ;;  %v6423_v5 = vmax.f32 %v6383_v58, 0.0  ;;  %v7208_v47 = vshll.u32 %v16994_v55, 16  ;;  %10756 = vmatpush2.bf16.msra.mxu0 %v12929_v35  ;;  %vm19454_vm14 = vmmov %vm19439_vm6 }
 0x3de   : > { %v6891_v21 = vrot.slane %v6889_v12, 6  ;;  %v6894_v48 = vrot.slane %v6892_v23, 7  ;;  %v6887_v10 = vrot.slane %v16959_v17, 4  ;;  %vm19435_vm8 = vnez %v19434_v61  ;;  %19436 = vst [vmem:[#allocation67_spill] sm:$0xff] %v17016_v60  ;;  %v19437_v18 = vld [vmem:[#allocation20_spill] sm:$0xff]  ;;  %vm19458_vm10 = vmmov %vm19439_vm6 }
 0x3df   : > { %v8172_v1 = vor.u32 %v8171_v16, %v8167_v44  ;;  %v6458_v34 = vsel %vm19435_vm8, %v6422_v46, 0.0  ;;  %vm19438_vm5 = vnez %v19437_v18  ;;  %v7204_v12 = vshrl.u32 %v16925_v36, 16  ;;  %v12876_v16 = vld [vmem:[#allocation3 + $0x10] sm:$0xfc]   ;;  %v12930_v36 = vld [vmem:[%s18514_s5 + $0xa8] sm:$0xff]   ;;  %vm19462_vm11 = vmmov %vm19439_vm6 }
 0x3e0   : > { %v6895_v53 = vor.u32 %v6894_v48, %v6891_v21  ;;  %v6459_v58 = vsel %vm19438_vm5, %v6423_v5, 0.0  ;;  %v12292_v14 = vpack.c.bf16 %v6458_v34, %v6458_v34  ;;  %v17022_v44 = vrot.slane %v7208_v47, 1  ;;  %v17037_v61 = vld [vmem:[#allocation3 + $0x74] sm:$0xf]  ;;  %10907 = vmatpush1.bf16.msra.mxu1 %v12930_v36  ;;  %v7003_v60 = vld [vmem:[#allocation3 + $0x98] sm:$0x3]  ;;  %vm19465_vm8 = vmmov %vm19439_vm6 }
 0x3e1   : > { %v8177_v23 = vsel %vm19439_vm6, %v8172_v1, %v8176_v11  ;;  %v12293_v17 = vpack.c.bf16 %v6459_v58, %v6459_v58  ;;  %v8182_v62 = vshll.u32 %v17000_v63, 16  ;;  %v7206_v48 = vor.u32 %v7204_v12, %v16951_v13  ;;  %19442 = vst [vmem:[#allocation68_spill] sm:$0xff] %v17037_v61  ;;  %v12877_v12 = vld [vmem:[#allocation3 + $0x18] sm:$0xff]   ;;  %10908 = vmatprep.subr.bf16.mxu1 %v18949_v42 }
 0x3e2   : > { %v6896_v46 = vsel %vm14573_vm1, %v6887_v10, %v6895_v53  ;;  %8317 = vrot.lane.b32.xlu1 %v8177_v23, %s13243_s12  ;;  %v6899_v21 = vshrl.u32 %v12292_v14, 16  ;;  %v8178_v5 = vshrl.u32 %v16955_v52, 16  ;;  %v19440_v47 = vrot.slane %v16965_v3, 7  ;;  %v17043_v23 = vld [vmem:[#allocation3 + $0x20] sm:$0xff]  }
 0x3e3   : > { %6999 = vst.msk [vmem:[#allocation3 + $0x88] sm:$0xf] %vm19443_vm15, %v6896_v46  ;;  %v6909_v10 = vshrl.u32 %v12293_v17, 16  ;;  %v6912_v34 = vshll.u32 %v12293_v17, 16  ;;  %v6902_v35 = vshll.u32 %v12292_v14, 16  ;;  %v7211_v52 = vsel %vm19444_vm7, %v7206_v48, %v17022_v44  ;;  %vm19473_vm15 = vmmov %vm19439_vm6 }
 0x3e4   : > { %v17035_v1 = vrot.slane %v19440_v47, 4  ;;  %v6901_v13 = vrot.slane %v6899_v21, 6  ;;  %v8180_v58 = vor.u32 %v8178_v5, %v8176_v11  ;;  %7300 = vrot.lane.b32.xlu0 %v7211_v52, %s13243_s12  ;;  %v8184_v46 = vrot.slane %v8182_v62, 1  ;;  %v17054_v21 = vld [vmem:[#allocation3 + $0x6c] sm:$0xf]  ;;  %vm19480_vm7 = vmmov %vm19439_vm6 }
 0x3e5   : > { %v6911_v47 = vrot.slane %v6909_v10, 6  ;;  %v6914_v0 = vrot.slane %v6912_v34, 7  ;;  %v6904_v54 = vrot.slane %v6902_v35, 7  ;;  %v19445_v14 = vrot.slane %v16990_v7, 7  ;;  %19447 = vst [vmem:[#allocation52_spill] sm:$0xff] %v17054_v21 }
 0x3e6   : > { %19441 = vst [vmem:[#allocation51_spill] sm:$0xff] %v17035_v1  ;;  %v17046_v1 = vld [vmem:[#allocation3 + $0x50] sm:$0xff]   ;;  %v6209_v48 = vadd.f32 %v16675_v38, %v6032_v19  ;;  %v6897_v5 = vrot.slane %v6895_v53, 4  ;;  %v8185_v10 = vsel %vm19448_vm9, %v8180_v58, %v8184_v46  ;;  %v9064_v34 = vshll.u32 %v12876_v16, 16  ;;  %v17065_v19 = vld [vmem:[#allocation3 + $0x20] sm:$0xff]   ;;  %v17070_v58 = vld [vmem:[#allocation3 + $0x28] sm:$0xff]  }
 0x3e7   : > { %v17051_v17 = vrot.slane %v19445_v14, 4  ;;  %v6905_v36 = vor.u32 %v6904_v54, %v6901_v13  ;;  %8319 = vrot.lane.b32.xlu1 %v8185_v10, %s13243_s12  ;;  %v9062_v35 = vshrl.u32 %v12876_v16, 16  ;;  %v9069_v52 = vshll.u32 %v12877_v12, 16  ;;  %vm19483_vm9 = vmmov %vm19439_vm6 }
 0x3e8   : > { %v6386_v62 = vadd.f32 %v16945_v9, %v6209_v48  ;;  %v9077_v14 = vshll.u32 %v17043_v23, 16  ;;  %v17061_v18 = vor.u32 %v6914_v0, %v6911_v47  ;;  %v9066_v38 = vrot.slane %v9064_v34, 1  ;;  %v12878_v9 = vld [vmem:[#allocation3 + $0x58] sm:$0xff]  }
 0x3e9   : > { %19446 = vst [vmem:[#allocation69_spill] sm:$0xff] %v17051_v17  ;;  %v6906_v11 = vsel %vm14573_vm1, %v6897_v5, %v6905_v36  ;;  %v6907_v17 = vrot.slane %v6905_v36, 4  ;;  %v9071_v13 = vrot.slane %v9069_v52, 1  ;;  %v7212_v16 = vshrl.u32 %v16994_v55, 16  ;;  %v17072_v0 = vld [vmem:[#allocation3 + $0x58] sm:$0xff]  }
 0x3ea   : > { %7000 = vst.msk [vmem:[#allocation3 + $0x8c] sm:$0xf] %vm19449_vm3, %v6906_v11  ;;  %v6424_v53 = vmax.f32 %v6386_v62, 0.0  ;;  %v9067_v48 = vor.u32 %v9066_v38, %v9062_v35  ;;  %v9073_v5 = vshrl.u32 %v12877_v12, 16  ;;  %v7216_v36 = vshll.u32 %v17046_v1, 16  ;;  %v19451_v11 = vld [vmem:[#allocation15_spill] sm:$0xff]  ;;  %vm19484_vm3 = vmmov %vm19439_vm6 }
 0x3eb   : > { %v6916_v47 = vsel %vm14573_vm1, %v6907_v17, %v17061_v18  ;;  %vm19452_vm0 = vnez %v19451_v11  ;;  %7683 = vrot.lane.b32.xlu1 %v12878_v9, %s13243_s12  ;;  %v9079_v55 = vrot.slane %v9077_v14, 1  ;;  %v7214_v34 = vor.u32 %v7212_v16, %v17022_v44  ;;  %v17083_v62 = vld [vmem:[#allocation3 + $0x78] sm:$0xf]  ;;  %v17093_v14 = vld [vmem:[#allocation3 + $0x70] sm:$0xf]  ;;  %v17096_v11 = vld [vmem:[#allocation3 + $0x28] sm:$0xff]  }
 0x3ec   : > { %7001 = vst.msk [vmem:[#allocation3 + $0x90] sm:$0xf] %vm19450_vm2, %v6916_v47  ;;  %v6460_v10 = vsel %vm19452_vm0, %v6424_v53, 0.0  ;;  %19453 = vst [vmem:[#allocation49_spill] sm:$0xff] %v17083_v62  ;;  %v9072_v54 = vsel %vm19454_vm14, %v9067_v48, %v9071_v13  ;;  %v9075_v17 = vor.u32 %v9073_v5, %v9071_v13  ;;  %v7218_v35 = vrot.slane %v7216_v36, 1  ;;  %v12883_v48 = vld [vmem:[#allocation3 + $0x60] sm:$0xff]  }
 0x3ed   : > { %v12294_v52 = vpack.c.bf16 %v6460_v10, %v6460_v10  ;;  %9212 = vrot.lane.b32.xlu0 %v9072_v54, %s13243_s12  ;;  %v8186_v12 = vshrl.u32 %v17000_v63, 16  ;;  %v8190_v38 = vshll.u32 %v17065_v19, 16  ;;  %v19455_v53 = vrot.slane %v17037_v61, 7  ;;  %19457 = vst [vmem:[#allocation56_spill] sm:$0xff] %v17093_v14  ;;  %v12933_v54 = vld [vmem:[%s18514_s5 + $0xa0] sm:$0xff]  }
 0x3ee   : > { %v7219_v16 = vsel %vm19458_vm10, %v7214_v34, %v7218_v35  ;;  %v9085_v5 = vshll.u32 %v17070_v58, 16  ;;  %v7224_v36 = vshll.u32 %v17072_v0, 16  ;;  %v17106_v10 = vld [vmem:[#allocation3 + $0x30] sm:$0xff]   ;;  %v19459_v34 = vrot.slane %v17054_v21, 7  ;;  %10909 = vmatpush1.bf16.msra.mxu1 %v12933_v54  ;;  %v17139_v54 = vld [vmem:[#allocation3 + $0x38] sm:$0xff]  }
 0x3ef   : > { %v17091_v47 = vrot.slane %v19455_v53, 4  ;;  %v6919_v44 = vshrl.u32 %v12294_v52, 16  ;;  %v6922_v9 = vshll.u32 %v12294_v52, 16  ;;  %7302 = vrot.lane.b32.xlu1 %v7219_v16, %s13243_s12  ;;  %v8188_v63 = vor.u32 %v8186_v12, %v8184_v46  ;;  %v17112_v53 = vld [vmem:[#allocation3 + $0x84] sm:$0xf]  ;;  %10910 = vmatprep.subr.bf16.mxu1 %v18949_v42  ;;  %v12936_v21 = vld [vmem:[%s18514_s5 + $0x98] sm:$0xff]  }
 0x3f0   : > { %v17102_v13 = vrot.slane %v8190_v38, 1  ;;  %v17110_v52 = vrot.slane %v19459_v34, 4  ;;  %19461 = vst [vmem:[#allocation66_spill] sm:$0xff] %v17112_v53  ;;  %v9080_v16 = vsel %vm19462_vm11, %v9075_v17, %v9079_v55  ;;  %v17115_v46 = vld [vmem:[#allocation3 + $0x60] sm:$0xff]   ;;  %v17118_v38 = vld [vmem:[#allocation3 + $0x7c] sm:$0xf] }
 0x3f1   : > { %19456 = vst [vmem:[#allocation53_spill] sm:$0xff] %v17091_v47  ;;  %v6921_v61 = vrot.slane %v6919_v44, 6  ;;  %v6924_v47 = vrot.slane %v6922_v9, 7  ;;  %19463 = vst [vmem:[#allocation70_spill] sm:$0xff] %v17118_v38  ;;  %v6917_v7 = vrot.slane %v17061_v18, 4  ;;  %9214 = vrot.lane.b32.xlu0 %v9080_v16, %s13243_s12  ;;  %v7220_v9 = vshrl.u32 %v17046_v1, 16 }
 0x3f2   : > { %19460 = vst [vmem:[#allocation61_spill] sm:$0xff] %v17110_v52  ;;  %v17123_v34 = vld [vmem:[#allocation3 + $0x88] sm:$0xf]  ;;  %v7226_v17 = vrot.slane %v7224_v36, 1  ;;  %v17126_v52 = vld [vmem:[#allocation3 + $0x30] sm:$0xff]   ;;  %v8193_v12 = vsel %vm19465_vm8, %v8188_v63, %v17102_v13  ;;  %v9081_v18 = vshrl.u32 %v17043_v23, 16  ;;  %10911 = vmatpush1.bf16.msra.mxu1 %v12936_v21 }
 0x3f3   : > { %19464 = vst [vmem:[#allocation8_spill] sm:$0xff] %v17123_v34  ;;  %v6925_v44 = vor.u32 %v6924_v47, %v6921_v61  ;;  %7685 = vrot.lane.b32.xlu1 %v12883_v48, %s13243_s12  ;;  %v9087_v16 = vrot.slane %v9085_v5, 1  ;;  %v7222_v47 = vor.u32 %v7220_v9, %v7218_v35  ;;  %v8198_v36 = vshll.u32 %v17096_v11, 16  ;;  %v17144_v63 = vld [vmem:[%s18514_s5 + $0x118] sm:$0xff]   ;;  %10912 = vmatprep.subr.bf16.mxu1 %v18949_v42 }
 0x3f4   : > { %v19466_v23 = vrot.slane %v17083_v62, 7  ;;  %v17151_v14 = vld [vmem:[#allocation3 + $0x8c] sm:$0xf]  ;;  %v9083_v8 = vor.u32 %v9081_v18, %v9079_v55  ;;  %v7232_v62 = vshll.u32 %v17115_v46, 16  ;;  %12452 = vmatprep.subr.bf16.mxu0 %v17144_v63  ;;  %v9101_v39 = vshll.u32 %v17139_v54, 16 }
 0x3f5   : > { %v6926_v1 = vsel %vm14573_vm1, %v6917_v7, %v6925_v44  ;;  %v6927_v61 = vrot.slane %v6925_v44, 4  ;;  %19468 = vst [vmem:[#allocation5_spill] sm:$0xff] %v17151_v14  ;;  %vm19469_vm1 = vmmov %vm19450_vm2  ;;  %8321 = vrot.lane.b32.xlu0 %v8193_v12, %s13243_s12  ;;  %v9093_v7 = vshll.u32 %v17106_v10, 16  ;;  %v17156_v35 = vld [vmem:[#allocation3 + $0x68] sm:$0xff]   ;;  %v17158_v44 = vld [vmem:[#allocation3 + $0x80] sm:$0xf]  ;;  %v7227_v5 = vsel %vm19439_vm6, %v7222_v47, %v7226_v17 }
 0x3f6   : > { %v17148_v48 = vrot.slane %v19466_v23, 4  ;;  %7002 = vst.msk [vmem:[#allocation3 + $0x94] sm:$0xf] %vm19469_vm1, %v6926_v1  ;;  %19470 = vst [vmem:[#allocation9_spill] sm:$0xff] %v17158_v44  ;;  %v19471_v23 = vld [vmem:[#allocation30_spill] sm:$0xff]  ;;  %v9088_v21 = vsel %vm19473_vm15, %v9083_v8, %v9087_v16  ;;  %v8194_v12 = vshrl.u32 %v17065_v19, 16 }
 0x3f7   : > { %vm19472_vm5 = vnez %v19471_v23  ;;  %7304 = vrot.lane.b32.xlu1 %v7227_v5, %s13243_s12  ;;  %v12887_v18 = vld [vmem:[#allocation3 + $0x68] sm:$0xff]   ;;  %v17171_v1 = vld [vmem:[#allocation3 + $0x38] sm:$0xff]   ;;  %v7228_v47 = vshrl.u32 %v17072_v0, 16  ;;  %v8206_v23 = vshll.u32 %v17126_v52, 16  ;;  %v9095_v8 = vrot.slane %v9093_v7, 1  ;;  %vm19485_vm2 = vmmov %vm19484_vm3 }
 0x3f8   : > { %19467 = vst [vmem:[#allocation7_spill] sm:$0xff] %v17148_v48  ;;  %v7004_v48 = vsel %vm19472_vm5, %v6927_v61, %v7003_v60  ;;  %v8200_v60 = vrot.slane %v8198_v36, 1  ;;  %v9089_v61 = vshrl.u32 %v17070_v58, 16  ;;  %v8202_v5 = vshrl.u32 %v17096_v11, 16  ;;  %v12943_v19 = vld [vmem:[%s18514_s5 + $0x90] sm:$0xff]   ;;  %vm19486_vm0 = vmmov %vm19485_vm2 }
 0x3f9   : > { %7005 = vst [vmem:[#allocation3 + $0x98] sm:$0x3] %v7004_v48  ;;  %9216 = vrot.lane.b32.xlu0 %v9088_v21, %s13243_s12  ;;  %v8196_v48 = vor.u32 %v8194_v12, %v17102_v13  ;;  %v17183_v36 = vld [vmem:[#allocation3 + $0x8] sm:$0xf]  ;;  %v7230_v55 = vor.u32 %v7228_v47, %v7226_v17  ;;  %v7234_v0 = vrot.slane %v7232_v62, 1  ;;  %v19474_v9 = vrot.slane %v17112_v53, 7  ;;  %10913 = vmatpush1.bf16.msra.mxu1 %v12943_v19  ;;  %vm19487_vm14 = vmmov %vm19486_vm0 }
 0x3fa   : > { %v9091_v58 = vor.u32 %v9089_v61, %v9087_v16  ;;  %v19476_v13 = vrot.slane %v17118_v38, 7  ;;  %v7240_v21 = vshll.u32 %v17156_v35, 16  ;;  %v17197_v12 = vld [vmem:[#allocation3 + $0x40] sm:$0xff]   ;;  %v19478_v17 = vrot.slane %v17123_v34, 7  ;;  %v17211_v11 = vld [vmem:[#allocation3 + $0x48] sm:$0xff]   ;;  %10914 = vmatprep.subr.bf16.mxu1 %v18949_v42  ;;  %v17227_v34 = vld [vmem:[#allocation3 + $0x78] sm:$0xff]  }
 0x3fb   : > { %v17188_v3 = vrot.slane %v19474_v9, 4  ;;  %7687 = vrot.lane.b32.xlu1 %v12887_v18, %s13243_s12  ;;  %v12948_v62 = vld [vmem:[%s18514_s5 + $0x88] sm:$0xff]   ;;  %v8201_v9 = vsel %vm19480_vm7, %v8196_v48, %v8200_v60  ;;  %v8204_v61 = vor.u32 %v8202_v5, %v8200_v60  ;;  %v8208_v47 = vrot.slane %v8206_v23, 1  ;;  %v17214_v19 = vld [vmem:[#allocation3 + $0xc] sm:$0xf]  ;;  %vm19488_vm10 = vmmov %vm19486_vm0 }
 0x3fc   : > { %v17192_v7 = vrot.slane %v19476_v13, 4  ;;  %v17204_v16 = vrot.slane %v19478_v17, 4  ;;  %v17207_v13 = vld [vmem:[#allocation3 + $0x70] sm:$0xff]   ;;  %v17209_v18 = vld [vmem:[#allocation3 + $0x40] sm:$0xff]   ;;  %v19481_v17 = vrot.slane %v17151_v14, 7  ;;  %v8214_v60 = vshll.u32 %v17171_v1, 16  ;;  %vm19489_vm11 = vmmov %vm19486_vm0 }
 0x3fd   : > { %19475 = vst [vmem:[#allocation6_spill] sm:$0xff] %v17188_v3  ;;  %8323 = vrot.lane.b32.xlu0 %v8201_v9, %s13243_s12  ;;  %v9096_v23 = vsel %vm19483_vm9, %v9091_v58, %v9095_v8  ;;  %v7235_v48 = vsel %vm19484_vm3, %v7230_v55, %v7234_v0  ;;  %v9097_v5 = vshrl.u32 %v17106_v10, 16  ;;  %v9103_v3 = vrot.slane %v9101_v39, 1  ;;  %v17235_v14 = vld [vmem:[#allocation3 + $0x50] sm:$0xff]   ;;  %10915 = vmatpush1.bf16.msra.mxu1 %v12948_v62  ;;  %vm19490_vm8 = vmmov %vm19486_vm0 }
 0x3fe   : > { %19477 = vst [vmem:[#allocation14_spill] sm:$0xff] %v17192_v7  ;;  %19479 = vst [vmem:[#allocation10_spill] sm:$0xff] %v17204_v16  ;;  %v17220_v16 = vrot.slane %v19481_v17, 4  ;;  %v17229_v7 = vld [vmem:[#allocation3 + $0x48] sm:$0xff]   ;;  %v7236_v17 = vshrl.u32 %v17115_v46, 16  ;;  %v7242_v53 = vrot.slane %v7240_v21, 1  ;;  %v8209_v10 = vsel %vm19485_vm2, %v8204_v61, %v8208_v47  ;;  %10916 = vmatprep.subr.bf16.mxu1 %v18949_v42 }
 0x3ff   : > { %7306 = vrot.lane.b32.xlu1 %v7235_v48, %s13243_s12  ;;  %v8210_v9 = vshrl.u32 %v17126_v52, 16  ;;  %v12955_v39 = vld [vmem:[%s18514_s5 + $0x80] sm:$0xff]   ;;  %v9099_v55 = vor.u32 %v9097_v5, %v9095_v8  ;;  %v7248_v58 = vshll.u32 %v17207_v13, 16  ;;  %v8222_v48 = vshll.u32 %v17209_v18, 16  ;;  %vm19491_vm1 = vmmov %vm19486_vm0 }
 0x400   : > { %19482 = vst [vmem:[#allocation21_spill] sm:$0xff] %v17220_v16  ;;  %v9109_v16 = vshll.u32 %v17197_v12, 16  ;;  %v12892_v52 = vld [vmem:[#allocation3 + $0x70] sm:$0xff]   ;;  %v7238_v46 = vor.u32 %v7236_v17, %v7234_v0  ;;  %v8216_v21 = vrot.slane %v8214_v60, 1  ;;  %v9105_v62 = vshrl.u32 %v17139_v54, 16  ;;  %vm19492_vm5 = vmmov %vm19486_vm0 }
 0x401   : > { %9218 = vrot.lane.b32.xlu0 %v9096_v23, %s13243_s12  ;;  %v9117_v44 = vshll.u32 %v17211_v11, 16  ;;  %v9104_v38 = vsel %vm19486_vm0, %v9099_v55, %v9103_v3  ;;  %v8212_v50 = vor.u32 %v8210_v9, %v8208_v47  ;;  %v7244_v8 = vshrl.u32 %v17156_v35, 16  ;;  %10917 = vmatpush1.bf16.msra.mxu1 %v12955_v39  ;;  %v12957_v54 = vld [vmem:[%s18514_s5 + $0xf8] sm:$0xff]   ;;  %v17257_v9 = vld [vmem:[#allocation3 + $0x80] sm:$0xff]   ;;  %vm19493_vm6 = vmmov %vm19486_vm0 }
 0x402   : > { %v7256_v61 = vshll.u32 %v17227_v34, 16  ;;  %v9107_v5 = vor.u32 %v9105_v62, %v9103_v3  ;;  %v9111_v43 = vrot.slane %v9109_v16, 1  ;;  %v8218_v23 = vshrl.u32 %v17171_v1, 16  ;;  %v17259_v55 = vld [vmem:[#allocation3 + $0x50] sm:$0xff]   ;;  %10918 = vmatprep.subr.bf16.mxu1 %v18949_v42  ;;  %vm19494_vm15 = vmmov %vm19486_vm0 }
 0x403   : > { %7689 = vrot.lane.b32.xlu1 %v12892_v52, %s13243_s12  ;;  %v8230_v0 = vshll.u32 %v17229_v7, 16  ;;  %v7243_v60 = vsel %vm19487_vm14, %v7238_v46, %v7242_v53  ;;  %v7246_v47 = vor.u32 %v7244_v8, %v7242_v53  ;;  %v7250_v17 = vrot.slane %v7248_v58, 1  ;;  %v17265_v52 = vld [vmem:[#allocation3 + $0x58] sm:$0xff]   ;;  %vm19496_vm9 = vmmov %vm19486_vm0 }
 0x404   : > { %v8224_v35 = vrot.slane %v8222_v48, 1  ;;  %v8220_v3 = vor.u32 %v8218_v23, %v8216_v21  ;;  %v9113_v1 = vshrl.u32 %v17197_v12, 16  ;;  %v9119_v16 = vrot.slane %v9117_v44, 1  ;;  %v7666_v44 = vpop.permute.xlu0 %7665  ;;  %v12961_v23 = vld [vmem:[%s18514_s5 + $0xf0] sm:$0xff]   ;;  %vm19499_vm2 = vmmov %vm19486_vm0 }
 0x405   : > { %8325 = vrot.lane.b32.xlu0 %v8209_v10, %s13243_s12  ;;  %v9125_v39 = vshll.u32 %v17235_v14, 16  ;;  %v7252_v53 = vshrl.u32 %v17207_v13, 16  ;;  %v7258_v58 = vrot.slane %v7256_v61, 1  ;;  %v8226_v48 = vshrl.u32 %v17209_v18, 16  ;;  %10919 = vmatpush2.bf16.msra.mxu1 %v12957_v54  ;;  %v12897_v13 = vld [vmem:[#allocation3 + $0x78] sm:$0xff]   ;;  %v7664_v54 = vpop.permute.xlu1 %7663  ;;  %vm19500_vm14 = vmmov %vm19486_vm0 }
 0x406   : > { %v9121_v46 = vshrl.u32 %v17211_v11, 16  ;;  %v8217_v62 = vsel %vm19488_vm10, %v8212_v50, %v8216_v21  ;;  %v9112_v10 = vsel %vm19489_vm11, %v9107_v5, %v9111_v43  ;;  %v9115_v8 = vor.u32 %v9113_v1, %v9111_v43  ;;  %10920 = vmatprep.subr.bf16.mxu1 %v18949_v42 }
 0x407   : > { %7308 = vrot.lane.b32.xlu1 %v7243_v60, %s13243_s12  ;;  %v8232_v12 = vrot.slane %v8230_v0, 1  ;;  %v7254_v61 = vor.u32 %v7252_v53, %v7250_v17  ;;  %v8228_v32 = vor.u32 %v8226_v48, %v8224_v35  ;;  %v7264_v18 = vshll.u32 %v17257_v9, 16  ;;  %v12920_v60 = vld [vmem:[#allocation3] sm:$0xfe]   ;;  %v17282_v0 = vld [vmem:[#allocation3 + $0x88] sm:$0xff]  }
 0x408   : > { %v8238_v11 = vshll.u32 %v17259_v55, 16  ;;  %v9123_v43 = vor.u32 %v9121_v46, %v9119_v16  ;;  %v9127_v50 = vrot.slane %v9125_v39, 1  ;;  %v7260_v21 = vshrl.u32 %v17227_v34, 16 }
 0x409   : > { %9220 = vrot.lane.b32.xlu0 %v9104_v38, %s13243_s12  ;;  %v9133_v5 = vshll.u32 %v17265_v52, 16  ;;  %v7251_v1 = vsel %vm19490_vm8, %v7246_v47, %v7250_v17  ;;  %v17286_v53 = vsel %vm19491_vm1, %v8220_v3, %v8224_v35  ;;  %v17289_v48 = vsel %vm19492_vm5, %v9115_v8, %v9119_v16  ;;  %v17300_v47 = vld [vmem:[#allocation3 + $0x58] sm:$0xff]   ;;  %v17302_v17 = vpop.permute.xlu0 %7667  ;;  %10921 = vmatpush2.bf16.msra.mxu1 %v12961_v23  ;;  %vm19505_vm1 = vmmov %vm19486_vm0 }
 0x40a   : > { %v8234_v45 = vshrl.u32 %v17229_v7, 16  ;;  %v17294_v38 = vsel %vm19493_vm6, %v7254_v61, %v7258_v58  ;;  %v17297_v34 = vsel %vm19494_vm15, %v8228_v32, %v8232_v12  ;;  %v7262_v39 = vor.u32 %v7260_v21, %v7258_v58  ;;  %v12962_v7 = vld [vmem:[%s18514_s5 + $0xe8] sm:$0xff]   ;;  %10922 = vmatprep.subr.bf16.mxu1 %v18949_v42  ;;  %vm19506_vm5 = vmmov %vm19486_vm0 }
 0x40b   : > { %7691 = vrot.lane.b32.xlu1 %v12897_v13, %s13243_s12  ;;  %v9129_v46 = vshrl.u32 %v17235_v14, 16  ;;  %v7266_v35 = vrot.slane %v7264_v18, 1  ;;  %v17307_v16 = vrot.slane %v8238_v11, 1  ;;  %vm19495_vm7 = vcmask 523264   ;;  %v17317_v18 = vld [vmem:[#allocation3 + $0x60] sm:$0xff]   ;;  %vm19507_vm6 = vmmov %vm19486_vm0 }
 0x40c   : > { %v8236_v3 = vor.u32 %v8234_v45, %v8232_v12  ;;  %v7703_v8 = vsel %vm19495_vm7, %v12920_v60, %v7664_v54  ;;  %v17313_v32 = vsel %vm19496_vm9, %v9123_v43, %v9127_v50  ;;  %v9135_v14 = vrot.slane %v9133_v5, 1  ;;  %vm19498_vm3 = vmmov %vm19495_vm7  ;;  %v17336_v54 = vld [vmem:[#allocation3 + $0x60] sm:$0xff]  }
 0x40d   : > { %8327 = vrot.lane.b32.xlu0 %v8217_v62, %s13243_s12  ;;  %v7272_v58 = vshll.u32 %v17282_v0, 16  ;;  %v11922_v23 = vcombine.low %v7703_v8, %v7703_v8  ;;  %v9131_v13 = vor.u32 %v9129_v46, %v9127_v50  ;;  %v7268_v61 = vshrl.u32 %v17257_v9, 16  ;;  %10923 = vmatpush2.bf16.msra.mxu1 %v12962_v7  ;;  %v12966_v9 = vld [vmem:[%s18514_s5 + $0xe0] sm:$0xff]   ;;  %vm19503_vm11 = vmmov %vm19498_vm3 }
 0x40e   : > { %v11923_v45 = vcombine.high %v7703_v8, %v7703_v8  ;;  %v19497_v12 = vcombine.low %v17183_v36, %v17214_v19  ;;  %v8246_v62 = vshll.u32 %v17300_v47, 16  ;;  %v17329_v50 = vsel %vm19499_vm2, %v7262_v39, %v7266_v35  ;;  %10924 = vmatprep.subr.bf16.mxu1 %v18949_v42  ;;  %vm19504_vm8 = vmmov %vm19498_vm3 }
 0x40f   : > { %7310 = vrot.lane.b32.xlu1 %v7251_v1, %s13243_s12  ;;  %v11959_v60 = vrot.slane %v11922_v23, 9  ;;  %v17333_v36 = vsel %vm19486_vm0, %v8236_v3, %v17307_v16  ;;  %v8242_v19 = vshrl.u32 %v17259_v55, 16  ;;  %v12902_v1 = vld [vmem:[#allocation3 + $0x80] sm:$0xff]   ;;  %v17341_v46 = vsel %vm19500_vm14, %v9131_v13, %v9135_v14  ;;  %v17343_v23 = vpop.permute.xlu0 %7669  ;;  %vm19508_vm15 = vmmov %vm19486_vm0 }
 0x410   : > { %v7706_v11 = vsel %vm19498_vm3, %v19497_v12, %v7666_v44  ;;  %v12919_v44 = vld [vmem:[#allocation3 + $0x90] ss:$0 sps:$4 sm:$0x11]   ;;  %v7853_v5 = vrot.slane %v11923_v45, 5  ;;  %v7270_v39 = vor.u32 %v7268_v61, %v7266_v35  ;;  %v7274_v7 = vrot.slane %v7272_v58, 1  ;;  %vm19509_vm7 = vmmov %vm19486_vm0 }
 0x411   : > { %v11924_v43 = vcombine.low %v7706_v11, %v7706_v11  ;;  %v11925_v21 = vcombine.high %v7706_v11, %v7706_v11  ;;  %9222 = vrot.lane.b32.xlu0 %v9112_v10, %s13243_s12  ;;  %v9137_v3 = vshrl.u32 %v17265_v52, 16  ;;  %v9141_v55 = vshll.u32 %v17317_v18, 16  ;;  %v19501_v45 = vld [vmem:[#allocation19_spill] sm:$0xff]  ;;  %v7285_v10 = vpop.permute.xlu1 %7284  ;;  %10925 = vmatpush2.bf16.msra.mxu1 %v12966_v9  ;;  %vm19510_vm9 = vmmov %vm19498_vm3 }
 0x412   : > { %vm19502_vm10 = vnez %v19501_v45  ;;  %v7855_v11 = vrot.slane %v7853_v5, 4  ;;  %v8248_v13 = vrot.slane %v8246_v62, 1  ;;  %v7276_v35 = vshrl.u32 %v17282_v0, 16  ;;  %v12967_v52 = vld [vmem:[%s18514_s5 + $0xd8] sm:$0xff]   ;;  %10926 = vmatprep.subr.bf16.mxu1 %v18949_v42  ;;  %vm19511_vm3 = vmmov %vm19486_vm0 }
 0x413   : > { %v7856_v8 = vrot.slane %v11924_v43, 5  ;;  %v7854_v12 = vsel %vm19502_vm10, %v11959_v60, %v7853_v5  ;;  %7693 = vrot.lane.b32.xlu1 %v12902_v1, %s13243_s12  ;;  %v7859_v61 = vrot.slane %v11925_v21, 5  ;;  %v17356_v43 = vld [vmem:[#allocation3 + $0x90] sm:$0xf]  ;;  %v7280_v60 = vshll.u32 %v12919_v44, 16  ;;  %v13162_v1 = vld [vmem:[#allocation3] sm:$0xff]   ;;  %vm19512_vm2 = vmmov %vm19504_vm8 }
 0x414   : > { %7996 = vst [vmem:[#allocation4 + $0x4] sm:$0xf] %v7854_v12  ;;  %v8254_v41 = vshll.u32 %v17336_v54, 16  ;;  %v7321_v62 = vsel %vm19503_vm11, %v13162_v1, %v7285_v10  ;;  %v9139_v0 = vor.u32 %v9137_v3, %v9135_v14  ;;  %v9143_v12 = vrot.slane %v9141_v55, 1  ;;  %v17375_v14 = vld [vmem:[#allocation3 + $0x68] sm:$0xff]   ;;  %vm19513_vm0 = vmmov %vm19512_vm2 }
 0x415   : > { %v7858_v58 = vrot.slane %v7856_v8, 4  ;;  %v7857_v5 = vsel %vm19502_vm10, %v7855_v11, %v7856_v8  ;;  %8329 = vrot.lane.b32.xlu0 %v17286_v53, %s13243_s12  ;;  %v11864_v9 = vcombine.low %v7321_v62, %v7321_v62  ;;  %v11865_v44 = vcombine.high %v7321_v62, %v7321_v62  ;;  %10927 = vmatpush2.bf16.msra.mxu1 %v12967_v52  ;;  %vm19514_vm14 = vmmov %vm19513_vm0 }
 0x416   : > { %7997 = vst [vmem:[#allocation4 + $0x18] sm:$0xf] %v7857_v5  ;;  %v8250_v8 = vshrl.u32 %v17300_v47, 16  ;;  %v9149_v11 = vshll.u32 %v17349_v29, 16  ;;  %v7709_v10 = vsel %vm19504_vm8, %v13163_v51, %v17302_v17  ;;  %v8244_v53 = vor.u32 %v8242_v19, %v17307_v16  ;;  %v7672_v47 = vpop.permute.xlu0 %7671  ;;  %10928 = vmatprep.subr.bf16.mxu1 %v18949_v42  ;;  %vm19515_vm11 = vmmov %vm19505_vm1 }
 0x417   : > { %v7860_v21 = vsel %vm19502_vm10, %v7858_v58, %v7859_v61  ;;  %7312 = vrot.lane.b32.xlu1 %v17294_v38, %s13243_s12  ;;  %7482 = vst [vmem:[#allocation4] sm:$0xf] %v11864_v9  ;;  %7483 = vst [vmem:[#allocation4 + $0x14] sm:$0xf] %v11865_v44  ;;  %v11926_v3 = vcombine.low %v7709_v10, %v7709_v10  ;;  %v11927_v55 = vcombine.high %v7709_v10, %v7709_v10  ;;  %v12971_v58 = vld [vmem:[%s18514_s5 + $0xd0] sm:$0xff]   ;;  %v17394_v44 = vld [vmem:[#allocation3 + $0x70] sm:$0xff]  }
 0x418   : > { %7998 = vst [vmem:[#allocation4 + $0x2c] sm:$0xf] %v7860_v21  ;;  %v7278_v51 = vor.u32 %v7276_v35, %v7274_v7  ;;  %v7282_v17 = vrot.slane %v7280_v60, 1  ;;  %v8252_v5 = vor.u32 %v8250_v8, %v8248_v13  ;;  %v8256_v62 = vrot.slane %v8254_v41, 1  ;;  %v12907_v38 = vld [vmem:[#allocation3 + $0x88] sm:$0xff]   ;;  %vm19516_vm8 = vmmov %vm19505_vm1 }
 0x419   : > { %9224 = vrot.lane.b32.xlu0 %v17289_v48, %s13243_s12  ;;  %v17384_v16 = vsel %vm19505_vm1, %v7270_v39, %v7274_v7  ;;  %v17387_v19 = vsel %vm19506_vm5, %v8244_v53, %v8248_v13  ;;  %v7861_v52 = vrot.slane %v7859_v61, 4  ;;  %v7862_v21 = vrot.slane %v11926_v3, 5  ;;  %v17396_v48 = vld [vmem:[#allocation3 + $0x70] sm:$0xff]   ;;  %10929 = vmatpush2.bf16.msra.mxu1 %v12971_v58  ;;  %vm19517_vm5 = vmmov %vm19513_vm0 }
 0x41a   : > { %v17390_v9 = vsel %vm19507_vm6, %v9139_v0, %v9143_v12  ;;  %v9145_v35 = vshrl.u32 %v17317_v18, 16  ;;  %v9151_v41 = vrot.slane %v9149_v11, 1  ;;  %v8258_v60 = vshrl.u32 %v17336_v54, 16  ;;  %v12973_v18 = vld [vmem:[%s18514_s5 + $0xc8] sm:$0xff]   ;;  %10930 = vmatprep.subr.bf16.mxu1 %v18949_v42  ;;  %vm19518_vm6 = vmmov %vm19513_vm0 }
 0x41b   : > { %7695 = vrot.lane.b32.xlu1 %v12907_v38, %s13243_s12  ;;  %v8262_v39 = vshll.u32 %v17375_v14, 16  ;;  %v7863_v7 = vsel %vm19502_vm10, %v7861_v52, %v7862_v21  ;;  %v7864_v13 = vrot.slane %v7862_v21, 4  ;;  %v7865_v61 = vrot.slane %v11927_v55, 5  ;;  %v13164_v11 = vld [vmem:[#allocation3 + $0x18] sm:$0xff]  }
 0x41c   : > { %v17406_v54 = vsel %vm19508_vm15, %v7278_v51, %v7282_v17  ;;  %v17409_v0 = vsel %vm19509_vm7, %v8252_v5, %v8256_v62  ;;  %v9147_v8 = vor.u32 %v9145_v35, %v9143_v12  ;;  %7999 = vst [vmem:[#allocation4 + $0x40] sm:$0xf] %v7863_v7  ;;  %v7712_v10 = vsel %vm19510_vm9, %v13164_v11, %v17343_v23  ;;  %v17420_v51 = vpop.permute.xlu0 %7673  ;;  %v13165_v35 = vld [vmem:[#allocation3 + $0x20] sm:$0xff]   ;;  %vm19519_vm15 = vmmov %vm19505_vm1 }
 0x41d   : > { %8331 = vrot.lane.b32.xlu0 %v17297_v34, %s13243_s12  ;;  %v17416_v53 = vor.u32 %v8258_v60, %v8256_v62  ;;  %v7866_v3 = vsel %vm19502_vm10, %v7864_v13, %v7865_v61  ;;  %v11928_v55 = vcombine.low %v7712_v10, %v7712_v10  ;;  %v11929_v58 = vcombine.high %v7712_v10, %v7712_v10  ;;  %v17428_v34 = vld [vmem:[#allocation3 + $0x78] sm:$0xff]   ;;  %v13166_v13 = vld [vmem:[#allocation3 + $0x8] sm:$0xff]   ;;  %v12941_v1 = vld [vmem:[#allocation4 + $0x4] ss:$20 sps:$4 sm:$0xff]  }
 0x41e   : > { %v17423_v12 = vsel %vm19511_vm3, %v9147_v8, %v9151_v41  ;;  %v9153_v17 = vshrl.u32 %v17349_v29, 16  ;;  %v9157_v23 = vshll.u32 %v17394_v44, 16  ;;  %8000 = vst [vmem:[#allocation4 + $0x54] sm:$0xf] %v7866_v3  ;;  %v8270_v5 = vshll.u32 %v17396_v48, 16  ;;  %10931 = vmatpush2.bf16.msra.mxu1 %v12973_v18  ;;  %v17435_v3 = vld [vmem:[#allocation3 + $0x78] sm:$0xff]   ;;  %10757 = vmatprep.mubr.bf16.mxu0 %v12941_v1  ;;  %vm19520_vm7 = vmmov %vm19505_vm1 }
 0x41f   : > { %7314 = vrot.lane.b32.xlu1 %v17329_v50, %s13243_s12  ;;  %v8264_v62 = vrot.slane %v8262_v39, 1  ;;  %v7867_v38 = vrot.slane %v7865_v61, 4  ;;  %v7287_v52 = vpop.permute.xlu1 %7286  ;;  %v7868_v21 = vrot.slane %v11928_v55, 5  ;;  %v7715_v60 = vsel %vm19512_vm2, %v13165_v35, %v7672_v47  ;;  %v12939_v7 = vld [vmem:[#allocation4] ss:$20 sps:$4 sm:$0xff]   ;;  %10932 = vmatprep.subr.bf16.mxu1 %v18949_v42  ;;  %v12977_v50 = vld [vmem:[%s18514_s5 + $0xc0] sm:$0xff]   ;;  %vm19521_vm9 = vmmov %vm19505_vm1 }
 0x420   : > { %v9155_v29 = vor.u32 %v9153_v17, %v9151_v41  ;;  %v7323_v8 = vsel %vm19513_vm0, %v13166_v13, %v7287_v52  ;;  %v8266_v11 = vshrl.u32 %v17375_v14, 16  ;;  %v7871_v10 = vrot.slane %v11929_v58, 5  ;;  %v12912_v47 = vld [vmem:[#allocation3 + $0x90] sm:$0xff]   ;;  %v17445_v18 = vld [vmem:[#allocation3 + $0x80] sm:$0xff]   ;;  %10758 = vmatmul.mubr.bf16.vlgmr.msra.gmra.mxu0 %v12939_v7  ;;  %vm19522_vm3 = vmmov %vm19513_vm0 }
 0x421   : > { %9226 = vrot.lane.b32.xlu0 %v17313_v32, %s13243_s12  ;;  %v11866_v41 = vcombine.low %v7323_v8, %v7323_v8  ;;  %v11867_v39 = vcombine.high %v7323_v8, %v7323_v8  ;;  %v7869_v61 = vsel %vm19502_vm10, %v7867_v38, %v7868_v21  ;;  %v7870_v14 = vrot.slane %v7868_v21, 4  ;;  %v12972_v42 = vld [vmem:[%s18514_s5 + $0x110] sm:$0xff]   ;;  %12453 = vmatpush3.bf16.msra.mxu0 %v17144_v63  ;;  %vm19523_vm2 = vmmov %vm19513_vm0 }
 0x422   : > { %v9159_v55 = vrot.slane %v9157_v23, 1  ;;  %v9165_v58 = vshll.u32 %v17428_v34, 16  ;;  %8001 = vst [vmem:[#allocation4 + $0x68] sm:$0xf] %v7869_v61  ;;  %v11930_v17 = vcombine.low %v7715_v60, %v7715_v60  ;;  %v11931_v52 = vcombine.high %v7715_v60, %v7715_v60  ;;  %v7676_v23 = vpop.permute.xlu0 %7675  ;;  %v13167_v61 = vld [vmem:[#allocation3 + $0x10] sm:$0xff]   ;;  %10933 = vmatpush2.bf16.msra.mxu1 %v12977_v50  ;;  %12454 = vmatprep.subr.bf16.mxu0 %v12972_v42 }
 0x423   : > { %7697 = vrot.lane.b32.xlu1 %v12912_v47, %s13243_s12  ;;  %7484 = vst [vmem:[#allocation4 + $0x28] sm:$0xf] %v11866_v41  ;;  %7485 = vst [vmem:[#allocation4 + $0x3c] sm:$0xf] %v11867_v39  ;;  %v8268_v32 = vor.u32 %v8266_v11, %v8264_v62  ;;  %v8272_v38 = vrot.slane %v8270_v5, 1  ;;  %v9161_v21 = vshrl.u32 %v17394_v44, 16  ;;  %v7872_v35 = vsel %vm19502_vm10, %v7870_v14, %v7871_v10  ;;  %v7289_v13 = vpop.permute.xlu1 %7288 }
 0x424   : > { %v7873_v8 = vrot.slane %v7871_v10, 4  ;;  %8002 = vst [vmem:[#allocation4 + $0x7c] sm:$0xf] %v7872_v35  ;;  %v7325_v60 = vsel %vm19514_vm14, %v13167_v61, %v7289_v13  ;;  %v8278_v1 = vshll.u32 %v17435_v3, 16  ;;  %v7874_v47 = vrot.slane %v11930_v17, 5  ;;  %v12999_v10 = vld [vmem:[%s18514_s5 + $0x108] sm:$0xff]   ;;  %vm19524_vm14 = vmmov %vm19505_vm1 }
 0x425   : > { %8333 = vrot.lane.b32.xlu0 %v17333_v36, %s13243_s12  ;;  %v11868_v44 = vcombine.low %v7325_v60, %v7325_v60  ;;  %v11869_v5 = vcombine.high %v7325_v60, %v7325_v60  ;;  %v9173_v11 = vshll.u32 %v17445_v18, 16  ;;  %v7877_v7 = vrot.slane %v11931_v52, 5  ;;  %v17483_v35 = vld [vmem:[#allocation3 + $0x88] sm:$0xff]   ;;  %12455 = vmatpush3.bf16.msra.mxu0 %v12972_v42 }
 0x426   : > { %v17466_v41 = vsel %vm19515_vm11, %v17416_v53, %v8264_v62  ;;  %v9167_v39 = vrot.slane %v9165_v58, 1  ;;  %v7875_v63 = vsel %vm19502_vm10, %v7873_v8, %v7874_v47  ;;  %v7876_v50 = vrot.slane %v7874_v47, 4  ;;  %v13168_v53 = vld [vmem:[#allocation3 + $0x28] sm:$0xff]   ;;  %v12917_v58 = vld [vmem:[#allocation3 + $0x98] ss:$0 sps:$4 sm:$0x11]   ;;  %v7678_v61 = vpop.permute.xlu0 %7677  ;;  %12456 = vmatprep.subr.bf16.mxu0 %v12999_v10  ;;  %vm19525_vm11 = vmmov %vm19505_vm1 }
 0x427   : > { %7316 = vrot.lane.b32.xlu1 %v17384_v16, %s13243_s12  ;;  %v17473_v36 = vsel %vm19516_vm8, %v9155_v29, %v9159_v55  ;;  %v17476_v14 = vsel %vm19505_vm1, %v8268_v32, %v8272_v38  ;;  %v9163_v17 = vor.u32 %v9161_v21, %v9159_v55  ;;  %7486 = vst [vmem:[#allocation4 + $0x50] sm:$0xf] %v11868_v44  ;;  %7487 = vst [vmem:[#allocation4 + $0x64] sm:$0xf] %v11869_v5  ;;  %v13169_v5 = vld [vmem:[#allocation3 + $0x30] sm:$0xff]  }
 0x428   : > { %8003 = vst [vmem:[#allocation4 + $0x90] sm:$0xf] %v7875_v63  ;;  %v7718_v62 = vsel %vm19517_vm5, %v13168_v53, %v17420_v51  ;;  %v9169_v52 = vshrl.u32 %v17428_v34, 16  ;;  %v7878_v16 = vsel %vm19502_vm10, %v7876_v50, %v7877_v7  ;;  %v8274_v55 = vshrl.u32 %v17396_v48, 16  ;;  %v17488_v51 = vld [vmem:[#allocation3 + $0x80] sm:$0xff]   ;;  %v17490_v34 = vld [vmem:[#allocation3 + $0x90] sm:$0xff]   ;;  %vm19526_vm8 = vmmov %vm19505_vm1 }
 0x429   : > { %v11932_v29 = vcombine.low %v7718_v62, %v7718_v62  ;;  %v11933_v13 = vcombine.high %v7718_v62, %v7718_v62  ;;  %9228 = vrot.lane.b32.xlu0 %v17341_v46, %s13243_s12  ;;  %v8280_v32 = vrot.slane %v8278_v1, 1  ;;  %v9175_v21 = vrot.slane %v9173_v11, 1  ;;  %8004 = vst [vmem:[#allocation4 + $0xa4] sm:$0xf] %v7878_v16  ;;  %v12945_v63 = vld [vmem:[#allocation4 + $0x2c] ss:$20 sps:$4 sm:$0xff]   ;;  %12457 = vmatpush3.bf16.msra.mxu0 %v12999_v10  ;;  %vm19527_vm1 = vmmov %vm19513_vm0 }
 0x42a   : > { %v7879_v8 = vrot.slane %v7877_v7, 4  ;;  %v9171_v60 = vor.u32 %v9169_v52, %v9167_v39  ;;  %v7721_v42 = vsel %vm19518_vm6, %v13169_v5, %v7676_v23  ;;  %v17495_v46 = vsel %vm19519_vm15, %v9163_v17, %v9167_v39  ;;  %v12950_v7 = vld [vmem:[#allocation4 + $0x28] ss:$20 sps:$4 sm:$0xff]   ;;  %10765 = vmatprep.mubr.bf16.mxu0 %v12945_v63  ;;  %vm19528_vm5 = vmmov %vm19513_vm0 }
 0x42b   : > { %v7880_v47 = vrot.slane %v11932_v29, 5  ;;  %v7883_v44 = vrot.slane %v11933_v13, 5  ;;  %7699 = vrot.lane.b32.xlu1 %v12917_v58, %s13243_s12  ;;  %v8276_v48 = vor.u32 %v8274_v55, %v8272_v38  ;;  %v8282_v1 = vshrl.u32 %v17435_v3, 16  ;;  %10766 = vmatmul.mubr.bf16.gmra.mxu0 %v12950_v7  ;;  %v17512_v10 = vld [vmem:[#allocation3 + $0x88] sm:$0xff]   ;;  %v13170_v29 = vld [vmem:[#allocation3 + $0x38] sm:$0xff]   ;;  %vm19531_vm6 = vmmov %vm19513_vm0 }
 0x42c   : > { %v11934_v11 = vcombine.low %v7721_v42, %v7721_v42  ;;  %v9181_v50 = vshll.u32 %v17483_v35, 16  ;;  %v11935_v52 = vcombine.high %v7721_v42, %v7721_v42  ;;  %v8286_v38 = vshll.u32 %v17488_v51, 16  ;;  %v13171_v55 = vld [vmem:[#allocation3 + $0x18] sm:$0xff]   ;;  %v7680_v42 = vpop.permute.xlu0 %7679 }
 0x42d   : > { %v7881_v53 = vsel %vm19502_vm10, %v7879_v8, %v7880_v47  ;;  %v7882_v62 = vrot.slane %v7880_v47, 4  ;;  %8335 = vrot.lane.b32.xlu0 %v17387_v19, %s13243_s12  ;;  %v17504_v23 = vsel %vm19520_vm7, %v8276_v48, %v8280_v32  ;;  %v7885_v3 = vrot.slane %v7883_v44, 4 }
 0x42e   : > { %8005 = vst [vmem:[#allocation4 + $0xb8] sm:$0xf] %v7881_v53  ;;  %v7886_v39 = vrot.slane %v11934_v11, 5  ;;  %v17508_v17 = vsel %vm19521_vm9, %v9171_v60, %v9175_v21  ;;  %v7291_v58 = vpop.permute.xlu1 %7290  ;;  %v9189_v19 = vshll.u32 %v17490_v34, 16  ;;  %v7724_v13 = vsel %vm19522_vm3, %v13170_v29, %v7678_v61  ;;  %v17522_v61 = vld [vmem:[#allocation3 + $0x98] sm:$0xff]   ;;  %v13172_v29 = vld [vmem:[#allocation3 + $0x20] sm:$0xff]  }
 0x42f   : > { %v7884_v16 = vsel %vm19502_vm10, %v7882_v62, %v7883_v44  ;;  %7318 = vrot.lane.b32.xlu1 %v17406_v54, %s13243_s12  ;;  %v7327_v8 = vsel %vm19523_vm2, %v13171_v55, %v7291_v58  ;;  %v7889_v5 = vrot.slane %v11935_v52, 5  ;;  %v12953_v44 = vld [vmem:[#allocation4 + $0x54] ss:$20 sps:$4 sm:$0xff]   ;;  %v9177_v11 = vshrl.u32 %v17445_v18, 16 }
 0x430   : > { %8006 = vst [vmem:[#allocation4 + $0xcc] sm:$0xf] %v7884_v16  ;;  %v7887_v60 = vsel %vm19502_vm10, %v7885_v3, %v7886_v39  ;;  %v7888_v47 = vrot.slane %v7886_v39, 4  ;;  %v11870_v63 = vcombine.low %v7327_v8, %v7327_v8  ;;  %v11871_v48 = vcombine.high %v7327_v8, %v7327_v8  ;;  %10773 = vmatprep.mubr.bf16.mxu0 %v12953_v44  ;;  %v12951_v16 = vld [vmem:[#allocation4 + $0x50] ss:$20 sps:$4 sm:$0xff]  }
 0x431   : > { %v9183_v7 = vrot.slane %v9181_v50, 1  ;;  %8007 = vst [vmem:[#allocation4 + $0xe0] sm:$0xf] %v7887_v60  ;;  %9230 = vrot.lane.b32.xlu0 %v17390_v9, %s13243_s12  ;;  %v8284_v54 = vor.u32 %v8282_v1, %v8280_v32  ;;  %v8288_v53 = vrot.slane %v8286_v38, 1  ;;  %v11936_v3 = vcombine.low %v7724_v13, %v7724_v13  ;;  %v17534_v8 = vld [vmem:[#allocation3 + $0x90] sm:$0xff]  }
 0x432   : > { %v7890_v62 = vsel %vm19502_vm10, %v7888_v47, %v7889_v5  ;;  %7488 = vst [vmem:[#allocation4 + $0x78] sm:$0xf] %v11870_v63  ;;  %7489 = vst [vmem:[#allocation4 + $0x8c] sm:$0xf] %v11871_v48  ;;  %v9179_v52 = vor.u32 %v9177_v11, %v9175_v21  ;;  %v8294_v39 = vshll.u32 %v17512_v10, 16  ;;  %v9185_v18 = vshrl.u32 %v17483_v35, 16  ;;  %v7682_v47 = vpop.permute.xlu0 %7681 }
 0x433   : > { %8008 = vst [vmem:[#allocation4 + $0xf4] sm:$0xf] %v7890_v62  ;;  %v11937_v50 = vcombine.high %v7724_v13, %v7724_v13  ;;  %9232 = vrot.lane.b32.xlu1 %v17423_v12, %s13243_s12  ;;  %v7293_v9 = vpop.permute.xlu1 %7292  ;;  %v8290_v32 = vshrl.u32 %v17488_v51, 16  ;;  %v9191_v1 = vrot.slane %v9189_v19, 1  ;;  %v7891_v38 = vrot.slane %v7889_v5, 4  ;;  %10774 = vmatmul.mubr.bf16.gmra.mxu0 %v12951_v16 }
 0x434   : > { %v7892_v58 = vrot.slane %v11936_v3, 5  ;;  %v7329_v55 = vsel %vm19513_vm0, %v13172_v29, %v7293_v9  ;;  %v9187_v21 = vor.u32 %v9185_v18, %v9183_v7  ;;  %v9197_v35 = vshll.u32 %v17522_v61, 16  ;;  %v12960_v29 = vld [vmem:[#allocation4 + $0x7c] ss:$20 sps:$4 sm:$0xff]  }
 0x435   : > { %v7895_v60 = vrot.slane %v11937_v50, 5  ;;  %8337 = vrot.lane.b32.xlu0 %v17409_v0, %s13243_s12  ;;  %v11872_v12 = vcombine.low %v7329_v55, %v7329_v55  ;;  %v11873_v13 = vcombine.high %v7329_v55, %v7329_v55  ;;  %v17542_v5 = vsel %vm19524_vm14, %v8284_v54, %v8288_v53  ;;  %10781 = vmatprep.mubr.bf16.mxu0 %v12960_v29  ;;  %vm19549_vm14 = vmmov %vm19527_vm1 }
 0x436   : > { %v7893_v51 = vsel %vm19502_vm10, %v7891_v38, %v7892_v58  ;;  %v7894_v19 = vrot.slane %v7892_v58, 4  ;;  %v17545_v44 = vsel %vm19525_vm11, %v9179_v52, %v9183_v7  ;;  %v17547_v63 = vor.u32 %v8290_v32, %v8288_v53  ;;  %v17559_v7 = vld [vmem:[#allocation3 + $0xa0] ss:$0 sps:$4 sm:$0x77]  }
 0x437   : > { %v17549_v48 = vrot.slane %v8294_v39, 1  ;;  %8009 = vst [vmem:[#allocation4 + $0x108] sm:$0xf] %v7893_v51  ;;  %9234 = vrot.lane.b32.xlu1 %v17473_v36, %s13243_s12  ;;  %7490 = vst [vmem:[#allocation4 + $0xa0] sm:$0xf] %v11872_v12  ;;  %v17554_v0 = vsel %vm19526_vm8, %v9187_v21, %v9191_v1  ;;  %v9193_v11 = vshrl.u32 %v17490_v34, 16 }
 0x438   : > { %7491 = vst [vmem:[#allocation4 + $0xb4] sm:$0xf] %v11873_v13  ;;  %v7896_v54 = vsel %vm19502_vm10, %v7894_v19, %v7895_v60  ;;  %v13173_v53 = vld [vmem:[#allocation3 + $0x40] sm:$0xff]   ;;  %v8302_v3 = vshll.u32 %v17534_v8, 16  ;;  %v13174_v39 = vld [vmem:[#allocation3 + $0x48] sm:$0xff]   ;;  %v17568_v50 = vrot.slane %v9197_v35, 1 }
 0x439   : > { %v7727_v62 = vsel %vm19527_vm1, %v13173_v53, %v7680_v42  ;;  %8010 = vst [vmem:[#allocation4 + $0x11c] sm:$0xf] %v7896_v54  ;;  %v7730_v18 = vsel %vm19528_vm5, %v13174_v39, %v7682_v47  ;;  %8339 = vrot.lane.b32.xlu0 %v17466_v41, %s13243_s12  ;;  %v17566_v34 = vor.u32 %v9193_v11, %v9191_v1  ;;  %v7897_v58 = vrot.slane %v7895_v60, 4  ;;  %v13175_v41 = vld [vmem:[#allocation3 + $0x28] sm:$0xff]   ;;  %v12958_v60 = vld [vmem:[#allocation4 + $0x78] ss:$20 sps:$4 sm:$0xff]  }
 0x43a   : > { %v11938_v52 = vcombine.low %v7727_v62, %v7727_v62  ;;  %v11939_v36 = vcombine.high %v7727_v62, %v7727_v62  ;;  %v11940_v9 = vcombine.low %v7730_v18, %v7730_v18  ;;  %v11941_v32 = vcombine.high %v7730_v18, %v7730_v18  ;;  %v7295_v38 = vpop.permute.xlu1 %7294 }
 0x43b   : > { %v19529_v55 = vrot.slane %v16517_v57, 7  ;;  %v19530_v21 = vrot.slane %v16569_v22, 11  ;;  %9236 = vrot.lane.b32.xlu1 %v17495_v46, %s13243_s12  ;;  %v7331_v1 = vsel %vm19531_vm6, %v13175_v41, %v7295_v38  ;;  %v9205_v35 = vshll.u32 %v17559_v7, 16  ;;  %10782 = vmatmul.mubr.bf16.gmra.mxu0 %v12958_v60 }
 0x43c   : > { %v7898_v42 = vrot.slane %v11938_v52, 5  ;;  %v7901_v16 = vrot.slane %v11939_v36, 5  ;;  %v7904_v13 = vrot.slane %v11940_v9, 5  ;;  %v19532_v51 = vrot.slane %v16531_v33, 7 }
 0x43d   : > { %v9640_v12 = vsel %vm15732_vm4, %v19530_v21, %v19529_v55  ;;  %vm19533_vm15 = vcmask 519168   ;;  %v11874_v22 = vcombine.low %v7331_v1, %v7331_v1  ;;  %v11875_v19 = vcombine.high %v7331_v1, %v7331_v1  ;;  %8341 = vrot.lane.b32.xlu0 %v17476_v14, %s13243_s12 }
 0x43e   : > { %v9643_v57 = vsel %vm15732_vm4, %v16611_v49, %v19532_v51  ;;  %9782 = vst.msk [vmem:[#allocation4 + $0x10] sm:$0xf] %vm19533_vm15, %v9640_v12  ;;  %v7899_v46 = vsel %vm19502_vm10, %v7897_v58, %v7898_v42  ;;  %v7900_v47 = vrot.slane %v7898_v42, 4  ;;  %vm19534_vm7 = vmmov %vm19533_vm15  ;;  %v7903_v11 = vrot.slane %v7901_v16, 4  ;;  %v19557_v12 = vld [vmem:[#allocation47_spill] sm:$0xff]  ;;  %v19560_v51 = vld [vmem:[#allocation44_spill] sm:$0xff] }
 0x43f   : > { %9783 = vst.msk [vmem:[#allocation4 + $0x24] sm:$0xf] %vm19534_vm7, %v9643_v57  ;;  %8011 = vst [vmem:[#allocation4 + $0x130] sm:$0xf] %v7899_v46  ;;  %v7906_v33 = vrot.slane %v7904_v13, 4  ;;  %v17591_v54 = vrot.slane %v11941_v32, 5  ;;  %9238 = vrot.lane.b32.xlu1 %v17508_v17, %s13243_s12 }
 0x440   : > { %v19535_v49 = vrot.slane %v16582_v25, 7  ;;  %7492 = vst [vmem:[#allocation4 + $0xc8] sm:$0xf] %v11874_v22  ;;  %7493 = vst [vmem:[#allocation4 + $0xdc] sm:$0xf] %v11875_v19  ;;  %v7902_v62 = vsel %vm19502_vm10, %v7900_v47, %v7901_v16  ;;  %v19536_v52 = vrot.slane %v16624_v27, 7  ;;  %v7905_v27 = vsel %vm19502_vm10, %v7903_v11, %v7904_v13  ;;  %v7297_v32 = vpop.permute.xlu1 %7296 }
 0x441   : > { %v19537_v36 = vrot.slane %v16643_v30, 7  ;;  %v19538_v25 = vrot.slane %v16689_v56, 7  ;;  %8012 = vst [vmem:[#allocation4 + $0x144] sm:$0xf] %v7902_v62  ;;  %v7908_v30 = vsel %vm19502_vm10, %v7906_v33, %v17591_v54  ;;  %vm19540_vm9 = vmmov %vm19534_vm7  ;;  %v19545_v38 = vrot.slane %v16707_v15, 7  ;;  %8343 = vrot.lane.b32.xlu0 %v17504_v23, %s13243_s12  ;;  %v13176_v15 = vld [vmem:[#allocation3 + $0x30] sm:$0xff]  }
 0x442   : > { %v9650_v53 = vrot.slane %v19535_v49, 4  ;;  %v9655_v14 = vsel %vm15732_vm4, %v16683_v2, %v19536_v52  ;;  %v12965_v2 = vld [vmem:[#allocation4 + $0xa4] ss:$20 sps:$4 sm:$0xff]   ;;  %vm19541_vm3 = vmmov %vm19534_vm7  ;;  %8013 = vst [vmem:[#allocation4 + $0x158] sm:$0xf] %v7905_v27  ;;  %v19546_v58 = vrot.slane %v16729_v6, 7 }
 0x443   : > { %v9658_v39 = vsel %vm15732_vm4, %v16687_v31, %v19537_v36  ;;  %v9661_v18 = vsel %vm15732_vm4, %v16700_v26, %v19538_v25  ;;  %v19539_v31 = vrot.slane %v16580_v40, 7  ;;  %9787 = vst.msk [vmem:[#allocation4 + $0x74] sm:$0xf] %vm19540_vm9, %v9655_v14  ;;  %vm19542_vm2 = vmmov %vm19541_vm3  ;;  %v19543_v26 = vmov %v19538_v25  ;;  %10789 = vmatprep.mubr.bf16.mxu0 %v12965_v2  ;;  %v19550_v6 = vld [vmem:[#allocation43_spill] sm:$0xff]  ;;  %v19563_v19 = vld [vmem:[#allocation45_spill] sm:$0xff]  ;;  %9240 = vrot.lane.b32.xlu1 %v17545_v44, %s13243_s12 }
 0x444   : > { %9788 = vst.msk [vmem:[#allocation4 + $0x88] sm:$0xf] %vm19541_vm3, %v9658_v39  ;;  %v9662_v17 = vrot.slane %v19543_v26, 4  ;;  %8014 = vst [vmem:[#allocation4 + $0x16c] sm:$0xf] %v7908_v30  ;;  %v9667_v40 = vsel %vm15732_vm4, %v16696_v24, %v19545_v38  ;;  %v9670_v42 = vsel %vm15732_vm4, %v16766_v37, %v19546_v58  ;;  %v19547_v56 = vrot.slane %v16769_v59, 7 }
 0x445   : > { %v9652_v9 = vsel %vm15732_vm4, %v9650_v53, %v19539_v31  ;;  %9789 = vst.msk [vmem:[#allocation4 + $0x9c] sm:$0xf] %vm19542_vm2, %v9661_v18  ;;  %vm19544_vm0 = vmmov %vm19542_vm2  ;;  %v7333_v24 = vsel %vm19549_vm14, %v13176_v15, %v7297_v32  ;;  %v19551_v21 = vrot.slane %v19550_v6, 7  ;;  %v19555_v59 = vrot.slane %v16807_v20, 7  ;;  %v19565_v46 = vld [vmem:[#allocation59_spill] sm:$0xff]  ;;  %v19568_v49 = vld [vmem:[#allocation46_spill] sm:$0xff]  ;;  %8345 = vrot.lane.b32.xlu0 %v17542_v5, %s13243_s12 }
 0x446   : > { %9786 = vst.msk [vmem:[#allocation4 + $0x60] sm:$0xf] %vm19544_vm0, %v9652_v9  ;;  %v9673_v16 = vsel %vm15732_vm4, %v16782_v28, %v19547_v56  ;;  %v19548_v29 = vmov %v19547_v56  ;;  %vm19552_vm11 = vmmov %vm19544_vm0  ;;  %v19556_v28 = vld [vmem:[#allocation55_spill] sm:$0xff]  ;;  %v19558_v41 = vrot.slane %v19557_v12, 7  ;;  %v11876_v13 = vcombine.low %v7333_v24, %v7333_v24  ;;  %v19570_v62 = vld [vmem:[#allocation57_spill] sm:$0xff] }
 0x447   : > { %v9674_v55 = vrot.slane %v19548_v29, 4  ;;  %v9664_v37 = vsel %vm15732_vm4, %v9662_v17, %v19551_v21  ;;  %9791 = vst.msk [vmem:[#allocation4 + $0xc4] sm:$0xf] %vm19552_vm11, %v9667_v40  ;;  %vm19553_vm8 = vmmov %vm19544_vm0  ;;  %v9679_v23 = vsel %vm15732_vm4, %v19556_v28, %v19555_v59  ;;  %v11877_v60 = vcombine.high %v7333_v24, %v7333_v24  ;;  %v12963_v11 = vld [vmem:[#allocation4 + $0xa0] ss:$20 sps:$4 sm:$0xff]   ;;  %v19572_v36 = vld [vmem:[#allocation58_spill] sm:$0xff]  ;;  %9242 = vrot.lane.b32.xlu1 %v17554_v0, %s13243_s12 }
 0x448   : > { %9792 = vst.msk [vmem:[#allocation4 + $0xd8] sm:$0xf] %vm19553_vm8, %v9670_v42  ;;  %vm19554_vm1 = vmmov %vm19544_vm0  ;;  %v9686_v1 = vrot.slane %v19558_v41, 4  ;;  %v19561_v57 = vrot.slane %v19560_v51, 7  ;;  %v19564_v20 = vrot.slane %v19563_v19, 7  ;;  %v19567_v33 = vmov %v19558_v41  ;;  %v19574_v25 = vld [vmem:[#allocation62_spill] sm:$0xff]  ;;  %10790 = vmatmul.mubr.bf16.gmra.mxu0 %v12963_v11 }
 0x449   : > { %9793 = vst.msk [vmem:[#allocation4 + $0xec] sm:$0xf] %vm19554_vm1, %v9673_v16  ;;  %vm19559_vm5 = vmmov %vm19544_vm0  ;;  %v9685_v53 = vsel %vm15732_vm4, %v19568_v49, %v19567_v33  ;;  %v19571_v52 = vrot.slane %v19570_v62, 7  ;;  %v19573_v39 = vrot.slane %v19572_v36, 7  ;;  %v19575_v18 = vld [vmem:[#allocation63_spill] sm:$0xff]  ;;  %v19577_v30 = vld [vmem:[#allocation64_spill] sm:$0xff] }
 0x44a   : > { %9790 = vst.msk [vmem:[#allocation4 + $0xb0] sm:$0xf] %vm19559_vm5, %v9664_v37  ;;  %v9676_v22 = vsel %vm15732_vm4, %v9674_v55, %v19561_v57  ;;  %vm19562_vm6 = vmmov %vm19544_vm0  ;;  %v9682_v47 = vsel %vm15732_vm4, %v19565_v46, %v19564_v20  ;;  %v19576_v27 = vrot.slane %v19575_v18, 7  ;;  %v17697_v31 = vld [vmem:[#allocation3 + $0x98] ss:$0 sps:$4 sm:$0x33]  }
 0x44b   : > { %9795 = vst.msk [vmem:[#allocation4 + $0x114] sm:$0xf] %vm19562_vm6, %v9679_v23  ;;  %vm19566_vm15 = vmmov %vm19544_vm0  ;;  %v9688_v14 = vsel %vm15732_vm4, %v9686_v1, %v19571_v52  ;;  %v9691_v44 = vsel %vm15732_vm4, %v19574_v25, %v19573_v39  ;;  %v19581_v9 = vld [vmem:[#allocation67_spill] sm:$0xff]  ;;  %v19585_v58 = vld [vmem:[#allocation65_spill] sm:$0xff] }
 0x44c   : > { %9794 = vst.msk [vmem:[#allocation4 + $0x100] sm:$0xf] %vm19566_vm15, %v9676_v22  ;;  %vm19569_vm7 = vmmov %vm19544_vm0  ;;  %v9694_v2 = vsel %vm15732_vm4, %v19577_v30, %v19576_v27  ;;  %v19582_v26 = vrot.slane %v19581_v9, 7  ;;  %v19583_v17 = vld [vmem:[#allocation51_spill] sm:$0xff]  ;;  %v19586_v42 = vrot.slane %v19585_v58, 7  ;;  %v19587_v56 = vld [vmem:[#allocation48_spill] sm:$0xff] }
 0x44d   : > { %9796 = vst.msk [vmem:[#allocation4 + $0x128] sm:$0xf] %vm19569_vm7, %v9682_v47  ;;  %7494 = vst [vmem:[#allocation4 + $0xf0] sm:$0xf] %v11876_v13  ;;  %v19588_v29 = vld [vmem:[#allocation52_spill] sm:$0xff]  ;;  %v19590_v15 = vld [vmem:[#allocation69_spill] sm:$0xff] }
 0x44e   : > { %7495 = vst [vmem:[#allocation4 + $0x104] sm:$0xf] %v11877_v60  ;;  %vm19578_vm9 = vmmov %vm19544_vm0  ;;  %v9697_v32 = vsel %vm15732_vm4, %v19583_v17, %v19582_v26  ;;  %v19584_v38 = vmov %v19582_v26  ;;  %v9703_v16 = vsel %vm15732_vm4, %v19587_v56, %v19586_v42  ;;  %v19589_v55 = vrot.slane %v19588_v29, 7  ;;  %v17720_v6 = vld [vmem:[#allocation3 + $0x94] sm:$0xf]  ;;  %v19595_v59 = vld [vmem:[#allocation61_spill] sm:$0xff]  ;;  %v7299_v56 = vpop.permute.xlu1 %7298 }
 0x44f   : > { %9797 = vst.msk [vmem:[#allocation4 + $0x13c] sm:$0xf] %vm19578_vm9, %v9685_v53  ;;  %vm19579_vm3 = vmmov %vm19544_vm0  ;;  %v9698_v40 = vrot.slane %v19584_v38, 4  ;;  %v19593_v21 = vld [vmem:[#allocation56_spill] sm:$0xff]  ;;  %v19598_v41 = vld [vmem:[#allocation49_spill] sm:$0xff]  ;;  %v8298_v27 = vshrl.u32 %v17512_v10, 16 }
 0x450   : > { %9798 = vst.msk [vmem:[#allocation4 + $0x150] sm:$0xf] %vm19579_vm3, %v9688_v14  ;;  %vm19580_vm2 = vmmov %vm19544_vm0  ;;  %v9706_v24 = vsel %vm15732_vm4, %v19590_v15, %v19589_v55  ;;  %v19594_v37 = vrot.slane %v19593_v21, 7  ;;  %v19599_v1 = vrot.slane %v19598_v41, 7  ;;  %v19600_v13 = vld [vmem:[#allocation53_spill] sm:$0xff]  ;;  %v19601_v60 = vld [vmem:[#allocation70_spill] sm:$0xff] }
 0x451   : > { %9799 = vst.msk [vmem:[#allocation4 + $0x164] sm:$0xf] %vm19580_vm2, %v9691_v44  ;;  %vm19591_vm14 = vmmov %vm19544_vm0  ;;  %v19602_v51 = vrot.slane %v19601_v60, 7  ;;  %v19603_v57 = vld [vmem:[#allocation7_spill] sm:$0xff]  ;;  %v19604_v20 = vld [vmem:[#allocation60_spill] sm:$0xff]  ;;  %v8304_v30 = vrot.slane %v8302_v3, 1  ;;  %v8300_v58 = vor.u32 %v8298_v27, %v17549_v48 }
 0x452   : > { %9800 = vst.msk [vmem:[#allocation4 + $0x178] sm:$0xf] %vm19544_vm0, %v9694_v2  ;;  %vm19592_vm11 = vmmov %vm19544_vm0  ;;  %v9709_v28 = vsel %vm15732_vm4, %v19595_v59, %v19594_v37  ;;  %v19597_v23 = vmov %v19594_v37  ;;  %v9715_v5 = vsel %vm15732_vm4, %v19600_v13, %v19599_v1  ;;  %v12970_v19 = vld [vmem:[#allocation4 + $0xcc] ss:$20 sps:$4 sm:$0xff]   ;;  %v19605_v46 = vrot.slane %v19604_v20, 7  ;;  %v19608_v11 = vld [vmem:[#allocation9_spill] sm:$0xff] }
 0x453   : > { %9801 = vst.msk [vmem:[#allocation4 + $0x18c] sm:$0xf] %vm19591_vm14, %v9697_v32  ;;  %vm19596_vm8 = vmmov %vm19544_vm0  ;;  %v9710_v12 = vrot.slane %v19597_v23, 4  ;;  %v9718_v22 = vsel %vm15732_vm4, %v19603_v57, %v19602_v51  ;;  %v19609_v33 = vrot.slane %v19608_v11, 7  ;;  %v19610_v49 = vld [vmem:[#allocation14_spill] sm:$0xff]  ;;  %v19612_v62 = vld [vmem:[#allocation8_spill] sm:$0xff]  ;;  %10797 = vmatprep.mubr.bf16.mxu0 %v12970_v19 }
 0x454   : > { %9803 = vst.msk [vmem:[#allocation4 + $0x1b4] sm:$0xf] %vm19592_vm11, %v9703_v16  ;;  %v9700_v47 = vsel %vm15732_vm4, %v9698_v40, %v19605_v46  ;;  %vm19606_vm1 = vmmov %vm19544_vm0  ;;  %v19613_v52 = vrot.slane %v19612_v62, 7  ;;  %v19614_v14 = vld [vmem:[#allocation6_spill] sm:$0xff]  ;;  %v19615_v39 = vld [vmem:[#allocation5_spill] sm:$0xff]  ;;  %v19623_v17 = vrot.slane %v17356_v43, 7 }
 0x455   : > { %9804 = vst.msk [vmem:[#allocation4 + $0x1c8] sm:$0xf] %vm19596_vm8, %v9706_v24  ;;  %vm19607_vm5 = vmmov %vm19544_vm0  ;;  %v9721_v53 = vsel %vm15732_vm4, %v19610_v49, %v19609_v33  ;;  %v19616_v25 = vrot.slane %v19615_v39, 7  ;;  %v19617_v44 = vld [vmem:[#allocation10_spill] sm:$0xff]  ;;  %v19619_v2 = vld [vmem:[#allocation68_spill] sm:$0xff]  ;;  %v8310_v3 = vshll.u32 %v17697_v31, 16 }
 0x456   : > { %9805 = vst.msk [vmem:[#allocation4 + $0x1dc] sm:$0xf] %vm19606_vm1, %v9709_v28  ;;  %vm19611_vm6 = vmmov %vm19544_vm0  ;;  %v9727_v36 = vsel %vm15732_vm4, %v19614_v14, %v19613_v52  ;;  %v19620_v9 = vrot.slane %v19619_v2, 7  ;;  %v19624_v32 = vld [vmem:[#allocation21_spill] sm:$0xff]  ;;  %vm19626_vm2 = vsmask.f32 7424  ;;  %v7301_v14 = vpop.permute.xlu0 %7300 }
 0x457   : > { %9807 = vst.msk [vmem:[#allocation4 + $0x204] sm:$0xf] %vm19607_vm5, %v9715_v5  ;;  %v9730_v18 = vsel %vm15732_vm4, %v19617_v44, %v19616_v25  ;;  %vm19618_vm15 = vmmov %vm19544_vm0  ;;  %v9733_v10 = vsel %vm15732_vm4, %v19624_v32, %v19623_v17  ;;  %v8297_v0 = vsel %vm19626_vm2, %v17547_v63, %v17549_v48  ;;  %v9201_v38 = vshrl.u32 %v17522_v61, 16  ;;  %v13177_v29 = vld [vmem:[#allocation3 + $0x38] sm:$0xff]   ;;  %v12976_v28 = vld [vmem:[#allocation4 + $0xf4] ss:$20 sps:$4 sm:$0xff]  }
 0x458   : > { %9808 = vst.msk [vmem:[#allocation4 + $0x218] sm:$0xf] %vm19611_vm6, %v9718_v22  ;;  %v9712_v26 = vsel %vm15732_vm4, %v9710_v12, %v19620_v9  ;;  %vm19621_vm7 = vmmov %vm19544_vm0  ;;  %v9735_v40 = vrot.slane %v17720_v6, 7  ;;  %8347 = vrot.lane.b32.xlu0 %v8297_v0, %s13243_s12  ;;  %v8306_v63 = vshrl.u32 %v17534_v8, 16  ;;  %v9207_v16 = vrot.slane %v9205_v35, 1  ;;  %v19633_v23 = vld [vmem:[#allocation66_spill] sm:$0xff] }
 0x459   : > { %9802 = vst.msk [vmem:[#allocation4 + $0x1a0] sm:$0xf] %vm19618_vm15, %v9700_v47  ;;  %vm19622_vm9 = vmmov %vm19544_vm0  ;;  %v9203_v61 = vor.u32 %v9201_v38, %v17568_v50  ;;  %vm19629_vm8 = vcmask 523264   ;;  %v9209_v15 = vshrl.u32 %v17559_v7, 16  ;;  %v12968_v6 = vld [vmem:[#allocation4 + $0xc8] ss:$20 sps:$4 sm:$0xff]   ;;  %v19631_v8 = vmov %v19623_v17  ;;  %v8318_v47 = vpop.permute.xlu1 %8317 }
 0x45a   : > { %9809 = vst.msk [vmem:[#allocation4 + $0x22c] sm:$0xf] %vm19621_vm7, %v9721_v53  ;;  %vm19625_vm3 = vmmov %vm19544_vm0  ;;  %v7335_v55 = vsel %vm19629_vm8, %v13177_v29, %v7299_v56  ;;  %v9734_v37 = vrot.slane %v19631_v8, 4  ;;  %v8308_v59 = vor.u32 %v8306_v63, %v8304_v30  ;;  %v8312_v35 = vrot.slane %v8310_v3, 1  ;;  %v13028_v7 = vld [vmem:[%s18514_s5 + $0x100] sm:$0xff]   ;;  %10798 = vmatmul.mubr.bf16.gmra.mxu0 %v12968_v6 }
 0x45b   : > { %9811 = vst.msk [vmem:[#allocation4 + $0x254] sm:$0xf] %vm19622_vm9, %v9727_v36  ;;  %vm19627_vm14 = vmmov %vm19544_vm0  ;;  %v11878_v48 = vcombine.low %v7335_v55, %v7335_v55  ;;  %v11879_v24 = vcombine.high %v7335_v55, %v7335_v55  ;;  %v19634_v12 = vrot.slane %v19633_v23, 7  ;;  %10805 = vmatprep.mubr.bf16.mxu0 %v12976_v28  ;;  %12458 = vmatprep.subr.bf16.mxu0 %v13028_v7  ;;  %v8032_v5 = vld [vmem:[#allocation3 + $0x8] sm:$0xe]  ;;  %v8314_v57 = vshrl.u32 %v17697_v31, 16 }
 0x45c   : > { %9812 = vst.msk [vmem:[#allocation4 + $0x268] sm:$0xf] %vm19625_vm3, %v9730_v18  ;;  %vm19628_vm11 = vmmov %vm19626_vm2  ;;  %v9736_v41 = vsel %vm15732_vm4, %v9734_v37, %v9735_v40  ;;  %v9211_v13 = vor.u32 %v9209_v15, %v9207_v16  ;;  %12459 = vmatpush3.bf16.msra.mxu0 %v13028_v7  ;;  %v9597_v51 = vld [vmem:[#allocation3 + $0x98] sm:$0xf]  ;;  %v13178_v22 = vld [vmem:[#allocation3 + $0xc] sm:$0xf] }
 0x45d   : > { %9806 = vst.msk [vmem:[#allocation4 + $0x1f0] sm:$0xf] %vm19544_vm0, %v9712_v26  ;;  %v9200_v42 = vsel %vm19628_vm11, %v17566_v34, %v17568_v50  ;;  %v19630_v34 = vmov %v19609_v33  ;;  %vm19632_vm1 = vmmov %vm19626_vm2  ;;  %v11960_v19 = vcombine.low %v8032_v5, %v13178_v22  ;;  %v9737_v20 = vrot.slane %v9735_v40, 4  ;;  %v12974_v11 = vld [vmem:[#allocation4 + $0xf0] ss:$20 sps:$4 sm:$0xff]   ;;  %v13179_v18 = vld [vmem:[#allocation3 + $0x40] sm:$0xff]   ;;  %v8320_v32 = vpop.permute.xlu1 %8319 }
 0x45e   : > { %9813 = vst.msk [vmem:[#allocation4 + $0x27c] sm:$0xf] %vm19627_vm14, %v9733_v10  ;;  %9244 = vrot.lane.b32.xlu1 %v9200_v42, %s13243_s12  ;;  %v9722_v21 = vrot.slane %v19630_v34, 4  ;;  %v8305_v50 = vsel %vm19632_vm1, %v8300_v58, %v8304_v30  ;;  %7496 = vst [vmem:[#allocation4 + $0x118] sm:$0xf] %v11878_v48  ;;  %v8316_v46 = vor.u32 %v8314_v57, %v8312_v35  ;;  %v9738_v49 = vrot.slane %v9597_v51, 7 }
 0x45f   : > { %8349 = vrot.lane.b32.xlu0 %v8305_v50, %s13243_s12  ;;  %7497 = vst [vmem:[#allocation4 + $0x12c] sm:$0xf] %v11879_v24  ;;  %vm19635_vm5 = vmmov %vm19632_vm1  ;;  %v12983_v52 = vld [vmem:[#allocation4 + $0x11c] ss:$20 sps:$4 sm:$0xff]   ;;  %v13180_v3 = vld [vmem:[#allocation3 + $0x10] sm:$0xff]   ;;  %v9213_v28 = vpop.permute.xlu0 %9212  ;;  %v7909_v22 = vrot.slane %v17591_v54, 4 }
 0x460   : > { %v9724_v43 = vsel %vm15732_vm4, %v9722_v21, %v19634_v12  ;;  %v9208_v1 = vsel %vm19635_vm5, %v9203_v61, %v9207_v16  ;;  %vm19636_vm6 = vmmov %vm19544_vm0  ;;  %v9739_v31 = vsel %vm15732_vm4, %v9737_v20, %v9738_v49  ;;  %v9740_v30 = vrot.slane %v9738_v49, 4  ;;  %v19643_v40 = vld [vmem:[#allocation22_spill] sm:$0xff]  ;;  %v13181_v8 = vld [vmem:[#allocation3 + $0x50] sm:$0xff]  }
 0x461   : > { %9810 = vst.msk [vmem:[#allocation4 + $0x240] sm:$0xf] %vm19636_vm6, %v9724_v43  ;;  %vm19637_vm15 = vmmov %vm19544_vm0  ;;  %v19644_v58 = vrot.slane %v19643_v40, 7  ;;  %v7684_v24 = vpop.permute.xlu1 %7683  ;;  %v13182_v43 = vld [vmem:[#allocation3 + $0x10] sm:$0xfc]   ;;  %v13183_v20 = vld [vmem:[#allocation3 + $0x48] sm:$0xff]  }
 0x462   : > { %9814 = vst.msk [vmem:[#allocation4 + $0x290] sm:$0xf] %vm19637_vm15, %v9736_v41  ;;  %9246 = vrot.lane.b32.xlu1 %v9208_v1, %s13243_s12  ;;  %vm19638_vm7 = vmmov %vm19632_vm1  ;;  %10806 = vmatmul.mubr.bf16.gmra.mxu0 %v12974_v11 }
 0x463   : > { %v8313_v60 = vsel %vm19638_vm7, %v8308_v59, %v8312_v35  ;;  %vm19639_vm9 = vmmov %vm19629_vm8  ;;  %10813 = vmatprep.mubr.bf16.mxu0 %v12983_v52  ;;  %v9742_v42 = vsel %vm15732_vm4, %v9740_v30, %v19644_v58 }
 0x464   : > { %8351 = vrot.lane.b32.xlu0 %v8313_v60, %s13243_s12  ;;  %v8357_v33 = vsel %vm19639_vm9, %v11960_v19, %v8318_v47  ;;  %vm19640_vm3 = vmmov %vm19544_vm0 }
 0x465   : > { %v11980_v53 = vcombine.low %v8357_v33, %v8357_v33  ;;  %v11981_v62 = vcombine.high %v8357_v33, %v8357_v33  ;;  %9815 = vst.msk [vmem:[#allocation4 + $0x2a4] sm:$0xf] %vm19640_vm3, %v9739_v31  ;;  %vm19641_vm2 = vmmov %vm19629_vm8  ;;  %v7303_v57 = vpop.permute.xlu1 %7302 }
 0x466   : > { %9248 = vrot.lane.b32.xlu1 %v9211_v13, %s13243_s12  ;;  %v7337_v27 = vsel %vm19641_vm2, %v13179_v18, %v7301_v14  ;;  %vm19642_vm0 = vmmov %vm19641_vm2  ;;  %v12981_v29 = vld [vmem:[#allocation4 + $0x118] ss:$20 sps:$4 sm:$0xff]  }
 0x467   : > { %v8488_v36 = vshrl.u32 %v11980_v53, 16  ;;  %v8491_v39 = vshll.u32 %v11980_v53, 16  ;;  %v8497_v25 = vshrl.u32 %v11981_v62, 16  ;;  %v8500_v44 = vshll.u32 %v11981_v62, 16  ;;  %vm19645_vm14 = vmmov %vm19640_vm3  ;;  %v9215_v53 = vpop.permute.xlu0 %9214  ;;  %v12989_v18 = vld [vmem:[#allocation4 + $0x144] ss:$20 sps:$4 sm:$0xff]  }
 0x468   : > { %8353 = vrot.lane.b32.xlu0 %v8316_v46, %s13243_s12  ;;  %v11880_v10 = vcombine.low %v7337_v27, %v7337_v27  ;;  %v11881_v0 = vcombine.high %v7337_v27, %v7337_v27  ;;  %v8359_v38 = vsel %vm19642_vm0, %v13180_v3, %v8320_v32  ;;  %9816 = vst.msk [vmem:[#allocation4 + $0x2b8] sm:$0xf] %vm19645_vm14, %v9742_v42  ;;  %vm19646_vm11 = vmmov %vm19642_vm0  ;;  %v13185_v3 = vld [vmem:[#allocation3 + $0x58] sm:$0xff]  }
 0x469   : > { %v8490_v2 = vrot.slane %v8488_v36, 5  ;;  %v8493_v9 = vrot.slane %v8491_v39, 6  ;;  %v8499_v26 = vrot.slane %v8497_v25, 5  ;;  %v8502_v17 = vrot.slane %v8500_v44, 6  ;;  %vm19648_vm4 = vmmov %vm19642_vm0  ;;  %v13184_v39 = vld [vmem:[#allocation3 + $0x18] sm:$0xff]   ;;  %v7686_v44 = vpop.permute.xlu1 %7685 }
 0x46a   : > { %v11982_v61 = vcombine.low %v8359_v38, %v8359_v38  ;;  %v11983_v16 = vcombine.high %v8359_v38, %v8359_v38  ;;  %7498 = vst [vmem:[#allocation4 + $0x140] sm:$0xf] %v11880_v10  ;;  %7499 = vst [vmem:[#allocation4 + $0x154] sm:$0xf] %v11881_v0  ;;  %10814 = vmatmul.mubr.bf16.gmra.mxu0 %v12981_v29  ;;  %v7733_v4 = vsel %vm19646_vm11, %v13181_v8, %v7684_v24  ;;  %v13186_v42 = vld [vmem:[#allocation3 + $0x18] sm:$0xff]  }
 0x46b   : > { %v8494_v63 = vor.u32 %v8493_v9, %v8490_v2  ;;  %v8503_v56 = vor.u32 %v8502_v17, %v8499_v26  ;;  %v11942_v7 = vcombine.low %v7733_v4, %v7733_v4  ;;  %v9251_v41 = vsel %vm19648_vm4, %v13182_v43, %v9213_v28  ;;  %vm19649_vm8 = vmmov %vm19642_vm0  ;;  %v8322_v0 = vpop.permute.xlu0 %8321  ;;  %10821 = vmatprep.mubr.bf16.mxu0 %v12989_v18 }
 0x46c   : > { %v8507_v15 = vshrl.u32 %v11982_v61, 16  ;;  %v8510_v48 = vshll.u32 %v11982_v61, 16  ;;  %v8517_v34 = vshrl.u32 %v11983_v16, 16  ;;  %v8520_v21 = vshll.u32 %v11983_v16, 16  ;;  %vm19651_vm1 = vmmov %vm19642_vm0 }
 0x46d   : > { %v8495_v55 = vrot.slane %v8494_v63, 4  ;;  %v8505_v6 = vrot.slane %v8503_v56, 4  ;;  %v11943_v1 = vcombine.high %v7733_v4, %v7733_v4  ;;  %v12037_v5 = vcombine.low %v9251_v41, %v9251_v41  ;;  %vm19652_vm5 = vmmov %vm19642_vm0 }
 0x46e   : > { %v8509_v59 = vrot.slane %v8507_v15, 5  ;;  %v8512_v35 = vrot.slane %v8510_v48, 6  ;;  %v8519_v23 = vrot.slane %v8517_v34, 5  ;;  %v8522_v12 = vrot.slane %v8520_v21, 6  ;;  %vm19653_vm6 = vmmov %vm19642_vm0  ;;  %v7305_v15 = vpop.permute.xlu1 %7304 }
 0x46f   : > { %v8504_v50 = vsel %vm15962_vm12, %v8495_v55, %v8503_v56  ;;  %v12038_v60 = vcombine.high %v9251_v41, %v9251_v41  ;;  %v7910_v51 = vrot.slane %v11942_v7, 5  ;;  %v7339_v46 = vsel %vm19649_vm8, %v13183_v20, %v7303_v57  ;;  %vm19654_vm15 = vmmov %vm19642_vm0 }
 0x470   : > { %8891 = vst [vmem:[#allocation4 + $0x8] sm:$0xf] %v8504_v50  ;;  %v8513_v13 = vor.u32 %v8512_v35, %v8509_v59  ;;  %v17844_v19 = vor.u32 %v8522_v12, %v8519_v23  ;;  %v12074_v33 = vrot.slane %v12037_v5, 10  ;;  %v7913_v14 = vrot.slane %v11943_v1, 5  ;;  %v9217_v59 = vpop.permute.xlu0 %9216  ;;  %vm19655_vm7 = vmmov %vm19642_vm0 }
 0x471   : > { %v9384_v49 = vrot.slane %v12038_v60, 6  ;;  %v7911_v62 = vsel %vm19502_vm10, %v7909_v22, %v7910_v51  ;;  %v7912_v52 = vrot.slane %v7910_v51, 4  ;;  %v9253_v25 = vsel %vm19651_vm1, %v13184_v39, %v9215_v53  ;;  %v12987_v26 = vld [vmem:[#allocation4 + $0x140] ss:$20 sps:$4 sm:$0xff]   ;;  %v13188_v22 = vld [vmem:[#allocation3 + $0x50] sm:$0xff]   ;;  %vm19656_vm9 = vmmov %vm19642_vm0 }
 0x472   : > { %v8514_v47 = vsel %vm15962_vm12, %v8505_v6, %v8513_v13  ;;  %v8515_v11 = vrot.slane %v8513_v13, 4  ;;  %8015 = vst [vmem:[#allocation4 + $0x180] sm:$0xf] %v7911_v62  ;;  %v12039_v30 = vcombine.low %v9253_v25, %v9253_v25  ;;  %v12040_v2 = vcombine.high %v9253_v25, %v9253_v25  ;;  %10822 = vmatmul.mubr.bf16.gmra.mxu0 %v12987_v26  ;;  %v7688_v13 = vpop.permute.xlu1 %7687  ;;  %v13187_v51 = vld [vmem:[#allocation3 + $0x20] sm:$0xff]   ;;  %vm19657_vm3 = vmmov %vm19642_vm0 }
 0x473   : > { %8892 = vst [vmem:[#allocation4 + $0x1c] sm:$0xf] %v8514_v47  ;;  %v9385_v36 = vsel %vm15985_vm13, %v12074_v33, %v9384_v49  ;;  %v7914_v27 = vsel %vm19502_vm10, %v7912_v52, %v7913_v14  ;;  %v11882_v9 = vcombine.low %v7339_v46, %v7339_v46  ;;  %v8525_v17 = vrot.slane %v17844_v19, 4  ;;  %v13189_v62 = vld [vmem:[#allocation3 + $0x20] sm:$0xff]   ;;  %vm19658_vm2 = vmmov %vm19642_vm0 }
 0x474   : > { %v8524_v54 = vsel %vm15962_vm12, %v8515_v11, %v17844_v19  ;;  %9527 = vst [vmem:[#allocation4 + $0xc] sm:$0xf] %v9385_v36  ;;  %v9386_v32 = vrot.slane %v9384_v49, 4  ;;  %8016 = vst [vmem:[#allocation4 + $0x194] sm:$0xf] %v7914_v27  ;;  %v11883_v10 = vcombine.high %v7339_v46, %v7339_v46  ;;  %v7736_v38 = vsel %vm19652_vm5, %v13185_v3, %v7686_v44  ;;  %v8324_v33 = vpop.permute.xlu0 %8323 }
 0x475   : > { %8893 = vst [vmem:[#allocation4 + $0x30] sm:$0xf] %v8524_v54  ;;  %v9387_v40 = vrot.slane %v12039_v30, 6  ;;  %v17861_v58 = vrot.slane %v12040_v2, 6  ;;  %7500 = vst [vmem:[#allocation4 + $0x168] sm:$0xf] %v11882_v9  ;;  %v8361_v63 = vsel %vm19653_vm6, %v13186_v42, %v8322_v0  ;;  %v11944_v56 = vcombine.low %v7736_v38, %v7736_v38 }
 0x476   : > { %v7915_v61 = vrot.slane %v7913_v14, 4  ;;  %7501 = vst [vmem:[#allocation4 + $0x17c] sm:$0xf] %v11883_v10  ;;  %v11984_v16 = vcombine.low %v8361_v63, %v8361_v63  ;;  %v11985_v29 = vcombine.high %v8361_v63, %v8361_v63  ;;  %v11945_v55 = vcombine.high %v7736_v38, %v7736_v38  ;;  %v13190_v14 = vld [vmem:[#allocation3 + $0x60] sm:$0xff]   ;;  %v7307_v27 = vpop.permute.xlu1 %7306  ;;  %vm19659_vm14 = vmmov %vm19642_vm0 }
 0x477   : > { %v9388_v48 = vsel %vm15985_vm13, %v9386_v32, %v9387_v40  ;;  %v9389_v24 = vrot.slane %v9387_v40, 4  ;;  %v9392_v6 = vrot.slane %v17861_v58, 4  ;;  %v7916_v34 = vrot.slane %v11944_v56, 5  ;;  %vm19660_vm11 = vmmov %vm19642_vm0 }
 0x478   : > { %9528 = vst [vmem:[#allocation4 + $0x20] sm:$0xf] %v9388_v48  ;;  %v8527_v21 = vshrl.u32 %v11984_v16, 16  ;;  %v8530_v8 = vshll.u32 %v11984_v16, 16  ;;  %v8537_v4 = vshrl.u32 %v11985_v29, 16  ;;  %v8540_v50 = vshll.u32 %v11985_v29, 16  ;;  %vm19661_vm4 = vmmov %vm19642_vm0 }
 0x479   : > { %v9391_v35 = vsel %vm15985_vm13, %v9389_v24, %v17861_v58  ;;  %v7917_v28 = vsel %vm19502_vm10, %v7915_v61, %v7916_v34  ;;  %v7918_v7 = vrot.slane %v7916_v34, 4  ;;  %v17872_v23 = vrot.slane %v11945_v55, 5  ;;  %v12995_v36 = vld [vmem:[#allocation4 + $0x16c] ss:$20 sps:$4 sm:$0xff]   ;;  %v9219_v58 = vpop.permute.xlu0 %9218  ;;  %vm19662_vm8 = vmmov %vm19642_vm0 }
 0x47a   : > { %9529 = vst [vmem:[#allocation4 + $0x34] sm:$0xf] %v9391_v35  ;;  %v8529_v12 = vrot.slane %v8527_v21, 5  ;;  %v8532_v43 = vrot.slane %v8530_v8, 6  ;;  %v8539_v41 = vrot.slane %v8537_v4, 5  ;;  %v8542_v1 = vrot.slane %v8540_v50, 6  ;;  %10829 = vmatprep.mubr.bf16.mxu0 %v12995_v36  ;;  %v7690_v48 = vpop.permute.xlu1 %7689  ;;  %vm19663_vm1 = vmmov %vm19642_vm0 }
 0x47b   : > { %8017 = vst [vmem:[#allocation4 + $0x1a8] sm:$0xf] %v7917_v28  ;;  %v7920_v5 = vsel %vm19502_vm10, %v7918_v7, %v17872_v23  ;;  %v7921_v60 = vrot.slane %v17872_v23, 4  ;;  %v9255_v57 = vsel %vm19654_vm15, %v13187_v51, %v9217_v59  ;;  %v7341_v19 = vsel %vm19655_vm7, %v13188_v22, %v7305_v15  ;;  %v12978_v10 = vld [vmem:[#allocation4 + $0x8] ss:$20 sps:$4 sm:$0xff]   ;;  %vm19664_vm5 = vmmov %vm19642_vm0 }
 0x47c   : > { %v8533_v20 = vor.u32 %v8532_v43, %v8529_v12  ;;  %v17880_v46 = vor.u32 %v8542_v1, %v8539_v41  ;;  %8018 = vst [vmem:[#allocation4 + $0x1bc] sm:$0xf] %v7920_v5  ;;  %v12041_v47 = vcombine.low %v9255_v57, %v9255_v57  ;;  %v12042_v11 = vcombine.high %v9255_v57, %v9255_v57  ;;  %v13191_v21 = vld [vmem:[#allocation3 + $0x28] sm:$0xff]   ;;  %v13192_v43 = vld [vmem:[#allocation3 + $0x58] sm:$0xff]   ;;  %vm19665_vm6 = vmmov %vm19642_vm0 }
 0x47d   : > { %v11884_v49 = vcombine.low %v7341_v19, %v7341_v19  ;;  %v11885_v53 = vcombine.high %v7341_v19, %v7341_v19  ;;  %v8363_v52 = vsel %vm19656_vm9, %v13189_v62, %v8324_v33  ;;  %v7739_v54 = vsel %vm19657_vm3, %v13190_v14, %v7688_v13  ;;  %v12993_v30 = vld [vmem:[#allocation4 + $0x168] ss:$20 sps:$4 sm:$0xff]   ;;  %v8326_v28 = vpop.permute.xlu0 %8325  ;;  %vm19666_vm15 = vmmov %vm19642_vm0 }
 0x47e   : > { %v8534_v39 = vsel %vm15962_vm12, %v8525_v17, %v8533_v20  ;;  %v8535_v25 = vrot.slane %v8533_v20, 4  ;;  %v8545_v44 = vrot.slane %v17880_v46, 4  ;;  %v9393_v18 = vrot.slane %v12041_v47, 6  ;;  %10830 = vmatmul.mubr.bf16.gmra.mxu0 %v12993_v30  ;;  %vm19667_vm7 = vmmov %vm19642_vm0 }
 0x47f   : > { %8894 = vst [vmem:[#allocation4 + $0x44] sm:$0xf] %v8534_v39  ;;  %v17887_v2 = vrot.slane %v12042_v11, 6  ;;  %7502 = vst [vmem:[#allocation4 + $0x190] sm:$0xf] %v11884_v49  ;;  %v11986_v9 = vcombine.low %v8363_v52, %v8363_v52  ;;  %v11987_v26 = vcombine.high %v8363_v52, %v8363_v52  ;;  %v11946_v32 = vcombine.low %v7739_v54, %v7739_v54  ;;  %v13193_v11 = vld [vmem:[#allocation3 + $0x28] sm:$0xff]  }
 0x480   : > { %7503 = vst [vmem:[#allocation4 + $0x1a4] sm:$0xf] %v11885_v53  ;;  %v12980_v0 = vld [vmem:[#allocation4 + $0xc] ss:$20 sps:$4 sm:$0xff]   ;;  %v8544_v17 = vsel %vm15962_vm12, %v8535_v25, %v17880_v46  ;;  %v9394_v3 = vsel %vm15985_vm13, %v9392_v6, %v9393_v18  ;;  %v9395_v38 = vrot.slane %v9393_v18, 4  ;;  %v11947_v40 = vcombine.high %v7739_v54, %v7739_v54  ;;  %v13195_v54 = vld [vmem:[#allocation3 + $0x60] sm:$0xff]   ;;  %vm19668_vm9 = vmmov %vm19642_vm0 }
 0x481   : > { %8895 = vst [vmem:[#allocation4 + $0x58] sm:$0xf] %v8544_v17  ;;  %v9398_v42 = vrot.slane %v17887_v2, 4  ;;  %9530 = vst [vmem:[#allocation4 + $0x48] sm:$0xf] %v9394_v3  ;;  %v8547_v63 = vshrl.u32 %v11986_v9, 16  ;;  %10934 = vmatprep.mubr.bf16.mxu1 %v12980_v0  ;;  %v9257_v8 = vsel %vm19658_vm2, %v13191_v21, %v9219_v58  ;;  %v7343_v41 = vsel %vm19642_vm0, %v13192_v43, %v7307_v27  ;;  %v9221_v62 = vpop.permute.xlu0 %9220 }
 0x482   : > { %v8550_v56 = vshll.u32 %v11986_v9, 16  ;;  %v8557_v61 = vshrl.u32 %v11987_v26, 16  ;;  %v9397_v16 = vsel %vm15985_vm13, %v9395_v38, %v17887_v2  ;;  %v8560_v29 = vshll.u32 %v11987_v26, 16  ;;  %10935 = vmatmul.mubr.bf16.vlgmr.msra.gmra.mxu1 %v12978_v10  ;;  %v13002_v46 = vld [vmem:[#allocation4 + $0x194] ss:$20 sps:$4 sm:$0xff]   ;;  %v13194_v49 = vld [vmem:[#allocation3 + $0x68] sm:$0xff]   ;;  %vm19669_vm3 = vmmov %vm19642_vm0 }
 0x483   : > { %v7922_v55 = vrot.slane %v11946_v32, 5  ;;  %v17898_v15 = vrot.slane %v11947_v40, 5  ;;  %9531 = vst [vmem:[#allocation4 + $0x5c] sm:$0xf] %v9397_v16  ;;  %v8549_v24 = vrot.slane %v8547_v63, 5  ;;  %v12043_v23 = vcombine.low %v9257_v8, %v9257_v8  ;;  %10837 = vmatprep.mubr.bf16.mxu0 %v13002_v46  ;;  %v13196_v0 = vld [vmem:[#allocation3 + $0x30] sm:$0xff]   ;;  %vm19670_vm2 = vmmov %vm19642_vm0 }
 0x484   : > { %v8552_v6 = vrot.slane %v8550_v56, 6  ;;  %v8559_v34 = vrot.slane %v8557_v61, 5  ;;  %v8562_v4 = vrot.slane %v8560_v29, 6  ;;  %v12044_v12 = vcombine.high %v9257_v8, %v9257_v8 }
 0x485   : > { %v7923_v50 = vsel %vm19502_vm10, %v7921_v60, %v7922_v55  ;;  %v7924_v59 = vrot.slane %v7922_v55, 4  ;;  %v7927_v35 = vrot.slane %v17898_v15, 4  ;;  %v11886_v5 = vcombine.low %v7343_v41, %v7343_v41  ;;  %v7309_v60 = vpop.permute.xlu1 %7308  ;;  %v8328_v56 = vpop.permute.xlu0 %8327 }
 0x486   : > { %v8553_v7 = vor.u32 %v8552_v6, %v8549_v24  ;;  %8019 = vst [vmem:[#allocation4 + $0x1d0] sm:$0xf] %v7923_v50  ;;  %v17905_v1 = vor.u32 %v8562_v4, %v8559_v34  ;;  %v11887_v51 = vcombine.high %v7343_v41, %v7343_v41  ;;  %v9399_v19 = vrot.slane %v12043_v23, 6  ;;  %v12984_v52 = vld [vmem:[#allocation4 + $0x30] ss:$20 sps:$4 sm:$0xff]  }
 0x487   : > { %v7926_v13 = vsel %vm19502_vm10, %v7924_v59, %v17898_v15  ;;  %v17912_v20 = vrot.slane %v12044_v12, 6  ;;  %7504 = vst [vmem:[#allocation4 + $0x1b8] sm:$0xf] %v11886_v5  ;;  %v8365_v33 = vsel %vm19659_vm14, %v13193_v11, %v8326_v28  ;;  %v7742_v53 = vsel %vm19660_vm11, %v13194_v49, %v7690_v48  ;;  %v13000_v32 = vld [vmem:[#allocation4 + $0x190] ss:$20 sps:$4 sm:$0xff]   ;;  %vm19671_vm14 = vmmov %vm19642_vm0 }
 0x488   : > { %v8554_v57 = vsel %vm15962_vm12, %v8545_v44, %v8553_v7  ;;  %v8555_v22 = vrot.slane %v8553_v7, 4  ;;  %8020 = vst [vmem:[#allocation4 + $0x1e4] sm:$0xf] %v7926_v13  ;;  %v8565_v47 = vrot.slane %v17905_v1, 4  ;;  %7505 = vst [vmem:[#allocation4 + $0x1cc] sm:$0xf] %v11887_v51  ;;  %v7345_v36 = vsel %vm19661_vm4, %v13195_v54, %v7309_v60  ;;  %10838 = vmatmul.mubr.bf16.gmra.mxu0 %v13000_v32 }
 0x489   : > { %8896 = vst [vmem:[#allocation4 + $0x6c] sm:$0xf] %v8554_v57  ;;  %v12986_v14 = vld [vmem:[#allocation4 + $0x34] ss:$20 sps:$4 sm:$0xff]   ;;  %v9400_v25 = vsel %vm15985_vm13, %v9398_v42, %v9399_v19  ;;  %v9401_v44 = vrot.slane %v9399_v19, 4  ;;  %v9404_v18 = vrot.slane %v17912_v20, 4  ;;  %v11988_v27 = vcombine.low %v8365_v33, %v8365_v33  ;;  %v17924_v26 = vpop.permute.xlu1 %7691  ;;  %v9223_v41 = vpop.permute.xlu0 %9222  ;;  %vm19672_vm11 = vmmov %vm19642_vm0 }
 0x48a   : > { %v8564_v39 = vsel %vm15962_vm12, %v8555_v22, %v17905_v1  ;;  %9532 = vst [vmem:[#allocation4 + $0x70] sm:$0xf] %v9400_v25  ;;  %v11989_v30 = vcombine.high %v8365_v33, %v8365_v33  ;;  %v11948_v2 = vcombine.low %v7742_v53, %v7742_v53  ;;  %v11949_v9 = vcombine.high %v7742_v53, %v7742_v53  ;;  %v13197_v12 = vld [vmem:[#allocation3 + $0x30] sm:$0xff]   ;;  %v13199_v54 = vld [vmem:[#allocation3 + $0x38] sm:$0xff]   ;;  %vm19673_vm4 = vmmov %vm19642_vm0 }
 0x48b   : > { %8897 = vst [vmem:[#allocation4 + $0x80] sm:$0xf] %v8564_v39  ;;  %10942 = vmatprep.mubr.bf16.mxu1 %v12986_v14  ;;  %v9403_v10 = vsel %vm15985_vm13, %v9401_v44, %v17912_v20  ;;  %v9259_v17 = vsel %vm19662_vm8, %v13196_v0, %v9221_v62  ;;  %v11888_v3 = vcombine.low %v7345_v36, %v7345_v36  ;;  %v8567_v40 = vshrl.u32 %v11988_v27, 16  ;;  %v13200_v39 = vld [vmem:[#allocation3 + $0x68] sm:$0xff]   ;;  %vm19674_vm8 = vmmov %vm19642_vm0 }
 0x48c   : > { %v11889_v38 = vcombine.high %v7345_v36, %v7345_v36  ;;  %10943 = vmatmul.mubr.bf16.gmra.mxu1 %v12984_v52  ;;  %9533 = vst [vmem:[#allocation4 + $0x84] sm:$0xf] %v9403_v10  ;;  %v8570_v58 = vshll.u32 %v11988_v27, 16  ;;  %v8577_v42 = vshrl.u32 %v11989_v30, 16  ;;  %v8580_v63 = vshll.u32 %v11989_v30, 16  ;;  %v13198_v52 = vld [vmem:[#allocation3 + $0x70] sm:$0xff]  }
 0x48d   : > { %v7928_v61 = vrot.slane %v11948_v2, 5  ;;  %v17930_v16 = vrot.slane %v11949_v9, 5  ;;  %v12045_v29 = vcombine.low %v9259_v17, %v9259_v17  ;;  %v12046_v55 = vcombine.high %v9259_v17, %v9259_v17  ;;  %7506 = vst [vmem:[#allocation4 + $0x1e0] sm:$0xf] %v11888_v3  ;;  %v7311_v21 = vpop.permute.xlu1 %7310  ;;  %v13008_v13 = vld [vmem:[#allocation4 + $0x1bc] ss:$20 sps:$4 sm:$0xff]   ;;  %v8330_v44 = vpop.permute.xlu0 %8329 }
 0x48e   : > { %7507 = vst [vmem:[#allocation4 + $0x1f4] sm:$0xf] %v11889_v38  ;;  %v8569_v48 = vrot.slane %v8567_v40, 5  ;;  %v8572_v24 = vrot.slane %v8570_v58, 6  ;;  %v8579_v6 = vrot.slane %v8577_v42, 5  ;;  %v8582_v34 = vrot.slane %v8580_v63, 6  ;;  %10845 = vmatprep.mubr.bf16.mxu0 %v13008_v13 }
 0x48f   : > { %v7929_v8 = vsel %vm19502_vm10, %v7927_v35, %v7928_v61  ;;  %v7930_v4 = vrot.slane %v7928_v61, 4  ;;  %v7933_v50 = vrot.slane %v17930_v16, 4  ;;  %v9405_v59 = vrot.slane %v12045_v29, 6  ;;  %v13006_v62 = vld [vmem:[#allocation4 + $0x1b8] ss:$20 sps:$4 sm:$0xff]  }
 0x490   : > { %v8573_v28 = vor.u32 %v8572_v24, %v8569_v48  ;;  %v8583_v7 = vor.u32 %v8582_v34, %v8579_v6  ;;  %8021 = vst [vmem:[#allocation4 + $0x1f8] sm:$0xf] %v7929_v8  ;;  %v17937_v23 = vrot.slane %v12046_v55, 6  ;;  %v8367_v43 = vsel %vm19663_vm1, %v13197_v12, %v8328_v56  ;;  %v12990_v60 = vld [vmem:[#allocation4 + $0x58] ss:$20 sps:$4 sm:$0xff]   ;;  %10846 = vmatmul.mubr.bf16.gmra.mxu0 %v13006_v62  ;;  %vm19675_vm1 = vmmov %vm19642_vm0 }
 0x491   : > { %v7932_v15 = vsel %vm19502_vm10, %v7930_v4, %v17930_v16  ;;  %v9406_v35 = vsel %vm15985_vm13, %v9404_v18, %v9405_v59  ;;  %v9407_v5 = vrot.slane %v9405_v59, 4  ;;  %v11990_v51 = vcombine.low %v8367_v43, %v8367_v43  ;;  %v12992_v57 = vld [vmem:[#allocation4 + $0x5c] ss:$20 sps:$4 sm:$0xff]   ;;  %v17950_v11 = vpop.permute.xlu1 %7693  ;;  %v9225_v61 = vpop.permute.xlu0 %9224 }
 0x492   : > { %v8574_v22 = vsel %vm15962_vm12, %v8565_v47, %v8573_v28  ;;  %v8575_v19 = vrot.slane %v8573_v28, 4  ;;  %v8585_v20 = vrot.slane %v8583_v7, 4  ;;  %8022 = vst [vmem:[#allocation4 + $0x20c] sm:$0xf] %v7932_v15  ;;  %v9410_v46 = vrot.slane %v17937_v23, 4  ;;  %10950 = vmatprep.mubr.bf16.mxu1 %v12992_v57  ;;  %v13202_v15 = vld [vmem:[#allocation3 + $0x78] sm:$0xff]  }
 0x493   : > { %9534 = vst [vmem:[#allocation4 + $0x98] sm:$0xf] %v9406_v35  ;;  %8898 = vst [vmem:[#allocation4 + $0x94] sm:$0xf] %v8574_v22  ;;  %v9409_v33 = vsel %vm15985_vm13, %v9407_v5, %v17937_v23  ;;  %v11991_v49 = vcombine.high %v8367_v43, %v8367_v43  ;;  %v8587_v53 = vshrl.u32 %v11990_v51, 16  ;;  %v8590_v1 = vshll.u32 %v11990_v51, 16 }
 0x494   : > { %v8584_v47 = vsel %vm15962_vm12, %v8575_v19, %v8583_v7  ;;  %9535 = vst [vmem:[#allocation4 + $0xac] sm:$0xf] %v9409_v33  ;;  %v7745_v14 = vsel %vm19664_vm5, %v13198_v52, %v17924_v26  ;;  %v9261_v36 = vsel %vm19665_vm6, %v13199_v54, %v9223_v41  ;;  %v7347_v25 = vsel %vm19666_vm15, %v13200_v39, %v7311_v21  ;;  %v13201_v41 = vld [vmem:[#allocation3 + $0x38] sm:$0xff]   ;;  %v13203_v5 = vld [vmem:[#allocation3 + $0x40] sm:$0xff]   ;;  %vm19676_vm5 = vmmov %vm19642_vm0 }
 0x495   : > { %10951 = vmatmul.mubr.bf16.gmra.mxu1 %v12990_v60  ;;  %8899 = vst [vmem:[#allocation4 + $0xa8] sm:$0xf] %v8584_v47  ;;  %v8589_v18 = vrot.slane %v8587_v53, 5  ;;  %v8592_v27 = vrot.slane %v8590_v1, 6  ;;  %v8597_v30 = vshrl.u32 %v11991_v49, 16  ;;  %v8600_v2 = vshll.u32 %v11991_v49, 16  ;;  %v7313_v17 = vpop.permute.xlu1 %7312  ;;  %v8332_v60 = vpop.permute.xlu0 %8331  ;;  %vm19677_vm6 = vmmov %vm19642_vm0 }
 0x496   : > { %v11950_v9 = vcombine.low %v7745_v14, %v7745_v14  ;;  %v11951_v32 = vcombine.high %v7745_v14, %v7745_v14  ;;  %v12047_v10 = vcombine.low %v9261_v36, %v9261_v36  ;;  %v12048_v0 = vcombine.high %v9261_v36, %v9261_v36  ;;  %v13204_v1 = vld [vmem:[#allocation3 + $0x70] sm:$0xff]   ;;  %vm19678_vm15 = vmmov %vm19642_vm0 }
 0x497   : > { %v8593_v26 = vor.u32 %v8592_v27, %v8589_v18  ;;  %v8599_v3 = vrot.slane %v8597_v30, 5  ;;  %v8602_v38 = vrot.slane %v8600_v2, 6  ;;  %v11890_v40 = vcombine.low %v7347_v25, %v7347_v25  ;;  %v13014_v29 = vld [vmem:[#allocation4 + $0x1e4] ss:$20 sps:$4 sm:$0xff]  }
 0x498   : > { %v7934_v58 = vrot.slane %v11950_v9, 5  ;;  %v17961_v42 = vrot.slane %v11951_v32, 5  ;;  %v9411_v63 = vrot.slane %v12047_v10, 6  ;;  %v17963_v56 = vrot.slane %v12048_v0, 6  ;;  %10853 = vmatprep.mubr.bf16.mxu0 %v13014_v29  ;;  %v13205_v29 = vld [vmem:[#allocation3 + $0x40] sm:$0xff]  }
 0x499   : > { %v8594_v55 = vsel %vm15962_vm12, %v8585_v20, %v8593_v26  ;;  %v8595_v48 = vrot.slane %v8593_v26, 4  ;;  %v17967_v24 = vor.u32 %v8602_v38, %v8599_v3  ;;  %v11891_v6 = vcombine.high %v7347_v25, %v7347_v25  ;;  %7508 = vst [vmem:[#allocation4 + $0x208] sm:$0xf] %v11890_v40  ;;  %v17976_v28 = vpop.permute.xlu1 %7695  ;;  %v9227_v18 = vpop.permute.xlu0 %9226 }
 0x49a   : > { %8900 = vst [vmem:[#allocation4 + $0xbc] sm:$0xf] %v8594_v55  ;;  %v7935_v34 = vsel %vm19502_vm10, %v7933_v50, %v7934_v58  ;;  %v7936_v21 = vrot.slane %v7934_v58, 4  ;;  %v7939_v8 = vrot.slane %v17961_v42, 4  ;;  %v9412_v4 = vsel %vm15985_vm13, %v9410_v46, %v9411_v63  ;;  %v12996_v59 = vld [vmem:[#allocation4 + $0x80] ss:$20 sps:$4 sm:$0xff]  }
 0x49b   : > { %v8604_v7 = vsel %vm15962_vm12, %v8595_v48, %v17967_v24  ;;  %v8605_v23 = vrot.slane %v17967_v24, 4  ;;  %8023 = vst [vmem:[#allocation4 + $0x220] sm:$0xf] %v7935_v34  ;;  %v9413_v16 = vrot.slane %v9411_v63, 4  ;;  %v9416_v50 = vrot.slane %v17963_v56, 4 }
 0x49c   : > { %9536 = vst [vmem:[#allocation4 + $0xc0] sm:$0xf] %v9412_v4  ;;  %7509 = vst [vmem:[#allocation4 + $0x21c] sm:$0xf] %v11891_v6  ;;  %v12998_v12 = vld [vmem:[#allocation4 + $0x84] ss:$20 sps:$4 sm:$0xff]   ;;  %v7938_v43 = vsel %vm19502_vm10, %v7936_v21, %v17961_v42  ;;  %v8369_v13 = vsel %vm19667_vm7, %v13201_v41, %v8330_v44  ;;  %v7748_v35 = vsel %vm19668_vm9, %v13202_v15, %v17950_v11 }
 0x49d   : > { %8901 = vst [vmem:[#allocation4 + $0xd0] sm:$0xf] %v8604_v7  ;;  %v9263_v51 = vsel %vm19669_vm3, %v13203_v5, %v9225_v61  ;;  %8024 = vst [vmem:[#allocation4 + $0x234] sm:$0xf] %v7938_v43  ;;  %v9415_v57 = vsel %vm15985_vm13, %v9413_v16, %v17963_v56  ;;  %v11992_v22 = vcombine.low %v8369_v13, %v8369_v13  ;;  %10958 = vmatprep.mubr.bf16.mxu1 %v12998_v12  ;;  %v13012_v46 = vld [vmem:[#allocation4 + $0x1e0] ss:$20 sps:$4 sm:$0xff]   ;;  %v17994_v54 = vpop.permute.xlu1 %7314  ;;  %v8334_v48 = vpop.permute.xlu0 %8333 }
 0x49e   : > { %v11993_v19 = vcombine.high %v8369_v13, %v8369_v13  ;;  %v11952_v20 = vcombine.low %v7748_v35, %v7748_v35  ;;  %9537 = vst [vmem:[#allocation4 + $0xd4] sm:$0xf] %v9415_v57  ;;  %v11953_v33 = vcombine.high %v7748_v35, %v7748_v35  ;;  %v12049_v49 = vcombine.low %v9263_v51, %v9263_v51  ;;  %v13206_v16 = vld [vmem:[#allocation3 + $0x80] sm:$0xff]   ;;  %vm19679_vm7 = vmmov %vm19642_vm0 }
 0x49f   : > { %v12050_v53 = vcombine.high %v9263_v51, %v9263_v51  ;;  %v7349_v11 = vsel %vm19670_vm2, %v13204_v1, %v7313_v17  ;;  %10959 = vmatmul.mubr.bf16.gmra.mxu1 %v12996_v59  ;;  %v8607_v62 = vshrl.u32 %v11992_v22, 16  ;;  %v8610_v47 = vshll.u32 %v11992_v22, 16  ;;  %10854 = vmatmul.mubr.bf16.gmra.mxu0 %v13012_v46  ;;  %vm19680_vm9 = vmmov %vm19642_vm0 }
 0x4a0   : > { %v8617_v52 = vshrl.u32 %v11993_v19, 16  ;;  %v8620_v14 = vshll.u32 %v11993_v19, 16  ;;  %v7940_v36 = vrot.slane %v11952_v20, 5  ;;  %v17996_v39 = vrot.slane %v11953_v33, 5  ;;  %vm19681_vm3 = vmmov %vm19642_vm0 }
 0x4a1   : > { %v9417_v25 = vrot.slane %v12049_v49, 6  ;;  %v17998_v44 = vrot.slane %v12050_v53, 6  ;;  %v8609_v27 = vrot.slane %v8607_v62, 5  ;;  %v8612_v30 = vrot.slane %v8610_v47, 6  ;;  %v13003_v26 = vld [vmem:[#allocation4 + $0xa8] ss:$20 sps:$4 sm:$0xff]   ;;  %v7698_v4 = vpop.permute.xlu1 %7697  ;;  %v9229_v22 = vpop.permute.xlu0 %9228  ;;  %vm19682_vm2 = vmmov %vm19642_vm0 }
 0x4a2   : > { %v8619_v2 = vrot.slane %v8617_v52, 5  ;;  %v8622_v9 = vrot.slane %v8620_v14, 6  ;;  %v7941_v32 = vsel %vm19502_vm10, %v7939_v8, %v7940_v36  ;;  %v7942_v10 = vrot.slane %v7940_v36, 4  ;;  %v13021_v59 = vld [vmem:[#allocation4 + $0x20c] ss:$20 sps:$4 sm:$0xff]  }
 0x4a3   : > { %v7945_v0 = vrot.slane %v17996_v39, 4  ;;  %v9418_v17 = vsel %vm15985_vm13, %v9416_v50, %v9417_v25  ;;  %v8613_v3 = vor.u32 %v8612_v30, %v8609_v27  ;;  %8025 = vst [vmem:[#allocation4 + $0x248] sm:$0xf] %v7941_v32  ;;  %v9419_v40 = vrot.slane %v9417_v25, 4  ;;  %v13005_v42 = vld [vmem:[#allocation4 + $0xac] ss:$20 sps:$4 sm:$0xff]   ;;  %10861 = vmatprep.mubr.bf16.mxu0 %v13021_v59 }
 0x4a4   : > { %v18005_v38 = vor.u32 %v8622_v9, %v8619_v2  ;;  %v9422_v58 = vrot.slane %v17998_v44, 4  ;;  %9538 = vst [vmem:[#allocation4 + $0xe8] sm:$0xf] %v9418_v17  ;;  %v7944_v63 = vsel %vm19502_vm10, %v7942_v10, %v17996_v39  ;;  %v11892_v56 = vcombine.low %v7349_v11, %v7349_v11  ;;  %10966 = vmatprep.mubr.bf16.mxu1 %v13005_v42  ;;  %v13207_v50 = vld [vmem:[#allocation3 + $0x48] sm:$0xff]   ;;  %v13208_v30 = vld [vmem:[#allocation3 + $0x78] sm:$0xff]  }
 0x4a5   : > { %v11893_v61 = vcombine.high %v7349_v11, %v7349_v11  ;;  %v8371_v55 = vsel %vm19642_vm0, %v13205_v29, %v8332_v60  ;;  %v8614_v6 = vsel %vm15962_vm12, %v8605_v23, %v8613_v3  ;;  %v8615_v34 = vrot.slane %v8613_v3, 4  ;;  %8026 = vst [vmem:[#allocation4 + $0x25c] sm:$0xf] %v7944_v63  ;;  %v13019_v43 = vld [vmem:[#allocation4 + $0x208] ss:$20 sps:$4 sm:$0xff]   ;;  %v7317_v14 = vpop.permute.xlu1 %7316 }
 0x4a6   : > { %v8625_v21 = vrot.slane %v18005_v38, 4  ;;  %v9421_v8 = vsel %vm15985_vm13, %v9419_v40, %v17998_v44  ;;  %8902 = vst [vmem:[#allocation4 + $0xe4] sm:$0xf] %v8614_v6  ;;  %7510 = vst [vmem:[#allocation4 + $0x230] sm:$0xf] %v11892_v56  ;;  %v11994_v7 = vcombine.low %v8371_v55, %v8371_v55  ;;  %v11995_v24 = vcombine.high %v8371_v55, %v8371_v55  ;;  %v13209_v9 = vld [vmem:[#allocation3 + $0x48] sm:$0xff]  }
 0x4a7   : > { %9539 = vst [vmem:[#allocation4 + $0xfc] sm:$0xf] %v9421_v8  ;;  %7511 = vst [vmem:[#allocation4 + $0x244] sm:$0xf] %v11893_v61  ;;  %v7751_v23 = vsel %vm19671_vm14, %v13206_v16, %v17976_v28  ;;  %v9265_v12 = vsel %vm19672_vm11, %v13207_v50, %v9227_v18  ;;  %10967 = vmatmul.mubr.bf16.gmra.mxu1 %v13003_v26  ;;  %v8624_v41 = vsel %vm15962_vm12, %v8615_v34, %v18005_v38  ;;  %v18037_v18 = vpop.permute.xlu0 %8335  ;;  %v13210_v10 = vld [vmem:[#allocation3 + $0x88] sm:$0xff]  }
 0x4a8   : > { %v11954_v13 = vcombine.low %v7751_v23, %v7751_v23  ;;  %v11955_v15 = vcombine.high %v7751_v23, %v7751_v23  ;;  %v12051_v35 = vcombine.low %v9265_v12, %v9265_v12  ;;  %8903 = vst [vmem:[#allocation4 + $0xf8] sm:$0xf] %v8624_v41  ;;  %v8627_v5 = vshrl.u32 %v11994_v7, 16  ;;  %10862 = vmatmul.mubr.bf16.gmra.mxu0 %v13019_v43  ;;  %vm19684_vm14 = vmmov %vm19642_vm0 }
 0x4a9   : > { %v8630_v51 = vshll.u32 %v11994_v7, 16  ;;  %v8637_v60 = vshrl.u32 %v11995_v24, 16  ;;  %v8640_v57 = vshll.u32 %v11995_v24, 16  ;;  %v12052_v20 = vcombine.high %v9265_v12, %v9265_v12  ;;  %v13212_v7 = vld [vmem:[#allocation3 + $0x80] sm:$0xff]   ;;  %v7700_v16 = vpop.permute.xlu1 %7699  ;;  %vm19685_vm11 = vmmov %vm19642_vm0 }
 0x4aa   : > { %v7946_v28 = vrot.slane %v11954_v13, 5  ;;  %v18026_v19 = vrot.slane %v11955_v15, 5  ;;  %v9423_v46 = vrot.slane %v12051_v35, 6  ;;  %v8629_v33 = vrot.slane %v8627_v5, 5  ;;  %v13027_v61 = vld [vmem:[#allocation4 + $0x234] ss:$20 sps:$4 sm:$0xff]  }
 0x4ab   : > { %v8632_v49 = vrot.slane %v8630_v51, 6  ;;  %v8639_v53 = vrot.slane %v8637_v60, 5  ;;  %v8642_v1 = vrot.slane %v8640_v57, 6  ;;  %v18035_v44 = vrot.slane %v12052_v20, 6  ;;  %v13011_v26 = vld [vmem:[#allocation4 + $0xd4] ss:$20 sps:$4 sm:$0xff]   ;;  %v9231_v23 = vpop.permute.xlu0 %9230  ;;  %10869 = vmatprep.mubr.bf16.mxu0 %v13027_v61 }
 0x4ac   : > { %v7947_v11 = vsel %vm19502_vm10, %v7945_v0, %v7946_v28  ;;  %v7948_v62 = vrot.slane %v7946_v28, 4  ;;  %v7951_v47 = vrot.slane %v18026_v19, 4  ;;  %v9424_v52 = vsel %vm15985_vm13, %v9422_v58, %v9423_v46  ;;  %10974 = vmatprep.mubr.bf16.mxu1 %v13011_v26 }
 0x4ad   : > { %v8633_v36 = vor.u32 %v8632_v49, %v8629_v33  ;;  %v18033_v39 = vor.u32 %v8642_v1, %v8639_v53  ;;  %8027 = vst [vmem:[#allocation4 + $0x270] sm:$0xf] %v7947_v11  ;;  %v9425_v25 = vrot.slane %v9423_v46, 4  ;;  %9540 = vst [vmem:[#allocation4 + $0x110] sm:$0xf] %v9424_v52  ;;  %v7351_v2 = vsel %vm19673_vm4, %v13208_v30, %v17994_v54 }
 0x4ae   : > { %v7950_v27 = vsel %vm19502_vm10, %v7948_v62, %v18026_v19  ;;  %v8373_v32 = vsel %vm19674_vm8, %v13209_v9, %v8334_v48  ;;  %v7754_v0 = vsel %vm19675_vm1, %v13210_v10, %v7698_v4  ;;  %v13009_v17 = vld [vmem:[#allocation4 + $0xd0] ss:$20 sps:$4 sm:$0xff]   ;;  %v9428_v54 = vrot.slane %v18035_v44, 4  ;;  %vm19686_vm4 = vmmov %vm19642_vm0 }
 0x4af   : > { %v8634_v3 = vsel %vm15962_vm12, %v8625_v21, %v8633_v36  ;;  %v8635_v38 = vrot.slane %v8633_v36, 4  ;;  %v8645_v40 = vrot.slane %v18033_v39, 4  ;;  %8028 = vst [vmem:[#allocation4 + $0x284] sm:$0xf] %v7950_v27  ;;  %v9427_v58 = vsel %vm15985_vm13, %v9425_v25, %v18035_v44  ;;  %10975 = vmatmul.mubr.bf16.gmra.mxu1 %v13009_v17  ;;  %v13025_v34 = vld [vmem:[#allocation4 + $0x230] ss:$20 sps:$4 sm:$0xff]   ;;  %v7319_v25 = vpop.permute.xlu1 %7318  ;;  %v8338_v44 = vpop.permute.xlu0 %8337  ;;  %vm19687_vm8 = vmmov %vm19642_vm0 }
 0x4b0   : > { %8904 = vst [vmem:[#allocation4 + $0x10c] sm:$0xf] %v8634_v3  ;;  %9541 = vst [vmem:[#allocation4 + $0x124] sm:$0xf] %v9427_v58  ;;  %v11894_v42 = vcombine.low %v7351_v2, %v7351_v2  ;;  %v11895_v63 = vcombine.high %v7351_v2, %v7351_v2  ;;  %v11996_v56 = vcombine.low %v8373_v32, %v8373_v32  ;;  %v13211_v4 = vld [vmem:[#allocation3 + $0x50] sm:$0xff]   ;;  %10870 = vmatmul.mubr.bf16.gmra.mxu0 %v13025_v34  ;;  %v13215_v58 = vld [vmem:[#allocation3 + $0x88] sm:$0xff]  }
 0x4b1   : > { %v8644_v29 = vsel %vm15962_vm12, %v8635_v38, %v18033_v39  ;;  %v11997_v55 = vcombine.high %v8373_v32, %v8373_v32  ;;  %v11956_v48 = vcombine.low %v7754_v0, %v7754_v0  ;;  %v11957_v6 = vcombine.high %v7754_v0, %v7754_v0  ;;  %v13015_v33 = vld [vmem:[#allocation3 + $0x90] ss:$0 sps:$4 sm:$0x11]   ;;  %vm19688_vm1 = vmmov %vm19642_vm0 }
 0x4b2   : > { %8905 = vst [vmem:[#allocation4 + $0x120] sm:$0xf] %v8644_v29  ;;  %7512 = vst [vmem:[#allocation4 + $0x258] sm:$0xf] %v11894_v42  ;;  %v8647_v21 = vshrl.u32 %v11996_v56, 16  ;;  %v8650_v8 = vshll.u32 %v11996_v56, 16  ;;  %v9267_v59 = vsel %vm19676_vm5, %v13211_v4, %v9229_v22  ;;  %v7353_v24 = vsel %vm19677_vm6, %v13212_v7, %v7317_v14 }
 0x4b3   : > { %7513 = vst [vmem:[#allocation4 + $0x26c] sm:$0xf] %v11895_v63  ;;  %v8657_v50 = vshrl.u32 %v11997_v55, 16  ;;  %v8660_v12 = vshll.u32 %v11997_v55, 16  ;;  %v7952_v43 = vrot.slane %v11956_v48, 5  ;;  %v18058_v41 = vrot.slane %v11957_v6, 5  ;;  %vm19689_vm5 = vmmov %vm19642_vm0 }
 0x4b4   : > { %v8649_v13 = vrot.slane %v8647_v21, 5  ;;  %v8652_v15 = vrot.slane %v8650_v8, 6  ;;  %v12053_v35 = vcombine.low %v9267_v59, %v9267_v59  ;;  %v12054_v5 = vcombine.high %v9267_v59, %v9267_v59  ;;  %v13018_v52 = vld [vmem:[#allocation4 + $0xfc] ss:$20 sps:$4 sm:$0xff]   ;;  %v13213_v2 = vld [vmem:[#allocation3 + $0x50] sm:$0xff]   ;;  %vm19690_vm6 = vmmov %vm19642_vm0 }
 0x4b5   : > { %v8659_v51 = vrot.slane %v8657_v50, 5  ;;  %v8662_v60 = vrot.slane %v8660_v12, 6  ;;  %v7953_v57 = vsel %vm19502_vm10, %v7951_v47, %v7952_v43  ;;  %v7954_v22 = vrot.slane %v7952_v43, 4  ;;  %10982 = vmatprep.mubr.bf16.mxu1 %v13018_v52  ;;  %v13034_v3 = vld [vmem:[#allocation4 + $0x25c] ss:$20 sps:$4 sm:$0xff]  }
 0x4b6   : > { %v8653_v28 = vor.u32 %v8652_v15, %v8649_v13  ;;  %v7957_v19 = vrot.slane %v18058_v41, 4  ;;  %8029 = vst [vmem:[#allocation4 + $0x298] sm:$0xf] %v7953_v57  ;;  %v9429_v20 = vrot.slane %v12053_v35, 6  ;;  %v18063_v46 = vrot.slane %v12054_v5, 6  ;;  %v13216_v42 = vld [vmem:[#allocation3 + $0x58] sm:$0xff]   ;;  %10877 = vmatprep.mubr.bf16.mxu0 %v13034_v3 }
 0x4b7   : > { %v18065_v49 = vor.u32 %v8662_v60, %v8659_v51  ;;  %v7956_v53 = vsel %vm19502_vm10, %v7954_v22, %v18058_v41  ;;  %v11896_v1 = vcombine.low %v7353_v24, %v7353_v24  ;;  %v11897_v11 = vcombine.high %v7353_v24, %v7353_v24  ;;  %v13016_v62 = vld [vmem:[#allocation4 + $0xf8] ss:$20 sps:$4 sm:$0xff]  }
 0x4b8   : > { %v8654_v47 = vsel %vm15962_vm12, %v8645_v40, %v8653_v28  ;;  %v8655_v14 = vrot.slane %v8653_v28, 4  ;;  %8030 = vst [vmem:[#allocation4 + $0x2ac] sm:$0xf] %v7956_v53  ;;  %v9430_v36 = vsel %vm15985_vm13, %v9428_v54, %v9429_v20  ;;  %v9431_v39 = vrot.slane %v9429_v20, 4  ;;  %10983 = vmatmul.mubr.bf16.gmra.mxu1 %v13016_v62  ;;  %v13214_v40 = vld [vmem:[#allocation3 + $0x58] sm:$0xff]   ;;  %v13217_v20 = vld [vmem:[#allocation3 + $0x60] sm:$0xff]  }
 0x4b9   : > { %v8665_v27 = vrot.slane %v18065_v49, 4  ;;  %8906 = vst [vmem:[#allocation4 + $0x134] sm:$0xf] %v8654_v47  ;;  %v9434_v30 = vrot.slane %v18063_v46, 4  ;;  %9542 = vst [vmem:[#allocation4 + $0x138] sm:$0xf] %v9430_v36  ;;  %v8375_v9 = vsel %vm19678_vm15, %v13213_v2, %v18037_v18  ;;  %v7757_v32 = vsel %vm19679_vm7, %v13015_v33, %v7700_v16  ;;  %v9233_v16 = vpop.permute.xlu1 %9232 }
 0x4ba   : > { %7514 = vst [vmem:[#allocation4 + $0x280] sm:$0xf] %v11896_v1  ;;  %7515 = vst [vmem:[#allocation4 + $0x294] sm:$0xf] %v11897_v11  ;;  %v8664_v10 = vsel %vm15962_vm12, %v8655_v14, %v18065_v49  ;;  %v9433_v0 = vsel %vm15985_vm13, %v9431_v39, %v18063_v46  ;;  %v11998_v17 = vcombine.low %v8375_v9, %v8375_v9  ;;  %v13032_v56 = vld [vmem:[#allocation4 + $0x258] ss:$20 sps:$4 sm:$0xff]  }
 0x4bb   : > { %v11999_v26 = vcombine.high %v8375_v9, %v8375_v9  ;;  %8907 = vst [vmem:[#allocation4 + $0x148] sm:$0xf] %v8664_v10  ;;  %9543 = vst [vmem:[#allocation4 + $0x14c] sm:$0xf] %v9433_v0  ;;  %v11958_v38 = vcombine.low %v7757_v32, %v7757_v32  ;;  %v9269_v18 = vsel %vm19680_vm9, %v13214_v40, %v9231_v23  ;;  %10878 = vmatmul.mubr.bf16.gmra.mxu0 %v13032_v56  ;;  %v8340_v23 = vpop.permute.xlu0 %8339  ;;  %v13218_v32 = vld [vmem:[#allocation3 + $0x60] sm:$0xff]  }
 0x4bc   : > { %v7355_v54 = vsel %vm19681_vm3, %v13215_v58, %v7319_v25  ;;  %v8377_v63 = vsel %vm19682_vm2, %v13216_v42, %v8338_v44  ;;  %v8667_v61 = vshrl.u32 %v11998_v17, 16  ;;  %v8670_v29 = vshll.u32 %v11998_v17, 16  ;;  %vm19691_vm15 = vmmov %vm19642_vm0 }
 0x4bd   : > { %v8677_v55 = vshrl.u32 %v11999_v26, 16  ;;  %v8680_v48 = vshll.u32 %v11999_v26, 16  ;;  %v7958_v6 = vrot.slane %v11958_v38, 5  ;;  %v12055_v34 = vcombine.low %v9269_v18, %v9269_v18  ;;  %v13040_v53 = vld [vmem:[#allocation4 + $0x284] ss:$20 sps:$4 sm:$0xff]   ;;  %v9235_v44 = vpop.permute.xlu1 %9234  ;;  %vm19692_vm7 = vmmov %vm19642_vm0 }
 0x4be   : > { %v12056_v21 = vcombine.high %v9269_v18, %v9269_v18  ;;  %v11898_v8 = vcombine.low %v7355_v54, %v7355_v54  ;;  %v8669_v4 = vrot.slane %v8667_v61, 5  ;;  %v8672_v59 = vrot.slane %v8670_v29, 6  ;;  %10885 = vmatprep.mubr.bf16.mxu0 %v13040_v53  ;;  %v13219_v18 = vld [vmem:[#allocation3 + $0x68] sm:$0xff]   ;;  %vm19693_vm9 = vmmov %vm19642_vm0 }
 0x4bf   : > { %v8679_v7 = vrot.slane %v8677_v55, 5  ;;  %v8682_v24 = vrot.slane %v8680_v48, 6  ;;  %v7959_v50 = vsel %vm19502_vm10, %v7957_v19, %v7958_v6  ;;  %v9435_v12 = vrot.slane %v12055_v34, 6  ;;  %vm19683_vm10 = vmmov %vm19642_vm0 }
 0x4c0   : > { %v9438_v43 = vrot.slane %v12056_v21, 6  ;;  %v11899_v41 = vcombine.high %v7355_v54, %v7355_v54  ;;  %7516 = vst [vmem:[#allocation4 + $0x2a8] sm:$0xf] %v11898_v8  ;;  %v8673_v13 = vor.u32 %v8672_v59, %v8669_v4  ;;  %8031 = vst [vmem:[#allocation4 + $0x2c0] sm:$0xf] %v7959_v50  ;;  %v12000_v35 = vcombine.low %v8377_v63, %v8377_v63  ;;  %v13220_v54 = vld [vmem:[#allocation3 + $0x68] sm:$0xff]  }
 0x4c1   : > { %v8683_v15 = vor.u32 %v8682_v24, %v8679_v7  ;;  %v12001_v5 = vcombine.high %v8377_v63, %v8377_v63  ;;  %v13022_v51 = vld [vmem:[#allocation4 + $0x120] ss:$20 sps:$4 sm:$0xff]   ;;  %v13024_v60 = vld [vmem:[#allocation4 + $0x124] ss:$20 sps:$4 sm:$0xff]   ;;  %v9436_v57 = vsel %vm15985_vm13, %v9434_v30, %v9435_v12  ;;  %v9437_v22 = vrot.slane %v9435_v12, 4  ;;  %v9237_v24 = vpop.permute.xlu1 %9236  ;;  %vm19694_vm3 = vmmov %vm19642_vm0 }
 0x4c2   : > { %v9440_v28 = vrot.slane %v9438_v43, 4  ;;  %7517 = vst [vmem:[#allocation4 + $0x2bc] sm:$0xf] %v11899_v41  ;;  %v9271_v45 = vsel %vm19642_vm0, %v13217_v20, %v9233_v16  ;;  %v8674_v19 = vsel %vm15962_vm12, %v8665_v27, %v8673_v13  ;;  %v8675_v46 = vrot.slane %v8673_v13, 4  ;;  %9544 = vst [vmem:[#allocation4 + $0x160] sm:$0xf] %v9436_v57  ;;  %10990 = vmatprep.mubr.bf16.mxu1 %v13024_v60  ;;  %v8342_v27 = vpop.permute.xlu0 %8341 }
 0x4c3   : > { %v8685_v33 = vrot.slane %v8683_v15, 4  ;;  %v8687_v49 = vshrl.u32 %v12000_v35, 16  ;;  %8908 = vst [vmem:[#allocation4 + $0x15c] sm:$0xf] %v8674_v19  ;;  %v9439_v1 = vsel %vm15985_vm13, %v9437_v22, %v9438_v43  ;;  %v8690_v11 = vshll.u32 %v12000_v35, 16  ;;  %10991 = vmatmul.mubr.bf16.gmra.mxu1 %v13022_v51  ;;  %v13221_v20 = vld [vmem:[#allocation3 + $0x70] sm:$0xff]   ;;  %vm19695_vm2 = vmmov %vm19642_vm0 }
 0x4c4   : > { %v8697_v62 = vshrl.u32 %v12001_v5, 16  ;;  %v8700_v52 = vshll.u32 %v12001_v5, 16  ;;  %v13038_v47 = vld [vmem:[#allocation4 + $0x280] ss:$20 sps:$4 sm:$0xff]   ;;  %v8684_v14 = vsel %vm15962_vm12, %v8675_v46, %v8683_v15  ;;  %9545 = vst [vmem:[#allocation4 + $0x174] sm:$0xf] %v9439_v1  ;;  %v12057_v39 = vcombine.low %v9271_v45, %v9271_v45 }
 0x4c5   : > { %v8689_v36 = vrot.slane %v8687_v49, 5  ;;  %v12058_v25 = vcombine.high %v9271_v45, %v9271_v45  ;;  %8909 = vst [vmem:[#allocation4 + $0x170] sm:$0xf] %v8684_v14  ;;  %v8692_v30 = vrot.slane %v8690_v11, 6  ;;  %v8379_v10 = vsel %vm19683_vm10, %v13218_v32, %v8340_v23  ;;  %10886 = vmatmul.mubr.bf16.gmra.mxu0 %v13038_v47  ;;  %v13054_v60 = vld [vmem:[#allocation4 + $0x10] ss:$20 sps:$4 sm:$0xff]   ;;  %vm19696_vm10 = vmmov %vm19642_vm0 }
 0x4c6   : > { %v8699_v2 = vrot.slane %v8697_v62, 5  ;;  %v8702_v9 = vrot.slane %v8700_v52, 6  ;;  %v9441_v0 = vrot.slane %v12057_v39, 6  ;;  %v12002_v26 = vcombine.low %v8379_v10, %v8379_v10  ;;  %v8344_v52 = vpop.permute.xlu0 %8343 }
 0x4c7   : > { %v9444_v17 = vrot.slane %v12058_v25, 6  ;;  %v12003_v3 = vcombine.high %v8379_v10, %v8379_v10  ;;  %v8693_v38 = vor.u32 %v8692_v30, %v8689_v36  ;;  %v9273_v58 = vsel %vm19684_vm14, %v13219_v18, %v9235_v44  ;;  %v13049_v21 = vld [vmem:[#allocation4 + $0x2ac] ss:$20 sps:$4 sm:$0xff]   ;;  %v9239_v25 = vpop.permute.xlu1 %9238  ;;  %vm19697_vm14 = vmmov %vm19642_vm0 }
 0x4c8   : > { %v8703_v40 = vor.u32 %v8702_v9, %v8699_v2  ;;  %v8381_v42 = vsel %vm19685_vm11, %v13220_v54, %v8342_v27  ;;  %v9442_v63 = vsel %vm15985_vm13, %v9440_v28, %v9441_v0  ;;  %v9443_v56 = vrot.slane %v9441_v0, 4  ;;  %10893 = vmatprep.mubr.bf16.mxu0 %v13049_v21  ;;  %v13222_v0 = vld [vmem:[#allocation3 + $0x70] sm:$0xff]   ;;  %vm19698_vm11 = vmmov %vm19642_vm0 }
 0x4c9   : > { %v9446_v61 = vrot.slane %v9444_v17, 4  ;;  %v8707_v29 = vshrl.u32 %v12002_v26, 16  ;;  %v8694_v55 = vsel %vm15962_vm12, %v8685_v33, %v8693_v38  ;;  %v8695_v48 = vrot.slane %v8693_v38, 4  ;;  %9546 = vst [vmem:[#allocation4 + $0x188] sm:$0xf] %v9442_v63 }
 0x4ca   : > { %v8705_v6 = vrot.slane %v8703_v40, 4  ;;  %v8710_v34 = vshll.u32 %v12002_v26, 16  ;;  %8910 = vst [vmem:[#allocation4 + $0x184] sm:$0xf] %v8694_v55  ;;  %v9445_v8 = vsel %vm15985_vm13, %v9443_v56, %v9444_v17  ;;  %v8717_v59 = vshrl.u32 %v12003_v3, 16 }
 0x4cb   : > { %v8709_v4 = vrot.slane %v8707_v29, 5  ;;  %v8720_v7 = vshll.u32 %v12003_v3, 16  ;;  %v13029_v16 = vld [vmem:[#allocation4 + $0x148] ss:$20 sps:$4 sm:$0xff]   ;;  %v8704_v23 = vsel %vm15962_vm12, %v8695_v48, %v8703_v40  ;;  %9547 = vst [vmem:[#allocation4 + $0x19c] sm:$0xf] %v9445_v8  ;;  %v12059_v12 = vcombine.low %v9273_v58, %v9273_v58 }
 0x4cc   : > { %v8712_v50 = vrot.slane %v8710_v34, 6  ;;  %v12060_v43 = vcombine.high %v9273_v58, %v9273_v58  ;;  %v13031_v41 = vld [vmem:[#allocation4 + $0x14c] ss:$20 sps:$4 sm:$0xff]   ;;  %v13047_v13 = vld [vmem:[#allocation4 + $0x2a8] ss:$20 sps:$4 sm:$0xff]   ;;  %v8719_v15 = vrot.slane %v8717_v59, 5  ;;  %v12004_v5 = vcombine.low %v8381_v42, %v8381_v42 }
 0x4cd   : > { %8911 = vst [vmem:[#allocation4 + $0x198] sm:$0xf] %v8704_v23  ;;  %v8722_v35 = vrot.slane %v8720_v7, 6  ;;  %v12005_v51 = vcombine.high %v8381_v42, %v8381_v42  ;;  %v9447_v22 = vrot.slane %v12059_v12, 6  ;;  %v9275_v45 = vsel %vm19686_vm4, %v13221_v20, %v9237_v24  ;;  %10998 = vmatprep.mubr.bf16.mxu1 %v13031_v41  ;;  %10894 = vmatmul.mubr.bf16.gmra.mxu0 %v13047_v13  ;;  %v13223_v58 = vld [vmem:[#allocation3 + $0x78] sm:$0xff]   ;;  %v8346_v24 = vpop.permute.xlu0 %8345  ;;  %vm19699_vm4 = vmmov %vm19642_vm0 }
 0x4ce   : > { %v8713_v57 = vor.u32 %v8712_v50, %v8709_v4  ;;  %v9450_v28 = vrot.slane %v12060_v43, 6  ;;  %v8727_v46 = vshrl.u32 %v12004_v5, 16  ;;  %v8730_v33 = vshll.u32 %v12004_v5, 16  ;;  %10999 = vmatmul.mubr.bf16.gmra.mxu1 %v13029_v16  ;;  %12460 = vmatprep.mubr.msk.bf16.mxu0 %vm19687_vm8, %v13054_v60  ;;  %v13058_v42 = vld [vmem:[#allocation4 + $0x38] ss:$20 sps:$4 sm:$0xff]   ;;  %v9241_v16 = vpop.permute.xlu1 %9240  ;;  %vm19700_vm8 = vmmov %vm19642_vm0 }
 0x4cf   : > { %v8723_v19 = vor.u32 %v8722_v35, %v8719_v15  ;;  %v8737_v49 = vshrl.u32 %v12005_v51, 16  ;;  %v9448_v11 = vsel %vm15985_vm13, %v9446_v61, %v9447_v22  ;;  %v9449_v62 = vrot.slane %v9447_v22, 4  ;;  %v13059_v55 = vld [vmem:[#allocation4 + $0x60] ss:$20 sps:$4 sm:$0xff]  }
 0x4d0   : > { %v8714_v53 = vsel %vm15962_vm12, %v8705_v6, %v8713_v57  ;;  %v8715_v1 = vrot.slane %v8713_v57, 4  ;;  %v9452_v14 = vrot.slane %v9450_v28, 4  ;;  %9548 = vst [vmem:[#allocation4 + $0x1b0] sm:$0xf] %v9448_v11  ;;  %v8729_v36 = vrot.slane %v8727_v46, 5  ;;  %v13224_v57 = vld [vmem:[#allocation3 + $0x78] sm:$0xff]  }
 0x4d1   : > { %v8725_v47 = vrot.slane %v8723_v19, 4  ;;  %8912 = vst [vmem:[#allocation4 + $0x1ac] sm:$0xf] %v8714_v53  ;;  %v8732_v39 = vrot.slane %v8730_v33, 6  ;;  %v9451_v27 = vsel %vm15985_vm13, %v9449_v62, %v9450_v28  ;;  %v8739_v30 = vrot.slane %v8737_v49, 5  ;;  %v13225_v28 = vld [vmem:[#allocation3 + $0x80] sm:$0xff]  }
 0x4d2   : > { %v8724_v44 = vsel %vm15962_vm12, %v8715_v1, %v8723_v19  ;;  %v8740_v2 = vshll.u32 %v12005_v51, 16  ;;  %9549 = vst [vmem:[#allocation4 + $0x1c4] sm:$0xf] %v9451_v27  ;;  %v12061_v32 = vcombine.low %v9275_v45, %v9275_v45  ;;  %v12062_v10 = vcombine.high %v9275_v45, %v9275_v45  ;;  %v13035_v26 = vld [vmem:[#allocation4 + $0x170] ss:$20 sps:$4 sm:$0xff]  }
 0x4d3   : > { %8913 = vst [vmem:[#allocation4 + $0x1c0] sm:$0xf] %v8724_v44  ;;  %v8733_v9 = vor.u32 %v8732_v39, %v8729_v36  ;;  %v8383_v17 = vsel %vm19688_vm1, %v13222_v0, %v8344_v52  ;;  %v13037_v3 = vld [vmem:[#allocation4 + $0x174] ss:$20 sps:$4 sm:$0xff]   ;;  %v9277_v54 = vsel %vm19689_vm5, %v13223_v58, %v9239_v25  ;;  %v8385_v22 = vsel %vm19692_vm7, %v13224_v57, %v8346_v24  ;;  %v13064_v52 = vld [vmem:[#allocation4 + $0xb0] ss:$20 sps:$4 sm:$0xff]   ;;  %v8348_v25 = vpop.permute.xlu0 %8347  ;;  %vm19701_vm1 = vmmov %vm19642_vm0 }
 0x4d4   : > { %v8742_v38 = vrot.slane %v8740_v2, 6  ;;  %v12006_v40 = vcombine.low %v8383_v17, %v8383_v17  ;;  %v12007_v18 = vcombine.high %v8383_v17, %v8383_v17  ;;  %v9453_v61 = vrot.slane %v12061_v32, 6  ;;  %11006 = vmatprep.mubr.bf16.mxu1 %v13037_v3  ;;  %v13063_v62 = vld [vmem:[#allocation4 + $0x88] ss:$20 sps:$4 sm:$0xff]   ;;  %v9243_v32 = vpop.permute.xlu1 %9242  ;;  %vm19702_vm5 = vmmov %vm19642_vm0 }
 0x4d5   : > { %v8734_v63 = vsel %vm15962_vm12, %v8725_v47, %v8733_v9  ;;  %v8735_v56 = vrot.slane %v8733_v9, 4  ;;  %v9456_v29 = vrot.slane %v12062_v10, 6  ;;  %12461 = vmatmul.mubr.msk.bf16.vlgmr.msra.gmra.mxu0 %vm19690_vm6, %v13058_v42  ;;  %v12063_v35 = vcombine.low %v9277_v54, %v9277_v54  ;;  %vm19703_vm6 = vmmov %vm19642_vm0 }
 0x4d6   : > { %v8743_v48 = vor.u32 %v8742_v38, %v8739_v30  ;;  %8914 = vst [vmem:[#allocation4 + $0x1d4] sm:$0xf] %v8734_v63  ;;  %v8747_v6 = vshrl.u32 %v12006_v40, 16  ;;  %v8750_v34 = vshll.u32 %v12006_v40, 16  ;;  %v8757_v21 = vshrl.u32 %v12007_v18, 16  ;;  %11007 = vmatmul.mubr.bf16.gmra.mxu1 %v13035_v26  ;;  %12464 = vmatprep.mubr.msk.bf16.mxu0 %vm19691_vm15, %v13059_v55  ;;  %vm19704_vm15 = vmmov %vm19642_vm0 }
 0x4d7   : > { %v9454_v8 = vsel %vm15985_vm13, %v9452_v14, %v9453_v61  ;;  %v9455_v4 = vrot.slane %v9453_v61, 4  ;;  %v9458_v59 = vrot.slane %v9456_v29, 4  ;;  %v8760_v7 = vshll.u32 %v12007_v18, 16  ;;  %v13043_v5 = vld [vmem:[#allocation4 + $0x19c] ss:$20 sps:$4 sm:$0xff]   ;;  %v13226_v18 = vld [vmem:[#allocation3 + $0x80] sm:$0xff]   ;;  %vm19705_vm7 = vmmov %vm19642_vm0 }
 0x4d8   : > { %v8744_v23 = vsel %vm15962_vm12, %v8735_v56, %v8743_v48  ;;  %v8745_v50 = vrot.slane %v8743_v48, 4  ;;  %9550 = vst [vmem:[#allocation4 + $0x1d8] sm:$0xf] %v9454_v8  ;;  %v8749_v12 = vrot.slane %v8747_v6, 5  ;;  %v8752_v43 = vrot.slane %v8750_v34, 6  ;;  %11014 = vmatprep.mubr.bf16.mxu1 %v13043_v5  ;;  %v13227_v6 = vld [vmem:[#allocation3 + $0x88] sm:$0xff]  }
 0x4d9   : > { %8915 = vst [vmem:[#allocation4 + $0x1e8] sm:$0xf] %v8744_v23  ;;  %v9457_v41 = vsel %vm15985_vm13, %v9455_v4, %v9456_v29  ;;  %v8759_v13 = vrot.slane %v8757_v21, 5  ;;  %v8762_v15 = vrot.slane %v8760_v7, 6  ;;  %v12064_v60 = vcombine.high %v9277_v54, %v9277_v54  ;;  %v13041_v44 = vld [vmem:[#allocation4 + $0x198] ss:$20 sps:$4 sm:$0xff]  }
 0x4da   : > { %9551 = vst [vmem:[#allocation4 + $0x1ec] sm:$0xf] %v9457_v41  ;;  %v8753_v51 = vor.u32 %v8752_v43, %v8749_v12  ;;  %v9279_v20 = vsel %vm19693_vm9, %v13225_v28, %v9241_v16  ;;  %v9459_v19 = vrot.slane %v12063_v35, 6  ;;  %v12008_v46 = vcombine.low %v8385_v22, %v8385_v22  ;;  %v13068_v7 = vld [vmem:[#allocation4 + $0xd8] ss:$20 sps:$4 sm:$0xff]   ;;  %v8350_v12 = vpop.permute.xlu0 %8349  ;;  %v9245_v43 = vpop.permute.xlu1 %9244  ;;  %vm19706_vm9 = vmmov %vm19642_vm0 }
 0x4db   : > { %v8763_v45 = vor.u32 %v8762_v15, %v8759_v13  ;;  %v12009_v33 = vcombine.high %v8385_v22, %v8385_v22  ;;  %v9462_v1 = vrot.slane %v12064_v60, 6  ;;  %v12065_v11 = vcombine.low %v9279_v20, %v9279_v20  ;;  %v13069_v13 = vld [vmem:[#allocation4 + $0x100] ss:$20 sps:$4 sm:$0xff]  }
 0x4dc   : > { %v8754_v49 = vsel %vm15962_vm12, %v8745_v50, %v8753_v51  ;;  %v8755_v53 = vrot.slane %v8753_v51, 4  ;;  %v9460_v14 = vsel %vm15985_vm13, %v9458_v59, %v9459_v19  ;;  %v9461_v36 = vrot.slane %v9459_v19, 4 }
 0x4dd   : > { %v8765_v47 = vrot.slane %v8763_v45, 4  ;;  %8916 = vst [vmem:[#allocation4 + $0x1fc] sm:$0xf] %v8754_v49  ;;  %v8767_v39 = vshrl.u32 %v12008_v46, 16  ;;  %v9464_v30 = vrot.slane %v9462_v1, 4  ;;  %v8770_v2 = vshll.u32 %v12008_v46, 16  ;;  %12465 = vmatmul.mubr.msk.bf16.gmra.mxu0 %vm19694_vm3, %v13063_v62  ;;  %vm19707_vm3 = vmmov %vm19642_vm0 }
 0x4de   : > { %v8764_v27 = vsel %vm15962_vm12, %v8755_v53, %v8763_v45  ;;  %9552 = vst [vmem:[#allocation4 + $0x200] sm:$0xf] %v9460_v14  ;;  %v8777_v9 = vshrl.u32 %v12009_v33, 16  ;;  %v9463_v10 = vsel %vm15985_vm13, %v9461_v36, %v9462_v1  ;;  %v8780_v17 = vshll.u32 %v12009_v33, 16  ;;  %11015 = vmatmul.mubr.bf16.gmra.mxu1 %v13041_v44  ;;  %12468 = vmatprep.mubr.msk.bf16.mxu0 %vm19695_vm2, %v13064_v52  ;;  %v13044_v41 = vld [vmem:[#allocation4 + $0x1c0] ss:$20 sps:$4 sm:$0xff]   ;;  %vm19708_vm2 = vmmov %vm19642_vm0 }
 0x4df   : > { %8917 = vst [vmem:[#allocation4 + $0x210] sm:$0xf] %v8764_v27  ;;  %v8769_v0 = vrot.slane %v8767_v39, 5  ;;  %v12066_v26 = vcombine.high %v9279_v20, %v9279_v20  ;;  %9553 = vst [vmem:[#allocation4 + $0x214] sm:$0xf] %v9463_v10  ;;  %v8772_v3 = vrot.slane %v8770_v2, 6  ;;  %v8387_v58 = vsel %vm19642_vm0, %v13226_v18, %v8348_v25  ;;  %v8352_v2 = vpop.permute.xlu0 %8351 }
 0x4e0   : > { %v8779_v38 = vrot.slane %v8777_v9, 5  ;;  %v9465_v40 = vrot.slane %v12065_v11, 6  ;;  %v13046_v54 = vld [vmem:[#allocation4 + $0x1c4] ss:$20 sps:$4 sm:$0xff]   ;;  %v8782_v42 = vrot.slane %v8780_v17, 6  ;;  %v12010_v56 = vcombine.low %v8387_v58, %v8387_v58  ;;  %v13228_v46 = vld [vmem:[#allocation3 + $0x88] sm:$0xff]   ;;  %v9247_v17 = vpop.permute.xlu1 %9246 }
 0x4e1   : > { %v9468_v63 = vrot.slane %v12066_v26, 6  ;;  %v12011_v61 = vcombine.high %v8387_v58, %v8387_v58  ;;  %v8773_v29 = vor.u32 %v8772_v3, %v8769_v0  ;;  %v9281_v34 = vsel %vm19696_vm10, %v13227_v6, %v9243_v32  ;;  %11022 = vmatprep.mubr.bf16.mxu1 %v13046_v54  ;;  %v13229_v49 = vld [vmem:[#allocation3 + $0x90] sm:$0xff]   ;;  %vm19709_vm10 = vmmov %vm19642_vm0 }
 0x4e2   : > { %v9466_v55 = vsel %vm15985_vm13, %v9464_v30, %v9465_v40  ;;  %v9467_v48 = vrot.slane %v9465_v40, 4  ;;  %v8783_v21 = vor.u32 %v8782_v42, %v8779_v38  ;;  %v8787_v4 = vshrl.u32 %v12010_v56, 16  ;;  %v13073_v26 = vld [vmem:[#allocation4 + $0x128] ss:$20 sps:$4 sm:$0xff]   ;;  %v13074_v58 = vld [vmem:[#allocation4 + $0x150] ss:$20 sps:$4 sm:$0xff]  }
 0x4e3   : > { %v9470_v8 = vrot.slane %v9468_v63, 4  ;;  %9554 = vst [vmem:[#allocation4 + $0x228] sm:$0xf] %v9466_v55  ;;  %v8790_v59 = vshll.u32 %v12010_v56, 16  ;;  %v8774_v24 = vsel %vm15962_vm12, %v8765_v47, %v8773_v29  ;;  %v8775_v16 = vrot.slane %v8773_v29, 4  ;;  %v13230_v56 = vld [vmem:[#allocation3 + $0x90] sm:$0xff]  }
 0x4e4   : > { %v9469_v23 = vsel %vm15985_vm13, %v9467_v48, %v9468_v63  ;;  %v8797_v50 = vshrl.u32 %v12011_v61, 16  ;;  %v8785_v15 = vrot.slane %v8783_v21, 4  ;;  %8918 = vst [vmem:[#allocation4 + $0x224] sm:$0xf] %v8774_v24  ;;  %v8789_v35 = vrot.slane %v8787_v4, 5 }
 0x4e5   : > { %9555 = vst [vmem:[#allocation4 + $0x23c] sm:$0xf] %v9469_v23  ;;  %v8792_v5 = vrot.slane %v8790_v59, 6  ;;  %v8800_v51 = vshll.u32 %v12011_v61, 16  ;;  %v8784_v60 = vsel %vm15962_vm12, %v8775_v16, %v8783_v21  ;;  %v12067_v22 = vcombine.low %v9281_v34, %v9281_v34  ;;  %v13053_v20 = vld [vmem:[#allocation4 + $0x1ec] ss:$20 sps:$4 sm:$0xff]   ;;  %12469 = vmatmul.mubr.msk.bf16.gmra.mxu0 %vm19697_vm14, %v13068_v7  ;;  %vm19712_vm14 = vmmov %vm19642_vm0 }
 0x4e6   : > { %v8799_v57 = vrot.slane %v8797_v50, 5  ;;  %v12068_v28 = vcombine.high %v9281_v34, %v9281_v34  ;;  %8919 = vst [vmem:[#allocation4 + $0x238] sm:$0xf] %v8784_v60  ;;  %v8389_v33 = vsel %vm19698_vm11, %v13228_v46, %v8350_v12  ;;  %v9283_v53 = vsel %vm19699_vm4, %v13229_v49, %v9245_v43  ;;  %11023 = vmatmul.mubr.bf16.gmra.mxu1 %v13044_v41  ;;  %v13051_v29 = vld [vmem:[#allocation4 + $0x1e8] ss:$20 sps:$4 sm:$0xff]   ;;  %v13231_v7 = vld [vmem:[#allocation3 + $0x98] sm:$0xff]   ;;  %vm19713_vm11 = vmmov %vm19642_vm0 }
 0x4e7   : > { %v8793_v45 = vor.u32 %v8792_v5, %v8789_v35  ;;  %v8802_v19 = vrot.slane %v8800_v51, 6  ;;  %12472 = vmatprep.mubr.msk.bf16.mxu0 %vm19700_vm8, %v13069_v13  ;;  %v9471_v1 = vrot.slane %v12067_v22, 6  ;;  %v12012_v62 = vcombine.low %v8389_v33, %v8389_v33  ;;  %11030 = vmatprep.mubr.bf16.mxu1 %v13053_v20  ;;  %v13050_v43 = vld [vmem:[#allocation3 + $0xa0] ss:$0 sps:$4 sm:$0x33]   ;;  %v8354_v5 = vpop.permute.xlu0 %8353  ;;  %v9249_v51 = vpop.permute.xlu1 %9248  ;;  %vm19714_vm4 = vmmov %vm19642_vm0 }
 0x4e8   : > { %v9474_v11 = vrot.slane %v12068_v28, 6  ;;  %v12013_v52 = vcombine.high %v8389_v33, %v8389_v33  ;;  %v12069_v39 = vcombine.low %v9283_v53, %v9283_v53  ;;  %v12070_v18 = vcombine.high %v9283_v53, %v9283_v53  ;;  %v18176_v20 = vpop.f32.mrf.mxu0 }
 0x4e9   : > { %v8794_v47 = vsel %vm15962_vm12, %v8785_v15, %v8793_v45  ;;  %v8795_v14 = vrot.slane %v8793_v45, 4  ;;  %v8803_v36 = vor.u32 %v8802_v19, %v8799_v57  ;;  %v9472_v25 = vsel %vm15985_vm13, %v9470_v8, %v9471_v1 }
 0x4ea   : > { %8920 = vst [vmem:[#allocation4 + $0x24c] sm:$0xf] %v8794_v47  ;;  %v9473_v44 = vrot.slane %v9471_v1, 4  ;;  %v9476_v27 = vrot.slane %v9474_v11, 4  ;;  %v8807_v30 = vshrl.u32 %v12012_v62, 16  ;;  %v8810_v10 = vshll.u32 %v12012_v62, 16  ;;  %v10761_v47 = vpop.f32.mrf.mxu0 }
 0x4eb   : > { %v8804_v9 = vsel %vm15962_vm12, %v8795_v14, %v8803_v36  ;;  %v8805_v32 = vrot.slane %v8803_v36, 4  ;;  %9556 = vst [vmem:[#allocation4 + $0x250] sm:$0xf] %v9472_v25  ;;  %v8817_v0 = vshrl.u32 %v12013_v52, 16  ;;  %v8820_v40 = vshll.u32 %v12013_v52, 16 }
 0x4ec   : > { %8921 = vst [vmem:[#allocation4 + $0x260] sm:$0xf] %v8804_v9  ;;  %v9475_v3 = vsel %vm15985_vm13, %v9473_v44, %v9474_v11  ;;  %v8809_v38 = vrot.slane %v8807_v30, 5  ;;  %v8812_v54 = vrot.slane %v8810_v10, 6  ;;  %v9477_v63 = vrot.slane %v12069_v39, 6  ;;  %v18185_v10 = vpop.f32.mrf.mxu0 }
 0x4ed   : > { %9557 = vst [vmem:[#allocation4 + $0x264] sm:$0xf] %v9475_v3  ;;  %v8819_v42 = vrot.slane %v8817_v0, 5  ;;  %v8391_v61 = vsel %vm19701_vm1, %v13230_v56, %v8352_v2  ;;  %v8822_v55 = vrot.slane %v8820_v40, 6  ;;  %v9480_v48 = vrot.slane %v12070_v18, 6  ;;  %12473 = vmatmul.mubr.msk.bf16.gmra.mxu0 %vm19702_vm5, %v13073_v26 }
 0x4ee   : > { %v12014_v6 = vcombine.low %v8391_v61, %v8391_v61  ;;  %v12015_v34 = vcombine.high %v8391_v61, %v8391_v61  ;;  %v13057_v21 = vld [vmem:[#allocation4 + $0x214] ss:$20 sps:$4 sm:$0xff]   ;;  %v8813_v8 = vor.u32 %v8812_v54, %v8809_v38  ;;  %v9478_v4 = vsel %vm15985_vm13, %v9476_v27, %v9477_v63  ;;  %11031 = vmatmul.mubr.bf16.gmra.mxu1 %v13051_v29  ;;  %v13232_v1 = vld [vmem:[#allocation3 + $0x98] ss:$0 sps:$4 sm:$0x33]  }
 0x4ef   : > { %v9479_v59 = vrot.slane %v9477_v63, 4  ;;  %v9285_v24 = vsel %vm19703_vm6, %v13231_v7, %v9247_v17  ;;  %12476 = vmatprep.mubr.msk.bf16.mxu0 %vm19704_vm15, %v13074_v58  ;;  %v8823_v16 = vor.u32 %v8822_v55, %v8819_v42  ;;  %v9482_v23 = vrot.slane %v9480_v48, 4  ;;  %9558 = vst [vmem:[#allocation4 + $0x278] sm:$0xf] %v9478_v4  ;;  %11038 = vmatprep.mubr.bf16.mxu1 %v13057_v21  ;;  %v13078_v52 = vld [vmem:[#allocation4 + $0x178] ss:$20 sps:$4 sm:$0xff]   ;;  %v10764_v58 = vpop.f32.mrf.mxu0 }
 0x4f0   : > { %v8827_v50 = vshrl.u32 %v12014_v6, 16  ;;  %v8830_v12 = vshll.u32 %v12014_v6, 16  ;;  %v8814_v41 = vsel %vm15962_vm12, %v8805_v32, %v8813_v8  ;;  %v8815_v13 = vrot.slane %v8813_v8, 4  ;;  %v13055_v44 = vld [vmem:[#allocation4 + $0x210] ss:$20 sps:$4 sm:$0xff]  }
 0x4f1   : > { %v9481_v15 = vsel %vm15985_vm13, %v9479_v59, %v9480_v48  ;;  %v8837_v35 = vshrl.u32 %v12015_v34, 16  ;;  %v8825_v60 = vrot.slane %v8823_v16, 4  ;;  %8922 = vst [vmem:[#allocation4 + $0x274] sm:$0xf] %v8814_v41  ;;  %v8840_v28 = vshll.u32 %v12015_v34, 16  ;;  %v18196_v48 = vpop.f32.mrf.mxu0 }
 0x4f2   : > { %9559 = vst [vmem:[#allocation4 + $0x28c] sm:$0xf] %v9481_v15  ;;  %v8829_v57 = vrot.slane %v8827_v50, 5  ;;  %v8832_v22 = vrot.slane %v8830_v12, 6  ;;  %v8824_v45 = vsel %vm15962_vm12, %v8815_v13, %v8823_v16  ;;  %v12071_v46 = vcombine.low %v9285_v24, %v9285_v24  ;;  %v13079_v27 = vld [vmem:[#allocation4 + $0x1a0] ss:$20 sps:$4 sm:$0xff]  }
 0x4f3   : > { %v8839_v19 = vrot.slane %v8837_v35, 5  ;;  %v12072_v33 = vcombine.high %v9285_v24, %v9285_v24  ;;  %8923 = vst [vmem:[#allocation4 + $0x288] sm:$0xf] %v8824_v45  ;;  %v8842_v53 = vrot.slane %v8840_v28, 6  ;;  %v8393_v11 = vsel %vm19705_vm7, %v13232_v1, %v8354_v5  ;;  %v13062_v32 = vld [vmem:[#allocation4 + $0x23c] ss:$20 sps:$4 sm:$0xff]   ;;  %v10769_v4 = vpop.f32.mrf.mxu0 }
 0x4f4   : > { %v8833_v49 = vor.u32 %v8832_v22, %v8829_v57  ;;  %v9288_v62 = vsel %vm19706_vm9, %v13050_v43, %v9249_v51  ;;  %v9483_v14 = vrot.slane %v12071_v46, 6  ;;  %v12016_v39 = vcombine.low %v8393_v11, %v8393_v11  ;;  %v13080_v55 = vld [vmem:[#allocation4 + $0x1c8] ss:$20 sps:$4 sm:$0xff]   ;;  %v13060_v6 = vld [vmem:[#allocation4 + $0x238] ss:$20 sps:$4 sm:$0xff]  }
 0x4f5   : > { %v9486_v36 = vrot.slane %v12072_v33, 6  ;;  %v12073_v25 = vcombine.low %v9288_v62, %v9288_v62  ;;  %v8843_v9 = vor.u32 %v8842_v53, %v8839_v19  ;;  %12477 = vmatmul.mubr.msk.bf16.gmra.mxu0 %vm19707_vm3, %v13078_v52  ;;  %v13081_v34 = vld [vmem:[#allocation4 + $0x1f0] ss:$20 sps:$4 sm:$0xff]   ;;  %v18202_v31 = vpop.f32.mrf.mxu0  ;;  %v13082_v7 = vld [vmem:[#allocation4 + $0x218] ss:$20 sps:$4 sm:$0xff]   ;;  %vm11256_vm8 = vcmask 97280  }
 0x4f6   : > { %v8834_v30 = vsel %vm15962_vm12, %v8825_v60, %v8833_v49  ;;  %v8835_v2 = vrot.slane %v8833_v49, 4  ;;  %v9484_v0 = vsel %vm15985_vm13, %v9482_v23, %v9483_v14  ;;  %v9485_v17 = vrot.slane %v9483_v14, 4  ;;  %11039 = vmatmul.mubr.bf16.gmra.mxu1 %v13055_v44  ;;  %12480 = vmatprep.mubr.msk.bf16.mxu0 %vm19708_vm2, %v13079_v27  ;;  %v13067_v8 = vld [vmem:[#allocation4 + $0x264] ss:$20 sps:$4 sm:$0xff]   ;;  %v13083_v23 = vld [vmem:[#allocation4 + $0x240] ss:$20 sps:$4 sm:$0xff]  }
 0x4f7   : > { %8924 = vst [vmem:[#allocation4 + $0x29c] sm:$0xf] %v8834_v30  ;;  %v8847_v26 = vshrl.u32 %v12016_v39, 16  ;;  %v9488_v38 = vrot.slane %v9486_v36, 4  ;;  %9560 = vst [vmem:[#allocation4 + $0x2a0] sm:$0xf] %v9484_v0  ;;  %11046 = vmatprep.mubr.bf16.mxu1 %v13062_v32  ;;  %v10772_v59 = vpop.f32.mrf.mxu0 }
 0x4f8   : > { %v8844_v3 = vsel %vm15962_vm12, %v8835_v2, %v8843_v9  ;;  %v8850_v40 = vshll.u32 %v12016_v39, 16  ;;  %v9489_v18 = vrot.slane %v12073_v25, 6  ;;  %v9487_v54 = vsel %vm15985_vm13, %v9485_v17, %v9486_v36  ;;  %v13065_v16 = vld [vmem:[#allocation4 + $0x260] ss:$20 sps:$4 sm:$0xff]   ;;  %v13084_v41 = vld [vmem:[#allocation4 + $0x268] ss:$20 sps:$4 sm:$0xff]  }
 0x4f9   : > { %8925 = vst [vmem:[#allocation4 + $0x2b0] sm:$0xf] %v8844_v3  ;;  %v8849_v42 = vrot.slane %v8847_v26, 5  ;;  %9561 = vst [vmem:[#allocation4 + $0x2b4] sm:$0xf] %v9487_v54  ;;  %v8845_v61 = vrot.slane %v8843_v9, 4  ;;  %v18204_v24 = vpop.f32.mrf.mxu0 }
 0x4fa   : > { %v8852_v63 = vrot.slane %v8850_v40, 6  ;;  %v9490_v56 = vsel %vm15985_vm13, %v9488_v38, %v9489_v18  ;;  %vm19710_vm13 = vmmov %vm19642_vm0  ;;  %v13085_v35 = vld [vmem:[#allocation4 + $0x290] ss:$20 sps:$4 sm:$0xff]   ;;  %v13086_v22 = vld [vmem:[#allocation4 + $0x2b8] ss:$20 sps:$4 sm:$0xff]  }
 0x4fb   : > { %9562 = vst [vmem:[#allocation4 + $0x2c8] sm:$0xf] %v9490_v56  ;;  %v10777_v37 = vpop.f32.mrf.mxu0  ;;  %v18240_v32 = vld [vmem:[%s18515_s6] ss:$0 sm:$0xff] }
 0x4fc   : > { %v8853_v29 = vor.u32 %v8852_v63, %v8849_v42  ;;  %v10760_v17 = vadd.f32 %v18240_v32, %v18176_v20  ;;  %v10763_v58 = vadd.f32 %v18240_v32, %v18185_v10 }
 0x4fd   : > { %12481 = vmatmul.mubr.msk.bf16.gmra.mxu0 %vm19642_vm0, %v13080_v55  ;;  %v18208_v12 = vpop.f32.mrf.mxu0 }
 0x4fe   : > { %v8854_v21 = vsel %vm15962_vm12, %v8845_v61, %v8853_v29  ;;  %11047 = vmatmul.mubr.bf16.gmra.mxu1 %v13060_v6  ;;  %12484 = vmatprep.mubr.msk.bf16.mxu0 %vm19709_vm10, %v13081_v34  ;;  %v13072_v50 = vld [vmem:[#allocation4 + $0x28c] ss:$20 sps:$4 sm:$0xff]   ;;  %vm19711_vm12 = vmmov %vm19642_vm0  ;;  %v13070_v15 = vld [vmem:[#allocation4 + $0x288] ss:$20 sps:$4 sm:$0xff]   ;;  %v10768_v61 = vadd.f32 %v18240_v32, %v18196_v48  ;;  %v10771_v34 = vadd.f32 %v18240_v32, %v18202_v31 }
 0x4ff   : > { %8926 = vst [vmem:[#allocation4 + $0x2c4] sm:$0xf] %v8854_v21  ;;  %11054 = vmatprep.mubr.bf16.mxu1 %v13067_v8  ;;  %v10780_v43 = vpop.f32.mrf.mxu0  ;;  %v10776_v48 = vadd.f32 %v18240_v32, %v18204_v24  ;;  %v10779_v31 = vadd.f32 %v18240_v32, %v18208_v12 }
 0x501   : > { %v18210_v13 = vpop.f32.mrf.mxu0 }
 0x502   : > { %v13077_v5 = vld [vmem:[#allocation4 + $0x2b4] ss:$20 sps:$4 sm:$0xff]  }
 0x503   : > { %v10785_v51 = vpop.f32.mrf.mxu0 }
 0x505   : > { %12485 = vmatmul.mubr.msk.bf16.gmra.mxu0 %vm19710_vm13, %v13082_v7  ;;  %v18214_v60 = vpop.f32.mrf.mxu0 }
 0x506   : > { %11055 = vmatmul.mubr.bf16.gmra.mxu1 %v13065_v16  ;;  %12488 = vmatprep.mubr.msk.bf16.mxu0 %vm19711_vm12, %v13083_v23  ;;  %v13075_v45 = vld [vmem:[#allocation4 + $0x2b0] ss:$20 sps:$4 sm:$0xff]  }
 0x507   : > { %11062 = vmatprep.mubr.bf16.mxu1 %v13072_v50  ;;  %v10788_v57 = vpop.f32.mrf.mxu0 }
 0x509   : > { %v18216_v28 = vpop.f32.mrf.mxu0 }
 0x50b   : > { %v10793_v19 = vpop.f32.mrf.mxu0 }
 0x50d   : > { %12489 = vmatmul.mubr.msk.bf16.gmra.mxu0 %vm19712_vm14, %v13084_v41  ;;  %v18219_v46 = vpop.f32.mrf.mxu0 }
 0x50e   : > { %11063 = vmatmul.mubr.bf16.gmra.mxu1 %v13070_v15  ;;  %12492 = vmatprep.mubr.msk.bf16.mxu0 %vm19713_vm11, %v13085_v35 }
 0x50f   : > { %11070 = vmatprep.mubr.bf16.mxu1 %v13077_v5  ;;  %v10796_v33 = vpop.f32.mrf.mxu0 }
 0x515   : > { %12493 = vmatmul.mubr.msk.bf16.gmra.mxu0 %vm19714_vm4, %v13086_v22 }
 0x516   : > { %11071 = vmatmul.mubr.bf16.gmra.mxu1 %v13075_v45 }
 0x51a   : > { %v18221_v49 = vpop.f32.mrf.mxu0 }
 0x51c   : > { %v10801_v53 = vpop.f32.mrf.mxu0 }
 0x51e   : > { %v18223_v1 = vpop.f32.mrf.mxu0 }
 0x520   : > { %v10804_v11 = vpop.f32.mrf.mxu0 }
 0x522   : > { %v18225_v62 = vpop.f32.mrf.mxu0 }
 0x524   : > { %v10809_v52 = vpop.f32.mrf.mxu0 }
 0x526   : > { %v18227_v47 = vpop.f32.mrf.mxu0 }
 0x528   : > { %v10812_v14 = vpop.f32.mrf.mxu0 }
 0x52a   : > { %v18229_v36 = vpop.f32.mrf.mxu0 }
 0x52c   : > { %v10817_v39 = vpop.f32.mrf.mxu0 }
 0x52e   : > { %v18231_v25 = vpop.f32.mrf.mxu0 }
 0x530   : > { %v10820_v44 = vpop.f32.mrf.mxu0 }
 0x532   : > { %v18233_v27 = vpop.f32.mrf.mxu0 }
 0x534   : > { %v10825_v30 = vpop.f32.mrf.mxu0 }
 0x536   : > { %v18235_v2 = vpop.f32.mrf.mxu0 }
 0x538   : > { %v10828_v9 = vpop.f32.mrf.mxu0 }
 0x53e   : > { %v18242_v0 = vpop.f32.mrf.mxu0 }
 0x540   : > { %v10833_v3 = vpop.f32.mrf.mxu0 }
 0x542   : > { %v10936_v26 = vpop.f32.mrf.mxu1  ;;  %v18248_v18 = vpop.f32.mrf.mxu0 }
 0x543   : > { %v18246_v38 = vadd.f32 %v10936_v26, %v10760_v17 }
 0x544   : > { %v10938_v40 = vpop.f32.mrf.mxu1  ;;  %v10836_v42 = vpop.f32.mrf.mxu0 }
 0x546   : > { %v10939_v54 = vpop.f32.mrf.mxu1 }
 0x547   : > { %v18252_v63 = vadd.f32 %v10939_v54, %v10763_v58 }
 0x548   : > { %v10941_v56 = vpop.f32.mrf.mxu1  ;;  %v18258_v55 = vpop.f32.mrf.mxu0 }
 0x54a   : > { %v10841_v21 = vpop.f32.mrf.mxu0 }
 0x54c   : > { %v10944_v29 = vpop.f32.mrf.mxu1  ;;  %v18264_v4 = vpop.f32.mrf.mxu0 }
 0x54d   : > { %v18256_v20 = vadd.f32 %v10944_v29, %v10768_v61 }
 0x54e   : > { %v10946_v6 = vpop.f32.mrf.mxu1  ;;  %v10844_v7 = vpop.f32.mrf.mxu0 }
 0x550   : > { %v10947_v8 = vpop.f32.mrf.mxu1  ;;  %v18270_v50 = vpop.f32.mrf.mxu0 }
 0x551   : > { %v18262_v10 = vadd.f32 %v10947_v8, %v10771_v34 }
 0x552   : > { %v10949_v59 = vpop.f32.mrf.mxu1  ;;  %v10849_v43 = vpop.f32.mrf.mxu0 }
 0x554   : > { %v18276_v35 = vpop.f32.mrf.mxu0 }
 0x555   : > { %v10952_v16 = vpop.f32.mrf.mxu1 }
 0x556   : > { %v18268_v23 = vadd.f32 %v10952_v16, %v10776_v48  ;;  %v10852_v51 = vpop.f32.mrf.mxu0 }
 0x557   : > { %v10954_v37 = vpop.f32.mrf.mxu1 }
 0x559   : > { %v10955_v41 = vpop.f32.mrf.mxu1 }
 0x55a   : > { %v18274_v15 = vadd.f32 %v10955_v41, %v10779_v31 }
 0x55b   : > { %v10957_v5 = vpop.f32.mrf.mxu1 }
 0x55f   : > { %v18278_v57 = vpop.f32.mrf.mxu1  ;;  %v18280_v24 = vpop.f32.mrf.mxu0 }
 0x561   : > { %v10962_v22 = vpop.f32.mrf.mxu1  ;;  %v10857_v45 = vpop.f32.mrf.mxu0 }
 0x563   : > { %v18282_v19 = vpop.f32.mrf.mxu1  ;;  %v18284_v33 = vpop.f32.mrf.mxu0 }
 0x565   : > { %v10965_v53 = vpop.f32.mrf.mxu1  ;;  %v10860_v12 = vpop.f32.mrf.mxu0 }
 0x567   : > { %v18286_v11 = vpop.f32.mrf.mxu1 }
 0x568   : > { %v18288_v14 = vpop.f32.mrf.mxu0 }
 0x569   : > { %v10970_v52 = vpop.f32.mrf.mxu1 }
 0x56a   : > { %v10865_v44 = vpop.f32.mrf.mxu0 }
 0x56b   : > { %v18290_v39 = vpop.f32.mrf.mxu1 }
 0x56c   : > { %v18292_v9 = vpop.f32.mrf.mxu0 }
 0x56d   : > { %v10973_v30 = vpop.f32.mrf.mxu1 }
 0x56e   : > { %v10868_v17 = vpop.f32.mrf.mxu0 }
 0x56f   : > { %v18294_v26 = vpop.f32.mrf.mxu1 }
 0x570   : > { %v18296_v40 = vpop.f32.mrf.mxu0 }
 0x571   : > { %v10978_v3 = vpop.f32.mrf.mxu1 }
 0x572   : > { %v10873_v54 = vpop.f32.mrf.mxu0 }
 0x573   : > { %v18298_v58 = vpop.f32.mrf.mxu1 }
 0x574   : > { %v18300_v56 = vpop.f32.mrf.mxu0 }
 0x575   : > { %v10981_v42 = vpop.f32.mrf.mxu1 }
 0x576   : > { %v10876_v61 = vpop.f32.mrf.mxu0 }
 0x578   : > { %v18302_v29 = vpop.f32.mrf.mxu1 }
 0x57a   : > { %v10986_v6 = vpop.f32.mrf.mxu1 }
 0x57b   : > { %v18304_v34 = vpop.f32.mrf.mxu0 }
 0x57c   : > { %v18306_v21 = vpop.f32.mrf.mxu1 }
 0x57d   : > { %v10881_v8 = vpop.f32.mrf.mxu0 }
 0x57e   : > { %v10989_v59 = vpop.f32.mrf.mxu1 }
 0x57f   : > { %v18308_v7 = vpop.f32.mrf.mxu0 }
 0x581   : > { %v10884_v16 = vpop.f32.mrf.mxu0 }
 0x583   : > { %v18310_v48 = vpop.f32.mrf.mxu1 }
 0x585   : > { %v10994_v37 = vpop.f32.mrf.mxu1  ;;  %v18312_v31 = vpop.f32.mrf.mxu0 }
 0x586   : > { %v10784_v37 = vadd.f32 %v18240_v32, %v18210_v13  ;;  %v10787_v13 = vadd.f32 %v18240_v32, %v18214_v60 }
 0x587   : > { %v18314_v43 = vpop.f32.mrf.mxu1  ;;  %v10889_v41 = vpop.f32.mrf.mxu0 }
 0x589   : > { %v10997_v5 = vpop.f32.mrf.mxu1  ;;  %v18316_v51 = vpop.f32.mrf.mxu0 }
 0x58b   : > { %v10892_v22 = vpop.f32.mrf.mxu0 }
 0x58d   : > { %v18318_v45 = vpop.f32.mrf.mxu0 }
 0x58e   : > { %v18320_v53 = vpop.f32.mrf.mxu1 }
 0x58f   : > { %v10897_v12 = vpop.f32.mrf.mxu0 }
 0x590   : > { %v11002_v52 = vpop.f32.mrf.mxu1 }
 0x591   : > { %v18322_v44 = vpop.f32.mrf.mxu0 }
 0x592   : > { %v18325_v30 = vpop.f32.mrf.mxu1 }
 0x593   : > { %v10900_v17 = vpop.f32.mrf.mxu0 }
 0x594   : > { %v11005_v3 = vpop.f32.mrf.mxu1 }
 0x595   : > { %v12462_v54 = vpop.f32.mrf.mxu0 }
 0x596   : > { %v18332_v42 = vpop.f32.mrf.mxu1  ;;  %v11122_v61 = vadd.f32 %v12462_v54, %v18256_v20  ;;  %v10961_v20 = vadd.f32 %v18278_v57, %v10784_v37  ;;  %v10964_v54 = vadd.f32 %v18282_v19, %v10787_v13  ;;  %v10792_v19 = vadd.f32 %v18240_v32, %v18216_v28 }
 0x597   : > { %v11113_v6 = vpop.f32.mrf.mxu0 }
 0x598   : > { %v11010_v8 = vpop.f32.mrf.mxu1  ;;  %11259 = vst.msk [vmem:[%s18330_s13 + $0x10] sm:$0xff] %vm11256_vm8, %v11122_v61  ;;  %v11114_v59 = vadd.f32 %v11113_v6, %v18246_v38  ;;  %v10800_v6 = vadd.f32 %v18240_v32, %v18221_v49  ;;  %v10803_v49 = vadd.f32 %v18240_v32, %v18223_v1  ;;  %v10816_v1 = vadd.f32 %v18240_v32, %v18229_v36 }
 0x599   : > { %v12463_v16 = vpop.f32.mrf.mxu0  ;;  %v10819_v36 = vadd.f32 %v18240_v32, %v18231_v25  ;;  %v10832_v25 = vadd.f32 %v18240_v32, %v18242_v0  ;;  %v10835_v0 = vadd.f32 %v18240_v32, %v18248_v18  ;;  %v10848_v18 = vadd.f32 %v18240_v32, %v18270_v50 }
 0x59a   : > { %v18340_v41 = vpop.f32.mrf.mxu1  ;;  %11257 = vst.msk [vmem:[%s18330_s13] sm:$0xff] %vm11256_vm8, %v11114_v59  ;;  %v11125_v5 = vadd.f32 %v12463_v16, %v18262_v10  ;;  %v10977_v16 = vadd.f32 %v18294_v26, %v10800_v6  ;;  %v10795_v26 = vadd.f32 %v18240_v32, %v18219_v46  ;;  %v10808_v46 = vadd.f32 %v18240_v32, %v18225_v62 }
 0x59b   : > { %v11116_v22 = vpop.f32.mrf.mxu0  ;;  %v10811_v62 = vadd.f32 %v18240_v32, %v18227_v47  ;;  %v10824_v47 = vadd.f32 %v18240_v32, %v18233_v27  ;;  %v10827_v27 = vadd.f32 %v18240_v32, %v18235_v2  ;;  %v10840_v2 = vadd.f32 %v18240_v32, %v18258_v55 }
 0x59c   : > { %v11013_v12 = vpop.f32.mrf.mxu1  ;;  %11260 = vst.msk [vmem:[%s18330_s13 + $0x18] sm:$0xff] %vm11256_vm8, %v11125_v5  ;;  %v11117_v38 = vadd.f32 %v11116_v22, %v18252_v63  ;;  %v10969_v22 = vadd.f32 %v18286_v11, %v10792_v19  ;;  %v10972_v11 = vadd.f32 %v18290_v39, %v10795_v26  ;;  %v10985_v39 = vadd.f32 %v18302_v29, %v10808_v46 }
 0x59d   : > { %v12466_v52 = vpop.f32.mrf.mxu0  ;;  %v10988_v29 = vadd.f32 %v18306_v21, %v10811_v62  ;;  %v11001_v21 = vadd.f32 %v18320_v53, %v10824_v47  ;;  %v11004_v53 = vadd.f32 %v18325_v30, %v10827_v27  ;;  %v10851_v50 = vadd.f32 %v18240_v32, %v18276_v35 }
 0x59e   : > { %v18351_v17 = vpop.f32.mrf.mxu1  ;;  %11258 = vst.msk [vmem:[%s18330_s13 + $0x8] sm:$0xff] %vm11256_vm8, %v11117_v38  ;;  %v11138_v3 = vadd.f32 %v12466_v52, %v10961_v20  ;;  %v10980_v38 = vadd.f32 %v18298_v58, %v10803_v49  ;;  %v10993_v58 = vadd.f32 %v18310_v48, %v10816_v1  ;;  %v10996_v48 = vadd.f32 %v18314_v43, %v10819_v36 }
 0x59f   : > { %v11129_v10 = vpop.f32.mrf.mxu0  ;;  %v11009_v43 = vadd.f32 %v18332_v42, %v10832_v25  ;;  %v11012_v42 = vadd.f32 %v18340_v41, %v10835_v0  ;;  %v11017_v30 = vadd.f32 %v18351_v17, %v10840_v2  ;;  %v10843_v55 = vadd.f32 %v18240_v32, %v18264_v4 }
 0x5a0   : > { %v11018_v57 = vpop.f32.mrf.mxu1  ;;  %11263 = vst.msk [vmem:[%s18330_s13 + $0x30] sm:$0xff] %vm11256_vm8, %v11138_v3  ;;  %v11130_v61 = vadd.f32 %v11129_v10, %v18268_v23  ;;  %v10864_v35 = vadd.f32 %v18240_v32, %v18288_v14  ;;  %v10856_v4 = vadd.f32 %v18240_v32, %v18280_v24  ;;  %v10867_v14 = vadd.f32 %v18240_v32, %v18292_v9 }
 0x5a1   : > { %v12467_v63 = vpop.f32.mrf.mxu0  ;;  %v10859_v24 = vadd.f32 %v18240_v32, %v18284_v33  ;;  %v10880_v9 = vadd.f32 %v18240_v32, %v18304_v34  ;;  %v10872_v33 = vadd.f32 %v18240_v32, %v18296_v40  ;;  %v10883_v34 = vadd.f32 %v18240_v32, %v18308_v7 }
 0x5a2   : > { %v18361_v60 = vpop.f32.mrf.mxu1  ;;  %11261 = vst.msk [vmem:[%s18330_s13 + $0x20] sm:$0xff] %vm11256_vm8, %v11130_v61  ;;  %v11141_v8 = vadd.f32 %v12467_v63, %v10964_v54  ;;  %v10875_v40 = vadd.f32 %v18240_v32, %v18300_v56 }
 0x5a3   : > { %v11132_v59 = vpop.f32.mrf.mxu0  ;;  %v11020_v17 = vadd.f32 %v18361_v60, %v10843_v55 }
 0x5a4   : > { %v11021_v37 = vpop.f32.mrf.mxu1  ;;  %11264 = vst.msk [vmem:[%s18330_s13 + $0x38] sm:$0xff] %vm11256_vm8, %v11141_v8  ;;  %v11133_v23 = vadd.f32 %v11132_v59, %v18274_v15 }
 0x5a5   : > { %v12470_v5 = vpop.f32.mrf.mxu0 }
 0x5a6   : > { %v18374_v20 = vpop.f32.mrf.mxu1  ;;  %11262 = vst.msk [vmem:[%s18330_s13 + $0x28] sm:$0xff] %vm11256_vm8, %v11133_v23  ;;  %v11154_v12 = vadd.f32 %v12470_v5, %v10977_v16 }
 0x5a7   : > { %v11145_v28 = vpop.f32.mrf.mxu0  ;;  %v11025_v41 = vadd.f32 %v18374_v20, %v10848_v18 }
 0x5a8   : > { %v11026_v15 = vpop.f32.mrf.mxu1  ;;  %11267 = vst.msk [vmem:[%s18330_s13 + $0x50] sm:$0xff] %vm11256_vm8, %v11154_v12  ;;  %v11146_v52 = vadd.f32 %v11145_v28, %v10969_v22 }
 0x5a9   : > { %v12471_v13 = vpop.f32.mrf.mxu0 }
 0x5aa   : > { %v18386_v3 = vpop.f32.mrf.mxu1  ;;  %11265 = vst.msk [vmem:[%s18330_s13 + $0x40] sm:$0xff] %vm11256_vm8, %v11146_v52  ;;  %v11157_v10 = vadd.f32 %v12471_v13, %v10980_v38 }
 0x5ab   : > { %v11148_v54 = vpop.f32.mrf.mxu0  ;;  %v11028_v20 = vadd.f32 %v18386_v3, %v10851_v50 }
 0x5ac   : > { %v11029_v57 = vpop.f32.mrf.mxu1  ;;  %11268 = vst.msk [vmem:[%s18330_s13 + $0x58] sm:$0xff] %vm11256_vm8, %v11157_v10  ;;  %v11149_v61 = vadd.f32 %v11148_v54, %v10972_v11 }
 0x5ad   : > { %v12474_v63 = vpop.f32.mrf.mxu0 }
 0x5ae   : > { %v18398_v6 = vpop.f32.mrf.mxu1  ;;  %11266 = vst.msk [vmem:[%s18330_s13 + $0x48] sm:$0xff] %vm11256_vm8, %v11149_v61  ;;  %v11170_v8 = vadd.f32 %v12474_v63, %v10993_v58 }
 0x5af   : > { %v11161_v59 = vpop.f32.mrf.mxu0  ;;  %v11033_v60 = vadd.f32 %v18398_v6, %v10856_v4 }
 0x5b0   : > { %v11034_v19 = vpop.f32.mrf.mxu1  ;;  %11271 = vst.msk [vmem:[%s18330_s13 + $0x70] sm:$0xff] %vm11256_vm8, %v11170_v8  ;;  %v11162_v16 = vadd.f32 %v11161_v59, %v10985_v39 }
 0x5b1   : > { %v12475_v37 = vpop.f32.mrf.mxu0 }
 0x5b2   : > { %v18410_v23 = vpop.f32.mrf.mxu1  ;;  %11269 = vst.msk [vmem:[%s18330_s13 + $0x60] sm:$0xff] %vm11256_vm8, %v11162_v16  ;;  %v11173_v5 = vadd.f32 %v12475_v37, %v10996_v48 }
 0x5b3   : > { %v11164_v49 = vpop.f32.mrf.mxu0  ;;  %v11036_v6 = vadd.f32 %v18410_v23, %v10859_v24 }
 0x5b4   : > { %v11037_v22 = vpop.f32.mrf.mxu1  ;;  %11272 = vst.msk [vmem:[%s18330_s13 + $0x78] sm:$0xff] %vm11256_vm8, %v11173_v5  ;;  %v11165_v12 = vadd.f32 %v11164_v49, %v10988_v29 }
 0x5b5   : > { %v12478_v28 = vpop.f32.mrf.mxu0 }
 0x5b6   : > { %v11040_v26 = vpop.f32.mrf.mxu1  ;;  %11270 = vst.msk [vmem:[%s18330_s13 + $0x68] sm:$0xff] %vm11256_vm8, %v11165_v12  ;;  %v11186_v38 = vadd.f32 %v12478_v28, %v11009_v43 }
 0x5b7   : > { %v11177_v15 = vpop.f32.mrf.mxu0  ;;  %v11041_v3 = vadd.f32 %v11040_v26, %v10864_v35 }
 0x5b8   : > { %v11042_v52 = vpop.f32.mrf.mxu1  ;;  %11275 = vst.msk [vmem:[%s18330_s13 + $0x90] sm:$0xff] %vm11256_vm8, %v11186_v38  ;;  %v11178_v13 = vadd.f32 %v11177_v15, %v11001_v21 }
 0x5b9   : > { %v12479_v1 = vpop.f32.mrf.mxu0 }
 0x5ba   : > { %v11043_v11 = vpop.f32.mrf.mxu1  ;;  %11273 = vst.msk [vmem:[%s18330_s13 + $0x80] sm:$0xff] %vm11256_vm8, %v11178_v13  ;;  %v11189_v10 = vadd.f32 %v12479_v1, %v11012_v42 }
 0x5bb   : > { %v11180_v54 = vpop.f32.mrf.mxu0  ;;  %v11044_v47 = vadd.f32 %v11043_v11, %v10867_v14 }
 0x5bc   : > { %v11045_v46 = vpop.f32.mrf.mxu1  ;;  %11276 = vst.msk [vmem:[%s18330_s13 + $0x98] sm:$0xff] %vm11256_vm8, %v11189_v10  ;;  %v11181_v58 = vadd.f32 %v11180_v54, %v11004_v53 }
 0x5bd   : > { %v12482_v57 = vpop.f32.mrf.mxu0 }
 0x5be   : > { %v11048_v61 = vpop.f32.mrf.mxu1  ;;  %11274 = vst.msk [vmem:[%s18330_s13 + $0x88] sm:$0xff] %vm11256_vm8, %v11181_v58  ;;  %v11202_v63 = vadd.f32 %v12482_v57, %v11025_v41  ;;  %v10888_v41 = vadd.f32 %v18240_v32, %v18312_v31  ;;  %v10896_v58 = vadd.f32 %v18240_v32, %v18318_v45  ;;  %v10891_v31 = vadd.f32 %v18240_v32, %v18316_v51 }
 0x5bf   : > { %v11193_v36 = vpop.f32.mrf.mxu0  ;;  %v11049_v23 = vadd.f32 %v11048_v61, %v10872_v33 }
 0x5c0   : > { %v11050_v39 = vpop.f32.mrf.mxu1  ;;  %11279 = vst.msk [vmem:[%s18330_s13 + $0xb0] sm:$0xff] %vm11256_vm8, %v11202_v63  ;;  %v11194_v8 = vadd.f32 %v11193_v36, %v11017_v30 }
 0x5c1   : > { %v12483_v59 = vpop.f32.mrf.mxu0 }
 0x5c2   : > { %v11051_v62 = vpop.f32.mrf.mxu1  ;;  %11277 = vst.msk [vmem:[%s18330_s13 + $0xa0] sm:$0xff] %vm11256_vm8, %v11194_v8  ;;  %v11205_v48 = vadd.f32 %v12483_v59, %v11028_v20  ;;  %v10899_v20 = vadd.f32 %v18240_v32, %v18322_v44 }
 0x5c3   : > { %v11196_v19 = vpop.f32.mrf.mxu0  ;;  %v11052_v10 = vadd.f32 %v11051_v62, %v10875_v40 }
 0x5c4   : > { %v11053_v16 = vpop.f32.mrf.mxu1  ;;  %11280 = vst.msk [vmem:[%s18330_s13 + $0xb8] sm:$0xff] %vm11256_vm8, %v11205_v48  ;;  %v11197_v37 = vadd.f32 %v11196_v19, %v11020_v17 }
 0x5c5   : > { %v12486_v25 = vpop.f32.mrf.mxu0 }
 0x5c6   : > { %v11056_v29 = vpop.f32.mrf.mxu1  ;;  %11278 = vst.msk [vmem:[%s18330_s13 + $0xa8] sm:$0xff] %vm11256_vm8, %v11197_v37  ;;  %v11218_v5 = vadd.f32 %v12486_v25, %v11041_v3 }
 0x5c7   : > { %v11209_v49 = vpop.f32.mrf.mxu0  ;;  %v11057_v26 = vadd.f32 %v11056_v29, %v10880_v9 }
 0x5c8   : > { %v11058_v43 = vpop.f32.mrf.mxu1  ;;  %11283 = vst.msk [vmem:[%s18330_s13 + $0xd0] sm:$0xff] %vm11256_vm8, %v11218_v5  ;;  %v11210_v22 = vadd.f32 %v11209_v49, %v11033_v60 }
 0x5c9   : > { %v12487_v12 = vpop.f32.mrf.mxu0 }
 0x5ca   : > { %v11059_v28 = vpop.f32.mrf.mxu1  ;;  %11281 = vst.msk [vmem:[%s18330_s13 + $0xc0] sm:$0xff] %vm11256_vm8, %v11210_v22  ;;  %v11221_v0 = vadd.f32 %v12487_v12, %v11044_v47 }
 0x5cb   : > { %v11212_v21 = vpop.f32.mrf.mxu0  ;;  %v11060_v1 = vadd.f32 %v11059_v28, %v10883_v34 }
 0x5cc   : > { %v11061_v38 = vpop.f32.mrf.mxu1  ;;  %11284 = vst.msk [vmem:[%s18330_s13 + $0xd8] sm:$0xff] %vm11256_vm8, %v11221_v0  ;;  %v11213_v15 = vadd.f32 %v11212_v21, %v11036_v6 }
 0x5cd   : > { %v12490_v27 = vpop.f32.mrf.mxu0 }
 0x5ce   : > { %v11064_v42 = vpop.f32.mrf.mxu1  ;;  %11282 = vst.msk [vmem:[%s18330_s13 + $0xc8] sm:$0xff] %vm11256_vm8, %v11213_v15  ;;  %v11234_v52 = vadd.f32 %v12490_v27, %v11057_v26 }
 0x5cf   : > { %v11225_v13 = vpop.f32.mrf.mxu0  ;;  %v11065_v50 = vadd.f32 %v11064_v42, %v10888_v41 }
 0x5d0   : > { %v11066_v18 = vpop.f32.mrf.mxu1  ;;  %11287 = vst.msk [vmem:[%s18330_s13 + $0xf0] sm:$0xff] %vm11256_vm8, %v11234_v52  ;;  %v11226_v53 = vadd.f32 %v11225_v13, %v11049_v23 }
 0x5d1   : > { %v12491_v11 = vpop.f32.mrf.mxu0 }
 0x5d2   : > { %v11067_v54 = vpop.f32.mrf.mxu1  ;;  %11285 = vst.msk [vmem:[%s18330_s13 + $0xe0] sm:$0xff] %vm11256_vm8, %v11226_v53  ;;  %v11237_v7 = vadd.f32 %v12491_v11, %v11060_v1 }
 0x5d3   : > { %v11228_v2 = vpop.f32.mrf.mxu0  ;;  %v11068_v8 = vadd.f32 %v11067_v54, %v10891_v31 }
 0x5d4   : > { %v11069_v46 = vpop.f32.mrf.mxu1  ;;  %11288 = vst.msk [vmem:[%s18330_s13 + $0xf8] sm:$0xff] %vm11256_vm8, %v11237_v7  ;;  %v11229_v56 = vadd.f32 %v11228_v2, %v11052_v10 }
 0x5d5   : > { %v12494_v57 = vpop.f32.mrf.mxu0 }
 0x5d6   : > { %v11072_v30 = vpop.f32.mrf.mxu1  ;;  %11286 = vst.msk [vmem:[%s18330_s13 + $0xe8] sm:$0xff] %vm11256_vm8, %v11229_v56 }
 0x5d7   : > { %v11073_v61 = vadd.f32 %v11072_v30, %v10896_v58  ;;  %v11241_v63 = vpop.f32.mrf.mxu0 }
 0x5d8   : > { %v11074_v36 = vpop.f32.mrf.mxu1  ;;  %v11242_v55 = vadd.f32 %v11241_v63, %v11065_v50 }
 0x5d9   : > { %v11250_v39 = vadd.f32 %v12494_v57, %v11073_v61  ;;  %v12495_v45 = vpop.f32.mrf.mxu0 }
 0x5da   : > { %v11075_v59 = vpop.f32.mrf.mxu1  ;;  %11289 = vst.msk [vmem:[%s18330_s13 + $0x100] sm:$0xff] %vm11256_vm8, %v11242_v55 }
 0x5db   : > { %v11076_v35 = vadd.f32 %v11075_v59, %v10899_v20  ;;  %11291 = vst.msk [vmem:[%s18330_s13 + $0x110] sm:$0xff] %vm11256_vm8, %v11250_v39  ;;  %v11244_v17 = vpop.f32.mrf.mxu0 }
 0x5dc   : > { %v11077_v62 = vpop.f32.mrf.mxu1  ;;  %v11245_v48 = vadd.f32 %v11244_v17, %v11068_v8 }
 0x5dd   : > { %v11253_v19 = vadd.f32 %v12495_v45, %v11076_v35 }
 0x5de   : > { %11290 = vst.msk [vmem:[%s18330_s13 + $0x108] sm:$0xff] %vm11256_vm8, %v11245_v48 }
 0x5df   : > { %11292 = vst.msk [vmem:[%s18330_s13 + $0x118] sm:$0xff] %vm11256_vm8, %v11253_v19 }
 0x5e0 PF: > { %s17_s24 = sadd.s32 1, %s13239_s24  }
 0x5e1   : > { %p14_p4 = scmp.ge.s32.totalorder %s17_s24, 4  }
 0x5e3   :  { %16 = sbr.rel (!%p14_p4) target bundleno = 1 (0x1), region = 78 }

</bundles_post_ra>
